<compile_context>
chip_gen: v7x
topology: tpu7x:2x2x1
jax: 0.10.0
libtpu: 0.0.40
codegen_flags: <defaults>
</compile_context>

<pallas_src>
import functools

import jax
import jax.numpy as jnp
from jax import lax
from jax.experimental import pallas as pl
from jax.experimental.pallas import tpu as pltpu

EPS = 1e-5


# ---------------------------------------------------------------------------
# Fused ResBlock kernel (single pallas_call, everything resident in VMEM)
# ---------------------------------------------------------------------------
def _resblock_kernel(x_ref, w1_ref, w2_ref, wd_ref, gb_ref, o_ref,
                     acc_ref, y1p_ref,
                     *, stride, n, ho, wo, cp, cop, eps, downsample):
    # x_ref : (S*S, N, Hph, Wph, cp)  phase-split, spatially padded, channel-padded input
    # w1_ref: (9, cp, cop)   w2_ref: (9, cop, cop)   wd_ref: (cp, cop)
    # gb_ref: (8, cop) rows = [g1, b1, g2, b2, gd, bd, 0, 0]
    # o_ref : (M, cop) lane-dense output (M = N*Ho*Wo)
    # acc_ref: (M, cop) f32 matmul accumulator scratch
    # y1p_ref: (N, Ho+2, Wo+2, cop) f32 scratch = conv1 output with zero halo for conv2
    m = n * ho * wo
    inv_m = 1.0 / m

    def batchnorm(y, g, b):
        # One-pass stats + single FMA.  All f32.  (Training-mode BN: biased variance.)
        s1 = jnp.sum(y, axis=0, keepdims=True)
        s2 = jnp.sum(y * y, axis=0, keepdims=True)
        mean = s1 * inv_m
        var = jnp.maximum(s2 * inv_m - mean * mean, 0.0)
        scale = g * lax.rsqrt(var + eps)          # EUP slot
        shift = b - mean * scale
        return y * scale + shift

    # ---- conv1: 3x3, stride=`stride`, pad=1  -> BN1 -> ReLU ----------------
    acc_ref[...] = jnp.zeros_like(acc_ref)
    for kh in range(3):
        for kw in range(3):
            phase = (kh % stride) * stride + (kw % stride)
            r0, c0 = kh // stride, kw // stride
            slab = x_ref[phase, :, pl.ds(r0, ho), pl.ds(c0, wo), :]
            acc_ref[...] += jnp.dot(slab.reshape(m, cp), w1_ref[kh * 3 + kw],
                                    preferred_element_type=jnp.float32)
    y1 = jnp.maximum(batchnorm(acc_ref[...], gb_ref[0:1], gb_ref[1:2]), 0.0)

    # Stage y1 with a zero halo so conv2's 9 taps are plain unit-stride slices.
    y1p_ref[...] = jnp.zeros_like(y1p_ref)
    y1p_ref[:, pl.ds(1, ho), pl.ds(1, wo), :] = y1.reshape(n, ho, wo, cop)

    # ---- conv2: 3x3, stride=1, pad=1 -> BN2 --------------------------------
    acc_ref[...] = jnp.zeros_like(acc_ref)
    for kh in range(3):
        for kw in range(3):
            slab = y1p_ref[:, pl.ds(kh, ho), pl.ds(kw, wo), :]
            acc_ref[...] += jnp.dot(slab.reshape(m, cop), w2_ref[kh * 3 + kw],
                                    preferred_element_type=jnp.float32)
    y2 = batchnorm(acc_ref[...], gb_ref[2:3], gb_ref[3:4])

    # ---- identity path (fused; no separate kernel, no HBM re-read) ---------
    if downsample:
        # x[:, ::2, ::2, :] lives in phase (1,1) == index 3 of the phase-split input.
        xs = x_ref[3, :, pl.ds(0, ho), pl.ds(0, wo), :].reshape(m, cp)
        ident = batchnorm(jnp.dot(xs, wd_ref[...],
                                  preferred_element_type=jnp.float32),
                          gb_ref[4:5], gb_ref[5:6])
    else:
        # Unpadded interior of the (single-phase) padded input.
        ident = x_ref[0, :, pl.ds(1, ho), pl.ds(1, wo), :].reshape(m, cp)

    o_ref[...] = jnp.maximum(y2 + ident, 0.0)


# ---------------------------------------------------------------------------
# Wrapper: channel padding, spatial halo, phase split, weight packing
# ---------------------------------------------------------------------------
def _round_up(x, m):
    return (x + m - 1) // m * m


def resblock_forward(x_nhwc, params, *, stride=1, downsample=False):
    N, H, W, Cin = x_nhwc.shape
    Cout = params["w1"].shape[0]
    if downsample:
        assert stride == 2, "downsample path implies stride=2 (as in the PyTorch module)"
    else:
        assert stride == 1 and Cin == Cout, (
            "without downsample the residual add requires stride=1 and Cin==Cout")
    assert H % stride == 0 and W % stride == 0

    Ho, Wo = H // stride, W // stride
    M = N * Ho * Wo
    cp = _round_up(max(Cin, 8), 128)     # lane-dense padded input channels
    cop = _round_up(max(Cout, 8), 128)   # lane-dense padded output channels

    # --- cheap XLA prep: channel pad, spatial halo pad, stride phase-split ---
    xpad = jnp.pad(x_nhwc, ((0, 0), (1, 1), (1, 1), (0, cp - Cin)))
    S = stride
    phases = [xpad[:, a::S, b::S, :] for a in range(S) for b in range(S)]
    hp = max(p.shape[1] for p in phases)
    wp = max(p.shape[2] for p in phases)
    phases = [jnp.pad(p, ((0, 0), (0, hp - p.shape[1]), (0, wp - p.shape[2]), (0, 0)))
              for p in phases]
    xph = jnp.stack(phases, axis=0)                       # (S*S, N, hp, wp, cp)

    def pack_w3x3(w, k_pad):
        cout_, cin_ = w.shape[0], w.shape[1]
        wk = jnp.transpose(w, (2, 3, 1, 0)).reshape(9, cin_, cout_)   # [kh*3+kw, cin, cout]
        return jnp.pad(wk, ((0, 0), (0, k_pad - cin_), (0, cop - cout_)))

    w1p = pack_w3x3(params["w1"], cp)                     # (9, cp,  cop)
    w2p = pack_w3x3(params["w2"], cop)                    # (9, cop, cop)
    if downsample:
        wd = jnp.transpose(params["wd"][:, :, 0, 0], (1, 0))          # (Cin, Cout)
        wdp = jnp.pad(wd, ((0, cp - Cin), (0, cop - Cout)))
    else:
        wdp = jnp.zeros((cp, cop), jnp.float32)

    def pad_vec(v):
        return jnp.pad(v, (0, cop - v.shape[0]))

    zrow = jnp.zeros((Cout,), jnp.float32)
    rows = [params["g1"], params["b1"], params["g2"], params["b2"]]
    rows += [params["gd"], params["bd"]] if downsample else [zrow, zrow]
    rows += [zrow, zrow]
    gb = jnp.stack([pad_vec(r) for r in rows], axis=0)    # (8, cop)

    vmem = pl.BlockSpec(memory_space=pltpu.MemorySpace.VMEM)
    kernel = functools.partial(
        _resblock_kernel, stride=stride, n=N, ho=Ho, wo=Wo,
        cp=cp, cop=cop, eps=EPS, downsample=downsample)

    out_full = pl.pallas_call(
        kernel,
        out_shape=jax.ShapeDtypeStruct((M, cop), jnp.float32),
        in_specs=[vmem] * 5,
        out_specs=vmem,
        scratch_shapes=[
            pltpu.VMEM((M, cop), jnp.float32),                 # matmul accumulator
            pltpu.VMEM((N, Ho + 2, Wo + 2, cop), jnp.float32), # y1 with zero halo
        ],
    )(xph, w1p, w2p, wdp, gb)

    return out_full[:, :Cout].reshape(N, Ho, Wo, Cout)


# ---------------------------------------------------------------------------
# Parameter init (matches PyTorch Conv2d kaiming_uniform(a=sqrt(5)) bounds, BN gamma=1/beta=0)
# ---------------------------------------------------------------------------
def init_resblock_params(key, in_channels, out_channels, downsample):
    k1, k2, k3 = jax.random.split(key, 3)

    def conv_w(k, cout, cin, kh, kw):
        bound = 1.0 / float(cin * kh * kw) ** 0.5
        return jax.random.uniform(k, (cout, cin, kh, kw), jnp.float32, -bound, bound)

    params = {
        "w1": conv_w(k1, out_channels, in_channels, 3, 3),
        "g1": jnp.ones((out_channels,), jnp.float32),
        "b1": jnp.zeros((out_channels,), jnp.float32),
        "w2": conv_w(k2, out_channels, out_channels, 3, 3),
        "g2": jnp.ones((out_channels,), jnp.float32),
        "b2": jnp.zeros((out_channels,), jnp.float32),
    }
    if downsample:
        params["wd"] = conv_w(k3, out_channels, in_channels, 1, 1)
        params["gd"] = jnp.ones((out_channels,), jnp.float32)
        params["bd"] = jnp.zeros((out_channels,), jnp.float32)
    return params


# ---------------------------------------------------------------------------
# Pure-JAX reference (training-mode BN, biased variance, eps=1e-5)
# ---------------------------------------------------------------------------
def _ref_conv(x, w_oihw, stride, pad):
    return lax.conv_general_dilated(
        x, jnp.transpose(w_oihw, (2, 3, 1, 0)), (stride, stride), pad,
        dimension_numbers=("NHWC", "HWIO", "NHWC"),
        precision=lax.Precision.HIGHEST)


def _ref_bn(y, g, b):
    mean = jnp.mean(y, axis=(0, 1, 2))
    var = jnp.mean(jnp.square(y - mean), axis=(0, 1, 2))
    return (y - mean) * lax.rsqrt(var + EPS) * g + b


def resblock_ref(x_nhwc, params, *, stride=1, downsample=False):
    y = _ref_bn(_ref_conv(x_nhwc, params["w1"], stride, [(1, 1), (1, 1)]),
                params["g1"], params["b1"])
    y = jnp.maximum(y, 0.0)
    y = _ref_bn(_ref_conv(y, params["w2"], 1, [(1, 1), (1, 1)]),
                params["g2"], params["b2"])
    identity = x_nhwc
    if downsample:
        identity = _ref_bn(_ref_conv(x_nhwc, params["wd"], 2, [(0, 0), (0, 0)]),
                           params["gd"], params["bd"])
    return jnp.maximum(y + identity, 0.0)


# ---------------------------------------------------------------------------
if __name__ == "__main__":
    key = jax.random.PRNGKey(0)
    kx, kp1, kp2 = jax.random.split(key, 3)

    # PyTorch-style NCHW input, small shapes.
    x_nchw = jax.random.normal(kx, (2, 4, 16, 16), jnp.float32)
    x_nhwc = jnp.transpose(x_nchw, (0, 2, 3, 1))

    fwd = jax.jit(resblock_forward, static_argnames=("stride", "downsample"))

    # Case 1: ResBlock(in=4, out=4, stride=1, downsample=False)
    params1 = init_resblock_params(kp1, 4, 4, downsample=False)
    out1 = jax.block_until_ready(fwd(x_nhwc, params1, stride=1, downsample=False))
    ref1 = resblock_ref(x_nhwc, params1, stride=1, downsample=False)
    assert out1.shape == (2, 16, 16, 4)
    assert jnp.allclose(out1, ref1, atol=1e-3, rtol=1e-3), \
        float(jnp.max(jnp.abs(out1 - ref1)))

    # Case 2: ResBlock(in=4, out=8, stride=2, downsample=True)
    params2 = init_resblock_params(kp2, 4, 8, downsample=True)
    out2 = jax.block_until_ready(fwd(x_nhwc, params2, stride=2, downsample=True))
    ref2 = resblock_ref(x_nhwc, params2, stride=2, downsample=True)
    assert out2.shape == (2, 8, 8, 8)
    assert jnp.allclose(out2, ref2, atol=1e-3, rtol=1e-3), \
        float(jnp.max(jnp.abs(out2 - ref2)))

    print("KERNEL_OK")
</pallas_src>

<mosaic_0001>
module attributes {stable_mosaic.version = 11 : i64} {
  func.func @_resblock_kernel(%arg0: memref<1x2x18x18x128xf32, #tpu.memory_space<vmem>>, %arg1: memref<9x128x128xf32, #tpu.memory_space<vmem>>, %arg2: memref<9x128x128xf32, #tpu.memory_space<vmem>>, %arg3: memref<128x128xf32, #tpu.memory_space<vmem>>, %arg4: memref<8x128xf32, #tpu.memory_space<vmem>>, %arg5: memref<512x128xf32, #tpu.memory_space<vmem>>, %arg6: memref<512x128xf32, #tpu.memory_space<vmem>>, %arg7: memref<2x18x18x128xf32, #tpu.memory_space<vmem>>) attributes {dimension_semantics = [], scalar_prefetch = 0 : i64, scratch_operands = 2 : i64, tpu.core_type = #tpu.core_type<tc>} {
    %cst = arith.constant 0.000000e+00 : f32
    %0 = vector.broadcast %cst : f32 to vector<512x128xf32>
    %c0 = arith.constant 0 : index
    %c0_0 = arith.constant 0 : index
    %1 = vector.load %arg6[%c0, %c0_0] : memref<512x128xf32, #tpu.memory_space<vmem>>, vector<512x128xf32>
    tpu.vector_store %arg6[%c0, %c0_0], %0 {strides = array<i32>} : memref<512x128xf32, #tpu.memory_space<vmem>>, vector<512x128xf32>,
    %c0_1 = arith.constant 0 : index
    %c0_2 = arith.constant 0 : index
    %c0_3 = arith.constant 0 : index
    %c0_4 = arith.constant 0 : index
    %c0_5 = arith.constant 0 : index
    %2 = vector.load %arg0[%c0_1, %c0_2, %c0_3, %c0_4, %c0_5] : memref<1x2x18x18x128xf32, #tpu.memory_space<vmem>>, vector<1x2x16x16x128xf32>
    %3 = vector.shape_cast %2 : vector<1x2x16x16x128xf32> to vector<2x16x16x128xf32>
    %c0_6 = arith.constant 0 : index
    %c0_7 = arith.constant 0 : index
    %4 = vector.load %arg6[%c0_6, %c0_7] : memref<512x128xf32, #tpu.memory_space<vmem>>, vector<512x128xf32>
    %5 = vector.shape_cast %3 : vector<2x16x16x128xf32> to vector<512x128xf32>
    %c0_8 = arith.constant 0 : index
    %c0_9 = arith.constant 0 : index
    %c0_10 = arith.constant 0 : index
    %6 = vector.load %arg1[%c0_8, %c0_9, %c0_10] : memref<9x128x128xf32, #tpu.memory_space<vmem>>, vector<1x128x128xf32>
    %7 = vector.shape_cast %6 : vector<1x128x128xf32> to vector<128x128xf32>
    %cst_11 = arith.constant dense<0.000000e+00> : vector<512x128xf32>
    %8 = tpu.matmul %5, %7, %cst_11 {dimension_numbers = #tpu.dot_dimension_numbers<[1], [0], [0], [1], [0, 0, 1, 1], [], []>} : vector<512x128xf32>, vector<128x128xf32>, vector<512x128xf32> -> vector<512x128xf32>
    %9 = arith.addf %4, %8 : vector<512x128xf32>
    %c0_12 = arith.constant 0 : index
    %c0_13 = arith.constant 0 : index
    %10 = vector.load %arg6[%c0_12, %c0_13] : memref<512x128xf32, #tpu.memory_space<vmem>>, vector<512x128xf32>
    tpu.vector_store %arg6[%c0_12, %c0_13], %9 {strides = array<i32>} : memref<512x128xf32, #tpu.memory_space<vmem>>, vector<512x128xf32>,
    %c0_14 = arith.constant 0 : index
    %c0_15 = arith.constant 0 : index
    %c0_16 = arith.constant 0 : index
    %c1 = arith.constant 1 : index
    %c0_17 = arith.constant 0 : index
    %11 = vector.load %arg0[%c0_14, %c0_15, %c0_16, %c1, %c0_17] : memref<1x2x18x18x128xf32, #tpu.memory_space<vmem>>, vector<1x2x16x16x128xf32>
    %12 = vector.shape_cast %11 : vector<1x2x16x16x128xf32> to vector<2x16x16x128xf32>
    %c0_18 = arith.constant 0 : index
    %c0_19 = arith.constant 0 : index
    %13 = vector.load %arg6[%c0_18, %c0_19] : memref<512x128xf32, #tpu.memory_space<vmem>>, vector<512x128xf32>
    %14 = vector.shape_cast %12 : vector<2x16x16x128xf32> to vector<512x128xf32>
    %c1_20 = arith.constant 1 : index
    %c0_21 = arith.constant 0 : index
    %c0_22 = arith.constant 0 : index
    %15 = vector.load %arg1[%c1_20, %c0_21, %c0_22] : memref<9x128x128xf32, #tpu.memory_space<vmem>>, vector<1x128x128xf32>
    %16 = vector.shape_cast %15 : vector<1x128x128xf32> to vector<128x128xf32>
    %cst_23 = arith.constant dense<0.000000e+00> : vector<512x128xf32>
    %17 = tpu.matmul %14, %16, %cst_23 {dimension_numbers = #tpu.dot_dimension_numbers<[1], [0], [0], [1], [0, 0, 1, 1], [], []>} : vector<512x128xf32>, vector<128x128xf32>, vector<512x128xf32> -> vector<512x128xf32>
    %18 = arith.addf %13, %17 : vector<512x128xf32>
    %c0_24 = arith.constant 0 : index
    %c0_25 = arith.constant 0 : index
    %19 = vector.load %arg6[%c0_24, %c0_25] : memref<512x128xf32, #tpu.memory_space<vmem>>, vector<512x128xf32>
    tpu.vector_store %arg6[%c0_24, %c0_25], %18 {strides = array<i32>} : memref<512x128xf32, #tpu.memory_space<vmem>>, vector<512x128xf32>,
    %c0_26 = arith.constant 0 : index
    %c0_27 = arith.constant 0 : index
    %c0_28 = arith.constant 0 : index
    %c2 = arith.constant 2 : index
    %c0_29 = arith.constant 0 : index
    %20 = vector.load %arg0[%c0_26, %c0_27, %c0_28, %c2, %c0_29] : memref<1x2x18x18x128xf32, #tpu.memory_space<vmem>>, vector<1x2x16x16x128xf32>
    %21 = vector.shape_cast %20 : vector<1x2x16x16x128xf32> to vector<2x16x16x128xf32>
    %c0_30 = arith.constant 0 : index
    %c0_31 = arith.constant 0 : index
    %22 = vector.load %arg6[%c0_30, %c0_31] : memref<512x128xf32, #tpu.memory_space<vmem>>, vector<512x128xf32>
    %23 = vector.shape_cast %21 : vector<2x16x16x128xf32> to vector<512x128xf32>
    %c2_32 = arith.constant 2 : index
    %c0_33 = arith.constant 0 : index
    %c0_34 = arith.constant 0 : index
    %24 = vector.load %arg1[%c2_32, %c0_33, %c0_34] : memref<9x128x128xf32, #tpu.memory_space<vmem>>, vector<1x128x128xf32>
    %25 = vector.shape_cast %24 : vector<1x128x128xf32> to vector<128x128xf32>
    %cst_35 = arith.constant dense<0.000000e+00> : vector<512x128xf32>
    %26 = tpu.matmul %23, %25, %cst_35 {dimension_numbers = #tpu.dot_dimension_numbers<[1], [0], [0], [1], [0, 0, 1, 1], [], []>} : vector<512x128xf32>, vector<128x128xf32>, vector<512x128xf32> -> vector<512x128xf32>
    %27 = arith.addf %22, %26 : vector<512x128xf32>
    %c0_36 = arith.constant 0 : index
    %c0_37 = arith.constant 0 : index
    %28 = vector.load %arg6[%c0_36, %c0_37] : memref<512x128xf32, #tpu.memory_space<vmem>>, vector<512x128xf32>
    tpu.vector_store %arg6[%c0_36, %c0_37], %27 {strides = array<i32>} : memref<512x128xf32, #tpu.memory_space<vmem>>, vector<512x128xf32>,
    %c0_38 = arith.constant 0 : index
    %c0_39 = arith.constant 0 : index
    %c1_40 = arith.constant 1 : index
    %c0_41 = arith.constant 0 : index
    %c0_42 = arith.constant 0 : index
    %29 = vector.load %arg0[%c0_38, %c0_39, %c1_40, %c0_41, %c0_42] : memref<1x2x18x18x128xf32, #tpu.memory_space<vmem>>, vector<1x2x16x16x128xf32>
    %30 = vector.shape_cast %29 : vector<1x2x16x16x128xf32> to vector<2x16x16x128xf32>
    %c0_43 = arith.constant 0 : index
    %c0_44 = arith.constant 0 : index
    %31 = vector.load %arg6[%c0_43, %c0_44] : memref<512x128xf32, #tpu.memory_space<vmem>>, vector<512x128xf32>
    %32 = vector.shape_cast %30 : vector<2x16x16x128xf32> to vector<512x128xf32>
    %c3 = arith.constant 3 : index
    %c0_45 = arith.constant 0 : index
    %c0_46 = arith.constant 0 : index
    %33 = vector.load %arg1[%c3, %c0_45, %c0_46] : memref<9x128x128xf32, #tpu.memory_space<vmem>>, vector<1x128x128xf32>
    %34 = vector.shape_cast %33 : vector<1x128x128xf32> to vector<128x128xf32>
    %cst_47 = arith.constant dense<0.000000e+00> : vector<512x128xf32>
    %35 = tpu.matmul %32, %34, %cst_47 {dimension_numbers = #tpu.dot_dimension_numbers<[1], [0], [0], [1], [0, 0, 1, 1], [], []>} : vector<512x128xf32>, vector<128x128xf32>, vector<512x128xf32> -> vector<512x128xf32>
    %36 = arith.addf %31, %35 : vector<512x128xf32>
    %c0_48 = arith.constant 0 : index
    %c0_49 = arith.constant 0 : index
    %37 = vector.load %arg6[%c0_48, %c0_49] : memref<512x128xf32, #tpu.memory_space<vmem>>, vector<512x128xf32>
    tpu.vector_store %arg6[%c0_48, %c0_49], %36 {strides = array<i32>} : memref<512x128xf32, #tpu.memory_space<vmem>>, vector<512x128xf32>,
    %c0_50 = arith.constant 0 : index
    %c0_51 = arith.constant 0 : index
    %c1_52 = arith.constant 1 : index
    %c1_53 = arith.constant 1 : index
    %c0_54 = arith.constant 0 : index
    %38 = vector.load %arg0[%c0_50, %c0_51, %c1_52, %c1_53, %c0_54] : memref<1x2x18x18x128xf32, #tpu.memory_space<vmem>>, vector<1x2x16x16x128xf32>
    %39 = vector.shape_cast %38 : vector<1x2x16x16x128xf32> to vector<2x16x16x128xf32>
    %c0_55 = arith.constant 0 : index
    %c0_56 = arith.constant 0 : index
    %40 = vector.load %arg6[%c0_55, %c0_56] : memref<512x128xf32, #tpu.memory_space<vmem>>, vector<512x128xf32>
    %41 = vector.shape_cast %39 : vector<2x16x16x128xf32> to vector<512x128xf32>
    %c4 = arith.constant 4 : index
    %c0_57 = arith.constant 0 : index
    %c0_58 = arith.constant 0 : index
    %42 = vector.load %arg1[%c4, %c0_57, %c0_58] : memref<9x128x128xf32, #tpu.memory_space<vmem>>, vector<1x128x128xf32>
    %43 = vector.shape_cast %42 : vector<1x128x128xf32> to vector<128x128xf32>
    %cst_59 = arith.constant dense<0.000000e+00> : vector<512x128xf32>
    %44 = tpu.matmul %41, %43, %cst_59 {dimension_numbers = #tpu.dot_dimension_numbers<[1], [0], [0], [1], [0, 0, 1, 1], [], []>} : vector<512x128xf32>, vector<128x128xf32>, vector<512x128xf32> -> vector<512x128xf32>
    %45 = arith.addf %40, %44 : vector<512x128xf32>
    %c0_60 = arith.constant 0 : index
    %c0_61 = arith.constant 0 : index
    %46 = vector.load %arg6[%c0_60, %c0_61] : memref<512x128xf32, #tpu.memory_space<vmem>>, vector<512x128xf32>
    tpu.vector_store %arg6[%c0_60, %c0_61], %45 {strides = array<i32>} : memref<512x128xf32, #tpu.memory_space<vmem>>, vector<512x128xf32>,
    %c0_62 = arith.constant 0 : index
    %c0_63 = arith.constant 0 : index
    %c1_64 = arith.constant 1 : index
    %c2_65 = arith.constant 2 : index
    %c0_66 = arith.constant 0 : index
    %47 = vector.load %arg0[%c0_62, %c0_63, %c1_64, %c2_65, %c0_66] : memref<1x2x18x18x128xf32, #tpu.memory_space<vmem>>, vector<1x2x16x16x128xf32>
    %48 = vector.shape_cast %47 : vector<1x2x16x16x128xf32> to vector<2x16x16x128xf32>
    %c0_67 = arith.constant 0 : index
    %c0_68 = arith.constant 0 : index
    %49 = vector.load %arg6[%c0_67, %c0_68] : memref<512x128xf32, #tpu.memory_space<vmem>>, vector<512x128xf32>
    %50 = vector.shape_cast %48 : vector<2x16x16x128xf32> to vector<512x128xf32>
    %c5 = arith.constant 5 : index
    %c0_69 = arith.constant 0 : index
    %c0_70 = arith.constant 0 : index
    %51 = vector.load %arg1[%c5, %c0_69, %c0_70] : memref<9x128x128xf32, #tpu.memory_space<vmem>>, vector<1x128x128xf32>
    %52 = vector.shape_cast %51 : vector<1x128x128xf32> to vector<128x128xf32>
    %cst_71 = arith.constant dense<0.000000e+00> : vector<512x128xf32>
    %53 = tpu.matmul %50, %52, %cst_71 {dimension_numbers = #tpu.dot_dimension_numbers<[1], [0], [0], [1], [0, 0, 1, 1], [], []>} : vector<512x128xf32>, vector<128x128xf32>, vector<512x128xf32> -> vector<512x128xf32>
    %54 = arith.addf %49, %53 : vector<512x128xf32>
    %c0_72 = arith.constant 0 : index
    %c0_73 = arith.constant 0 : index
    %55 = vector.load %arg6[%c0_72, %c0_73] : memref<512x128xf32, #tpu.memory_space<vmem>>, vector<512x128xf32>
    tpu.vector_store %arg6[%c0_72, %c0_73], %54 {strides = array<i32>} : memref<512x128xf32, #tpu.memory_space<vmem>>, vector<512x128xf32>,
    %c0_74 = arith.constant 0 : index
    %c0_75 = arith.constant 0 : index
    %c2_76 = arith.constant 2 : index
    %c0_77 = arith.constant 0 : index
    %c0_78 = arith.constant 0 : index
    %56 = vector.load %arg0[%c0_74, %c0_75, %c2_76, %c0_77, %c0_78] : memref<1x2x18x18x128xf32, #tpu.memory_space<vmem>>, vector<1x2x16x16x128xf32>
    %57 = vector.shape_cast %56 : vector<1x2x16x16x128xf32> to vector<2x16x16x128xf32>
    %c0_79 = arith.constant 0 : index
    %c0_80 = arith.constant 0 : index
    %58 = vector.load %arg6[%c0_79, %c0_80] : memref<512x128xf32, #tpu.memory_space<vmem>>, vector<512x128xf32>
    %59 = vector.shape_cast %57 : vector<2x16x16x128xf32> to vector<512x128xf32>
    %c6 = arith.constant 6 : index
    %c0_81 = arith.constant 0 : index
    %c0_82 = arith.constant 0 : index
    %60 = vector.load %arg1[%c6, %c0_81, %c0_82] : memref<9x128x128xf32, #tpu.memory_space<vmem>>, vector<1x128x128xf32>
    %61 = vector.shape_cast %60 : vector<1x128x128xf32> to vector<128x128xf32>
    %cst_83 = arith.constant dense<0.000000e+00> : vector<512x128xf32>
    %62 = tpu.matmul %59, %61, %cst_83 {dimension_numbers = #tpu.dot_dimension_numbers<[1], [0], [0], [1], [0, 0, 1, 1], [], []>} : vector<512x128xf32>, vector<128x128xf32>, vector<512x128xf32> -> vector<512x128xf32>
    %63 = arith.addf %58, %62 : vector<512x128xf32>
    %c0_84 = arith.constant 0 : index
    %c0_85 = arith.constant 0 : index
    %64 = vector.load %arg6[%c0_84, %c0_85] : memref<512x128xf32, #tpu.memory_space<vmem>>, vector<512x128xf32>
    tpu.vector_store %arg6[%c0_84, %c0_85], %63 {strides = array<i32>} : memref<512x128xf32, #tpu.memory_space<vmem>>, vector<512x128xf32>,
    %c0_86 = arith.constant 0 : index
    %c0_87 = arith.constant 0 : index
    %c2_88 = arith.constant 2 : index
    %c1_89 = arith.constant 1 : index
    %c0_90 = arith.constant 0 : index
    %65 = vector.load %arg0[%c0_86, %c0_87, %c2_88, %c1_89, %c0_90] : memref<1x2x18x18x128xf32, #tpu.memory_space<vmem>>, vector<1x2x16x16x128xf32>
    %66 = vector.shape_cast %65 : vector<1x2x16x16x128xf32> to vector<2x16x16x128xf32>
    %c0_91 = arith.constant 0 : index
    %c0_92 = arith.constant 0 : index
    %67 = vector.load %arg6[%c0_91, %c0_92] : memref<512x128xf32, #tpu.memory_space<vmem>>, vector<512x128xf32>
    %68 = vector.shape_cast %66 : vector<2x16x16x128xf32> to vector<512x128xf32>
    %c7 = arith.constant 7 : index
    %c0_93 = arith.constant 0 : index
    %c0_94 = arith.constant 0 : index
    %69 = vector.load %arg1[%c7, %c0_93, %c0_94] : memref<9x128x128xf32, #tpu.memory_space<vmem>>, vector<1x128x128xf32>
    %70 = vector.shape_cast %69 : vector<1x128x128xf32> to vector<128x128xf32>
    %cst_95 = arith.constant dense<0.000000e+00> : vector<512x128xf32>
    %71 = tpu.matmul %68, %70, %cst_95 {dimension_numbers = #tpu.dot_dimension_numbers<[1], [0], [0], [1], [0, 0, 1, 1], [], []>} : vector<512x128xf32>, vector<128x128xf32>, vector<512x128xf32> -> vector<512x128xf32>
    %72 = arith.addf %67, %71 : vector<512x128xf32>
    %c0_96 = arith.constant 0 : index
    %c0_97 = arith.constant 0 : index
    %73 = vector.load %arg6[%c0_96, %c0_97] : memref<512x128xf32, #tpu.memory_space<vmem>>, vector<512x128xf32>
    tpu.vector_store %arg6[%c0_96, %c0_97], %72 {strides = array<i32>} : memref<512x128xf32, #tpu.memory_space<vmem>>, vector<512x128xf32>,
    %c0_98 = arith.constant 0 : index
    %c0_99 = arith.constant 0 : index
    %c2_100 = arith.constant 2 : index
    %c2_101 = arith.constant 2 : index
    %c0_102 = arith.constant 0 : index
    %74 = vector.load %arg0[%c0_98, %c0_99, %c2_100, %c2_101, %c0_102] : memref<1x2x18x18x128xf32, #tpu.memory_space<vmem>>, vector<1x2x16x16x128xf32>
    %75 = vector.shape_cast %74 : vector<1x2x16x16x128xf32> to vector<2x16x16x128xf32>
    %c0_103 = arith.constant 0 : index
    %c0_104 = arith.constant 0 : index
    %76 = vector.load %arg6[%c0_103, %c0_104] : memref<512x128xf32, #tpu.memory_space<vmem>>, vector<512x128xf32>
    %77 = vector.shape_cast %75 : vector<2x16x16x128xf32> to vector<512x128xf32>
    %c8 = arith.constant 8 : index
    %c0_105 = arith.constant 0 : index
    %c0_106 = arith.constant 0 : index
    %78 = vector.load %arg1[%c8, %c0_105, %c0_106] : memref<9x128x128xf32, #tpu.memory_space<vmem>>, vector<1x128x128xf32>
    %79 = vector.shape_cast %78 : vector<1x128x128xf32> to vector<128x128xf32>
    %cst_107 = arith.constant dense<0.000000e+00> : vector<512x128xf32>
    %80 = tpu.matmul %77, %79, %cst_107 {dimension_numbers = #tpu.dot_dimension_numbers<[1], [0], [0], [1], [0, 0, 1, 1], [], []>} : vector<512x128xf32>, vector<128x128xf32>, vector<512x128xf32> -> vector<512x128xf32>
    %81 = arith.addf %76, %80 : vector<512x128xf32>
    %c0_108 = arith.constant 0 : index
    %c0_109 = arith.constant 0 : index
    %82 = vector.load %arg6[%c0_108, %c0_109] : memref<512x128xf32, #tpu.memory_space<vmem>>, vector<512x128xf32>
    tpu.vector_store %arg6[%c0_108, %c0_109], %81 {strides = array<i32>} : memref<512x128xf32, #tpu.memory_space<vmem>>, vector<512x128xf32>,
    %c0_110 = arith.constant 0 : index
    %c0_111 = arith.constant 0 : index
    %83 = vector.load %arg6[%c0_110, %c0_111] : memref<512x128xf32, #tpu.memory_space<vmem>>, vector<512x128xf32>
    %c0_112 = arith.constant 0 : index
    %c0_113 = arith.constant 0 : index
    %84 = vector.load %arg4[%c0_112, %c0_113] : memref<8x128xf32, #tpu.memory_space<vmem>>, vector<1x128xf32>
    %c1_114 = arith.constant 1 : index
    %c0_115 = arith.constant 0 : index
    %85 = vector.load %arg4[%c1_114, %c0_115] : memref<8x128xf32, #tpu.memory_space<vmem>>, vector<1x128xf32>
    %cst_116 = arith.constant dense<0.000000e+00> : vector<128xf32>
    %86 = vector.multi_reduction <add>, %83, %cst_116 [0] : vector<512x128xf32> to vector<128xf32>
    %87 = vector.shape_cast %86 : vector<128xf32> to vector<1x128xf32>
    %88 = arith.mulf %83, %83 : vector<512x128xf32>
    %cst_117 = arith.constant dense<0.000000e+00> : vector<128xf32>
    %89 = vector.multi_reduction <add>, %88, %cst_117 [0] : vector<512x128xf32> to vector<128xf32>
    %90 = vector.shape_cast %89 : vector<128xf32> to vector<1x128xf32>
    %cst_118 = arith.constant 0.001953125 : f32
    %91 = vector.broadcast %cst_118 : f32 to vector<1x128xf32>
    %92 = arith.mulf %87, %91 : vector<1x128xf32>
    %cst_119 = arith.constant 0.001953125 : f32
    %93 = vector.broadcast %cst_119 : f32 to vector<1x128xf32>
    %94 = arith.mulf %90, %93 : vector<1x128xf32>
    %95 = arith.mulf %92, %92 : vector<1x128xf32>
    %96 = arith.subf %94, %95 : vector<1x128xf32>
    %cst_120 = arith.constant 0.000000e+00 : f32
    %97 = vector.broadcast %cst_120 : f32 to vector<1x128xf32>
    %98 = arith.maximumf %96, %97 : vector<1x128xf32>
    %cst_121 = arith.constant 9.99999974E-6 : f32
    %99 = vector.broadcast %cst_121 : f32 to vector<1x128xf32>
    %100 = arith.addf %98, %99 : vector<1x128xf32>
    %101 = math.rsqrt %100 : vector<1x128xf32>
    %102 = arith.mulf %84, %101 : vector<1x128xf32>
    %103 = arith.mulf %92, %102 : vector<1x128xf32>
    %104 = arith.subf %85, %103 : vector<1x128xf32>
    %105 = vector.broadcast %102 : vector<1x128xf32> to vector<512x128xf32>
    %106 = arith.mulf %83, %105 : vector<512x128xf32>
    %107 = vector.broadcast %104 : vector<1x128xf32> to vector<512x128xf32>
    %108 = arith.addf %106, %107 : vector<512x128xf32>
    %cst_122 = arith.constant 0.000000e+00 : f32
    %109 = vector.broadcast %cst_122 : f32 to vector<512x128xf32>
    %110 = arith.maximumf %108, %109 : vector<512x128xf32>
    %cst_123 = arith.constant 0.000000e+00 : f32
    %111 = vector.broadcast %cst_123 : f32 to vector<2x18x18x128xf32>
    %c0_124 = arith.constant 0 : index
    %c0_125 = arith.constant 0 : index
    %c0_126 = arith.constant 0 : index
    %c0_127 = arith.constant 0 : index
    %112 = vector.load %arg7[%c0_124, %c0_125, %c0_126, %c0_127] : memref<2x18x18x128xf32, #tpu.memory_space<vmem>>, vector<2x18x18x128xf32>
    tpu.vector_store %arg7[%c0_124, %c0_125, %c0_126, %c0_127], %111 {strides = array<i32>} : memref<2x18x18x128xf32, #tpu.memory_space<vmem>>, vector<2x18x18x128xf32>,
    %113 = vector.shape_cast %110 : vector<512x128xf32> to vector<2x16x16x128xf32>
    %c0_128 = arith.constant 0 : index
    %c1_129 = arith.constant 1 : index
    %c1_130 = arith.constant 1 : index
    %c0_131 = arith.constant 0 : index
    %114 = vector.load %arg7[%c0_128, %c1_129, %c1_130, %c0_131] : memref<2x18x18x128xf32, #tpu.memory_space<vmem>>, vector<2x16x16x128xf32>
    tpu.vector_store %arg7[%c0_128, %c1_129, %c1_130, %c0_131], %113 {strides = array<i32>} : memref<2x18x18x128xf32, #tpu.memory_space<vmem>>, vector<2x16x16x128xf32>,
    %cst_132 = arith.constant 0.000000e+00 : f32
    %115 = vector.broadcast %cst_132 : f32 to vector<512x128xf32>
    %c0_133 = arith.constant 0 : index
    %c0_134 = arith.constant 0 : index
    %116 = vector.load %arg6[%c0_133, %c0_134] : memref<512x128xf32, #tpu.memory_space<vmem>>, vector<512x128xf32>
    tpu.vector_store %arg6[%c0_133, %c0_134], %115 {strides = array<i32>} : memref<512x128xf32, #tpu.memory_space<vmem>>, vector<512x128xf32>,
    %c0_135 = arith.constant 0 : index
    %c0_136 = arith.constant 0 : index
    %c0_137 = arith.constant 0 : index
    %c0_138 = arith.constant 0 : index
    %117 = vector.load %arg7[%c0_135, %c0_136, %c0_137, %c0_138] : memref<2x18x18x128xf32, #tpu.memory_space<vmem>>, vector<2x16x16x128xf32>
    %c0_139 = arith.constant 0 : index
    %c0_140 = arith.constant 0 : index
    %118 = vector.load %arg6[%c0_139, %c0_140] : memref<512x128xf32, #tpu.memory_space<vmem>>, vector<512x128xf32>
    %119 = vector.shape_cast %117 : vector<2x16x16x128xf32> to vector<512x128xf32>
    %c0_141 = arith.constant 0 : index
    %c0_142 = arith.constant 0 : index
    %c0_143 = arith.constant 0 : index
    %120 = vector.load %arg2[%c0_141, %c0_142, %c0_143] : memref<9x128x128xf32, #tpu.memory_space<vmem>>, vector<1x128x128xf32>
    %121 = vector.shape_cast %120 : vector<1x128x128xf32> to vector<128x128xf32>
    %cst_144 = arith.constant dense<0.000000e+00> : vector<512x128xf32>
    %122 = tpu.matmul %119, %121, %cst_144 {dimension_numbers = #tpu.dot_dimension_numbers<[1], [0], [0], [1], [0, 0, 1, 1], [], []>} : vector<512x128xf32>, vector<128x128xf32>, vector<512x128xf32> -> vector<512x128xf32>
    %123 = arith.addf %118, %122 : vector<512x128xf32>
    %c0_145 = arith.constant 0 : index
    %c0_146 = arith.constant 0 : index
    %124 = vector.load %arg6[%c0_145, %c0_146] : memref<512x128xf32, #tpu.memory_space<vmem>>, vector<512x128xf32>
    tpu.vector_store %arg6[%c0_145, %c0_146], %123 {strides = array<i32>} : memref<512x128xf32, #tpu.memory_space<vmem>>, vector<512x128xf32>,
    %c0_147 = arith.constant 0 : index
    %c0_148 = arith.constant 0 : index
    %c1_149 = arith.constant 1 : index
    %c0_150 = arith.constant 0 : index
    %125 = vector.load %arg7[%c0_147, %c0_148, %c1_149, %c0_150] : memref<2x18x18x128xf32, #tpu.memory_space<vmem>>, vector<2x16x16x128xf32>
    %c0_151 = arith.constant 0 : index
    %c0_152 = arith.constant 0 : index
    %126 = vector.load %arg6[%c0_151, %c0_152] : memref<512x128xf32, #tpu.memory_space<vmem>>, vector<512x128xf32>
    %127 = vector.shape_cast %125 : vector<2x16x16x128xf32> to vector<512x128xf32>
    %c1_153 = arith.constant 1 : index
    %c0_154 = arith.constant 0 : index
    %c0_155 = arith.constant 0 : index
    %128 = vector.load %arg2[%c1_153, %c0_154, %c0_155] : memref<9x128x128xf32, #tpu.memory_space<vmem>>, vector<1x128x128xf32>
    %129 = vector.shape_cast %128 : vector<1x128x128xf32> to vector<128x128xf32>
    %cst_156 = arith.constant dense<0.000000e+00> : vector<512x128xf32>
    %130 = tpu.matmul %127, %129, %cst_156 {dimension_numbers = #tpu.dot_dimension_numbers<[1], [0], [0], [1], [0, 0, 1, 1], [], []>} : vector<512x128xf32>, vector<128x128xf32>, vector<512x128xf32> -> vector<512x128xf32>
    %131 = arith.addf %126, %130 : vector<512x128xf32>
    %c0_157 = arith.constant 0 : index
    %c0_158 = arith.constant 0 : index
    %132 = vector.load %arg6[%c0_157, %c0_158] : memref<512x128xf32, #tpu.memory_space<vmem>>, vector<512x128xf32>
    tpu.vector_store %arg6[%c0_157, %c0_158], %131 {strides = array<i32>} : memref<512x128xf32, #tpu.memory_space<vmem>>, vector<512x128xf32>,
    %c0_159 = arith.constant 0 : index
    %c0_160 = arith.constant 0 : index
    %c2_161 = arith.constant 2 : index
    %c0_162 = arith.constant 0 : index
    %133 = vector.load %arg7[%c0_159, %c0_160, %c2_161, %c0_162] : memref<2x18x18x128xf32, #tpu.memory_space<vmem>>, vector<2x16x16x128xf32>
    %c0_163 = arith.constant 0 : index
    %c0_164 = arith.constant 0 : index
    %134 = vector.load %arg6[%c0_163, %c0_164] : memref<512x128xf32, #tpu.memory_space<vmem>>, vector<512x128xf32>
    %135 = vector.shape_cast %133 : vector<2x16x16x128xf32> to vector<512x128xf32>
    %c2_165 = arith.constant 2 : index
    %c0_166 = arith.constant 0 : index
    %c0_167 = arith.constant 0 : index
    %136 = vector.load %arg2[%c2_165, %c0_166, %c0_167] : memref<9x128x128xf32, #tpu.memory_space<vmem>>, vector<1x128x128xf32>
    %137 = vector.shape_cast %136 : vector<1x128x128xf32> to vector<128x128xf32>
    %cst_168 = arith.constant dense<0.000000e+00> : vector<512x128xf32>
    %138 = tpu.matmul %135, %137, %cst_168 {dimension_numbers = #tpu.dot_dimension_numbers<[1], [0], [0], [1], [0, 0, 1, 1], [], []>} : vector<512x128xf32>, vector<128x128xf32>, vector<512x128xf32> -> vector<512x128xf32>
    %139 = arith.addf %134, %138 : vector<512x128xf32>
    %c0_169 = arith.constant 0 : index
    %c0_170 = arith.constant 0 : index
    %140 = vector.load %arg6[%c0_169, %c0_170] : memref<512x128xf32, #tpu.memory_space<vmem>>, vector<512x128xf32>
    tpu.vector_store %arg6[%c0_169, %c0_170], %139 {strides = array<i32>} : memref<512x128xf32, #tpu.memory_space<vmem>>, vector<512x128xf32>,
    %c0_171 = arith.constant 0 : index
    %c1_172 = arith.constant 1 : index
    %c0_173 = arith.constant 0 : index
    %c0_174 = arith.constant 0 : index
    %141 = vector.load %arg7[%c0_171, %c1_172, %c0_173, %c0_174] : memref<2x18x18x128xf32, #tpu.memory_space<vmem>>, vector<2x16x16x128xf32>
    %c0_175 = arith.constant 0 : index
    %c0_176 = arith.constant 0 : index
    %142 = vector.load %arg6[%c0_175, %c0_176] : memref<512x128xf32, #tpu.memory_space<vmem>>, vector<512x128xf32>
    %143 = vector.shape_cast %141 : vector<2x16x16x128xf32> to vector<512x128xf32>
    %c3_177 = arith.constant 3 : index
    %c0_178 = arith.constant 0 : index
    %c0_179 = arith.constant 0 : index
    %144 = vector.load %arg2[%c3_177, %c0_178, %c0_179] : memref<9x128x128xf32, #tpu.memory_space<vmem>>, vector<1x128x128xf32>
    %145 = vector.shape_cast %144 : vector<1x128x128xf32> to vector<128x128xf32>
    %cst_180 = arith.constant dense<0.000000e+00> : vector<512x128xf32>
    %146 = tpu.matmul %143, %145, %cst_180 {dimension_numbers = #tpu.dot_dimension_numbers<[1], [0], [0], [1], [0, 0, 1, 1], [], []>} : vector<512x128xf32>, vector<128x128xf32>, vector<512x128xf32> -> vector<512x128xf32>
    %147 = arith.addf %142, %146 : vector<512x128xf32>
    %c0_181 = arith.constant 0 : index
    %c0_182 = arith.constant 0 : index
    %148 = vector.load %arg6[%c0_181, %c0_182] : memref<512x128xf32, #tpu.memory_space<vmem>>, vector<512x128xf32>
    tpu.vector_store %arg6[%c0_181, %c0_182], %147 {strides = array<i32>} : memref<512x128xf32, #tpu.memory_space<vmem>>, vector<512x128xf32>,
    %c0_183 = arith.constant 0 : index
    %c1_184 = arith.constant 1 : index
    %c1_185 = arith.constant 1 : index
    %c0_186 = arith.constant 0 : index
    %149 = vector.load %arg7[%c0_183, %c1_184, %c1_185, %c0_186] : memref<2x18x18x128xf32, #tpu.memory_space<vmem>>, vector<2x16x16x128xf32>
    %c0_187 = arith.constant 0 : index
    %c0_188 = arith.constant 0 : index
    %150 = vector.load %arg6[%c0_187, %c0_188] : memref<512x128xf32, #tpu.memory_space<vmem>>, vector<512x128xf32>
    %151 = vector.shape_cast %149 : vector<2x16x16x128xf32> to vector<512x128xf32>
    %c4_189 = arith.constant 4 : index
    %c0_190 = arith.constant 0 : index
    %c0_191 = arith.constant 0 : index
    %152 = vector.load %arg2[%c4_189, %c0_190, %c0_191] : memref<9x128x128xf32, #tpu.memory_space<vmem>>, vector<1x128x128xf32>
    %153 = vector.shape_cast %152 : vector<1x128x128xf32> to vector<128x128xf32>
    %cst_192 = arith.constant dense<0.000000e+00> : vector<512x128xf32>
    %154 = tpu.matmul %151, %153, %cst_192 {dimension_numbers = #tpu.dot_dimension_numbers<[1], [0], [0], [1], [0, 0, 1, 1], [], []>} : vector<512x128xf32>, vector<128x128xf32>, vector<512x128xf32> -> vector<512x128xf32>
    %155 = arith.addf %150, %154 : vector<512x128xf32>
    %c0_193 = arith.constant 0 : index
    %c0_194 = arith.constant 0 : index
    %156 = vector.load %arg6[%c0_193, %c0_194] : memref<512x128xf32, #tpu.memory_space<vmem>>, vector<512x128xf32>
    tpu.vector_store %arg6[%c0_193, %c0_194], %155 {strides = array<i32>} : memref<512x128xf32, #tpu.memory_space<vmem>>, vector<512x128xf32>,
    %c0_195 = arith.constant 0 : index
    %c1_196 = arith.constant 1 : index
    %c2_197 = arith.constant 2 : index
    %c0_198 = arith.constant 0 : index
    %157 = vector.load %arg7[%c0_195, %c1_196, %c2_197, %c0_198] : memref<2x18x18x128xf32, #tpu.memory_space<vmem>>, vector<2x16x16x128xf32>
    %c0_199 = arith.constant 0 : index
    %c0_200 = arith.constant 0 : index
    %158 = vector.load %arg6[%c0_199, %c0_200] : memref<512x128xf32, #tpu.memory_space<vmem>>, vector<512x128xf32>
    %159 = vector.shape_cast %157 : vector<2x16x16x128xf32> to vector<512x128xf32>
    %c5_201 = arith.constant 5 : index
    %c0_202 = arith.constant 0 : index
    %c0_203 = arith.constant 0 : index
    %160 = vector.load %arg2[%c5_201, %c0_202, %c0_203] : memref<9x128x128xf32, #tpu.memory_space<vmem>>, vector<1x128x128xf32>
    %161 = vector.shape_cast %160 : vector<1x128x128xf32> to vector<128x128xf32>
    %cst_204 = arith.constant dense<0.000000e+00> : vector<512x128xf32>
    %162 = tpu.matmul %159, %161, %cst_204 {dimension_numbers = #tpu.dot_dimension_numbers<[1], [0], [0], [1], [0, 0, 1, 1], [], []>} : vector<512x128xf32>, vector<128x128xf32>, vector<512x128xf32> -> vector<512x128xf32>
    %163 = arith.addf %158, %162 : vector<512x128xf32>
    %c0_205 = arith.constant 0 : index
    %c0_206 = arith.constant 0 : index
    %164 = vector.load %arg6[%c0_205, %c0_206] : memref<512x128xf32, #tpu.memory_space<vmem>>, vector<512x128xf32>
    tpu.vector_store %arg6[%c0_205, %c0_206], %163 {strides = array<i32>} : memref<512x128xf32, #tpu.memory_space<vmem>>, vector<512x128xf32>,
    %c0_207 = arith.constant 0 : index
    %c2_208 = arith.constant 2 : index
    %c0_209 = arith.constant 0 : index
    %c0_210 = arith.constant 0 : index
    %165 = vector.load %arg7[%c0_207, %c2_208, %c0_209, %c0_210] : memref<2x18x18x128xf32, #tpu.memory_space<vmem>>, vector<2x16x16x128xf32>
    %c0_211 = arith.constant 0 : index
    %c0_212 = arith.constant 0 : index
    %166 = vector.load %arg6[%c0_211, %c0_212] : memref<512x128xf32, #tpu.memory_space<vmem>>, vector<512x128xf32>
    %167 = vector.shape_cast %165 : vector<2x16x16x128xf32> to vector<512x128xf32>
    %c6_213 = arith.constant 6 : index
    %c0_214 = arith.constant 0 : index
    %c0_215 = arith.constant 0 : index
    %168 = vector.load %arg2[%c6_213, %c0_214, %c0_215] : memref<9x128x128xf32, #tpu.memory_space<vmem>>, vector<1x128x128xf32>
    %169 = vector.shape_cast %168 : vector<1x128x128xf32> to vector<128x128xf32>
    %cst_216 = arith.constant dense<0.000000e+00> : vector<512x128xf32>
    %170 = tpu.matmul %167, %169, %cst_216 {dimension_numbers = #tpu.dot_dimension_numbers<[1], [0], [0], [1], [0, 0, 1, 1], [], []>} : vector<512x128xf32>, vector<128x128xf32>, vector<512x128xf32> -> vector<512x128xf32>
    %171 = arith.addf %166, %170 : vector<512x128xf32>
    %c0_217 = arith.constant 0 : index
    %c0_218 = arith.constant 0 : index
    %172 = vector.load %arg6[%c0_217, %c0_218] : memref<512x128xf32, #tpu.memory_space<vmem>>, vector<512x128xf32>
    tpu.vector_store %arg6[%c0_217, %c0_218], %171 {strides = array<i32>} : memref<512x128xf32, #tpu.memory_space<vmem>>, vector<512x128xf32>,
    %c0_219 = arith.constant 0 : index
    %c2_220 = arith.constant 2 : index
    %c1_221 = arith.constant 1 : index
    %c0_222 = arith.constant 0 : index
    %173 = vector.load %arg7[%c0_219, %c2_220, %c1_221, %c0_222] : memref<2x18x18x128xf32, #tpu.memory_space<vmem>>, vector<2x16x16x128xf32>
    %c0_223 = arith.constant 0 : index
    %c0_224 = arith.constant 0 : index
    %174 = vector.load %arg6[%c0_223, %c0_224] : memref<512x128xf32, #tpu.memory_space<vmem>>, vector<512x128xf32>
    %175 = vector.shape_cast %173 : vector<2x16x16x128xf32> to vector<512x128xf32>
    %c7_225 = arith.constant 7 : index
    %c0_226 = arith.constant 0 : index
    %c0_227 = arith.constant 0 : index
    %176 = vector.load %arg2[%c7_225, %c0_226, %c0_227] : memref<9x128x128xf32, #tpu.memory_space<vmem>>, vector<1x128x128xf32>
    %177 = vector.shape_cast %176 : vector<1x128x128xf32> to vector<128x128xf32>
    %cst_228 = arith.constant dense<0.000000e+00> : vector<512x128xf32>
    %178 = tpu.matmul %175, %177, %cst_228 {dimension_numbers = #tpu.dot_dimension_numbers<[1], [0], [0], [1], [0, 0, 1, 1], [], []>} : vector<512x128xf32>, vector<128x128xf32>, vector<512x128xf32> -> vector<512x128xf32>
    %179 = arith.addf %174, %178 : vector<512x128xf32>
    %c0_229 = arith.constant 0 : index
    %c0_230 = arith.constant 0 : index
    %180 = vector.load %arg6[%c0_229, %c0_230] : memref<512x128xf32, #tpu.memory_space<vmem>>, vector<512x128xf32>
    tpu.vector_store %arg6[%c0_229, %c0_230], %179 {strides = array<i32>} : memref<512x128xf32, #tpu.memory_space<vmem>>, vector<512x128xf32>,
    %c0_231 = arith.constant 0 : index
    %c2_232 = arith.constant 2 : index
    %c2_233 = arith.constant 2 : index
    %c0_234 = arith.constant 0 : index
    %181 = vector.load %arg7[%c0_231, %c2_232, %c2_233, %c0_234] : memref<2x18x18x128xf32, #tpu.memory_space<vmem>>, vector<2x16x16x128xf32>
    %c0_235 = arith.constant 0 : index
    %c0_236 = arith.constant 0 : index
    %182 = vector.load %arg6[%c0_235, %c0_236] : memref<512x128xf32, #tpu.memory_space<vmem>>, vector<512x128xf32>
    %183 = vector.shape_cast %181 : vector<2x16x16x128xf32> to vector<512x128xf32>
    %c8_237 = arith.constant 8 : index
    %c0_238 = arith.constant 0 : index
    %c0_239 = arith.constant 0 : index
    %184 = vector.load %arg2[%c8_237, %c0_238, %c0_239] : memref<9x128x128xf32, #tpu.memory_space<vmem>>, vector<1x128x128xf32>
    %185 = vector.shape_cast %184 : vector<1x128x128xf32> to vector<128x128xf32>
    %cst_240 = arith.constant dense<0.000000e+00> : vector<512x128xf32>
    %186 = tpu.matmul %183, %185, %cst_240 {dimension_numbers = #tpu.dot_dimension_numbers<[1], [0], [0], [1], [0, 0, 1, 1], [], []>} : vector<512x128xf32>, vector<128x128xf32>, vector<512x128xf32> -> vector<512x128xf32>
    %187 = arith.addf %182, %186 : vector<512x128xf32>
    %c0_241 = arith.constant 0 : index
    %c0_242 = arith.constant 0 : index
    %188 = vector.load %arg6[%c0_241, %c0_242] : memref<512x128xf32, #tpu.memory_space<vmem>>, vector<512x128xf32>
    tpu.vector_store %arg6[%c0_241, %c0_242], %187 {strides = array<i32>} : memref<512x128xf32, #tpu.memory_space<vmem>>, vector<512x128xf32>,
    %c0_243 = arith.constant 0 : index
    %c0_244 = arith.constant 0 : index
    %189 = vector.load %arg6[%c0_243, %c0_244] : memref<512x128xf32, #tpu.memory_space<vmem>>, vector<512x128xf32>
    %c2_245 = arith.constant 2 : index
    %c0_246 = arith.constant 0 : index
    %190 = vector.load %arg4[%c2_245, %c0_246] : memref<8x128xf32, #tpu.memory_space<vmem>>, vector<1x128xf32>
    %c3_247 = arith.constant 3 : index
    %c0_248 = arith.constant 0 : index
    %191 = vector.load %arg4[%c3_247, %c0_248] : memref<8x128xf32, #tpu.memory_space<vmem>>, vector<1x128xf32>
    %cst_249 = arith.constant dense<0.000000e+00> : vector<128xf32>
    %192 = vector.multi_reduction <add>, %189, %cst_249 [0] : vector<512x128xf32> to vector<128xf32>
    %193 = vector.shape_cast %192 : vector<128xf32> to vector<1x128xf32>
    %194 = arith.mulf %189, %189 : vector<512x128xf32>
    %cst_250 = arith.constant dense<0.000000e+00> : vector<128xf32>
    %195 = vector.multi_reduction <add>, %194, %cst_250 [0] : vector<512x128xf32> to vector<128xf32>
    %196 = vector.shape_cast %195 : vector<128xf32> to vector<1x128xf32>
    %cst_251 = arith.constant 0.001953125 : f32
    %197 = vector.broadcast %cst_251 : f32 to vector<1x128xf32>
    %198 = arith.mulf %193, %197 : vector<1x128xf32>
    %cst_252 = arith.constant 0.001953125 : f32
    %199 = vector.broadcast %cst_252 : f32 to vector<1x128xf32>
    %200 = arith.mulf %196, %199 : vector<1x128xf32>
    %201 = arith.mulf %198, %198 : vector<1x128xf32>
    %202 = arith.subf %200, %201 : vector<1x128xf32>
    %cst_253 = arith.constant 0.000000e+00 : f32
    %203 = vector.broadcast %cst_253 : f32 to vector<1x128xf32>
    %204 = arith.maximumf %202, %203 : vector<1x128xf32>
    %cst_254 = arith.constant 9.99999974E-6 : f32
    %205 = vector.broadcast %cst_254 : f32 to vector<1x128xf32>
    %206 = arith.addf %204, %205 : vector<1x128xf32>
    %207 = math.rsqrt %206 : vector<1x128xf32>
    %208 = arith.mulf %190, %207 : vector<1x128xf32>
    %209 = arith.mulf %198, %208 : vector<1x128xf32>
    %210 = arith.subf %191, %209 : vector<1x128xf32>
    %211 = vector.broadcast %208 : vector<1x128xf32> to vector<512x128xf32>
    %212 = arith.mulf %189, %211 : vector<512x128xf32>
    %213 = vector.broadcast %210 : vector<1x128xf32> to vector<512x128xf32>
    %214 = arith.addf %212, %213 : vector<512x128xf32>
    %c0_255 = arith.constant 0 : index
    %c0_256 = arith.constant 0 : index
    %c1_257 = arith.constant 1 : index
    %c1_258 = arith.constant 1 : index
    %c0_259 = arith.constant 0 : index
    %215 = vector.load %arg0[%c0_255, %c0_256, %c1_257, %c1_258, %c0_259] : memref<1x2x18x18x128xf32, #tpu.memory_space<vmem>>, vector<1x2x16x16x128xf32>
    %216 = vector.shape_cast %215 : vector<1x2x16x16x128xf32> to vector<2x16x16x128xf32>
    %217 = vector.shape_cast %216 : vector<2x16x16x128xf32> to vector<512x128xf32>
    %218 = arith.addf %214, %217 : vector<512x128xf32>
    %cst_260 = arith.constant 0.000000e+00 : f32
    %219 = vector.broadcast %cst_260 : f32 to vector<512x128xf32>
    %220 = arith.maximumf %218, %219 : vector<512x128xf32>
    %c0_261 = arith.constant 0 : index
    %c0_262 = arith.constant 0 : index
    %221 = vector.load %arg5[%c0_261, %c0_262] : memref<512x128xf32, #tpu.memory_space<vmem>>, vector<512x128xf32>
    tpu.vector_store %arg5[%c0_261, %c0_262], %220 {strides = array<i32>} : memref<512x128xf32, #tpu.memory_space<vmem>>, vector<512x128xf32>,
    return
  }
}

</mosaic_0001>

<bundles_post_ra>
// kernel: resblock_forward.1
= control target key start
LH: loop header
LB: loop body
LE: loop exit
PB: predicated region body
PF: predicated region fallthrough
CT: control target
= control target key end

     0   :  { %s25738_s1 = inlined_call_operand.vmem [shape: f32[9,128,128], index: 1, kind: input, shape index: {}]   ;;  %s25739_s3 = inlined_call_operand.vmem [shape: f32[128,128], index: 3, kind: input, shape index: {}]   ;;  %s25740_s0 = inlined_call_operand.vmem [shape: f32[1,2,18,18,128], index: 0, kind: input, shape index: {}]   ;;  %s25741_s2 = inlined_call_operand.vmem [shape: f32[9,128,128], index: 2, kind: input, shape index: {}]   ;;  %s25742_s4 = inlined_call_operand.vmem [shape: f32[8,128], index: 4, kind: input, shape index: {}]   ;;  %s25743_s5 = inlined_call_operand.vmem [shape: f32[512,128], index: 5, kind: output, shape index: {}]  }
   0x1   :  { %v212_v0 = vld [vmem:[%s25738_s1] sm:$0xff]  ;;  %v213_v1 = vld [vmem:[%s25738_s1 + $0x8] sm:$0xff]  ;;  %v214_v2 = vld [vmem:[%s25738_s1 + $0x10] sm:$0xff] }
   0x2   :  { %v17766_v3 = vpack.c.bf16 %v213_v1, %v212_v0  ;;  %v215_v4 = vld [vmem:[%s25738_s1 + $0x18] sm:$0xff]  ;;  %v216_v6 = vld [vmem:[%s25738_s1 + $0x20] sm:$0xff]  ;;  %v217_v7 = vld [vmem:[%s25738_s1 + $0x28] sm:$0xff] }
   0x3   :  { %v17770_v5 = vpack.c.bf16 %v215_v4, %v214_v2  ;;  %v17774_v8 = vpack.c.bf16 %v217_v7, %v216_v6  ;;  %v84_v9 = vld [vmem:[%s25740_s0] sm:$0xff]  ;;  %v218_v10 = vld [vmem:[%s25738_s1 + $0x30] sm:$0xff]  ;;  %v219_v11 = vld [vmem:[%s25738_s1 + $0x38] sm:$0xff] }
   0x4   :  { %17767 = vmatprep.subr.bf16.mxu0 %v17766_v3  ;;  %15494 = vmatprep.mubr.f32.mxu0 %v84_v9  ;;  %v17778_v12 = vpack.c.bf16 %v219_v11, %v218_v10  ;;  %v220_v13 = vld [vmem:[%s25738_s1 + $0x40] sm:$0xff]  ;;  %v221_v14 = vld [vmem:[%s25738_s1 + $0x48] sm:$0xff]  ;;  %v222_v16 = vld [vmem:[%s25738_s1 + $0x50] sm:$0xff] }
   0x5   :  { %17769 = vmatpush3.bf16.msra.mxu0 %v17766_v3  ;;  %v17782_v15 = vpack.c.bf16 %v221_v14, %v220_v13  ;;  %v223_v17 = vld [vmem:[%s25738_s1 + $0x58] sm:$0xff]  ;;  %v224_v19 = vld [vmem:[%s25738_s1 + $0x60] sm:$0xff]  ;;  %v225_v20 = vld [vmem:[%s25738_s1 + $0x68] sm:$0xff] }
   0x6   :  { %17771 = vmatprep.subr.bf16.mxu0 %v17770_v5  ;;  %v17786_v18 = vpack.c.bf16 %v223_v17, %v222_v16  ;;  %v17790_v21 = vpack.c.bf16 %v225_v20, %v224_v19  ;;  %v226_v22 = vld [vmem:[%s25738_s1 + $0x70] sm:$0xff]  ;;  %v227_v23 = vld [vmem:[%s25738_s1 + $0x78] sm:$0xff]  ;;  %v13318_v25 = vld [vmem:[%s25738_s1 + $0x80] sm:$0xff] }
   0x7   :  { %v17794_v24 = vpack.c.bf16 %v227_v23, %v226_v22  ;;  %v13319_v26 = vld [vmem:[%s25738_s1 + $0x88] sm:$0xff]  ;;  %v13320_v28 = vld [vmem:[%s25738_s1 + $0x90] sm:$0xff]  ;;  %v13321_v29 = vld [vmem:[%s25738_s1 + $0x98] sm:$0xff] }
   0x8   :  { %v17798_v27 = vpack.c.bf16 %v13319_v26, %v13318_v25  ;;  %v85_v30 = vld [vmem:[%s25740_s0 + $0x8] sm:$0xff]  ;;  %v19475_v31 = vld [vmem:[%s25740_s0 + $0x18] sm:$0xff]  ;;  %v17802_v32 = vpack.c.bf16 %v13321_v29, %v13320_v28  ;;  %v13322_v33 = vld [vmem:[%s25738_s1 + $0xa0] sm:$0xff] }
   0x9   :  { %17773 = vmatpush3.bf16.msra.mxu0 %v17770_v5  ;;  %v13323_v34 = vld [vmem:[%s25738_s1 + $0xa8] sm:$0xff]  ;;  %v19487_v35 = vld [vmem:[%s25740_s0 + $0x20] sm:$0xff]  ;;  %v19492_v36 = vld [vmem:[%s25740_s0 + $0x30] sm:$0xff] }
   0xa   :  { %17775 = vmatprep.subr.bf16.mxu0 %v17774_v8  ;;  %v17806_v37 = vpack.c.bf16 %v13323_v34, %v13322_v33  ;;  %v13324_v38 = vld [vmem:[%s25738_s1 + $0xb0] sm:$0xff]  ;;  %v13325_v39 = vld [vmem:[%s25738_s1 + $0xb8] sm:$0xff]  ;;  %v19510_v41 = vld [vmem:[%s25740_s0 + $0x48] sm:$0xff] }
   0xb   :  { %v19505_v40 = vld [vmem:[%s25740_s0 + $0x38] sm:$0xff]  ;;  %v17810_v42 = vpack.c.bf16 %v13325_v39, %v13324_v38  ;;  %v13326_v43 = vld [vmem:[%s25738_s1 + $0xc0] sm:$0xff]  ;;  %v13327_v44 = vld [vmem:[%s25738_s1 + $0xc8] sm:$0xff] }
   0xc   :  { %v19523_v45 = vld [vmem:[%s25740_s0 + $0x50] sm:$0xff]  ;;  %v19528_v46 = vld [vmem:[%s25740_s0 + $0x60] sm:$0xff]  ;;  %v17814_v47 = vpack.c.bf16 %v13327_v44, %v13326_v43  ;;  %v13329_v49 = vld [vmem:[%s25738_s1 + $0xd8] sm:$0xff] }
   0xd   :  { %17777 = vmatpush3.bf16.msra.mxu0 %v17774_v8  ;;  %v13328_v48 = vld [vmem:[%s25738_s1 + $0xd0] sm:$0xff]  ;;  %v19541_v50 = vld [vmem:[%s25740_s0 + $0x68] sm:$0xff]  ;;  %v19546_v51 = vld [vmem:[%s25740_s0 + $0x78] sm:$0xff] }
   0xe   :  { %17779 = vmatprep.subr.bf16.mxu0 %v17778_v12  ;;  %v17818_v52 = vpack.c.bf16 %v13329_v49, %v13328_v48  ;;  %v13330_v53 = vld [vmem:[%s25738_s1 + $0xe0] sm:$0xff]  ;;  %v13331_v54 = vld [vmem:[%s25738_s1 + $0xe8] sm:$0xff]  ;;  %v19564_v56 = vld [vmem:[%s25740_s0 + $0x90] sm:$0xff] }
   0xf   :  { %v19559_v55 = vld [vmem:[%s25740_s0 + $0x80] sm:$0xff]  ;;  %v17822_v57 = vpack.c.bf16 %v13331_v54, %v13330_v53  ;;  %v13332_v58 = vld [vmem:[%s25738_s1 + $0xf0] sm:$0xff]  ;;  %v13333_v59 = vld [vmem:[%s25738_s1 + $0xf8] sm:$0xff] }
  0x10   :  { %v19577_v60 = vld [vmem:[%s25740_s0 + $0x98] sm:$0xff]  ;;  %v19582_v61 = vld [vmem:[%s25740_s0 + $0xa8] sm:$0xff]  ;;  %v17826_v62 = vpack.c.bf16 %v13333_v59, %v13332_v58  ;;  %v13334_v63 = vld [vmem:[%s25738_s1 + $0x100] sm:$0xff] }
  0x11   :  { %17781 = vmatpush3.bf16.msra.mxu0 %v17778_v12  ;;  %v13335_v0 = vld [vmem:[%s25738_s1 + $0x108] sm:$0xff]  ;;  %v19595_v1 = vld [vmem:[%s25740_s0 + $0xb0] sm:$0xff]  ;;  %v19600_v2 = vld [vmem:[%s25740_s0 + $0xc0] sm:$0xff] }
  0x12   :  { %17783 = vmatprep.subr.bf16.mxu0 %v17782_v15  ;;  %v19602_v3 = vpack.c.bf16 %v13335_v0, %v13334_v63  ;;  %v19609_v4 = vld [vmem:[%s25740_s0 + $0xc8] sm:$0xff]  ;;  %v19614_v5 = vld [vmem:[%s25740_s0 + $0xd8] sm:$0xff]  ;;  %v19622_v6 = vld [vmem:[%s25740_s0 + $0xe0] sm:$0xff] }
  0x13   :  { %v19627_v7 = vld [vmem:[%s25740_s0 + $0xf0] sm:$0xff]  ;;  %v19634_v8 = vld [vmem:[%s25740_s0 + $0xf8] sm:$0xff]  ;;  %v19639_v9 = vld [vmem:[%s25740_s0 + $0x108] sm:$0xff] }
  0x14   :  { %v19646_v10 = vld [vmem:[%s25740_s0 + $0x110] sm:$0xff]  ;;  %v19651_v11 = vld [vmem:[%s25740_s0 + $0x120] sm:$0xff]  ;;  %v19658_v12 = vld [vmem:[%s25740_s0 + $0x128] sm:$0xff] }
  0x15   :  { %17785 = vmatpush3.bf16.msra.mxu0 %v17782_v15  ;;  %v19663_v13 = vld [vmem:[%s25740_s0 + $0x138] sm:$0xff]  ;;  %v19670_v14 = vld [vmem:[%s25740_s0 + $0x140] sm:$0xff]  ;;  %v19675_v15 = vld [vmem:[%s25740_s0 + $0x150] sm:$0xff] }
  0x16   :  { %17787 = vmatprep.subr.bf16.mxu0 %v17786_v18  ;;  %v19682_v16 = vld [vmem:[%s25740_s0 + $0x158] sm:$0xff]  ;;  %v19687_v17 = vld [vmem:[%s25740_s0 + $0x168] sm:$0xff]  ;;  %v116_v19 = vld [vmem:[%s25740_s0 + $0x1b0] sm:$0xff] }
  0x17   :  { %v117_v20 = vld [vmem:[%s25740_s0 + $0x1b8] sm:$0xff]  ;;  %v19712_v22 = vld [vmem:[%s25740_s0 + $0x1d0] sm:$0xff]  ;;  %v19717_v23 = vld [vmem:[%s25740_s0 + $0x1e0] sm:$0xff] }
  0x18   :  { %v19729_v25 = vld [vmem:[%s25740_s0 + $0x1f8] sm:$0xff]  ;;  %v19736_v26 = vld [vmem:[%s25740_s0 + $0x200] sm:$0xff]  ;;  %v19753_v29 = vld [vmem:[%s25740_s0 + $0x228] sm:$0xff] }
  0x19   :  { %17789 = vmatpush3.bf16.msra.mxu0 %v17786_v18  ;;  %v19694_v18 = vld [vmem:[%s25740_s0 + $0x170] sm:$0xff]  ;;  %v19748_v28 = vld [vmem:[%s25740_s0 + $0x218] sm:$0xff]  ;;  %v19772_v33 = vld [vmem:[%s25740_s0 + $0x248] sm:$0xff] }
  0x1a   :  { %17791 = vmatprep.subr.bf16.mxu0 %v17790_v21  ;;  %v19777_v34 = vld [vmem:[%s25740_s0 + $0x258] sm:$0xff]  ;;  %v19789_v38 = vld [vmem:[%s25740_s0 + $0x270] sm:$0xff]  ;;  %v19813_v44 = vld [vmem:[%s25740_s0 + $0x2a0] sm:$0xff] }
  0x1b   :  { %v19796_v39 = vld [vmem:[%s25740_s0 + $0x278] sm:$0xff]  ;;  %v19808_v43 = vld [vmem:[%s25740_s0 + $0x290] sm:$0xff]  ;;  %v19832_v49 = vld [vmem:[%s25740_s0 + $0x2c0] sm:$0xff] }
  0x1c   :  { %v19825_v48 = vld [vmem:[%s25740_s0 + $0x2b8] sm:$0xff]  ;;  %v19849_v54 = vld [vmem:[%s25740_s0 + $0x2e8] sm:$0xff]  ;;  %v19861_v58 = vld [vmem:[%s25740_s0 + $0x300] sm:$0xff] }
  0x1d   :  { %17793 = vmatpush3.bf16.msra.mxu0 %v17790_v21  ;;  %v19706_v21 = vld [vmem:[%s25740_s0 + $0x1c8] sm:$0xff]  ;;  %v19844_v53 = vld [vmem:[%s25740_s0 + $0x2d8] sm:$0xff]  ;;  %26071 = vst [vmem:[#allocation4_spill] sm:$0xff] %v19849_v54  ;;  %26073 = vst [vmem:[#allocation6_spill] sm:$0xff] %v19861_v58 }
  0x1e   :  { %17795 = vmatprep.subr.bf16.mxu0 %v17794_v24  ;;  %v19868_v59 = vld [vmem:[%s25740_s0 + $0x308] sm:$0xff]  ;;  %v19880_v63 = vld [vmem:[%s25740_s0 + $0x320] sm:$0xff] }
  0x1f   :  { %26074 = vst [vmem:[#allocation7_spill] sm:$0xff] %v19868_v59  ;;  %26076 = vst [vmem:[#allocation9_spill] sm:$0xff] %v19880_v63  ;;  %v741_v0 = vld [vmem:[%s25740_s0 + $0x1] sm:$0xff] }
  0x21   :  { %17797 = vmatpush3.bf16.msra.mxu0 %v17794_v24  ;;  %v19724_v24 = vld [vmem:[%s25740_s0 + $0x1e8] sm:$0xff] }
  0x22   :  { %17799 = vmatprep.subr.bf16.mxu0 %v17798_v27 }
  0x24   :  { %15495 = vmatmul.mubr.f32.vlgmr.msra.gmra.mrb[0].mxu0 %v85_v30  ;;  %v19760_v30 = vld [vmem:[%s25740_s0 + $0x230] sm:$0xff] }
  0x25   :  { %17801 = vmatpush3.bf16.msra.mxu0 %v17798_v27  ;;  %15497 = vmatprep.mubr.f32.mxu0 %v19475_v31  ;;  %v19741_v27 = vld [vmem:[%s25740_s0 + $0x210] sm:$0xff] }
  0x26   :  { %17803 = vmatprep.subr.bf16.mxu0 %v17802_v32 }
  0x28   :  { %15498 = vmatmul.mubr.f32.gmra.mrb[2].mxu0 %v19487_v35 }
  0x29   :  { %15500 = vmatprep.mubr.f32.mxu0 %v19492_v36  ;;  %17805 = vmatpush3.bf16.msra.mxu0 %v17802_v32  ;;  %v19765_v32 = vld [vmem:[%s25740_s0 + $0x240] sm:$0xff] }
  0x2a   :  { %17807 = vmatprep.subr.bf16.mxu0 %v17806_v37 }
  0x2c   :  { %15501 = vmatmul.mubr.f32.gmra.mrb[4].mxu0 %v19505_v40 }
  0x2d   :  { %15503 = vmatprep.mubr.f32.mxu0 %v19510_v41  ;;  %17809 = vmatpush3.bf16.msra.mxu0 %v17806_v37  ;;  %v19784_v37 = vld [vmem:[%s25740_s0 + $0x260] sm:$0xff] }
  0x2e   :  { %17811 = vmatprep.subr.bf16.mxu0 %v17810_v42 }
  0x30   :  { %15504 = vmatmul.mubr.f32.gmra.mrb[6].mxu0 %v19523_v45 }
  0x31   :  { %15506 = vmatprep.mubr.f32.mxu0 %v19528_v46  ;;  %17813 = vmatpush3.bf16.msra.mxu0 %v17810_v42  ;;  %v19801_v42 = vld [vmem:[%s25740_s0 + $0x288] sm:$0xff] }
  0x32   :  { %17815 = vmatprep.subr.bf16.mxu0 %v17814_v47 }
  0x34   :  { %15507 = vmatmul.mubr.f32.gmra.mrb[8].mxu0 %v19541_v50 }
  0x35   :  { %15509 = vmatprep.mubr.f32.mxu0 %v19546_v51  ;;  %17817 = vmatpush3.bf16.msra.mxu0 %v17814_v47  ;;  %v19820_v47 = vld [vmem:[%s25740_s0 + $0x2a8] sm:$0xff] }
  0x36   :  { %17819 = vmatprep.subr.bf16.mxu0 %v17818_v52 }
  0x38   :  { %15510 = vmatmul.mubr.f32.gmra.mrb[10].mxu0 %v19559_v55 }
  0x39   :  { %15512 = vmatprep.mubr.f32.mxu0 %v19564_v56  ;;  %17821 = vmatpush3.bf16.msra.mxu0 %v17818_v52  ;;  %v19837_v52 = vld [vmem:[%s25740_s0 + $0x2d0] sm:$0xff] }
  0x3a   :  { %17823 = vmatprep.subr.bf16.mxu0 %v17822_v57 }
  0x3c   :  { %15513 = vmatmul.mubr.f32.gmra.mrb[12].mxu0 %v19577_v60 }
  0x3d   :  { %15515 = vmatprep.mubr.f32.mxu0 %v19582_v61  ;;  %17825 = vmatpush3.bf16.msra.mxu0 %v17822_v57  ;;  %v19856_v57 = vld [vmem:[%s25740_s0 + $0x2f0] sm:$0xff] }
  0x3e   :  { %17827 = vmatprep.subr.bf16.mxu0 %v17826_v62  ;;  %26072 = vst [vmem:[#allocation5_spill] sm:$0xff] %v19856_v57 }
  0x40   :  { %15516 = vmatmul.mubr.f32.gmra.mrb[14].mxu0 %v19595_v1 }
  0x41   :  { %15518 = vmatprep.mubr.f32.mxu0 %v19600_v2  ;;  %17829 = vmatpush3.bf16.msra.mxu0 %v17826_v62  ;;  %v19873_v62 = vld [vmem:[%s25740_s0 + $0x318] sm:$0xff] }
  0x42   :  { %17831 = vmatprep.subr.bf16.mxu0 %v19602_v3  ;;  %26075 = vst [vmem:[#allocation8_spill] sm:$0xff] %v19873_v62 }
  0x44   :  { %15519 = vmatmul.mubr.f32.gmra.mrb[16].mxu0 %v19609_v4 }
  0x45   :  { %15521 = vmatprep.mubr.f32.mxu0 %v19614_v5 }
  0x48   :  { %15522 = vmatmul.mubr.f32.gmra.mrb[18].mxu0 %v19622_v6 }
  0x49   :  { %15524 = vmatprep.mubr.f32.mxu0 %v19627_v7 }
  0x4c   :  { %15525 = vmatmul.mubr.f32.gmra.mrb[20].mxu0 %v19634_v8 }
  0x4d   :  { %15527 = vmatprep.mubr.f32.mxu0 %v19639_v9 }
  0x50   :  { %15528 = vmatmul.mubr.f32.gmra.mrb[22].mxu0 %v19646_v10 }
  0x51   :  { %15530 = vmatprep.mubr.f32.mxu0 %v19651_v11 }
  0x54   :  { %15531 = vmatmul.mubr.f32.gmra.mrb[24].mxu0 %v19658_v12 }
  0x55   :  { %15533 = vmatprep.mubr.f32.mxu0 %v19663_v13 }
  0x58   :  { %15534 = vmatmul.mubr.f32.gmra.mrb[26].mxu0 %v19670_v14 }
  0x59   :  { %15536 = vmatprep.mubr.f32.mxu0 %v19675_v15 }
  0x5c   :  { %15537 = vmatmul.mubr.f32.gmra.mrb[28].mxu0 %v19682_v16 }
  0x5d   :  { %15539 = vmatprep.mubr.f32.mxu0 %v19687_v17 }
  0x60   :  { %15540 = vmatmul.mubr.f32.gmra.mrb[30].mxu0 %v19694_v18 }
  0x61   :  { %15542 = vmatprep.mubr.f32.mxu0 %v116_v19  ;;  %v13336_v19 = vld [vmem:[%s25738_s1 + $0x110] sm:$0xff] }
  0x64   :  { %15543 = vmatmul.mubr.f32.gmra.mrb[32].mxu0 %v117_v20  ;;  %v13337_v20 = vld [vmem:[%s25738_s1 + $0x118] sm:$0xff] }
  0x65   :  { %15545 = vmatprep.mubr.f32.mxu0 %v19706_v21 }
  0x68   :  { %15546 = vmatmul.mubr.f32.gmra.mrb[34].mxu0 %v19712_v22 }
  0x69   :  { %15548 = vmatprep.mubr.f32.mxu0 %v19717_v23 }
  0x6c   :  { %15549 = vmatmul.mubr.f32.gmra.mrb[36].mxu0 %v19724_v24 }
  0x6d   :  { %15551 = vmatprep.mubr.f32.mxu0 %v19729_v25 }
  0x70   :  { %15552 = vmatmul.mubr.f32.gmra.mrb[38].mxu0 %v19736_v26 }
  0x71   :  { %15554 = vmatprep.mubr.f32.mxu0 %v19741_v27 }
  0x74   :  { %15555 = vmatmul.mubr.f32.gmra.mrb[40].mxu0 %v19748_v28 }
  0x75   :  { %15557 = vmatprep.mubr.f32.mxu0 %v19753_v29 }
  0x78   :  { %15558 = vmatmul.mubr.f32.gmra.mrb[42].mxu0 %v19760_v30 }
  0x79   :  { %15560 = vmatprep.mubr.f32.mxu0 %v19765_v32 }
  0x7c   :  { %15561 = vmatmul.mubr.f32.gmra.mrb[44].mxu0 %v19772_v33 }
  0x7d   :  { %15563 = vmatprep.mubr.f32.mxu0 %v19777_v34 }
  0x80   :  { %15564 = vmatmul.mubr.f32.gmra.mrb[46].mxu0 %v19784_v37 }
  0x81   :  { %15566 = vmatprep.mubr.f32.mxu0 %v19789_v38 }
  0x84   :  { %15567 = vmatmul.mubr.f32.gmra.mrb[48].mxu0 %v19796_v39 }
  0x85   :  { %15569 = vmatprep.mubr.f32.mxu0 %v19801_v42 }
  0x88   :  { %15570 = vmatmul.mubr.f32.gmra.mrb[50].mxu0 %v19808_v43 }
  0x89   :  { %15572 = vmatprep.mubr.f32.mxu0 %v19813_v44 }
  0x8c   :  { %15573 = vmatmul.mubr.f32.gmra.mrb[52].mxu0 %v19820_v47 }
  0x8d   :  { %15575 = vmatprep.mubr.f32.mxu0 %v19825_v48 }
  0x90   :  { %15576 = vmatmul.mubr.f32.gmra.mrb[54].mxu0 %v19832_v49 }
  0x91   :  { %15578 = vmatprep.mubr.f32.mxu0 %v19837_v52 }
  0x94   :  { %15579 = vmatmul.mubr.f32.gmra.mrb[56].mxu0 %v19844_v53 }
  0x95   :  { %15581 = vmatprep.mubr.f32.mxu0 %v19849_v54  ;;  %v13339_v54 = vld [vmem:[%s25738_s1 + $0x128] sm:$0xff] }
  0x98   :  { %15582 = vmatmul.mubr.f32.gmra.mrb[58].mxu0 %v19856_v57  ;;  %v13338_v57 = vld [vmem:[%s25738_s1 + $0x120] sm:$0xff] }
  0x99   :  { %15584 = vmatprep.mubr.f32.mxu0 %v19861_v58  ;;  %v17834_v58 = vpack.c.bf16 %v13337_v20, %v13336_v19  ;;  %v19916_v19 = vld [vmem:[%s25740_s0 + $0x31] sm:$0xff]  ;;  %v17838_v20 = vpack.c.bf16 %v13339_v54, %v13338_v57  ;;  %v19934_v54 = vld [vmem:[%s25740_s0 + $0x49] sm:$0xff] }
  0x9a   :  { %26079 = vst [vmem:[#allocation12_spill] sm:$0xff] %v19916_v19  ;;  %26081 = vst [vmem:[#allocation14_spill] sm:$0xff] %v19934_v54 }
  0x9c   :  { %15585 = vmatmul.mubr.f32.gmra.mrb[60].mxu0 %v19868_v59  ;;  %v19898_v59 = vld [vmem:[%s25740_s0 + $0x19] sm:$0xff] }
  0x9d   :  { %15587 = vmatprep.mubr.f32.mxu0 %v19873_v62  ;;  %v742_v62 = vld [vmem:[%s25740_s0 + $0x9] sm:$0xff]  ;;  %26077 = vst [vmem:[#allocation10_spill] sm:$0xff] %v19898_v59 }
  0xa0   :  { %15588 = vmatmul.mubr.f32.gmra.mrb[62].mxu0 %v19880_v63  ;;  %v13342_v63 = vld [vmem:[%s25738_s1 + $0x140] sm:$0xff] }
  0xa1   :  { %15622 = vmatprep.mubr.f32.mxu0 %v741_v0  ;;  %v19911_v0 = vld [vmem:[%s25740_s0 + $0x21] sm:$0xff] }
  0xa2   :  { %26078 = vst [vmem:[#allocation11_spill] sm:$0xff] %v19911_v0 }
  0xa4   :  { %15623 = vmatmul.mubr.f32.vlgmr.msra.gmra.mrb[0].mxu0 %v742_v62  ;;  %v13340_v62 = vld [vmem:[%s25738_s1 + $0x130] sm:$0xff] }
  0xa5   :  { %17833 = vmatpush3.bf16.msra.mxu0 %v19602_v3  ;;  %15625 = vmatprep.mubr.f32.mxu0 %v19898_v59  ;;  %v13341_v3 = vld [vmem:[%s25738_s1 + $0x138] sm:$0xff] }
  0xa6   :  { %17835 = vmatprep.subr.bf16.mxu0 %v17834_v58  ;;  %v19929_v59 = vld [vmem:[%s25740_s0 + $0x39] sm:$0xff]  ;;  %v17842_v57 = vpack.c.bf16 %v13341_v3, %v13340_v62  ;;  %v19952_v62 = vld [vmem:[%s25740_s0 + $0x61] sm:$0xff] }
  0xa7   :  { %26080 = vst [vmem:[#allocation13_spill] sm:$0xff] %v19929_v59  ;;  %26083 = vst [vmem:[#allocation16_spill] sm:$0xff] %v19952_v62 }
  0xa8   :  { %15626 = vmatmul.mubr.f32.gmra.mrb[2].mxu0 %v19911_v0  ;;  %v13344_v0 = vld [vmem:[%s25738_s1 + $0x150] sm:$0xff] }
  0xa9   :  { %15628 = vmatprep.mubr.f32.mxu0 %v19916_v19  ;;  %17837 = vmatpush3.bf16.msra.mxu0 %v17834_v58  ;;  %v13343_v19 = vld [vmem:[%s25738_s1 + $0x148] sm:$0xff]  ;;  %v19947_v58 = vld [vmem:[%s25740_s0 + $0x51] sm:$0xff] }
  0xaa   :  { %17839 = vmatprep.subr.bf16.mxu0 %v17838_v20  ;;  %26082 = vst [vmem:[#allocation15_spill] sm:$0xff] %v19947_v58  ;;  %v17846_v3 = vpack.c.bf16 %v13343_v19, %v13342_v63  ;;  %v19970_v63 = vld [vmem:[%s25740_s0 + $0x79] sm:$0xff] }
  0xab   :  { %26085 = vst [vmem:[#allocation18_spill] sm:$0xff] %v19970_v63 }
  0xac   :  { %15629 = vmatmul.mubr.f32.gmra.mrb[4].mxu0 %v19929_v59  ;;  %v13346_v59 = vld [vmem:[%s25738_s1 + $0x160] sm:$0xff] }
  0xad   :  { %15631 = vmatprep.mubr.f32.mxu0 %v19934_v54  ;;  %17841 = vmatpush3.bf16.msra.mxu0 %v17838_v20  ;;  %v13345_v54 = vld [vmem:[%s25738_s1 + $0x158] sm:$0xff]  ;;  %v19965_v20 = vld [vmem:[%s25740_s0 + $0x69] sm:$0xff] }
  0xae   :  { %17843 = vmatprep.subr.bf16.mxu0 %v17842_v57  ;;  %26084 = vst [vmem:[#allocation17_spill] sm:$0xff] %v19965_v20  ;;  %v17850_v19 = vpack.c.bf16 %v13345_v54, %v13344_v0  ;;  %v19988_v0 = vld [vmem:[%s25740_s0 + $0x91] sm:$0xff] }
  0xaf   :  { %26087 = vst [vmem:[#allocation20_spill] sm:$0xff] %v19988_v0 }
  0xb0   :  { %15632 = vmatmul.mubr.f32.gmra.mrb[6].mxu0 %v19947_v58  ;;  %v13348_v58 = vld [vmem:[%s25738_s1 + $0x170] sm:$0xff] }
  0xb1   :  { %15634 = vmatprep.mubr.f32.mxu0 %v19952_v62  ;;  %17845 = vmatpush3.bf16.msra.mxu0 %v17842_v57  ;;  %v13347_v62 = vld [vmem:[%s25738_s1 + $0x168] sm:$0xff] }
  0xb2   :  { %17847 = vmatprep.subr.bf16.mxu0 %v17846_v3  ;;  %v19983_v57 = vld [vmem:[%s25740_s0 + $0x81] sm:$0xff]  ;;  %v17854_v54 = vpack.c.bf16 %v13347_v62, %v13346_v59  ;;  %v20006_v59 = vld [vmem:[%s25740_s0 + $0xa9] sm:$0xff] }
  0xb3   :  { %26086 = vst [vmem:[#allocation19_spill] sm:$0xff] %v19983_v57  ;;  %26089 = vst [vmem:[#allocation22_spill] sm:$0xff] %v20006_v59 }
  0xb4   :  { %15635 = vmatmul.mubr.f32.gmra.mrb[8].mxu0 %v19965_v20  ;;  %v13414_v20 = vld [vmem:[%s25738_s1 + $0x180] sm:$0xff] }
  0xb5   :  { %15637 = vmatprep.mubr.f32.mxu0 %v19970_v63  ;;  %17849 = vmatpush3.bf16.msra.mxu0 %v17846_v3  ;;  %v13349_v63 = vld [vmem:[%s25738_s1 + $0x178] sm:$0xff] }
  0xb6   :  { %17851 = vmatprep.subr.bf16.mxu0 %v17850_v19  ;;  %v20001_v3 = vld [vmem:[%s25740_s0 + $0x99] sm:$0xff]  ;;  %v17858_v62 = vpack.c.bf16 %v13349_v63, %v13348_v58  ;;  %v20024_v58 = vld [vmem:[%s25740_s0 + $0xc1] sm:$0xff] }
  0xb7   :  { %26088 = vst [vmem:[#allocation21_spill] sm:$0xff] %v20001_v3  ;;  %26091 = vst [vmem:[#allocation24_spill] sm:$0xff] %v20024_v58 }
  0xb8   :  { %15638 = vmatmul.mubr.f32.gmra.mrb[10].mxu0 %v19983_v57  ;;  %v13419_v57 = vld [vmem:[%s25738_s1 + $0x1a8] sm:$0xff] }
  0xb9   :  { %15640 = vmatprep.mubr.f32.mxu0 %v19988_v0  ;;  %17853 = vmatpush3.bf16.msra.mxu0 %v17850_v19  ;;  %v13415_v0 = vld [vmem:[%s25738_s1 + $0x188] sm:$0xff]  ;;  %v20019_v19 = vld [vmem:[%s25740_s0 + $0xb1] sm:$0xff] }
  0xba   :  { %17855 = vmatprep.subr.bf16.mxu0 %v17854_v54  ;;  %26090 = vst [vmem:[#allocation23_spill] sm:$0xff] %v20019_v19  ;;  %v20026_v63 = vpack.c.bf16 %v13415_v0, %v13414_v20  ;;  %v20046_v20 = vld [vmem:[%s25740_s0 + $0xe1] sm:$0xff]  ;;  %v20051_v0 = vld [vmem:[%s25740_s0 + $0xf1] sm:$0xff] }
  0xbb   :  { %26094 = vst [vmem:[#allocation27_spill] sm:$0xff] %v20046_v20  ;;  %26095 = vst [vmem:[#allocation28_spill] sm:$0xff] %v20051_v0 }
  0xbc   :  { %15641 = vmatmul.mubr.f32.gmra.mrb[12].mxu0 %v20001_v3  ;;  %v13418_v3 = vld [vmem:[%s25738_s1 + $0x1a0] sm:$0xff] }
  0xbd   :  { %15643 = vmatprep.mubr.f32.mxu0 %v20006_v59  ;;  %17857 = vmatpush3.bf16.msra.mxu0 %v17854_v54  ;;  %v20033_v59 = vld [vmem:[%s25740_s0 + $0xc9] sm:$0xff]  ;;  %v20038_v54 = vld [vmem:[%s25740_s0 + $0xd9] sm:$0xff] }
  0xbe   :  { %17859 = vmatprep.subr.bf16.mxu0 %v17858_v62  ;;  %26092 = vst [vmem:[#allocation25_spill] sm:$0xff] %v20033_v59  ;;  %26093 = vst [vmem:[#allocation26_spill] sm:$0xff] %v20038_v54 }
  0xc0   :  { %15644 = vmatmul.mubr.f32.gmra.mrb[14].mxu0 %v20019_v19 }
  0xc1   :  { %15646 = vmatprep.mubr.f32.mxu0 %v20024_v58  ;;  %17861 = vmatpush3.bf16.msra.mxu0 %v17858_v62  ;;  %v20058_v62 = vld [vmem:[%s25740_s0 + $0xf9] sm:$0xff] }
  0xc2   :  { %17863 = vmatprep.subr.bf16.mxu0 %v20026_v63  ;;  %26096 = vst [vmem:[#allocation29_spill] sm:$0xff] %v20058_v62  ;;  %v13417_v58 = vld [vmem:[%s25738_s1 + $0x198] sm:$0xff] }
  0xc4   :  { %15647 = vmatmul.mubr.f32.gmra.mrb[16].mxu0 %v20033_v59  ;;  %v774_v59 = vld [vmem:[%s25740_s0 + $0x1b9] sm:$0xff] }
  0xc5   :  { %15649 = vmatprep.mubr.f32.mxu0 %v20038_v54  ;;  %v20063_v54 = vld [vmem:[%s25740_s0 + $0x109] sm:$0xff] }
  0xc6   :  { %26097 = vst [vmem:[#allocation30_spill] sm:$0xff] %v20063_v54 }
  0xc8   :  { %15650 = vmatmul.mubr.f32.gmra.mrb[18].mxu0 %v20046_v20  ;;  %v20070_v20 = vld [vmem:[%s25740_s0 + $0x111] sm:$0xff] }
  0xc9   :  { %15652 = vmatprep.mubr.f32.mxu0 %v20051_v0  ;;  %26098 = vst [vmem:[#allocation31_spill] sm:$0xff] %v20070_v20  ;;  %v20075_v0 = vld [vmem:[%s25740_s0 + $0x121] sm:$0xff] }
  0xca   :  { %26099 = vst [vmem:[#allocation32_spill] sm:$0xff] %v20075_v0 }
  0xcc   :  { %15653 = vmatmul.mubr.f32.gmra.mrb[20].mxu0 %v20058_v62  ;;  %v20082_v62 = vld [vmem:[%s25740_s0 + $0x129] sm:$0xff] }
  0xcd   :  { %15655 = vmatprep.mubr.f32.mxu0 %v20063_v54  ;;  %26100 = vst [vmem:[#allocation33_spill] sm:$0xff] %v20082_v62  ;;  %v20087_v54 = vld [vmem:[%s25740_s0 + $0x139] sm:$0xff] }
  0xce   :  { %26101 = vst [vmem:[#allocation34_spill] sm:$0xff] %v20087_v54 }
  0xd0   :  { %15656 = vmatmul.mubr.f32.gmra.mrb[22].mxu0 %v20070_v20  ;;  %v20094_v20 = vld [vmem:[%s25740_s0 + $0x141] sm:$0xff] }
  0xd1   :  { %15658 = vmatprep.mubr.f32.mxu0 %v20075_v0  ;;  %26102 = vst [vmem:[#allocation35_spill] sm:$0xff] %v20094_v20  ;;  %v20099_v0 = vld [vmem:[%s25740_s0 + $0x151] sm:$0xff] }
  0xd2   :  { %26103 = vst [vmem:[#allocation36_spill] sm:$0xff] %v20099_v0 }
  0xd4   :  { %15659 = vmatmul.mubr.f32.gmra.mrb[24].mxu0 %v20082_v62  ;;  %v20106_v62 = vld [vmem:[%s25740_s0 + $0x159] sm:$0xff] }
  0xd5   :  { %15661 = vmatprep.mubr.f32.mxu0 %v20087_v54  ;;  %26104 = vst [vmem:[#allocation37_spill] sm:$0xff] %v20106_v62  ;;  %v20111_v54 = vld [vmem:[%s25740_s0 + $0x169] sm:$0xff] }
  0xd6   :  { %26105 = vst [vmem:[#allocation38_spill] sm:$0xff] %v20111_v54 }
  0xd8   :  { %15662 = vmatmul.mubr.f32.gmra.mrb[26].mxu0 %v20094_v20  ;;  %v20118_v20 = vld [vmem:[%s25740_s0 + $0x171] sm:$0xff] }
  0xd9   :  { %15664 = vmatprep.mubr.f32.mxu0 %v20099_v0  ;;  %26106 = vst [vmem:[#allocation39_spill] sm:$0xff] %v20118_v20  ;;  %v773_v0 = vld [vmem:[%s25740_s0 + $0x1b1] sm:$0xff] }
  0xdc   :  { %15665 = vmatmul.mubr.f32.gmra.mrb[28].mxu0 %v20106_v62  ;;  %v20136_v62 = vld [vmem:[%s25740_s0 + $0x1d1] sm:$0xff] }
  0xdd   :  { %15667 = vmatprep.mubr.f32.mxu0 %v20111_v54  ;;  %v20130_v54 = vld [vmem:[%s25740_s0 + $0x1c9] sm:$0xff]  ;;  %26108 = vst [vmem:[#allocation41_spill] sm:$0xff] %v20136_v62 }
  0xde   :  { %26107 = vst [vmem:[#allocation40_spill] sm:$0xff] %v20130_v54 }
  0xe0   :  { %15668 = vmatmul.mubr.f32.gmra.mrb[30].mxu0 %v20118_v20  ;;  %v13416_v20 = vld [vmem:[%s25738_s1 + $0x190] sm:$0xff] }
  0xe1   :  { %15670 = vmatprep.mubr.f32.mxu0 %v773_v0  ;;  %v20141_v0 = vld [vmem:[%s25740_s0 + $0x1e1] sm:$0xff]  ;;  %v17866_v19 = vpack.c.bf16 %v13417_v58, %v13416_v20  ;;  %v20340_v58 = vld [vmem:[%s25740_s0 + $0x32] sm:$0xff]  ;;  %v17870_v20 = vpack.c.bf16 %v13419_v57, %v13418_v3  ;;  %v20358_v57 = vld [vmem:[%s25740_s0 + $0x4a] sm:$0xff] }
  0xe2   :  { %26109 = vst [vmem:[#allocation42_spill] sm:$0xff] %v20141_v0  ;;  %26139 = vst [vmem:[#allocation72_spill] sm:$0xff] %v20340_v58 }
  0xe3   :  { %26141 = vst [vmem:[#allocation74_spill] sm:$0xff] %v20358_v57 }
  0xe4   :  { %15671 = vmatmul.mubr.f32.gmra.mrb[32].mxu0 %v774_v59  ;;  %v20148_v59 = vld [vmem:[%s25740_s0 + $0x1e9] sm:$0xff] }
  0xe5   :  { %15673 = vmatprep.mubr.f32.mxu0 %v20130_v54  ;;  %26110 = vst [vmem:[#allocation43_spill] sm:$0xff] %v20148_v59  ;;  %v20153_v54 = vld [vmem:[%s25740_s0 + $0x1f9] sm:$0xff] }
  0xe6   :  { %26111 = vst [vmem:[#allocation44_spill] sm:$0xff] %v20153_v54 }
  0xe8   :  { %15674 = vmatmul.mubr.f32.gmra.mrb[34].mxu0 %v20136_v62  ;;  %v20160_v62 = vld [vmem:[%s25740_s0 + $0x201] sm:$0xff] }
  0xe9   :  { %15676 = vmatprep.mubr.f32.mxu0 %v20141_v0  ;;  %26112 = vst [vmem:[#allocation45_spill] sm:$0xff] %v20160_v62  ;;  %v20165_v0 = vld [vmem:[%s25740_s0 + $0x211] sm:$0xff] }
  0xea   :  { %26113 = vst [vmem:[#allocation46_spill] sm:$0xff] %v20165_v0 }
  0xec   :  { %15677 = vmatmul.mubr.f32.gmra.mrb[36].mxu0 %v20148_v59  ;;  %v20172_v59 = vld [vmem:[%s25740_s0 + $0x219] sm:$0xff] }
  0xed   :  { %15679 = vmatprep.mubr.f32.mxu0 %v20153_v54  ;;  %26114 = vst [vmem:[#allocation47_spill] sm:$0xff] %v20172_v59  ;;  %v20177_v54 = vld [vmem:[%s25740_s0 + $0x229] sm:$0xff] }
  0xee   :  { %26115 = vst [vmem:[#allocation48_spill] sm:$0xff] %v20177_v54 }
  0xf0   :  { %15680 = vmatmul.mubr.f32.gmra.mrb[38].mxu0 %v20160_v62  ;;  %v20184_v62 = vld [vmem:[%s25740_s0 + $0x231] sm:$0xff] }
  0xf1   :  { %15682 = vmatprep.mubr.f32.mxu0 %v20165_v0  ;;  %26116 = vst [vmem:[#allocation49_spill] sm:$0xff] %v20184_v62  ;;  %v20189_v0 = vld [vmem:[%s25740_s0 + $0x241] sm:$0xff] }
  0xf2   :  { %26117 = vst [vmem:[#allocation50_spill] sm:$0xff] %v20189_v0 }
  0xf4   :  { %15683 = vmatmul.mubr.f32.gmra.mrb[40].mxu0 %v20172_v59  ;;  %v20196_v59 = vld [vmem:[%s25740_s0 + $0x249] sm:$0xff] }
  0xf5   :  { %15685 = vmatprep.mubr.f32.mxu0 %v20177_v54  ;;  %26118 = vst [vmem:[#allocation51_spill] sm:$0xff] %v20196_v59  ;;  %v20201_v54 = vld [vmem:[%s25740_s0 + $0x259] sm:$0xff] }
  0xf6   :  { %26119 = vst [vmem:[#allocation52_spill] sm:$0xff] %v20201_v54 }
  0xf8   :  { %15686 = vmatmul.mubr.f32.gmra.mrb[42].mxu0 %v20184_v62  ;;  %v20208_v62 = vld [vmem:[%s25740_s0 + $0x261] sm:$0xff] }
  0xf9   :  { %15688 = vmatprep.mubr.f32.mxu0 %v20189_v0  ;;  %26120 = vst [vmem:[#allocation53_spill] sm:$0xff] %v20208_v62  ;;  %v20213_v0 = vld [vmem:[%s25740_s0 + $0x271] sm:$0xff] }
  0xfa   :  { %26121 = vst [vmem:[#allocation54_spill] sm:$0xff] %v20213_v0 }
  0xfc   :  { %15689 = vmatmul.mubr.f32.gmra.mrb[44].mxu0 %v20196_v59  ;;  %v20220_v59 = vld [vmem:[%s25740_s0 + $0x279] sm:$0xff] }
  0xfd   :  { %15691 = vmatprep.mubr.f32.mxu0 %v20201_v54  ;;  %26122 = vst [vmem:[#allocation55_spill] sm:$0xff] %v20220_v59  ;;  %v20225_v54 = vld [vmem:[%s25740_s0 + $0x289] sm:$0xff] }
  0xfe   :  { %26123 = vst [vmem:[#allocation56_spill] sm:$0xff] %v20225_v54 }
 0x100   :  { %15692 = vmatmul.mubr.f32.gmra.mrb[46].mxu0 %v20208_v62  ;;  %v20232_v62 = vld [vmem:[%s25740_s0 + $0x291] sm:$0xff] }
 0x101   :  { %15694 = vmatprep.mubr.f32.mxu0 %v20213_v0  ;;  %26124 = vst [vmem:[#allocation57_spill] sm:$0xff] %v20232_v62  ;;  %v20237_v0 = vld [vmem:[%s25740_s0 + $0x2a1] sm:$0xff] }
 0x102   :  { %26125 = vst [vmem:[#allocation58_spill] sm:$0xff] %v20237_v0 }
 0x104   :  { %15695 = vmatmul.mubr.f32.gmra.mrb[48].mxu0 %v20220_v59  ;;  %v20244_v59 = vld [vmem:[%s25740_s0 + $0x2a9] sm:$0xff] }
 0x105   :  { %15697 = vmatprep.mubr.f32.mxu0 %v20225_v54  ;;  %26126 = vst [vmem:[#allocation59_spill] sm:$0xff] %v20244_v59  ;;  %v20249_v54 = vld [vmem:[%s25740_s0 + $0x2b9] sm:$0xff] }
 0x106   :  { %26127 = vst [vmem:[#allocation60_spill] sm:$0xff] %v20249_v54 }
 0x108   :  { %15698 = vmatmul.mubr.f32.gmra.mrb[50].mxu0 %v20232_v62  ;;  %v20256_v62 = vld [vmem:[%s25740_s0 + $0x2c1] sm:$0xff] }
 0x109   :  { %15700 = vmatprep.mubr.f32.mxu0 %v20237_v0  ;;  %26128 = vst [vmem:[#allocation61_spill] sm:$0xff] %v20256_v62  ;;  %v20261_v0 = vld [vmem:[%s25740_s0 + $0x2d1] sm:$0xff] }
 0x10a   :  { %26129 = vst [vmem:[#allocation62_spill] sm:$0xff] %v20261_v0 }
 0x10c   :  { %15701 = vmatmul.mubr.f32.gmra.mrb[52].mxu0 %v20244_v59  ;;  %v20268_v59 = vld [vmem:[%s25740_s0 + $0x2d9] sm:$0xff] }
 0x10d   :  { %15703 = vmatprep.mubr.f32.mxu0 %v20249_v54  ;;  %26130 = vst [vmem:[#allocation63_spill] sm:$0xff] %v20268_v59  ;;  %v20273_v54 = vld [vmem:[%s25740_s0 + $0x2e9] sm:$0xff] }
 0x10e   :  { %26131 = vst [vmem:[#allocation64_spill] sm:$0xff] %v20273_v54 }
 0x110   :  { %15704 = vmatmul.mubr.f32.gmra.mrb[54].mxu0 %v20256_v62  ;;  %v20280_v62 = vld [vmem:[%s25740_s0 + $0x2f1] sm:$0xff] }
 0x111   :  { %15706 = vmatprep.mubr.f32.mxu0 %v20261_v0  ;;  %26132 = vst [vmem:[#allocation65_spill] sm:$0xff] %v20280_v62  ;;  %v20285_v0 = vld [vmem:[%s25740_s0 + $0x301] sm:$0xff] }
 0x112   :  { %26133 = vst [vmem:[#allocation66_spill] sm:$0xff] %v20285_v0 }
 0x114   :  { %15707 = vmatmul.mubr.f32.gmra.mrb[56].mxu0 %v20268_v59  ;;  %v20292_v59 = vld [vmem:[%s25740_s0 + $0x309] sm:$0xff] }
 0x115   :  { %15709 = vmatprep.mubr.f32.mxu0 %v20273_v54  ;;  %26134 = vst [vmem:[#allocation67_spill] sm:$0xff] %v20292_v59  ;;  %v20297_v54 = vld [vmem:[%s25740_s0 + $0x319] sm:$0xff] }
 0x116   :  { %26135 = vst [vmem:[#allocation68_spill] sm:$0xff] %v20297_v54 }
 0x118   :  { %15710 = vmatmul.mubr.f32.gmra.mrb[58].mxu0 %v20280_v62  ;;  %v20304_v62 = vld [vmem:[%s25740_s0 + $0x321] sm:$0xff] }
 0x119   :  { %15712 = vmatprep.mubr.f32.mxu0 %v20285_v0  ;;  %26136 = vst [vmem:[#allocation69_spill] sm:$0xff] %v20304_v62  ;;  %v1399_v0 = vld [vmem:[%s25740_s0 + $0x2] sm:$0xff] }
 0x11c   :  { %15713 = vmatmul.mubr.f32.gmra.mrb[60].mxu0 %v20292_v59  ;;  %v20322_v59 = vld [vmem:[%s25740_s0 + $0x1a] sm:$0xff] }
 0x11d   :  { %15715 = vmatprep.mubr.f32.mxu0 %v20297_v54  ;;  %v1400_v54 = vld [vmem:[%s25740_s0 + $0xa] sm:$0xff]  ;;  %26137 = vst [vmem:[#allocation70_spill] sm:$0xff] %v20322_v59 }
 0x120   :  { %15716 = vmatmul.mubr.f32.gmra.mrb[62].mxu0 %v20304_v62  ;;  %v13422_v62 = vld [vmem:[%s25738_s1 + $0x1c0] sm:$0xff] }
 0x121   :  { %15750 = vmatprep.mubr.f32.mxu0 %v1399_v0  ;;  %v20335_v0 = vld [vmem:[%s25740_s0 + $0x22] sm:$0xff] }
 0x122   :  { %26138 = vst [vmem:[#allocation71_spill] sm:$0xff] %v20335_v0 }
 0x124   :  { %15751 = vmatmul.mubr.f32.vlgmr.msra.gmra.mrb[0].mxu0 %v1400_v54  ;;  %v13420_v54 = vld [vmem:[%s25738_s1 + $0x1b0] sm:$0xff] }
 0x125   :  { %17865 = vmatpush3.bf16.msra.mxu0 %v20026_v63  ;;  %15753 = vmatprep.mubr.f32.mxu0 %v20322_v59  ;;  %v13421_v63 = vld [vmem:[%s25738_s1 + $0x1b8] sm:$0xff] }
 0x126   :  { %17867 = vmatprep.subr.bf16.mxu0 %v17866_v19  ;;  %v20353_v59 = vld [vmem:[%s25740_s0 + $0x3a] sm:$0xff]  ;;  %v17874_v3 = vpack.c.bf16 %v13421_v63, %v13420_v54  ;;  %v20376_v54 = vld [vmem:[%s25740_s0 + $0x62] sm:$0xff] }
 0x127   :  { %26140 = vst [vmem:[#allocation73_spill] sm:$0xff] %v20353_v59  ;;  %26143 = vst [vmem:[#allocation76_spill] sm:$0xff] %v20376_v54 }
 0x128   :  { %15754 = vmatmul.mubr.f32.gmra.mrb[2].mxu0 %v20335_v0  ;;  %v13424_v0 = vld [vmem:[%s25738_s1 + $0x1d0] sm:$0xff] }
 0x129   :  { %15756 = vmatprep.mubr.f32.mxu0 %v20340_v58  ;;  %17869 = vmatpush3.bf16.msra.mxu0 %v17866_v19  ;;  %v13423_v58 = vld [vmem:[%s25738_s1 + $0x1c8] sm:$0xff]  ;;  %v20371_v19 = vld [vmem:[%s25740_s0 + $0x52] sm:$0xff] }
 0x12a   :  { %17871 = vmatprep.subr.bf16.mxu0 %v17870_v20  ;;  %26142 = vst [vmem:[#allocation75_spill] sm:$0xff] %v20371_v19  ;;  %v17878_v63 = vpack.c.bf16 %v13423_v58, %v13422_v62  ;;  %v20394_v62 = vld [vmem:[%s25740_s0 + $0x7a] sm:$0xff] }
 0x12b   :  { %26145 = vst [vmem:[#allocation78_spill] sm:$0xff] %v20394_v62 }
 0x12c   :  { %15757 = vmatmul.mubr.f32.gmra.mrb[4].mxu0 %v20353_v59  ;;  %v13426_v59 = vld [vmem:[%s25738_s1 + $0x1e0] sm:$0xff] }
 0x12d   :  { %15759 = vmatprep.mubr.f32.mxu0 %v20358_v57  ;;  %17873 = vmatpush3.bf16.msra.mxu0 %v17870_v20  ;;  %v13425_v57 = vld [vmem:[%s25738_s1 + $0x1d8] sm:$0xff]  ;;  %v20389_v20 = vld [vmem:[%s25740_s0 + $0x6a] sm:$0xff] }
 0x12e   :  { %17875 = vmatprep.subr.bf16.mxu0 %v17874_v3  ;;  %26144 = vst [vmem:[#allocation77_spill] sm:$0xff] %v20389_v20  ;;  %v17882_v58 = vpack.c.bf16 %v13425_v57, %v13424_v0  ;;  %v20412_v0 = vld [vmem:[%s25740_s0 + $0x92] sm:$0xff] }
 0x12f   :  { %26146 = vst [vmem:[#allocation79_spill] sm:$0xff] %v20412_v0 }
 0x130   :  { %15760 = vmatmul.mubr.f32.gmra.mrb[6].mxu0 %v20371_v19  ;;  %v13428_v19 = vld [vmem:[%s25738_s1 + $0x1f0] sm:$0xff] }
 0x131   :  { %15762 = vmatprep.mubr.f32.mxu0 %v20376_v54  ;;  %17877 = vmatpush3.bf16.msra.mxu0 %v17874_v3  ;;  %v13427_v54 = vld [vmem:[%s25738_s1 + $0x1e8] sm:$0xff] }
 0x132   :  { %17879 = vmatprep.subr.bf16.mxu0 %v17878_v63  ;;  %v20407_v3 = vld [vmem:[%s25740_s0 + $0x82] sm:$0xff]  ;;  %v17886_v57 = vpack.c.bf16 %v13427_v54, %v13426_v59  ;;  %v20430_v59 = vld [vmem:[%s25740_s0 + $0xaa] sm:$0xff] }
 0x133   :  { %26147 = vst [vmem:[#allocation80_spill] sm:$0xff] %v20430_v59 }
 0x134   :  { %15763 = vmatmul.mubr.f32.gmra.mrb[8].mxu0 %v20389_v20  ;;  %v13494_v20 = vld [vmem:[%s25738_s1 + $0x200] sm:$0xff] }
 0x135   :  { %15765 = vmatprep.mubr.f32.mxu0 %v20394_v62  ;;  %17881 = vmatpush3.bf16.msra.mxu0 %v17878_v63  ;;  %v13429_v62 = vld [vmem:[%s25738_s1 + $0x1f8] sm:$0xff] }
 0x136   :  { %17883 = vmatprep.subr.bf16.mxu0 %v17882_v58  ;;  %v20425_v63 = vld [vmem:[%s25740_s0 + $0x9a] sm:$0xff]  ;;  %v17890_v54 = vpack.c.bf16 %v13429_v62, %v13428_v19  ;;  %v20448_v19 = vld [vmem:[%s25740_s0 + $0xc2] sm:$0xff] }
 0x137   :  { %26149 = vst [vmem:[#allocation82_spill] sm:$0xff] %v20448_v19 }
 0x138   :  { %15766 = vmatmul.mubr.f32.gmra.mrb[10].mxu0 %v20407_v3 }
 0x139   :  { %15768 = vmatprep.mubr.f32.mxu0 %v20412_v0  ;;  %17885 = vmatpush3.bf16.msra.mxu0 %v17882_v58  ;;  %v13495_v0 = vld [vmem:[%s25738_s1 + $0x208] sm:$0xff]  ;;  %v20443_v58 = vld [vmem:[%s25740_s0 + $0xb2] sm:$0xff] }
 0x13a   :  { %17887 = vmatprep.subr.bf16.mxu0 %v17886_v57  ;;  %26148 = vst [vmem:[#allocation81_spill] sm:$0xff] %v20443_v58  ;;  %v20450_v62 = vpack.c.bf16 %v13495_v0, %v13494_v20  ;;  %v20470_v20 = vld [vmem:[%s25740_s0 + $0xe2] sm:$0xff]  ;;  %v20475_v0 = vld [vmem:[%s25740_s0 + $0xf2] sm:$0xff] }
 0x13b   :  { %26152 = vst [vmem:[#allocation85_spill] sm:$0xff] %v20470_v20  ;;  %26153 = vst [vmem:[#allocation86_spill] sm:$0xff] %v20475_v0 }
 0x13c   :  { %15769 = vmatmul.mubr.f32.gmra.mrb[12].mxu0 %v20425_v63 }
 0x13d   :  { %15771 = vmatprep.mubr.f32.mxu0 %v20430_v59  ;;  %17889 = vmatpush3.bf16.msra.mxu0 %v17886_v57  ;;  %v20457_v59 = vld [vmem:[%s25740_s0 + $0xca] sm:$0xff]  ;;  %v20462_v57 = vld [vmem:[%s25740_s0 + $0xda] sm:$0xff] }
 0x13e   :  { %17891 = vmatprep.subr.bf16.mxu0 %v17890_v54  ;;  %26150 = vst [vmem:[#allocation83_spill] sm:$0xff] %v20457_v59  ;;  %26151 = vst [vmem:[#allocation84_spill] sm:$0xff] %v20462_v57 }
 0x140   :  { %15772 = vmatmul.mubr.f32.gmra.mrb[14].mxu0 %v20443_v58 }
 0x141   :  { %15774 = vmatprep.mubr.f32.mxu0 %v20448_v19  ;;  %17893 = vmatpush3.bf16.msra.mxu0 %v17890_v54  ;;  %v20482_v54 = vld [vmem:[%s25740_s0 + $0xfa] sm:$0xff]  ;;  %v13499_v19 = vld [vmem:[%s25738_s1 + $0x228] sm:$0xff] }
 0x142   :  { %17895 = vmatprep.subr.bf16.mxu0 %v20450_v62  ;;  %26154 = vst [vmem:[#allocation87_spill] sm:$0xff] %v20482_v54 }
 0x144   :  { %15775 = vmatmul.mubr.f32.gmra.mrb[16].mxu0 %v20457_v59  ;;  %v1432_v59 = vld [vmem:[%s25740_s0 + $0x1ba] sm:$0xff] }
 0x145   :  { %15777 = vmatprep.mubr.f32.mxu0 %v20462_v57  ;;  %v20487_v57 = vld [vmem:[%s25740_s0 + $0x10a] sm:$0xff] }
 0x146   :  { %26155 = vst [vmem:[#allocation88_spill] sm:$0xff] %v20487_v57 }
 0x148   :  { %15778 = vmatmul.mubr.f32.gmra.mrb[18].mxu0 %v20470_v20  ;;  %v20494_v20 = vld [vmem:[%s25740_s0 + $0x112] sm:$0xff] }
 0x149   :  { %15780 = vmatprep.mubr.f32.mxu0 %v20475_v0  ;;  %26156 = vst [vmem:[#allocation89_spill] sm:$0xff] %v20494_v20  ;;  %v20499_v0 = vld [vmem:[%s25740_s0 + $0x122] sm:$0xff] }
 0x14a   :  { %26157 = vst [vmem:[#allocation90_spill] sm:$0xff] %v20499_v0 }
 0x14c   :  { %15781 = vmatmul.mubr.f32.gmra.mrb[20].mxu0 %v20482_v54  ;;  %v20506_v54 = vld [vmem:[%s25740_s0 + $0x12a] sm:$0xff] }
 0x14d   :  { %15783 = vmatprep.mubr.f32.mxu0 %v20487_v57  ;;  %26158 = vst [vmem:[#allocation91_spill] sm:$0xff] %v20506_v54  ;;  %v20511_v57 = vld [vmem:[%s25740_s0 + $0x13a] sm:$0xff] }
 0x14e   :  { %26159 = vst [vmem:[#allocation92_spill] sm:$0xff] %v20511_v57 }
 0x150   :  { %15784 = vmatmul.mubr.f32.gmra.mrb[22].mxu0 %v20494_v20  ;;  %v20518_v20 = vld [vmem:[%s25740_s0 + $0x142] sm:$0xff] }
 0x151   :  { %15786 = vmatprep.mubr.f32.mxu0 %v20499_v0  ;;  %26160 = vst [vmem:[#allocation93_spill] sm:$0xff] %v20518_v20  ;;  %v20523_v0 = vld [vmem:[%s25740_s0 + $0x152] sm:$0xff] }
 0x152   :  { %26161 = vst [vmem:[#allocation94_spill] sm:$0xff] %v20523_v0 }
 0x154   :  { %15787 = vmatmul.mubr.f32.gmra.mrb[24].mxu0 %v20506_v54  ;;  %v20530_v54 = vld [vmem:[%s25740_s0 + $0x15a] sm:$0xff] }
 0x155   :  { %15789 = vmatprep.mubr.f32.mxu0 %v20511_v57  ;;  %26162 = vst [vmem:[#allocation95_spill] sm:$0xff] %v20530_v54  ;;  %v20535_v57 = vld [vmem:[%s25740_s0 + $0x16a] sm:$0xff] }
 0x156   :  { %26163 = vst [vmem:[#allocation96_spill] sm:$0xff] %v20535_v57 }
 0x158   :  { %15790 = vmatmul.mubr.f32.gmra.mrb[26].mxu0 %v20518_v20  ;;  %v20542_v20 = vld [vmem:[%s25740_s0 + $0x172] sm:$0xff] }
 0x159   :  { %15792 = vmatprep.mubr.f32.mxu0 %v20523_v0  ;;  %26164 = vst [vmem:[#allocation97_spill] sm:$0xff] %v20542_v20  ;;  %v1431_v0 = vld [vmem:[%s25740_s0 + $0x1b2] sm:$0xff] }
 0x15c   :  { %15793 = vmatmul.mubr.f32.gmra.mrb[28].mxu0 %v20530_v54  ;;  %v20560_v54 = vld [vmem:[%s25740_s0 + $0x1d2] sm:$0xff] }
 0x15d   :  { %15795 = vmatprep.mubr.f32.mxu0 %v20535_v57  ;;  %v20554_v57 = vld [vmem:[%s25740_s0 + $0x1ca] sm:$0xff]  ;;  %26166 = vst [vmem:[#allocation99_spill] sm:$0xff] %v20560_v54 }
 0x15e   :  { %26165 = vst [vmem:[#allocation98_spill] sm:$0xff] %v20554_v57 }
 0x160   :  { %15796 = vmatmul.mubr.f32.gmra.mrb[30].mxu0 %v20542_v20  ;;  %v13497_v20 = vld [vmem:[%s25738_s1 + $0x218] sm:$0xff] }
 0x161   :  { %15798 = vmatprep.mubr.f32.mxu0 %v1431_v0  ;;  %v20565_v0 = vld [vmem:[%s25740_s0 + $0x1e2] sm:$0xff] }
 0x162   :  { %26167 = vst [vmem:[#allocation100_spill] sm:$0xff] %v20565_v0 }
 0x164   :  { %15799 = vmatmul.mubr.f32.gmra.mrb[32].mxu0 %v1432_v59  ;;  %v20572_v59 = vld [vmem:[%s25740_s0 + $0x1ea] sm:$0xff] }
 0x165   :  { %15801 = vmatprep.mubr.f32.mxu0 %v20554_v57  ;;  %26168 = vst [vmem:[#allocation101_spill] sm:$0xff] %v20572_v59  ;;  %v20577_v57 = vld [vmem:[%s25740_s0 + $0x1fa] sm:$0xff] }
 0x166   :  { %26169 = vst [vmem:[#allocation102_spill] sm:$0xff] %v20577_v57 }
 0x168   :  { %15802 = vmatmul.mubr.f32.gmra.mrb[34].mxu0 %v20560_v54  ;;  %v20584_v54 = vld [vmem:[%s25740_s0 + $0x202] sm:$0xff] }
 0x169   :  { %15804 = vmatprep.mubr.f32.mxu0 %v20565_v0  ;;  %26170 = vst [vmem:[#allocation103_spill] sm:$0xff] %v20584_v54  ;;  %v20589_v0 = vld [vmem:[%s25740_s0 + $0x212] sm:$0xff] }
 0x16a   :  { %26171 = vst [vmem:[#allocation104_spill] sm:$0xff] %v20589_v0 }
 0x16c   :  { %15805 = vmatmul.mubr.f32.gmra.mrb[36].mxu0 %v20572_v59  ;;  %v20596_v59 = vld [vmem:[%s25740_s0 + $0x21a] sm:$0xff] }
 0x16d   :  { %15807 = vmatprep.mubr.f32.mxu0 %v20577_v57  ;;  %26172 = vst [vmem:[#allocation105_spill] sm:$0xff] %v20596_v59  ;;  %v20601_v57 = vld [vmem:[%s25740_s0 + $0x22a] sm:$0xff] }
 0x16e   :  { %26173 = vst [vmem:[#allocation106_spill] sm:$0xff] %v20601_v57 }
 0x170   :  { %15808 = vmatmul.mubr.f32.gmra.mrb[38].mxu0 %v20584_v54  ;;  %v20608_v54 = vld [vmem:[%s25740_s0 + $0x232] sm:$0xff] }
 0x171   :  { %15810 = vmatprep.mubr.f32.mxu0 %v20589_v0  ;;  %26174 = vst [vmem:[#allocation107_spill] sm:$0xff] %v20608_v54  ;;  %v20613_v0 = vld [vmem:[%s25740_s0 + $0x242] sm:$0xff] }
 0x172   :  { %26175 = vst [vmem:[#allocation108_spill] sm:$0xff] %v20613_v0 }
 0x174   :  { %15811 = vmatmul.mubr.f32.gmra.mrb[40].mxu0 %v20596_v59  ;;  %v20620_v59 = vld [vmem:[%s25740_s0 + $0x24a] sm:$0xff] }
 0x175   :  { %15813 = vmatprep.mubr.f32.mxu0 %v20601_v57  ;;  %26176 = vst [vmem:[#allocation109_spill] sm:$0xff] %v20620_v59  ;;  %v20625_v57 = vld [vmem:[%s25740_s0 + $0x25a] sm:$0xff] }
 0x176   :  { %26177 = vst [vmem:[#allocation110_spill] sm:$0xff] %v20625_v57 }
 0x178   :  { %15814 = vmatmul.mubr.f32.gmra.mrb[42].mxu0 %v20608_v54  ;;  %v20632_v54 = vld [vmem:[%s25740_s0 + $0x262] sm:$0xff] }
 0x179   :  { %15816 = vmatprep.mubr.f32.mxu0 %v20613_v0  ;;  %26178 = vst [vmem:[#allocation111_spill] sm:$0xff] %v20632_v54  ;;  %v20637_v0 = vld [vmem:[%s25740_s0 + $0x272] sm:$0xff] }
 0x17a   :  { %26179 = vst [vmem:[#allocation112_spill] sm:$0xff] %v20637_v0 }
 0x17c   :  { %15817 = vmatmul.mubr.f32.gmra.mrb[44].mxu0 %v20620_v59  ;;  %v20644_v59 = vld [vmem:[%s25740_s0 + $0x27a] sm:$0xff] }
 0x17d   :  { %15819 = vmatprep.mubr.f32.mxu0 %v20625_v57  ;;  %26180 = vst [vmem:[#allocation113_spill] sm:$0xff] %v20644_v59  ;;  %v20649_v57 = vld [vmem:[%s25740_s0 + $0x28a] sm:$0xff] }
 0x17e   :  { %26181 = vst [vmem:[#allocation114_spill] sm:$0xff] %v20649_v57 }
 0x180   :  { %15820 = vmatmul.mubr.f32.gmra.mrb[46].mxu0 %v20632_v54  ;;  %v20656_v54 = vld [vmem:[%s25740_s0 + $0x292] sm:$0xff] }
 0x181   :  { %15822 = vmatprep.mubr.f32.mxu0 %v20637_v0  ;;  %26182 = vst [vmem:[#allocation115_spill] sm:$0xff] %v20656_v54  ;;  %v20661_v0 = vld [vmem:[%s25740_s0 + $0x2a2] sm:$0xff] }
 0x182   :  { %26183 = vst [vmem:[#allocation116_spill] sm:$0xff] %v20661_v0 }
 0x184   :  { %15823 = vmatmul.mubr.f32.gmra.mrb[48].mxu0 %v20644_v59  ;;  %v20668_v59 = vld [vmem:[%s25740_s0 + $0x2aa] sm:$0xff] }
 0x185   :  { %15825 = vmatprep.mubr.f32.mxu0 %v20649_v57  ;;  %26184 = vst [vmem:[#allocation117_spill] sm:$0xff] %v20668_v59  ;;  %v20673_v57 = vld [vmem:[%s25740_s0 + $0x2ba] sm:$0xff] }
 0x186   :  { %26185 = vst [vmem:[#allocation118_spill] sm:$0xff] %v20673_v57 }
 0x188   :  { %15826 = vmatmul.mubr.f32.gmra.mrb[50].mxu0 %v20656_v54  ;;  %v20680_v54 = vld [vmem:[%s25740_s0 + $0x2c2] sm:$0xff] }
 0x189   :  { %15828 = vmatprep.mubr.f32.mxu0 %v20661_v0  ;;  %26186 = vst [vmem:[#allocation119_spill] sm:$0xff] %v20680_v54  ;;  %v20685_v0 = vld [vmem:[%s25740_s0 + $0x2d2] sm:$0xff] }
 0x18a   :  { %26187 = vst [vmem:[#allocation120_spill] sm:$0xff] %v20685_v0 }
 0x18c   :  { %15829 = vmatmul.mubr.f32.gmra.mrb[52].mxu0 %v20668_v59  ;;  %v20692_v59 = vld [vmem:[%s25740_s0 + $0x2da] sm:$0xff] }
 0x18d   :  { %15831 = vmatprep.mubr.f32.mxu0 %v20673_v57  ;;  %26188 = vst [vmem:[#allocation121_spill] sm:$0xff] %v20692_v59  ;;  %v20697_v57 = vld [vmem:[%s25740_s0 + $0x2ea] sm:$0xff] }
 0x18e   :  { %26189 = vst [vmem:[#allocation122_spill] sm:$0xff] %v20697_v57 }
 0x190   :  { %15832 = vmatmul.mubr.f32.gmra.mrb[54].mxu0 %v20680_v54  ;;  %v20704_v54 = vld [vmem:[%s25740_s0 + $0x2f2] sm:$0xff] }
 0x191   :  { %15834 = vmatprep.mubr.f32.mxu0 %v20685_v0  ;;  %26190 = vst [vmem:[#allocation123_spill] sm:$0xff] %v20704_v54  ;;  %v20709_v0 = vld [vmem:[%s25740_s0 + $0x302] sm:$0xff] }
 0x192   :  { %26191 = vst [vmem:[#allocation124_spill] sm:$0xff] %v20709_v0 }
 0x194   :  { %15835 = vmatmul.mubr.f32.gmra.mrb[56].mxu0 %v20692_v59  ;;  %v20716_v59 = vld [vmem:[%s25740_s0 + $0x30a] sm:$0xff] }
 0x195   :  { %15837 = vmatprep.mubr.f32.mxu0 %v20697_v57  ;;  %26192 = vst [vmem:[#allocation125_spill] sm:$0xff] %v20716_v59  ;;  %v20721_v57 = vld [vmem:[%s25740_s0 + $0x31a] sm:$0xff] }
 0x196   :  { %26193 = vst [vmem:[#allocation126_spill] sm:$0xff] %v20721_v57 }
 0x198   :  { %15838 = vmatmul.mubr.f32.gmra.mrb[58].mxu0 %v20704_v54  ;;  %v20728_v54 = vld [vmem:[%s25740_s0 + $0x322] sm:$0xff] }
 0x199   :  { %15840 = vmatprep.mubr.f32.mxu0 %v20709_v0  ;;  %v13496_v0 = vld [vmem:[%s25738_s1 + $0x210] sm:$0xff] }
 0x19c   :  { %15841 = vmatmul.mubr.f32.gmra.mrb[60].mxu0 %v20716_v59  ;;  %v17898_v59 = vpack.c.bf16 %v13497_v20, %v13496_v0  ;;  %v13501_v20 = vld [vmem:[%s25738_s1 + $0x238] sm:$0xff]  ;;  %v13575_v0 = vld [vmem:[%s25738_s1 + $0x288] sm:$0xff] }
 0x19d   :  { %15843 = vmatprep.mubr.f32.mxu0 %v20721_v57  ;;  %v13498_v57 = vld [vmem:[%s25738_s1 + $0x220] sm:$0xff] }
 0x19e   :  { %v17902_v58 = vpack.c.bf16 %v13499_v19, %v13498_v57  ;;  %v13503_v19 = vld [vmem:[%s25738_s1 + $0x248] sm:$0xff]  ;;  %v13509_v57 = vld [vmem:[%s25738_s1 + $0x278] sm:$0xff] }
 0x1a0   :  { %15844 = vmatmul.mubr.f32.gmra.mrb[62].mxu0 %v20728_v54 }
 0x1a1   :  { %15878 = vmatprep.mubr.f32.mxu0 %v19475_v31  ;;  %v13500_v31 = vld [vmem:[%s25738_s1 + $0x230] sm:$0xff] }
 0x1a4   :  { %15879 = vmatmul.mubr.f32.vlgmr.msra.gmra.mrb[0].mxu0 %v19487_v35  ;;  %v17906_v35 = vpack.c.bf16 %v13501_v20, %v13500_v31  ;;  %v13654_v20 = vld [vmem:[%s25738_s1 + $0x300] sm:$0xff] }
 0x1a5   :  { %17897 = vmatpush3.bf16.msra.mxu0 %v20450_v62  ;;  %15881 = vmatprep.mubr.f32.mxu0 %v19492_v36  ;;  %v13502_v36 = vld [vmem:[%s25738_s1 + $0x240] sm:$0xff]  ;;  %v13505_v62 = vld [vmem:[%s25738_s1 + $0x258] sm:$0xff] }
 0x1a6   :  { %17899 = vmatprep.subr.bf16.mxu0 %v17898_v59 }
 0x1a8   :  { %15882 = vmatmul.mubr.f32.gmra.mrb[2].mxu0 %v19505_v40  ;;  %v17910_v40 = vpack.c.bf16 %v13503_v19, %v13502_v36  ;;  %v26213_v36 = vld [vmem:[#allocation23_spill] sm:$0xff]  ;;  %v26214_v19 = vld [vmem:[#allocation24_spill] sm:$0xff] }
 0x1a9   :  { %15884 = vmatprep.mubr.f32.mxu0 %v19510_v41  ;;  %17901 = vmatpush3.bf16.msra.mxu0 %v17898_v59  ;;  %v13504_v41 = vld [vmem:[%s25738_s1 + $0x250] sm:$0xff] }
 0x1aa   :  { %17903 = vmatprep.subr.bf16.mxu0 %v17902_v58  ;;  %v26212_v59 = vld [vmem:[#allocation22_spill] sm:$0xff] }
 0x1ac   :  { %15885 = vmatmul.mubr.f32.gmra.mrb[4].mxu0 %v19523_v45  ;;  %v17914_v45 = vpack.c.bf16 %v13505_v62, %v13504_v41  ;;  %v26215_v41 = vld [vmem:[#allocation25_spill] sm:$0xff]  ;;  %v26216_v62 = vld [vmem:[#allocation26_spill] sm:$0xff] }
 0x1ad   :  { %15887 = vmatprep.mubr.f32.mxu0 %v19528_v46  ;;  %17905 = vmatpush3.bf16.msra.mxu0 %v17902_v58  ;;  %v13506_v46 = vld [vmem:[%s25738_s1 + $0x260] sm:$0xff]  ;;  %v13507_v58 = vld [vmem:[%s25738_s1 + $0x268] sm:$0xff] }
 0x1ae   :  { %17907 = vmatprep.subr.bf16.mxu0 %v17906_v35 }
 0x1b0   :  { %15888 = vmatmul.mubr.f32.gmra.mrb[6].mxu0 %v19541_v50  ;;  %v17918_v50 = vpack.c.bf16 %v13507_v58, %v13506_v46  ;;  %v26218_v46 = vld [vmem:[#allocation28_spill] sm:$0xff]  ;;  %v26219_v58 = vld [vmem:[#allocation29_spill] sm:$0xff] }
 0x1b1   :  { %15890 = vmatprep.mubr.f32.mxu0 %v19546_v51  ;;  %17909 = vmatpush3.bf16.msra.mxu0 %v17906_v35  ;;  %v13508_v51 = vld [vmem:[%s25738_s1 + $0x270] sm:$0xff]  ;;  %v13655_v35 = vld [vmem:[%s25738_s1 + $0x308] sm:$0xff] }
 0x1b2   :  { %17911 = vmatprep.subr.bf16.mxu0 %v17910_v40 }
 0x1b4   :  { %15891 = vmatmul.mubr.f32.gmra.mrb[8].mxu0 %v19559_v55  ;;  %v17922_v55 = vpack.c.bf16 %v13509_v57, %v13508_v51  ;;  %v26221_v51 = vld [vmem:[#allocation31_spill] sm:$0xff]  ;;  %v26222_v57 = vld [vmem:[#allocation32_spill] sm:$0xff] }
 0x1b5   :  { %15893 = vmatprep.mubr.f32.mxu0 %v19564_v56  ;;  %17913 = vmatpush3.bf16.msra.mxu0 %v17910_v40  ;;  %v13574_v56 = vld [vmem:[%s25738_s1 + $0x280] sm:$0xff]  ;;  %v17958_v40 = vpack.c.bf16 %v13655_v35, %v13654_v20 }
 0x1b6   :  { %17915 = vmatprep.subr.bf16.mxu0 %v17914_v45  ;;  %v13658_v35 = vld [vmem:[%s25738_s1 + $0x320] sm:$0xff] }
 0x1b8   :  { %15894 = vmatmul.mubr.f32.gmra.mrb[10].mxu0 %v19577_v60  ;;  %v17926_v60 = vpack.c.bf16 %v13575_v0, %v13574_v56  ;;  %v26224_v56 = vld [vmem:[#allocation34_spill] sm:$0xff]  ;;  %v26225_v0 = vld [vmem:[#allocation35_spill] sm:$0xff] }
 0x1b9   :  { %15896 = vmatprep.mubr.f32.mxu0 %v19582_v61  ;;  %17917 = vmatpush3.bf16.msra.mxu0 %v17914_v45  ;;  %v20812_v61 = vld [vmem:[%s25740_s0 + $0x180] sm:$0xff]  ;;  %v26217_v45 = vld [vmem:[#allocation27_spill] sm:$0xff] }
 0x1ba   :  { %17919 = vmatprep.subr.bf16.mxu0 %v17918_v50 }
 0x1bc   :  { %15897 = vmatmul.mubr.f32.gmra.mrb[12].mxu0 %v19595_v1  ;;  %v20819_v1 = vld [vmem:[%s25740_s0 + $0x188] sm:$0xff] }
 0x1bd   :  { %15899 = vmatprep.mubr.f32.mxu0 %v19600_v2  ;;  %17921 = vmatpush3.bf16.msra.mxu0 %v17918_v50  ;;  %v26194_v2 = vld [vmem:[#allocation4_spill] sm:$0xff]  ;;  %v26220_v50 = vld [vmem:[#allocation30_spill] sm:$0xff] }
 0x1be   :  { %17923 = vmatprep.subr.bf16.mxu0 %v17922_v55 }
 0x1c0   :  { %15900 = vmatmul.mubr.f32.gmra.mrb[14].mxu0 %v19609_v4  ;;  %v26195_v4 = vld [vmem:[#allocation5_spill] sm:$0xff] }
 0x1c1   :  { %15902 = vmatprep.mubr.f32.mxu0 %v19614_v5  ;;  %17925 = vmatpush3.bf16.msra.mxu0 %v17922_v55  ;;  %v26196_v5 = vld [vmem:[#allocation6_spill] sm:$0xff]  ;;  %v26223_v55 = vld [vmem:[#allocation33_spill] sm:$0xff] }
 0x1c2   :  { %17927 = vmatprep.subr.bf16.mxu0 %v17926_v60 }
 0x1c4   :  { %15903 = vmatmul.mubr.f32.gmra.mrb[16].mxu0 %v19622_v6  ;;  %v26197_v6 = vld [vmem:[#allocation7_spill] sm:$0xff] }
 0x1c5   :  { %15905 = vmatprep.mubr.f32.mxu0 %v19627_v7  ;;  %v26198_v7 = vld [vmem:[#allocation8_spill] sm:$0xff] }
 0x1c8   :  { %15906 = vmatmul.mubr.f32.gmra.mrb[18].mxu0 %v19634_v8  ;;  %v20854_v8 = vld [vmem:[%s25740_s0 + $0x330] sm:$0xff] }
 0x1c9   :  { %15908 = vmatprep.mubr.f32.mxu0 %v19639_v9  ;;  %v26199_v9 = vld [vmem:[#allocation9_spill] sm:$0xff] }
 0x1cc   :  { %15909 = vmatmul.mubr.f32.gmra.mrb[20].mxu0 %v19646_v10  ;;  %v20861_v10 = vld [vmem:[%s25740_s0 + $0x338] sm:$0xff] }
 0x1cd   :  { %15911 = vmatprep.mubr.f32.mxu0 %v19651_v11  ;;  %v13576_v11 = vld [vmem:[%s25738_s1 + $0x290] sm:$0xff] }
 0x1d0   :  { %15912 = vmatmul.mubr.f32.gmra.mrb[22].mxu0 %v19658_v12  ;;  %v13577_v12 = vld [vmem:[%s25738_s1 + $0x298] sm:$0xff] }
 0x1d1   :  { %15914 = vmatprep.mubr.f32.mxu0 %v19663_v13  ;;  %v26200_v13 = vld [vmem:[#allocation10_spill] sm:$0xff] }
 0x1d4   :  { %15915 = vmatmul.mubr.f32.gmra.mrb[24].mxu0 %v19670_v14  ;;  %v17930_v14 = vpack.c.bf16 %v13577_v12, %v13576_v11  ;;  %v26231_v11 = vld [vmem:[#allocation41_spill] sm:$0xff]  ;;  %v26232_v12 = vld [vmem:[#allocation42_spill] sm:$0xff] }
 0x1d5   :  { %15917 = vmatprep.mubr.f32.mxu0 %v19675_v15  ;;  %v13578_v15 = vld [vmem:[%s25738_s1 + $0x2a0] sm:$0xff] }
 0x1d8   :  { %15918 = vmatmul.mubr.f32.gmra.mrb[26].mxu0 %v19682_v16  ;;  %v13579_v16 = vld [vmem:[%s25738_s1 + $0x2a8] sm:$0xff] }
 0x1d9   :  { %15920 = vmatprep.mubr.f32.mxu0 %v19687_v17  ;;  %v26201_v17 = vld [vmem:[#allocation11_spill] sm:$0xff] }
 0x1dc   :  { %15921 = vmatmul.mubr.f32.gmra.mrb[28].mxu0 %v19694_v18  ;;  %v26202_v18 = vld [vmem:[#allocation12_spill] sm:$0xff] }
 0x1dd   :  { %15923 = vmatprep.mubr.f32.mxu0 %v20812_v61 }
 0x1e0   :  { %15924 = vmatmul.mubr.f32.gmra.mrb[30].mxu0 %v20819_v1 }
 0x1e1   :  { %15926 = vmatprep.mubr.f32.mxu0 %v19706_v21  ;;  %v17934_v21 = vpack.c.bf16 %v13579_v16, %v13578_v15  ;;  %v26235_v15 = vld [vmem:[#allocation45_spill] sm:$0xff]  ;;  %v26236_v16 = vld [vmem:[#allocation46_spill] sm:$0xff] }
 0x1e4   :  { %15927 = vmatmul.mubr.f32.gmra.mrb[32].mxu0 %v19712_v22  ;;  %v13580_v22 = vld [vmem:[%s25738_s1 + $0x2b0] sm:$0xff] }
 0x1e5   :  { %15929 = vmatprep.mubr.f32.mxu0 %v19717_v23  ;;  %v13581_v23 = vld [vmem:[%s25738_s1 + $0x2b8] sm:$0xff] }
 0x1e8   :  { %15930 = vmatmul.mubr.f32.gmra.mrb[34].mxu0 %v19724_v24  ;;  %v26203_v24 = vld [vmem:[#allocation13_spill] sm:$0xff] }
 0x1e9   :  { %15932 = vmatprep.mubr.f32.mxu0 %v19729_v25  ;;  %v26204_v25 = vld [vmem:[#allocation14_spill] sm:$0xff] }
 0x1ec   :  { %15933 = vmatmul.mubr.f32.gmra.mrb[36].mxu0 %v19736_v26  ;;  %v17938_v26 = vpack.c.bf16 %v13581_v23, %v13580_v22  ;;  %v26240_v22 = vld [vmem:[#allocation50_spill] sm:$0xff]  ;;  %v26241_v23 = vld [vmem:[#allocation51_spill] sm:$0xff] }
 0x1ed   :  { %15935 = vmatprep.mubr.f32.mxu0 %v19741_v27  ;;  %v13582_v27 = vld [vmem:[%s25738_s1 + $0x2c0] sm:$0xff] }
 0x1f0   :  { %15936 = vmatmul.mubr.f32.gmra.mrb[38].mxu0 %v19748_v28  ;;  %v13583_v28 = vld [vmem:[%s25738_s1 + $0x2c8] sm:$0xff] }
 0x1f1   :  { %15938 = vmatprep.mubr.f32.mxu0 %v19753_v29  ;;  %v26205_v29 = vld [vmem:[#allocation15_spill] sm:$0xff] }
 0x1f4   :  { %15939 = vmatmul.mubr.f32.gmra.mrb[40].mxu0 %v19760_v30  ;;  %v26206_v30 = vld [vmem:[#allocation16_spill] sm:$0xff] }
 0x1f5   :  { %15941 = vmatprep.mubr.f32.mxu0 %v19765_v32  ;;  %v17942_v32 = vpack.c.bf16 %v13583_v28, %v13582_v27  ;;  %v26245_v27 = vld [vmem:[#allocation55_spill] sm:$0xff]  ;;  %v26246_v28 = vld [vmem:[#allocation56_spill] sm:$0xff] }
 0x1f8   :  { %15942 = vmatmul.mubr.f32.gmra.mrb[42].mxu0 %v19772_v33  ;;  %v13584_v33 = vld [vmem:[%s25738_s1 + $0x2d0] sm:$0xff] }
 0x1f9   :  { %15944 = vmatprep.mubr.f32.mxu0 %v19777_v34  ;;  %v13585_v34 = vld [vmem:[%s25738_s1 + $0x2d8] sm:$0xff] }
 0x1fc   :  { %15945 = vmatmul.mubr.f32.gmra.mrb[44].mxu0 %v19784_v37  ;;  %v26207_v37 = vld [vmem:[#allocation17_spill] sm:$0xff] }
 0x1fd   :  { %15947 = vmatprep.mubr.f32.mxu0 %v19789_v38  ;;  %v26208_v38 = vld [vmem:[#allocation18_spill] sm:$0xff] }
 0x200   :  { %15948 = vmatmul.mubr.f32.gmra.mrb[46].mxu0 %v19796_v39  ;;  %v17946_v39 = vpack.c.bf16 %v13585_v34, %v13584_v33  ;;  %v26250_v33 = vld [vmem:[#allocation60_spill] sm:$0xff]  ;;  %v26251_v34 = vld [vmem:[#allocation61_spill] sm:$0xff] }
 0x201   :  { %15950 = vmatprep.mubr.f32.mxu0 %v19801_v42  ;;  %v13586_v42 = vld [vmem:[%s25738_s1 + $0x2e0] sm:$0xff] }
 0x204   :  { %15951 = vmatmul.mubr.f32.gmra.mrb[48].mxu0 %v19808_v43  ;;  %v13587_v43 = vld [vmem:[%s25738_s1 + $0x2e8] sm:$0xff] }
 0x205   :  { %15953 = vmatprep.mubr.f32.mxu0 %v19813_v44  ;;  %v26209_v44 = vld [vmem:[#allocation19_spill] sm:$0xff] }
 0x208   :  { %15954 = vmatmul.mubr.f32.gmra.mrb[50].mxu0 %v19820_v47  ;;  %v26210_v47 = vld [vmem:[#allocation20_spill] sm:$0xff] }
 0x209   :  { %15956 = vmatprep.mubr.f32.mxu0 %v19825_v48  ;;  %v17950_v48 = vpack.c.bf16 %v13587_v43, %v13586_v42  ;;  %v26255_v42 = vld [vmem:[#allocation65_spill] sm:$0xff]  ;;  %v26256_v43 = vld [vmem:[#allocation66_spill] sm:$0xff] }
 0x20c   :  { %15957 = vmatmul.mubr.f32.gmra.mrb[52].mxu0 %v19832_v49  ;;  %v13588_v49 = vld [vmem:[%s25738_s1 + $0x2f0] sm:$0xff] }
 0x20d   :  { %15959 = vmatprep.mubr.f32.mxu0 %v19837_v52  ;;  %v13589_v52 = vld [vmem:[%s25738_s1 + $0x2f8] sm:$0xff] }
 0x20e   :  { %v17954_v31 = vpack.c.bf16 %v13589_v52, %v13588_v49  ;;  %v26259_v49 = vld [vmem:[#allocation69_spill] sm:$0xff]  ;;  %v20993_v52 = vld [vmem:[%s25740_s0 + $0x339] sm:$0xff] }
 0x210   :  { %15960 = vmatmul.mubr.f32.gmra.mrb[54].mxu0 %v19844_v53  ;;  %v26211_v53 = vld [vmem:[#allocation21_spill] sm:$0xff] }
 0x211   :  { %15962 = vmatprep.mubr.f32.mxu0 %v26194_v2  ;;  %v26227_v2 = vld [vmem:[#allocation37_spill] sm:$0xff] }
 0x214   :  { %15963 = vmatmul.mubr.f32.gmra.mrb[56].mxu0 %v26195_v4  ;;  %v26228_v4 = vld [vmem:[#allocation38_spill] sm:$0xff] }
 0x215   :  { %15965 = vmatprep.mubr.f32.mxu0 %v26196_v5  ;;  %v20944_v5 = vld [vmem:[%s25740_s0 + $0x181] sm:$0xff] }
 0x218   :  { %15966 = vmatmul.mubr.f32.gmra.mrb[58].mxu0 %v26197_v6  ;;  %v26229_v6 = vld [vmem:[#allocation39_spill] sm:$0xff] }
 0x219   :  { %15968 = vmatprep.mubr.f32.mxu0 %v26198_v7  ;;  %v20951_v7 = vld [vmem:[%s25740_s0 + $0x189] sm:$0xff] }
 0x21c   :  { %15969 = vmatmul.mubr.f32.gmra.mrb[60].mxu0 %v26199_v9  ;;  %v26230_v9 = vld [vmem:[#allocation40_spill] sm:$0xff] }
 0x21d   :  { %15971 = vmatprep.mubr.f32.mxu0 %v20854_v8 }
 0x220   :  { %15972 = vmatmul.mubr.f32.gmra.mrb[62].mxu0 %v20861_v10 }
 0x221   :  { %16006 = vmatprep.mubr.f32.mxu0 %v26200_v13  ;;  %v26233_v13 = vld [vmem:[#allocation43_spill] sm:$0xff] }
 0x224   :  { %16007 = vmatmul.mubr.f32.vlgmr.msra.gmra.mrb[0].mxu0 %v26201_v17  ;;  %v26237_v17 = vld [vmem:[#allocation47_spill] sm:$0xff] }
 0x225   :  { %17929 = vmatpush3.bf16.msra.mxu0 %v17926_v60  ;;  %16009 = vmatprep.mubr.f32.mxu0 %v26202_v18  ;;  %v26226_v60 = vld [vmem:[#allocation36_spill] sm:$0xff] }
 0x226   :  { %17931 = vmatprep.subr.bf16.mxu0 %v17930_v14  ;;  %v26238_v18 = vld [vmem:[#allocation48_spill] sm:$0xff] }
 0x228   :  { %16010 = vmatmul.mubr.f32.gmra.mrb[2].mxu0 %v26203_v24  ;;  %v26242_v24 = vld [vmem:[#allocation52_spill] sm:$0xff] }
 0x229   :  { %16012 = vmatprep.mubr.f32.mxu0 %v26204_v25  ;;  %17933 = vmatpush3.bf16.msra.mxu0 %v17930_v14  ;;  %v26234_v14 = vld [vmem:[#allocation44_spill] sm:$0xff]  ;;  %v26243_v25 = vld [vmem:[#allocation53_spill] sm:$0xff] }
 0x22a   :  { %17935 = vmatprep.subr.bf16.mxu0 %v17934_v21 }
 0x22c   :  { %16013 = vmatmul.mubr.f32.gmra.mrb[4].mxu0 %v26205_v29  ;;  %v26247_v29 = vld [vmem:[#allocation57_spill] sm:$0xff] }
 0x22d   :  { %16015 = vmatprep.mubr.f32.mxu0 %v26206_v30  ;;  %17937 = vmatpush3.bf16.msra.mxu0 %v17934_v21  ;;  %v26239_v21 = vld [vmem:[#allocation49_spill] sm:$0xff]  ;;  %v26248_v30 = vld [vmem:[#allocation58_spill] sm:$0xff] }
 0x22e   :  { %17939 = vmatprep.subr.bf16.mxu0 %v17938_v26 }
 0x230   :  { %16016 = vmatmul.mubr.f32.gmra.mrb[6].mxu0 %v26207_v37  ;;  %v26252_v37 = vld [vmem:[#allocation62_spill] sm:$0xff] }
 0x231   :  { %16018 = vmatprep.mubr.f32.mxu0 %v26208_v38  ;;  %17941 = vmatpush3.bf16.msra.mxu0 %v17938_v26  ;;  %v26244_v26 = vld [vmem:[#allocation54_spill] sm:$0xff]  ;;  %v26253_v38 = vld [vmem:[#allocation63_spill] sm:$0xff] }
 0x232   :  { %17943 = vmatprep.subr.bf16.mxu0 %v17942_v32 }
 0x234   :  { %16019 = vmatmul.mubr.f32.gmra.mrb[8].mxu0 %v26209_v44  ;;  %v26257_v44 = vld [vmem:[#allocation67_spill] sm:$0xff] }
 0x235   :  { %16021 = vmatprep.mubr.f32.mxu0 %v26210_v47  ;;  %17945 = vmatpush3.bf16.msra.mxu0 %v17942_v32  ;;  %v26249_v32 = vld [vmem:[#allocation59_spill] sm:$0xff]  ;;  %v26258_v47 = vld [vmem:[#allocation68_spill] sm:$0xff] }
 0x236   :  { %17947 = vmatprep.subr.bf16.mxu0 %v17946_v39 }
 0x238   :  { %16022 = vmatmul.mubr.f32.gmra.mrb[10].mxu0 %v26211_v53  ;;  %v13656_v53 = vld [vmem:[%s25738_s1 + $0x310] sm:$0xff] }
 0x239   :  { %16024 = vmatprep.mubr.f32.mxu0 %v26212_v59  ;;  %17949 = vmatpush3.bf16.msra.mxu0 %v17946_v39  ;;  %v26254_v39 = vld [vmem:[#allocation64_spill] sm:$0xff]  ;;  %v13657_v59 = vld [vmem:[%s25738_s1 + $0x318] sm:$0xff] }
 0x23a   :  { %17951 = vmatprep.subr.bf16.mxu0 %v17950_v48  ;;  %v17962_v20 = vpack.c.bf16 %v13657_v59, %v13656_v53  ;;  %v26289_v53 = vld [vmem:[#allocation99_spill] sm:$0xff]  ;;  %v26290_v59 = vld [vmem:[#allocation100_spill] sm:$0xff] }
 0x23c   :  { %16025 = vmatmul.mubr.f32.gmra.mrb[12].mxu0 %v26213_v36  ;;  %v13659_v36 = vld [vmem:[%s25738_s1 + $0x328] sm:$0xff] }
 0x23d   :  { %16027 = vmatprep.mubr.f32.mxu0 %v26214_v19  ;;  %17953 = vmatpush3.bf16.msra.mxu0 %v17950_v48  ;;  %v20986_v48 = vld [vmem:[%s25740_s0 + $0x331] sm:$0xff] }
 0x23e   :  { %17955 = vmatprep.subr.bf16.mxu0 %v17954_v31  ;;  %v26261_v19 = vld [vmem:[#allocation71_spill] sm:$0xff] }
 0x240   :  { %16028 = vmatmul.mubr.f32.gmra.mrb[14].mxu0 %v26215_v41  ;;  %v26262_v41 = vld [vmem:[#allocation72_spill] sm:$0xff] }
 0x241   :  { %16030 = vmatprep.mubr.f32.mxu0 %v26216_v62  ;;  %17957 = vmatpush3.bf16.msra.mxu0 %v17954_v31  ;;  %v26260_v31 = vld [vmem:[#allocation70_spill] sm:$0xff]  ;;  %v17966_v62 = vpack.c.bf16 %v13659_v36, %v13658_v35  ;;  %v26293_v35 = vld [vmem:[#allocation103_spill] sm:$0xff]  ;;  %v26294_v36 = vld [vmem:[#allocation104_spill] sm:$0xff] }
 0x242   :  { %17959 = vmatprep.subr.bf16.mxu0 %v17958_v40 }
 0x244   :  { %16031 = vmatmul.mubr.f32.gmra.mrb[16].mxu0 %v26217_v45  ;;  %v13660_v45 = vld [vmem:[%s25738_s1 + $0x330] sm:$0xff] }
 0x245   :  { %16033 = vmatprep.mubr.f32.mxu0 %v26218_v46  ;;  %v13661_v46 = vld [vmem:[%s25738_s1 + $0x338] sm:$0xff] }
 0x248   :  { %16034 = vmatmul.mubr.f32.gmra.mrb[18].mxu0 %v26219_v58  ;;  %v26263_v58 = vld [vmem:[#allocation73_spill] sm:$0xff] }
 0x249   :  { %16036 = vmatprep.mubr.f32.mxu0 %v26220_v50  ;;  %v26264_v50 = vld [vmem:[#allocation74_spill] sm:$0xff] }
 0x24c   :  { %16037 = vmatmul.mubr.f32.gmra.mrb[20].mxu0 %v26221_v51  ;;  %v17970_v51 = vpack.c.bf16 %v13661_v46, %v13660_v45  ;;  %v26298_v45 = vld [vmem:[#allocation108_spill] sm:$0xff]  ;;  %v26299_v46 = vld [vmem:[#allocation109_spill] sm:$0xff] }
 0x24d   :  { %16039 = vmatprep.mubr.f32.mxu0 %v26222_v57  ;;  %v13663_v57 = vld [vmem:[%s25738_s1 + $0x348] sm:$0xff] }
 0x250   :  { %16040 = vmatmul.mubr.f32.gmra.mrb[22].mxu0 %v26223_v55  ;;  %v26265_v55 = vld [vmem:[#allocation75_spill] sm:$0xff] }
 0x251   :  { %16042 = vmatprep.mubr.f32.mxu0 %v26224_v56  ;;  %v26266_v56 = vld [vmem:[#allocation76_spill] sm:$0xff] }
 0x254   :  { %16043 = vmatmul.mubr.f32.gmra.mrb[24].mxu0 %v26225_v0 }
 0x255   :  { %16045 = vmatprep.mubr.f32.mxu0 %v26226_v60  ;;  %v13664_v60 = vld [vmem:[%s25738_s1 + $0x350] sm:$0xff] }
 0x258   :  { %16046 = vmatmul.mubr.f32.gmra.mrb[26].mxu0 %v26227_v2  ;;  %v13665_v2 = vld [vmem:[%s25738_s1 + $0x358] sm:$0xff] }
 0x259   :  { %16048 = vmatprep.mubr.f32.mxu0 %v26228_v4  ;;  %v26267_v4 = vld [vmem:[#allocation77_spill] sm:$0xff] }
 0x25c   :  { %16049 = vmatmul.mubr.f32.gmra.mrb[28].mxu0 %v26229_v6  ;;  %v26268_v6 = vld [vmem:[#allocation78_spill] sm:$0xff] }
 0x25d   :  { %16051 = vmatprep.mubr.f32.mxu0 %v20944_v5 }
 0x260   :  { %16052 = vmatmul.mubr.f32.gmra.mrb[30].mxu0 %v20951_v7 }
 0x261   :  { %16054 = vmatprep.mubr.f32.mxu0 %v26230_v9  ;;  %v17978_v9 = vpack.c.bf16 %v13665_v2, %v13664_v60  ;;  %v26308_v60 = vld [vmem:[#allocation118_spill] sm:$0xff]  ;;  %v26309_v2 = vld [vmem:[#allocation119_spill] sm:$0xff] }
 0x264   :  { %16055 = vmatmul.mubr.f32.gmra.mrb[32].mxu0 %v26231_v11  ;;  %v13666_v11 = vld [vmem:[%s25738_s1 + $0x360] sm:$0xff] }
 0x265   :  { %16057 = vmatprep.mubr.f32.mxu0 %v26232_v12  ;;  %v13667_v12 = vld [vmem:[%s25738_s1 + $0x368] sm:$0xff] }
 0x268   :  { %16058 = vmatmul.mubr.f32.gmra.mrb[34].mxu0 %v26233_v13  ;;  %v26269_v13 = vld [vmem:[#allocation79_spill] sm:$0xff] }
 0x269   :  { %16060 = vmatprep.mubr.f32.mxu0 %v26234_v14  ;;  %v17982_v14 = vpack.c.bf16 %v13667_v12, %v13666_v11  ;;  %v26313_v11 = vld [vmem:[#allocation123_spill] sm:$0xff]  ;;  %v26314_v12 = vld [vmem:[#allocation124_spill] sm:$0xff] }
 0x26c   :  { %16061 = vmatmul.mubr.f32.gmra.mrb[36].mxu0 %v26235_v15  ;;  %v13668_v15 = vld [vmem:[%s25738_s1 + $0x370] sm:$0xff] }
 0x26d   :  { %16063 = vmatprep.mubr.f32.mxu0 %v26236_v16  ;;  %v13669_v16 = vld [vmem:[%s25738_s1 + $0x378] sm:$0xff] }
 0x270   :  { %16064 = vmatmul.mubr.f32.gmra.mrb[38].mxu0 %v26237_v17  ;;  %v26270_v17 = vld [vmem:[#allocation80_spill] sm:$0xff] }
 0x271   :  { %16066 = vmatprep.mubr.f32.mxu0 %v26238_v18  ;;  %v13734_v18 = vld [vmem:[%s25738_s1 + $0x380] sm:$0xff] }
 0x274   :  { %16067 = vmatmul.mubr.f32.gmra.mrb[40].mxu0 %v26239_v21  ;;  %v13735_v21 = vld [vmem:[%s25738_s1 + $0x388] sm:$0xff] }
 0x275   :  { %16069 = vmatprep.mubr.f32.mxu0 %v26240_v22  ;;  %v26271_v22 = vld [vmem:[#allocation81_spill] sm:$0xff] }
 0x278   :  { %16070 = vmatmul.mubr.f32.gmra.mrb[42].mxu0 %v26241_v23  ;;  %v26272_v23 = vld [vmem:[#allocation82_spill] sm:$0xff] }
 0x279   :  { %16072 = vmatprep.mubr.f32.mxu0 %v26242_v24  ;;  %v26273_v24 = vld [vmem:[#allocation83_spill] sm:$0xff] }
 0x27c   :  { %16073 = vmatmul.mubr.f32.gmra.mrb[44].mxu0 %v26243_v25  ;;  %v26274_v25 = vld [vmem:[#allocation84_spill] sm:$0xff] }
 0x27d   :  { %16075 = vmatprep.mubr.f32.mxu0 %v26244_v26  ;;  %v26275_v26 = vld [vmem:[#allocation85_spill] sm:$0xff] }
 0x280   :  { %16076 = vmatmul.mubr.f32.gmra.mrb[46].mxu0 %v26245_v27  ;;  %v26276_v27 = vld [vmem:[#allocation86_spill] sm:$0xff] }
 0x281   :  { %16078 = vmatprep.mubr.f32.mxu0 %v26246_v28  ;;  %v26277_v28 = vld [vmem:[#allocation87_spill] sm:$0xff] }
 0x284   :  { %16079 = vmatmul.mubr.f32.gmra.mrb[48].mxu0 %v26247_v29  ;;  %v26278_v29 = vld [vmem:[#allocation88_spill] sm:$0xff] }
 0x285   :  { %16081 = vmatprep.mubr.f32.mxu0 %v26248_v30  ;;  %v26279_v30 = vld [vmem:[#allocation89_spill] sm:$0xff] }
 0x288   :  { %16082 = vmatmul.mubr.f32.gmra.mrb[50].mxu0 %v26249_v32  ;;  %v26280_v32 = vld [vmem:[#allocation90_spill] sm:$0xff] }
 0x289   :  { %16084 = vmatprep.mubr.f32.mxu0 %v26250_v33  ;;  %v26281_v33 = vld [vmem:[#allocation91_spill] sm:$0xff] }
 0x28c   :  { %16085 = vmatmul.mubr.f32.gmra.mrb[52].mxu0 %v26251_v34  ;;  %v26282_v34 = vld [vmem:[#allocation92_spill] sm:$0xff] }
 0x28d   :  { %16087 = vmatprep.mubr.f32.mxu0 %v26252_v37  ;;  %v26283_v37 = vld [vmem:[#allocation93_spill] sm:$0xff] }
 0x290   :  { %16088 = vmatmul.mubr.f32.gmra.mrb[54].mxu0 %v26253_v38  ;;  %v26284_v38 = vld [vmem:[#allocation94_spill] sm:$0xff] }
 0x291   :  { %16090 = vmatprep.mubr.f32.mxu0 %v26254_v39  ;;  %v26285_v39 = vld [vmem:[#allocation95_spill] sm:$0xff] }
 0x294   :  { %16091 = vmatmul.mubr.f32.gmra.mrb[56].mxu0 %v26255_v42  ;;  %v26286_v42 = vld [vmem:[#allocation96_spill] sm:$0xff] }
 0x295   :  { %16093 = vmatprep.mubr.f32.mxu0 %v26256_v43  ;;  %v21079_v43 = vld [vmem:[%s25740_s0 + $0x182] sm:$0xff] }
 0x298   :  { %16094 = vmatmul.mubr.f32.gmra.mrb[58].mxu0 %v26257_v44  ;;  %v26287_v44 = vld [vmem:[#allocation97_spill] sm:$0xff] }
 0x299   :  { %16096 = vmatprep.mubr.f32.mxu0 %v26258_v47  ;;  %v21086_v47 = vld [vmem:[%s25740_s0 + $0x18a] sm:$0xff] }
 0x29c   :  { %16097 = vmatmul.mubr.f32.gmra.mrb[60].mxu0 %v26259_v49  ;;  %v26288_v49 = vld [vmem:[#allocation98_spill] sm:$0xff] }
 0x29d   :  { %16099 = vmatprep.mubr.f32.mxu0 %v20986_v48 }
 0x2a0   :  { %16100 = vmatmul.mubr.f32.gmra.mrb[62].mxu0 %v20993_v52 }
 0x2a1   :  { %16134 = vmatprep.mubr.f32.mxu0 %v26260_v31  ;;  %v26291_v31 = vld [vmem:[#allocation101_spill] sm:$0xff] }
 0x2a4   :  { %16135 = vmatmul.mubr.f32.vlgmr.msra.gmra.mrb[0].mxu0 %v26261_v19  ;;  %v26295_v19 = vld [vmem:[#allocation105_spill] sm:$0xff] }
 0x2a5   :  { %17961 = vmatpush3.bf16.msra.mxu0 %v17958_v40  ;;  %16137 = vmatprep.mubr.f32.mxu0 %v26262_v41  ;;  %v13662_v40 = vld [vmem:[%s25738_s1 + $0x340] sm:$0xff]  ;;  %v26296_v41 = vld [vmem:[#allocation106_spill] sm:$0xff] }
 0x2a6   :  { %17963 = vmatprep.subr.bf16.mxu0 %v17962_v20  ;;  %v17974_v0 = vpack.c.bf16 %v13663_v57, %v13662_v40  ;;  %v26303_v40 = vld [vmem:[#allocation113_spill] sm:$0xff]  ;;  %v26304_v57 = vld [vmem:[#allocation114_spill] sm:$0xff] }
 0x2a8   :  { %16138 = vmatmul.mubr.f32.gmra.mrb[2].mxu0 %v26263_v58  ;;  %v26300_v58 = vld [vmem:[#allocation110_spill] sm:$0xff] }
 0x2a9   :  { %16140 = vmatprep.mubr.f32.mxu0 %v26264_v50  ;;  %17965 = vmatpush3.bf16.msra.mxu0 %v17962_v20  ;;  %v26292_v20 = vld [vmem:[#allocation102_spill] sm:$0xff]  ;;  %v26301_v50 = vld [vmem:[#allocation111_spill] sm:$0xff] }
 0x2aa   :  { %17967 = vmatprep.subr.bf16.mxu0 %v17966_v62 }
 0x2ac   :  { %16141 = vmatmul.mubr.f32.gmra.mrb[4].mxu0 %v26265_v55  ;;  %v26305_v55 = vld [vmem:[#allocation115_spill] sm:$0xff] }
 0x2ad   :  { %16143 = vmatprep.mubr.f32.mxu0 %v26266_v56  ;;  %17969 = vmatpush3.bf16.msra.mxu0 %v17966_v62  ;;  %v26297_v62 = vld [vmem:[#allocation107_spill] sm:$0xff]  ;;  %v26306_v56 = vld [vmem:[#allocation116_spill] sm:$0xff] }
 0x2ae   :  { %17971 = vmatprep.subr.bf16.mxu0 %v17970_v51 }
 0x2b0   :  { %16144 = vmatmul.mubr.f32.gmra.mrb[6].mxu0 %v26267_v4  ;;  %v26310_v4 = vld [vmem:[#allocation120_spill] sm:$0xff] }
 0x2b1   :  { %16146 = vmatprep.mubr.f32.mxu0 %v26268_v6  ;;  %17973 = vmatpush3.bf16.msra.mxu0 %v17970_v51  ;;  %v26302_v51 = vld [vmem:[#allocation112_spill] sm:$0xff]  ;;  %v26311_v6 = vld [vmem:[#allocation121_spill] sm:$0xff] }
 0x2b2   :  { %17975 = vmatprep.subr.bf16.mxu0 %v17974_v0 }
 0x2b4   :  { %16147 = vmatmul.mubr.f32.gmra.mrb[8].mxu0 %v20407_v3  ;;  %v17986_v3 = vpack.c.bf16 %v13669_v16, %v13668_v15  ;;  %v13572_v15 = vld [vmem:[%s25740_s0 + $0x332] sm:$0xff]  ;;  %v13573_v16 = vld [vmem:[%s25740_s0 + $0x33a] sm:$0xff] }
 0x2b5   :  { %16149 = vmatprep.mubr.f32.mxu0 %v26269_v13  ;;  %17977 = vmatpush3.bf16.msra.mxu0 %v17974_v0  ;;  %v26307_v0 = vld [vmem:[#allocation117_spill] sm:$0xff] }
 0x2b6   :  { %17979 = vmatprep.subr.bf16.mxu0 %v17978_v9  ;;  %v26315_v13 = vld [vmem:[#allocation125_spill] sm:$0xff] }
 0x2b8   :  { %16150 = vmatmul.mubr.f32.gmra.mrb[10].mxu0 %v20425_v63  ;;  %v21059_v63 = vpack.c.bf16 %v13735_v21, %v13734_v18  ;;  %v13737_v18 = vld [vmem:[%s25738_s1 + $0x398] sm:$0xff]  ;;  %v13592_v21 = vld [vmem:[%s25740_s0 + $0x48] sm:$0xff] }
 0x2b9   :  { %16152 = vmatprep.mubr.f32.mxu0 %v26270_v17  ;;  %17981 = vmatpush3.bf16.msra.mxu0 %v17978_v9  ;;  %v26312_v9 = vld [vmem:[#allocation122_spill] sm:$0xff] }
 0x2ba   :  { %17983 = vmatprep.subr.bf16.mxu0 %v17982_v14  ;;  %v13590_v17 = vld [vmem:[%s25740_s0 + $0x30] sm:$0xff] }
 0x2bc   :  { %16153 = vmatmul.mubr.f32.gmra.mrb[12].mxu0 %v26271_v22 }
 0x2bd   :  { %16155 = vmatprep.mubr.f32.mxu0 %v26272_v23  ;;  %17985 = vmatpush3.bf16.msra.mxu0 %v17982_v14  ;;  %v26316_v14 = vld [vmem:[#allocation126_spill] sm:$0xff]  ;;  %v13738_v23 = vld [vmem:[%s25738_s1 + $0x3a0] sm:$0xff] }
 0x2be   :  { %17987 = vmatprep.subr.bf16.mxu0 %v17986_v3 }
 0x2c0   :  { %16156 = vmatmul.mubr.f32.gmra.mrb[14].mxu0 %v26273_v24  ;;  %v13739_v24 = vld [vmem:[%s25738_s1 + $0x3a8] sm:$0xff] }
 0x2c1   :  { %16158 = vmatprep.mubr.f32.mxu0 %v26274_v25  ;;  %17989 = vmatpush3.bf16.msra.mxu0 %v17986_v3  ;;  %v13736_v3 = vld [vmem:[%s25738_s1 + $0x390] sm:$0xff] }
 0x2c2   :  { %17991 = vmatprep.subr.bf16.mxu0 %v21059_v63  ;;  %v17994_v22 = vpack.c.bf16 %v13737_v18, %v13736_v3  ;;  %v13593_v25 = vld [vmem:[%s25740_s0 + $0x50] sm:$0xff]  ;;  %v13624_v3 = vld [vmem:[%s25740_s0 + $0x1f8] sm:$0xff] }
 0x2c3   :  { %v13626_v18 = vld [vmem:[%s25740_s0 + $0x210] sm:$0xff] }
 0x2c4   :  { %16159 = vmatmul.mubr.f32.gmra.mrb[16].mxu0 %v26275_v26  ;;  %v13594_v26 = vld [vmem:[%s25740_s0 + $0x60] sm:$0xff] }
 0x2c5   :  { %16161 = vmatprep.mubr.f32.mxu0 %v26276_v27  ;;  %v17998_v27 = vpack.c.bf16 %v13739_v24, %v13738_v23  ;;  %v13630_v23 = vld [vmem:[%s25740_s0 + $0x240] sm:$0xff]  ;;  %v13631_v24 = vld [vmem:[%s25740_s0 + $0x248] sm:$0xff] }
 0x2c8   :  { %16162 = vmatmul.mubr.f32.gmra.mrb[18].mxu0 %v26277_v28  ;;  %v13740_v28 = vld [vmem:[%s25738_s1 + $0x3b0] sm:$0xff] }
 0x2c9   :  { %16164 = vmatprep.mubr.f32.mxu0 %v26278_v29  ;;  %v13741_v29 = vld [vmem:[%s25738_s1 + $0x3b8] sm:$0xff] }
 0x2cc   :  { %16165 = vmatmul.mubr.f32.gmra.mrb[20].mxu0 %v26279_v30  ;;  %v13596_v30 = vld [vmem:[%s25740_s0 + $0x78] sm:$0xff] }
 0x2cd   :  { %16167 = vmatprep.mubr.f32.mxu0 %v26280_v32  ;;  %v18002_v32 = vpack.c.bf16 %v13741_v29, %v13740_v28  ;;  %v13635_v28 = vld [vmem:[%s25740_s0 + $0x278] sm:$0xff]  ;;  %v13636_v29 = vld [vmem:[%s25740_s0 + $0x288] sm:$0xff] }
 0x2d0   :  { %16168 = vmatmul.mubr.f32.gmra.mrb[22].mxu0 %v26281_v33  ;;  %v13742_v33 = vld [vmem:[%s25738_s1 + $0x3c0] sm:$0xff] }
 0x2d1   :  { %16170 = vmatprep.mubr.f32.mxu0 %v26282_v34  ;;  %v13743_v34 = vld [vmem:[%s25738_s1 + $0x3c8] sm:$0xff] }
 0x2d4   :  { %16171 = vmatmul.mubr.f32.gmra.mrb[24].mxu0 %v26283_v37  ;;  %v13597_v37 = vld [vmem:[%s25740_s0 + $0x80] sm:$0xff] }
 0x2d5   :  { %16173 = vmatprep.mubr.f32.mxu0 %v26284_v38  ;;  %v13598_v38 = vld [vmem:[%s25740_s0 + $0x90] sm:$0xff] }
 0x2d8   :  { %16174 = vmatmul.mubr.f32.gmra.mrb[26].mxu0 %v26285_v39  ;;  %v18006_v39 = vpack.c.bf16 %v13743_v34, %v13742_v33  ;;  %v13640_v33 = vld [vmem:[%s25740_s0 + $0x2b8] sm:$0xff]  ;;  %v13641_v34 = vld [vmem:[%s25740_s0 + $0x2c0] sm:$0xff] }
 0x2d9   :  { %16176 = vmatprep.mubr.f32.mxu0 %v26286_v42  ;;  %v13744_v42 = vld [vmem:[%s25738_s1 + $0x3d0] sm:$0xff] }
 0x2dc   :  { %16177 = vmatmul.mubr.f32.gmra.mrb[28].mxu0 %v26287_v44  ;;  %v13745_v44 = vld [vmem:[%s25738_s1 + $0x3d8] sm:$0xff] }
 0x2dd   :  { %16179 = vmatprep.mubr.f32.mxu0 %v21079_v43 }
 0x2e0   :  { %16180 = vmatmul.mubr.f32.gmra.mrb[30].mxu0 %v21086_v47 }
 0x2e1   :  { %16182 = vmatprep.mubr.f32.mxu0 %v26288_v49  ;;  %v13599_v49 = vld [vmem:[%s25740_s0 + $0x98] sm:$0xff] }
 0x2e4   :  { %16183 = vmatmul.mubr.f32.gmra.mrb[32].mxu0 %v26289_v53  ;;  %v13600_v53 = vld [vmem:[%s25740_s0 + $0xa8] sm:$0xff] }
 0x2e5   :  { %16185 = vmatprep.mubr.f32.mxu0 %v26290_v59  ;;  %v18010_v59 = vpack.c.bf16 %v13745_v44, %v13744_v42  ;;  %v13645_v42 = vld [vmem:[%s25740_s0 + $0x2f0] sm:$0xff]  ;;  %v13646_v44 = vld [vmem:[%s25740_s0 + $0x300] sm:$0xff] }
 0x2e8   :  { %16186 = vmatmul.mubr.f32.gmra.mrb[34].mxu0 %v26291_v31  ;;  %v13746_v31 = vld [vmem:[%s25738_s1 + $0x3e0] sm:$0xff] }
 0x2e9   :  { %16188 = vmatprep.mubr.f32.mxu0 %v26292_v20  ;;  %v13747_v20 = vld [vmem:[%s25738_s1 + $0x3e8] sm:$0xff] }
 0x2ec   :  { %16189 = vmatmul.mubr.f32.gmra.mrb[36].mxu0 %v26293_v35  ;;  %v13601_v35 = vld [vmem:[%s25740_s0 + $0xb0] sm:$0xff] }
 0x2ed   :  { %16191 = vmatprep.mubr.f32.mxu0 %v26294_v36  ;;  %v13602_v36 = vld [vmem:[%s25740_s0 + $0xc0] sm:$0xff] }
 0x2f0   :  { %16192 = vmatmul.mubr.f32.gmra.mrb[38].mxu0 %v26295_v19  ;;  %v18014_v19 = vpack.c.bf16 %v13747_v20, %v13746_v31  ;;  %v13652_v31 = vld [vmem:[%s25740_s0 + $0x348] sm:$0xff]  ;;  %v13653_v20 = vld [vmem:[%s25740_s0 + $0x350] sm:$0xff] }
 0x2f1   :  { %16194 = vmatprep.mubr.f32.mxu0 %v26296_v41  ;;  %v13748_v41 = vld [vmem:[%s25738_s1 + $0x3f0] sm:$0xff] }
 0x2f4   :  { %16195 = vmatmul.mubr.f32.gmra.mrb[40].mxu0 %v26297_v62  ;;  %v13749_v62 = vld [vmem:[%s25738_s1 + $0x3f8] sm:$0xff] }
 0x2f5   :  { %16197 = vmatprep.mubr.f32.mxu0 %v26298_v45  ;;  %v13603_v45 = vld [vmem:[%s25740_s0 + $0xc8] sm:$0xff] }
 0x2f8   :  { %16198 = vmatmul.mubr.f32.gmra.mrb[42].mxu0 %v26299_v46  ;;  %v13604_v46 = vld [vmem:[%s25740_s0 + $0xd8] sm:$0xff] }
 0x2f9   :  { %16200 = vmatprep.mubr.f32.mxu0 %v26300_v58  ;;  %v18018_v58 = vpack.c.bf16 %v13749_v62, %v13748_v41  ;;  %v13818_v62 = vld [vmem:[%s25738_s1 + $0x420] sm:$0xff] }
 0x2fc   :  { %16201 = vmatmul.mubr.f32.gmra.mrb[44].mxu0 %v26301_v50  ;;  %v13814_v50 = vld [vmem:[%s25738_s1 + $0x400] sm:$0xff] }
 0x2fd   :  { %16203 = vmatprep.mubr.f32.mxu0 %v26302_v51  ;;  %v13815_v51 = vld [vmem:[%s25738_s1 + $0x408] sm:$0xff] }
 0x300   :  { %16204 = vmatmul.mubr.f32.gmra.mrb[46].mxu0 %v26303_v40  ;;  %v13605_v40 = vld [vmem:[%s25740_s0 + $0xe0] sm:$0xff] }
 0x301   :  { %16206 = vmatprep.mubr.f32.mxu0 %v26304_v57  ;;  %v13606_v57 = vld [vmem:[%s25740_s0 + $0xf0] sm:$0xff] }
 0x304   :  { %16207 = vmatmul.mubr.f32.gmra.mrb[48].mxu0 %v26305_v55  ;;  %v21225_v55 = vpack.c.bf16 %v13815_v51, %v13814_v50  ;;  %v13820_v51 = vld [vmem:[%s25738_s1 + $0x430] sm:$0xff] }
 0x305   :  { %16209 = vmatprep.mubr.f32.mxu0 %v26306_v56  ;;  %v13607_v56 = vld [vmem:[%s25740_s0 + $0xf8] sm:$0xff] }
 0x308   :  { %16210 = vmatmul.mubr.f32.gmra.mrb[50].mxu0 %v26307_v0  ;;  %v13608_v0 = vld [vmem:[%s25740_s0 + $0x108] sm:$0xff] }
 0x309   :  { %16212 = vmatprep.mubr.f32.mxu0 %v26308_v60  ;;  %v13609_v60 = vld [vmem:[%s25740_s0 + $0x110] sm:$0xff] }
 0x30c   :  { %16213 = vmatmul.mubr.f32.gmra.mrb[52].mxu0 %v26309_v2  ;;  %v13610_v2 = vld [vmem:[%s25740_s0 + $0x120] sm:$0xff] }
 0x30d   :  { %16215 = vmatprep.mubr.f32.mxu0 %v26310_v4  ;;  %v13611_v4 = vld [vmem:[%s25740_s0 + $0x128] sm:$0xff] }
 0x310   :  { %16216 = vmatmul.mubr.f32.gmra.mrb[54].mxu0 %v26311_v6  ;;  %v13612_v6 = vld [vmem:[%s25740_s0 + $0x138] sm:$0xff] }
 0x311   :  { %16218 = vmatprep.mubr.f32.mxu0 %v26312_v9  ;;  %v13613_v9 = vld [vmem:[%s25740_s0 + $0x140] sm:$0xff] }
 0x314   :  { %16219 = vmatmul.mubr.f32.gmra.mrb[56].mxu0 %v26313_v11  ;;  %v13614_v11 = vld [vmem:[%s25740_s0 + $0x150] sm:$0xff] }
 0x315   :  { %16221 = vmatprep.mubr.f32.mxu0 %v26314_v12  ;;  %v13615_v12 = vld [vmem:[%s25740_s0 + $0x158] sm:$0xff] }
 0x318   :  { %16222 = vmatmul.mubr.f32.gmra.mrb[58].mxu0 %v26315_v13  ;;  %v13616_v13 = vld [vmem:[%s25740_s0 + $0x168] sm:$0xff] }
 0x319   :  { %16224 = vmatprep.mubr.f32.mxu0 %v26316_v14  ;;  %v13617_v14 = vld [vmem:[%s25740_s0 + $0x170] sm:$0xff] }
 0x31c   :  { %16225 = vmatmul.mubr.f32.gmra.mrb[60].mxu0 %v20728_v54  ;;  %v13591_v54 = vld [vmem:[%s25740_s0 + $0x38] sm:$0xff] }
 0x31d   :  { %16227 = vmatprep.mubr.f32.mxu0 %v13572_v15  ;;  %v13620_v15 = vld [vmem:[%s25740_s0 + $0x198] sm:$0xff] }
 0x320   :  { %16228 = vmatmul.mubr.f32.gmra.mrb[62].mxu0 %v13573_v16  ;;  %v13621_v16 = vld [vmem:[%s25740_s0 + $0x1a0] sm:$0xff] }
 0x321   :  { %16262 = vmatprep.mubr.f32.mxu0 %v13590_v17  ;;  %v13622_v17 = vld [vmem:[%s25740_s0 + $0x1e0] sm:$0xff] }
 0x324   :  { %16263 = vmatmul.mubr.f32.vlgmr.msra.gmra.mrb[0].mxu0 %v13591_v54  ;;  %v13627_v54 = vld [vmem:[%s25740_s0 + $0x218] sm:$0xff] }
 0x325   :  { %17993 = vmatpush3.bf16.msra.mxu0 %v21059_v63  ;;  %16265 = vmatprep.mubr.f32.mxu0 %v13592_v21  ;;  %v13595_v63 = vld [vmem:[%s25740_s0 + $0x68] sm:$0xff] }
 0x326   :  { %17995 = vmatprep.subr.bf16.mxu0 %v17994_v22  ;;  %v13628_v21 = vld [vmem:[%s25740_s0 + $0x228] sm:$0xff] }
 0x328   :  { %16266 = vmatmul.mubr.f32.gmra.mrb[2].mxu0 %v13593_v25  ;;  %v13632_v25 = vld [vmem:[%s25740_s0 + $0x258] sm:$0xff] }
 0x329   :  { %16268 = vmatprep.mubr.f32.mxu0 %v13594_v26  ;;  %17997 = vmatpush3.bf16.msra.mxu0 %v17994_v22  ;;  %v13629_v22 = vld [vmem:[%s25740_s0 + $0x230] sm:$0xff]  ;;  %v13633_v26 = vld [vmem:[%s25740_s0 + $0x260] sm:$0xff] }
 0x32a   :  { %17999 = vmatprep.subr.bf16.mxu0 %v17998_v27 }
 0x32c   :  { %16269 = vmatmul.mubr.f32.gmra.mrb[4].mxu0 %v13595_v63  ;;  %v13637_v63 = vld [vmem:[%s25740_s0 + $0x290] sm:$0xff] }
 0x32d   :  { %16271 = vmatprep.mubr.f32.mxu0 %v13596_v30  ;;  %18001 = vmatpush3.bf16.msra.mxu0 %v17998_v27  ;;  %v13634_v27 = vld [vmem:[%s25740_s0 + $0x270] sm:$0xff]  ;;  %v13638_v30 = vld [vmem:[%s25740_s0 + $0x2a0] sm:$0xff] }
 0x32e   :  { %18003 = vmatprep.subr.bf16.mxu0 %v18002_v32 }
 0x330   :  { %16272 = vmatmul.mubr.f32.gmra.mrb[6].mxu0 %v13597_v37  ;;  %v13642_v37 = vld [vmem:[%s25740_s0 + $0x2d0] sm:$0xff] }
 0x331   :  { %16274 = vmatprep.mubr.f32.mxu0 %v13598_v38  ;;  %18005 = vmatpush3.bf16.msra.mxu0 %v18002_v32  ;;  %v13639_v32 = vld [vmem:[%s25740_s0 + $0x2a8] sm:$0xff]  ;;  %v13643_v38 = vld [vmem:[%s25740_s0 + $0x2d8] sm:$0xff] }
 0x332   :  { %18007 = vmatprep.subr.bf16.mxu0 %v18006_v39 }
 0x334   :  { %16275 = vmatmul.mubr.f32.gmra.mrb[8].mxu0 %v13599_v49  ;;  %v13647_v49 = vld [vmem:[%s25740_s0 + $0x308] sm:$0xff] }
 0x335   :  { %16277 = vmatprep.mubr.f32.mxu0 %v13600_v53  ;;  %18009 = vmatpush3.bf16.msra.mxu0 %v18006_v39  ;;  %v13644_v39 = vld [vmem:[%s25740_s0 + $0x2e8] sm:$0xff]  ;;  %v13648_v53 = vld [vmem:[%s25740_s0 + $0x318] sm:$0xff] }
 0x336   :  { %18011 = vmatprep.subr.bf16.mxu0 %v18010_v59 }
 0x338   :  { %16278 = vmatmul.mubr.f32.gmra.mrb[10].mxu0 %v13601_v35  ;;  %v13670_v35 = vld [vmem:[%s25740_s0 + $0x31] sm:$0xff] }
 0x339   :  { %16280 = vmatprep.mubr.f32.mxu0 %v13602_v36  ;;  %18013 = vmatpush3.bf16.msra.mxu0 %v18010_v59  ;;  %v13649_v59 = vld [vmem:[%s25740_s0 + $0x320] sm:$0xff]  ;;  %v13816_v36 = vld [vmem:[%s25738_s1 + $0x410] sm:$0xff] }
 0x33a   :  { %18015 = vmatprep.subr.bf16.mxu0 %v18014_v19 }
 0x33c   :  { %16281 = vmatmul.mubr.f32.gmra.mrb[12].mxu0 %v13603_v45  ;;  %v13819_v45 = vld [vmem:[%s25738_s1 + $0x428] sm:$0xff] }
 0x33d   :  { %16283 = vmatprep.mubr.f32.mxu0 %v13604_v46  ;;  %18017 = vmatpush3.bf16.msra.mxu0 %v18014_v19  ;;  %v13672_v19 = vld [vmem:[%s25740_s0 + $0x49] sm:$0xff]  ;;  %v13673_v46 = vld [vmem:[%s25740_s0 + $0x51] sm:$0xff]  ;;  %v18030_v50 = vpack.c.bf16 %v13819_v45, %v13818_v62  ;;  %v13718_v45 = vld [vmem:[%s25740_s0 + $0x2a1] sm:$0xff] }
 0x33e   :  { %18019 = vmatprep.subr.bf16.mxu0 %v18018_v58  ;;  %v13717_v62 = vld [vmem:[%s25740_s0 + $0x291] sm:$0xff] }
 0x340   :  { %16284 = vmatmul.mubr.f32.gmra.mrb[14].mxu0 %v13605_v40  ;;  %v13821_v40 = vld [vmem:[%s25738_s1 + $0x438] sm:$0xff] }
 0x341   :  { %16286 = vmatprep.mubr.f32.mxu0 %v13606_v57  ;;  %18021 = vmatpush3.bf16.msra.mxu0 %v18018_v58  ;;  %v13674_v58 = vld [vmem:[%s25740_s0 + $0x61] sm:$0xff]  ;;  %v13675_v57 = vld [vmem:[%s25740_s0 + $0x69] sm:$0xff] }
 0x342   :  { %18023 = vmatprep.subr.bf16.mxu0 %v21225_v55 }
 0x344   :  { %16287 = vmatmul.mubr.f32.gmra.mrb[16].mxu0 %v13607_v56  ;;  %v18034_v56 = vpack.c.bf16 %v13821_v40, %v13820_v51  ;;  %v13722_v51 = vld [vmem:[%s25740_s0 + $0x2d1] sm:$0xff]  ;;  %v13723_v40 = vld [vmem:[%s25740_s0 + $0x2d9] sm:$0xff] }
 0x345   :  { %16289 = vmatprep.mubr.f32.mxu0 %v13608_v0  ;;  %v13822_v0 = vld [vmem:[%s25738_s1 + $0x440] sm:$0xff] }
 0x348   :  { %16290 = vmatmul.mubr.f32.gmra.mrb[18].mxu0 %v13609_v60  ;;  %v13823_v60 = vld [vmem:[%s25738_s1 + $0x448] sm:$0xff] }
 0x349   :  { %16292 = vmatprep.mubr.f32.mxu0 %v13610_v2  ;;  %v13677_v2 = vld [vmem:[%s25740_s0 + $0x81] sm:$0xff] }
 0x34c   :  { %16293 = vmatmul.mubr.f32.gmra.mrb[20].mxu0 %v13611_v4  ;;  %v13678_v4 = vld [vmem:[%s25740_s0 + $0x91] sm:$0xff] }
 0x34d   :  { %16295 = vmatprep.mubr.f32.mxu0 %v13612_v6  ;;  %v18038_v6 = vpack.c.bf16 %v13823_v60, %v13822_v0  ;;  %v13727_v0 = vld [vmem:[%s25740_s0 + $0x309] sm:$0xff]  ;;  %v13728_v60 = vld [vmem:[%s25740_s0 + $0x319] sm:$0xff] }
 0x350   :  { %16296 = vmatmul.mubr.f32.gmra.mrb[22].mxu0 %v13613_v9  ;;  %v13824_v9 = vld [vmem:[%s25738_s1 + $0x450] sm:$0xff] }
 0x351   :  { %16298 = vmatprep.mubr.f32.mxu0 %v13614_v11  ;;  %v13825_v11 = vld [vmem:[%s25738_s1 + $0x458] sm:$0xff] }
 0x354   :  { %16299 = vmatmul.mubr.f32.gmra.mrb[24].mxu0 %v13615_v12  ;;  %v13679_v12 = vld [vmem:[%s25740_s0 + $0x99] sm:$0xff] }
 0x355   :  { %16301 = vmatprep.mubr.f32.mxu0 %v13616_v13  ;;  %v13680_v13 = vld [vmem:[%s25740_s0 + $0xa9] sm:$0xff] }
 0x358   :  { %16302 = vmatmul.mubr.f32.gmra.mrb[26].mxu0 %v13617_v14  ;;  %v18042_v14 = vpack.c.bf16 %v13825_v11, %v13824_v9  ;;  %v13750_v9 = vld [vmem:[%s25740_s0 + $0x32] sm:$0xff]  ;;  %v13752_v11 = vld [vmem:[%s25740_s0 + $0x4a] sm:$0xff] }
 0x359   :  { %16304 = vmatprep.mubr.f32.mxu0 %v20812_v61  ;;  %v13623_v61 = vld [vmem:[%s25740_s0 + $0x1e8] sm:$0xff] }
 0x35c   :  { %16305 = vmatmul.mubr.f32.gmra.mrb[28].mxu0 %v20819_v1  ;;  %v13625_v1 = vld [vmem:[%s25740_s0 + $0x200] sm:$0xff] }
 0x35d   :  { %16307 = vmatprep.mubr.f32.mxu0 %v13620_v15  ;;  %v13826_v15 = vld [vmem:[%s25738_s1 + $0x460] sm:$0xff] }
 0x360   :  { %16308 = vmatmul.mubr.f32.gmra.mrb[30].mxu0 %v13621_v16  ;;  %v13827_v16 = vld [vmem:[%s25738_s1 + $0x468] sm:$0xff] }
 0x361   :  { %16310 = vmatprep.mubr.f32.mxu0 %v13622_v17  ;;  %v13681_v17 = vld [vmem:[%s25740_s0 + $0xb1] sm:$0xff] }
 0x364   :  { %16311 = vmatmul.mubr.f32.gmra.mrb[32].mxu0 %v13623_v61  ;;  %v13682_v61 = vld [vmem:[%s25740_s0 + $0xc1] sm:$0xff] }
 0x365   :  { %16313 = vmatprep.mubr.f32.mxu0 %v13624_v3  ;;  %v18046_v3 = vpack.c.bf16 %v13827_v16, %v13826_v15  ;;  %v13757_v15 = vld [vmem:[%s25740_s0 + $0x82] sm:$0xff]  ;;  %v13758_v16 = vld [vmem:[%s25740_s0 + $0x92] sm:$0xff] }
 0x368   :  { %16314 = vmatmul.mubr.f32.gmra.mrb[34].mxu0 %v13625_v1  ;;  %v13828_v1 = vld [vmem:[%s25738_s1 + $0x470] sm:$0xff] }
 0x369   :  { %16316 = vmatprep.mubr.f32.mxu0 %v13626_v18  ;;  %v13829_v18 = vld [vmem:[%s25738_s1 + $0x478] sm:$0xff] }
 0x36c   :  { %16317 = vmatmul.mubr.f32.gmra.mrb[36].mxu0 %v13627_v54  ;;  %v13683_v54 = vld [vmem:[%s25740_s0 + $0xc9] sm:$0xff] }
 0x36d   :  { %16319 = vmatprep.mubr.f32.mxu0 %v13628_v21  ;;  %v13684_v21 = vld [vmem:[%s25740_s0 + $0xd9] sm:$0xff] }
 0x370   :  { %16320 = vmatmul.mubr.f32.gmra.mrb[38].mxu0 %v13629_v22  ;;  %v18050_v22 = vpack.c.bf16 %v13829_v18, %v13828_v1  ;;  %v13762_v1 = vld [vmem:[%s25740_s0 + $0xc2] sm:$0xff]  ;;  %v13763_v18 = vld [vmem:[%s25740_s0 + $0xca] sm:$0xff] }
 0x371   :  { %16322 = vmatprep.mubr.f32.mxu0 %v13630_v23  ;;  %v13685_v23 = vld [vmem:[%s25740_s0 + $0xe1] sm:$0xff] }
 0x374   :  { %16323 = vmatmul.mubr.f32.gmra.mrb[40].mxu0 %v13631_v24  ;;  %v13686_v24 = vld [vmem:[%s25740_s0 + $0xf1] sm:$0xff] }
 0x375   :  { %16325 = vmatprep.mubr.f32.mxu0 %v13632_v25  ;;  %v13687_v25 = vld [vmem:[%s25740_s0 + $0xf9] sm:$0xff] }
 0x378   :  { %16326 = vmatmul.mubr.f32.gmra.mrb[42].mxu0 %v13633_v26  ;;  %v13688_v26 = vld [vmem:[%s25740_s0 + $0x109] sm:$0xff] }
 0x379   :  { %16328 = vmatprep.mubr.f32.mxu0 %v13634_v27  ;;  %v13689_v27 = vld [vmem:[%s25740_s0 + $0x111] sm:$0xff] }
 0x37c   :  { %16329 = vmatmul.mubr.f32.gmra.mrb[44].mxu0 %v13635_v28  ;;  %v13690_v28 = vld [vmem:[%s25740_s0 + $0x121] sm:$0xff] }
 0x37d   :  { %16331 = vmatprep.mubr.f32.mxu0 %v13636_v29  ;;  %v13691_v29 = vld [vmem:[%s25740_s0 + $0x129] sm:$0xff] }
 0x380   :  { %16332 = vmatmul.mubr.f32.gmra.mrb[46].mxu0 %v13637_v63  ;;  %v13692_v63 = vld [vmem:[%s25740_s0 + $0x139] sm:$0xff] }
 0x381   :  { %16334 = vmatprep.mubr.f32.mxu0 %v13638_v30  ;;  %v13693_v30 = vld [vmem:[%s25740_s0 + $0x141] sm:$0xff] }
 0x384   :  { %16335 = vmatmul.mubr.f32.gmra.mrb[48].mxu0 %v13639_v32  ;;  %v13694_v32 = vld [vmem:[%s25740_s0 + $0x151] sm:$0xff] }
 0x385   :  { %16337 = vmatprep.mubr.f32.mxu0 %v13640_v33  ;;  %v13695_v33 = vld [vmem:[%s25740_s0 + $0x159] sm:$0xff] }
 0x388   :  { %16338 = vmatmul.mubr.f32.gmra.mrb[50].mxu0 %v13641_v34  ;;  %v13696_v34 = vld [vmem:[%s25740_s0 + $0x169] sm:$0xff] }
 0x389   :  { %16340 = vmatprep.mubr.f32.mxu0 %v13642_v37  ;;  %v13697_v37 = vld [vmem:[%s25740_s0 + $0x171] sm:$0xff] }
 0x38c   :  { %16341 = vmatmul.mubr.f32.gmra.mrb[52].mxu0 %v13643_v38  ;;  %v13700_v38 = vld [vmem:[%s25740_s0 + $0x199] sm:$0xff] }
 0x38d   :  { %16343 = vmatprep.mubr.f32.mxu0 %v13644_v39  ;;  %v13701_v39 = vld [vmem:[%s25740_s0 + $0x1a1] sm:$0xff] }
 0x390   :  { %16344 = vmatmul.mubr.f32.gmra.mrb[54].mxu0 %v13645_v42  ;;  %v13702_v42 = vld [vmem:[%s25740_s0 + $0x1e1] sm:$0xff] }
 0x391   :  { %16346 = vmatprep.mubr.f32.mxu0 %v13646_v44  ;;  %v13704_v44 = vld [vmem:[%s25740_s0 + $0x1f9] sm:$0xff] }
 0x394   :  { %16347 = vmatmul.mubr.f32.gmra.mrb[56].mxu0 %v13647_v49  ;;  %v13706_v49 = vld [vmem:[%s25740_s0 + $0x211] sm:$0xff] }
 0x395   :  { %16349 = vmatprep.mubr.f32.mxu0 %v13648_v53  ;;  %v13707_v53 = vld [vmem:[%s25740_s0 + $0x219] sm:$0xff] }
 0x398   :  { %16350 = vmatmul.mubr.f32.gmra.mrb[58].mxu0 %v13649_v59  ;;  %v13708_v59 = vld [vmem:[%s25740_s0 + $0x229] sm:$0xff] }
 0x399   :  { %16352 = vmatprep.mubr.f32.mxu0 %v20854_v8  ;;  %v13817_v8 = vld [vmem:[%s25738_s1 + $0x418] sm:$0xff] }
 0x39a   :  { %v18026_v41 = vpack.c.bf16 %v13817_v8, %v13816_v36  ;;  %v13712_v36 = vld [vmem:[%s25740_s0 + $0x259] sm:$0xff]  ;;  %v13713_v8 = vld [vmem:[%s25740_s0 + $0x261] sm:$0xff] }
 0x39c   :  { %16353 = vmatmul.mubr.f32.gmra.mrb[60].mxu0 %v20861_v10  ;;  %v13671_v10 = vld [vmem:[%s25740_s0 + $0x39] sm:$0xff] }
 0x39d   :  { %16355 = vmatprep.mubr.f32.mxu0 %v13652_v31  ;;  %v13709_v31 = vld [vmem:[%s25740_s0 + $0x231] sm:$0xff] }
 0x3a0   :  { %16356 = vmatmul.mubr.f32.gmra.mrb[62].mxu0 %v13653_v20  ;;  %v13710_v20 = vld [vmem:[%s25740_s0 + $0x241] sm:$0xff] }
 0x3a1   :  { %16390 = vmatprep.mubr.f32.mxu0 %v13670_v35  ;;  %v13711_v35 = vld [vmem:[%s25740_s0 + $0x249] sm:$0xff] }
 0x3a4   :  { %16391 = vmatmul.mubr.f32.vlgmr.msra.gmra.mrb[0].mxu0 %v13671_v10  ;;  %v13714_v10 = vld [vmem:[%s25740_s0 + $0x271] sm:$0xff] }
 0x3a5   :  { %18025 = vmatpush3.bf16.msra.mxu0 %v21225_v55  ;;  %16393 = vmatprep.mubr.f32.mxu0 %v13672_v19  ;;  %v13676_v55 = vld [vmem:[%s25740_s0 + $0x79] sm:$0xff] }
 0x3a6   :  { %18027 = vmatprep.subr.bf16.mxu0 %v18026_v41  ;;  %v13715_v19 = vld [vmem:[%s25740_s0 + $0x279] sm:$0xff] }
 0x3a8   :  { %16394 = vmatmul.mubr.f32.gmra.mrb[2].mxu0 %v13673_v46  ;;  %v13719_v46 = vld [vmem:[%s25740_s0 + $0x2a9] sm:$0xff] }
 0x3a9   :  { %16396 = vmatprep.mubr.f32.mxu0 %v13674_v58  ;;  %18029 = vmatpush3.bf16.msra.mxu0 %v18026_v41  ;;  %v13716_v41 = vld [vmem:[%s25740_s0 + $0x289] sm:$0xff]  ;;  %v13720_v58 = vld [vmem:[%s25740_s0 + $0x2b9] sm:$0xff] }
 0x3aa   :  { %18031 = vmatprep.subr.bf16.mxu0 %v18030_v50 }
 0x3ac   :  { %16397 = vmatmul.mubr.f32.gmra.mrb[4].mxu0 %v13675_v57  ;;  %v13724_v57 = vld [vmem:[%s25740_s0 + $0x2e9] sm:$0xff] }
 0x3ad   :  { %16399 = vmatprep.mubr.f32.mxu0 %v13676_v55  ;;  %18033 = vmatpush3.bf16.msra.mxu0 %v18030_v50  ;;  %v13721_v50 = vld [vmem:[%s25740_s0 + $0x2c1] sm:$0xff]  ;;  %v13725_v55 = vld [vmem:[%s25740_s0 + $0x2f1] sm:$0xff] }
 0x3ae   :  { %18035 = vmatprep.subr.bf16.mxu0 %v18034_v56 }
 0x3b0   :  { %16400 = vmatmul.mubr.f32.gmra.mrb[6].mxu0 %v13677_v2  ;;  %v13729_v2 = vld [vmem:[%s25740_s0 + $0x321] sm:$0xff] }
 0x3b1   :  { %16402 = vmatprep.mubr.f32.mxu0 %v13678_v4  ;;  %18037 = vmatpush3.bf16.msra.mxu0 %v18034_v56  ;;  %v13726_v56 = vld [vmem:[%s25740_s0 + $0x301] sm:$0xff]  ;;  %v13732_v4 = vld [vmem:[%s25740_s0 + $0x349] sm:$0xff] }
 0x3b2   :  { %18039 = vmatprep.subr.bf16.mxu0 %v18038_v6 }
 0x3b4   :  { %16403 = vmatmul.mubr.f32.gmra.mrb[8].mxu0 %v13679_v12  ;;  %v13754_v12 = vld [vmem:[%s25740_s0 + $0x62] sm:$0xff] }
 0x3b5   :  { %16405 = vmatprep.mubr.f32.mxu0 %v13680_v13  ;;  %18041 = vmatpush3.bf16.msra.mxu0 %v18038_v6  ;;  %v13733_v6 = vld [vmem:[%s25740_s0 + $0x351] sm:$0xff] }
 0x3b6   :  { %18043 = vmatprep.subr.bf16.mxu0 %v18042_v14  ;;  %v13755_v13 = vld [vmem:[%s25740_s0 + $0x6a] sm:$0xff] }
 0x3b8   :  { %16406 = vmatmul.mubr.f32.gmra.mrb[10].mxu0 %v13681_v17  ;;  %v13759_v17 = vld [vmem:[%s25740_s0 + $0x9a] sm:$0xff] }
 0x3b9   :  { %16408 = vmatprep.mubr.f32.mxu0 %v13682_v61  ;;  %18045 = vmatpush3.bf16.msra.mxu0 %v18042_v14  ;;  %v13756_v14 = vld [vmem:[%s25740_s0 + $0x7a] sm:$0xff]  ;;  %v13760_v61 = vld [vmem:[%s25740_s0 + $0xaa] sm:$0xff] }
 0x3ba   :  { %18047 = vmatprep.subr.bf16.mxu0 %v18046_v3 }
 0x3bc   :  { %16409 = vmatmul.mubr.f32.gmra.mrb[12].mxu0 %v13683_v54  ;;  %v13764_v54 = vld [vmem:[%s25740_s0 + $0xda] sm:$0xff] }
 0x3bd   :  { %16411 = vmatprep.mubr.f32.mxu0 %v13684_v21  ;;  %18049 = vmatpush3.bf16.msra.mxu0 %v18046_v3  ;;  %v13761_v3 = vld [vmem:[%s25740_s0 + $0xb2] sm:$0xff]  ;;  %v13765_v21 = vld [vmem:[%s25740_s0 + $0xe2] sm:$0xff] }
 0x3be   :  { %18051 = vmatprep.subr.bf16.mxu0 %v18050_v22 }
 0x3c0   :  { %16412 = vmatmul.mubr.f32.gmra.mrb[14].mxu0 %v13685_v23  ;;  %v13767_v23 = vld [vmem:[%s25740_s0 + $0xfa] sm:$0xff] }
 0x3c1   :  { %16414 = vmatprep.mubr.f32.mxu0 %v13686_v24  ;;  %18053 = vmatpush3.bf16.msra.mxu0 %v18050_v22  ;;  %v13766_v22 = vld [vmem:[%s25740_s0 + $0xf2] sm:$0xff]  ;;  %v13768_v24 = vld [vmem:[%s25740_s0 + $0x10a] sm:$0xff] }
 0x3c4   :  { %16415 = vmatmul.mubr.f32.gmra.mrb[16].mxu0 %v13687_v25  ;;  %v13769_v25 = vld [vmem:[%s25740_s0 + $0x112] sm:$0xff] }
 0x3c5   :  { %16417 = vmatprep.mubr.f32.mxu0 %v13688_v26  ;;  %v13770_v26 = vld [vmem:[%s25740_s0 + $0x122] sm:$0xff] }
 0x3c8   :  { %16418 = vmatmul.mubr.f32.gmra.mrb[18].mxu0 %v13689_v27  ;;  %v13771_v27 = vld [vmem:[%s25740_s0 + $0x12a] sm:$0xff] }
 0x3c9   :  { %16420 = vmatprep.mubr.f32.mxu0 %v13690_v28  ;;  %v13772_v28 = vld [vmem:[%s25740_s0 + $0x13a] sm:$0xff] }
 0x3cc   :  { %16421 = vmatmul.mubr.f32.gmra.mrb[20].mxu0 %v13691_v29  ;;  %v13773_v29 = vld [vmem:[%s25740_s0 + $0x142] sm:$0xff] }
 0x3cd   :  { %16423 = vmatprep.mubr.f32.mxu0 %v13692_v63  ;;  %v13774_v63 = vld [vmem:[%s25740_s0 + $0x152] sm:$0xff] }
 0x3d0   :  { %16424 = vmatmul.mubr.f32.gmra.mrb[22].mxu0 %v13693_v30  ;;  %v13775_v30 = vld [vmem:[%s25740_s0 + $0x15a] sm:$0xff] }
 0x3d1   :  { %16426 = vmatprep.mubr.f32.mxu0 %v13694_v32  ;;  %v13776_v32 = vld [vmem:[%s25740_s0 + $0x16a] sm:$0xff] }
 0x3d4   :  { %16427 = vmatmul.mubr.f32.gmra.mrb[24].mxu0 %v13695_v33  ;;  %v13777_v33 = vld [vmem:[%s25740_s0 + $0x172] sm:$0xff] }
 0x3d5   :  { %16429 = vmatprep.mubr.f32.mxu0 %v13696_v34  ;;  %v13780_v34 = vld [vmem:[%s25740_s0 + $0x19a] sm:$0xff] }
 0x3d8   :  { %16430 = vmatmul.mubr.f32.gmra.mrb[26].mxu0 %v13697_v37  ;;  %v13781_v37 = vld [vmem:[%s25740_s0 + $0x1a2] sm:$0xff] }
 0x3d9   :  { %16432 = vmatprep.mubr.f32.mxu0 %v20944_v5  ;;  %v13703_v5 = vld [vmem:[%s25740_s0 + $0x1e9] sm:$0xff] }
 0x3dc   :  { %16433 = vmatmul.mubr.f32.gmra.mrb[28].mxu0 %v20951_v7  ;;  %v13705_v7 = vld [vmem:[%s25740_s0 + $0x201] sm:$0xff] }
 0x3dd   :  { %16435 = vmatprep.mubr.f32.mxu0 %v13700_v38  ;;  %v13782_v38 = vld [vmem:[%s25740_s0 + $0x1e2] sm:$0xff] }
 0x3e0   :  { %16436 = vmatmul.mubr.f32.gmra.mrb[30].mxu0 %v13701_v39  ;;  %v13784_v39 = vld [vmem:[%s25740_s0 + $0x1fa] sm:$0xff] }
 0x3e1   :  { %16438 = vmatprep.mubr.f32.mxu0 %v13702_v42  ;;  %v13786_v42 = vld [vmem:[%s25740_s0 + $0x212] sm:$0xff] }
 0x3e4   :  { %16439 = vmatmul.mubr.f32.gmra.mrb[32].mxu0 %v13703_v5  ;;  %v13787_v5 = vld [vmem:[%s25740_s0 + $0x21a] sm:$0xff] }
 0x3e5   :  { %16441 = vmatprep.mubr.f32.mxu0 %v13704_v44  ;;  %v13788_v44 = vld [vmem:[%s25740_s0 + $0x22a] sm:$0xff] }
 0x3e8   :  { %16442 = vmatmul.mubr.f32.gmra.mrb[34].mxu0 %v13705_v7  ;;  %v13789_v7 = vld [vmem:[%s25740_s0 + $0x232] sm:$0xff] }
 0x3e9   :  { %16444 = vmatprep.mubr.f32.mxu0 %v13706_v49  ;;  %v13790_v49 = vld [vmem:[%s25740_s0 + $0x242] sm:$0xff] }
 0x3ec   :  { %16445 = vmatmul.mubr.f32.gmra.mrb[36].mxu0 %v13707_v53  ;;  %v13791_v53 = vld [vmem:[%s25740_s0 + $0x24a] sm:$0xff] }
 0x3ed   :  { %16447 = vmatprep.mubr.f32.mxu0 %v13708_v59  ;;  %v13792_v59 = vld [vmem:[%s25740_s0 + $0x25a] sm:$0xff] }
 0x3f0   :  { %16448 = vmatmul.mubr.f32.gmra.mrb[38].mxu0 %v13709_v31  ;;  %v13793_v31 = vld [vmem:[%s25740_s0 + $0x262] sm:$0xff] }
 0x3f1   :  { %16450 = vmatprep.mubr.f32.mxu0 %v13710_v20  ;;  %v13794_v20 = vld [vmem:[%s25740_s0 + $0x272] sm:$0xff] }
 0x3f4   :  { %16451 = vmatmul.mubr.f32.gmra.mrb[40].mxu0 %v13711_v35  ;;  %v21722_v35 = vld [vmem:[%s25740_s0 + $0x27a] sm:$0xff] }
 0x3f5   :  { %16453 = vmatprep.mubr.f32.mxu0 %v13712_v36  ;;  %v19375_v36 = vmov 0.0  }
 0x3f6   :  { %6489 = vst [vmem:[#allocation3 + $0x20] sm:$0xff] %v19375_v36  ;;  %6490 = vst [vmem:[#allocation3 + $0x28] sm:$0x3] %v19375_v36  ;;  %16646 = vmatprep.mubr.f32.mxu1 %v19375_v36 }
 0x3f7   :  { %6485 = vst [vmem:[#allocation3] sm:$0xff] %v19375_v36  ;;  %6486 = vst [vmem:[#allocation3 + $0x8] sm:$0xff] %v19375_v36 }
 0x3f8   :  { %16454 = vmatmul.mubr.f32.gmra.mrb[42].mxu0 %v13713_v8  ;;  %6487 = vst [vmem:[#allocation3 + $0x10] sm:$0x3] %v19375_v36  ;;  %6488 = vst [vmem:[#allocation3 + $0x18] sm:$0xff] %v19375_v36  ;;  %v13796_v8 = vld [vmem:[%s25740_s0 + $0x28a] sm:$0xff] }
 0x3f9   :  { %16456 = vmatprep.mubr.f32.mxu0 %v13714_v10  ;;  %6491 = vst [vmem:[#allocation3 + $0x30] sm:$0xff] %v19375_v36  ;;  %6492 = vst [vmem:[#allocation3 + $0x38] sm:$0xff] %v19375_v36  ;;  %v13797_v10 = vld [vmem:[%s25740_s0 + $0x292] sm:$0xff] }
 0x3fa   :  { %6493 = vst [vmem:[#allocation3 + $0x40] sm:$0x3] %v19375_v36  ;;  %6494 = vst [vmem:[#allocation3 + $0x48] sm:$0xff] %v19375_v36 }
 0x3fb   :  { %6495 = vst [vmem:[#allocation3 + $0x50] sm:$0xff] %v19375_v36  ;;  %6496 = vst [vmem:[#allocation3 + $0x58] sm:$0x3] %v19375_v36 }
 0x3fc   :  { %16457 = vmatmul.mubr.f32.gmra.mrb[44].mxu0 %v13715_v19  ;;  %6497 = vst [vmem:[#allocation3 + $0x60] sm:$0xff] %v19375_v36  ;;  %6498 = vst [vmem:[#allocation3 + $0x68] sm:$0xff] %v19375_v36  ;;  %v13798_v19 = vld [vmem:[%s25740_s0 + $0x2a2] sm:$0xff] }
 0x3fd   :  { %16459 = vmatprep.mubr.f32.mxu0 %v13716_v41  ;;  %6499 = vst [vmem:[#allocation3 + $0x70] sm:$0x3] %v19375_v36  ;;  %6500 = vst [vmem:[#allocation3 + $0x78] sm:$0xff] %v19375_v36  ;;  %v13799_v41 = vld [vmem:[%s25740_s0 + $0x2aa] sm:$0xff] }
 0x3fe   :  { %6501 = vst [vmem:[#allocation3 + $0x80] sm:$0xff] %v19375_v36  ;;  %6502 = vst [vmem:[#allocation3 + $0x88] sm:$0x3] %v19375_v36 }
 0x3ff   :  { %6503 = vst [vmem:[#allocation3 + $0x90] sm:$0xff] %v19375_v36  ;;  %6504 = vst [vmem:[#allocation3 + $0x98] sm:$0xff] %v19375_v36 }
 0x400   :  { %16460 = vmatmul.mubr.f32.gmra.mrb[46].mxu0 %v13717_v62  ;;  %6505 = vst [vmem:[#allocation3 + $0xa0] sm:$0x3] %v19375_v36  ;;  %6506 = vst [vmem:[#allocation3 + $0xa8] sm:$0xff] %v19375_v36  ;;  %v13800_v62 = vld [vmem:[%s25740_s0 + $0x2ba] sm:$0xff] }
 0x401   :  { %16462 = vmatprep.mubr.f32.mxu0 %v13718_v45  ;;  %6507 = vst [vmem:[#allocation3 + $0xb0] sm:$0xff] %v19375_v36  ;;  %6508 = vst [vmem:[#allocation3 + $0xb8] sm:$0x3] %v19375_v36  ;;  %v13801_v45 = vld [vmem:[%s25740_s0 + $0x2c2] sm:$0xff] }
 0x402   :  { %6509 = vst [vmem:[#allocation3 + $0xc0] sm:$0xff] %v19375_v36  ;;  %6510 = vst [vmem:[#allocation3 + $0xc8] sm:$0xff] %v19375_v36 }
 0x403   :  { %6511 = vst [vmem:[#allocation3 + $0xd0] sm:$0x3] %v19375_v36  ;;  %6512 = vst [vmem:[#allocation3 + $0xd8] sm:$0xff] %v19375_v36 }
 0x404   :  { %16463 = vmatmul.mubr.f32.gmra.mrb[48].mxu0 %v13719_v46  ;;  %6513 = vst [vmem:[#allocation3 + $0xe0] sm:$0xff] %v19375_v36  ;;  %6514 = vst [vmem:[#allocation3 + $0xe8] sm:$0x3] %v19375_v36  ;;  %v13802_v46 = vld [vmem:[%s25740_s0 + $0x2d2] sm:$0xff] }
 0x405   :  { %16465 = vmatprep.mubr.f32.mxu0 %v13720_v58  ;;  %6515 = vst [vmem:[#allocation3 + $0xf0] sm:$0xff] %v19375_v36  ;;  %6516 = vst [vmem:[#allocation3 + $0xf8] sm:$0xff] %v19375_v36  ;;  %v13803_v58 = vld [vmem:[%s25740_s0 + $0x2da] sm:$0xff] }
 0x406   :  { %6517 = vst [vmem:[#allocation3 + $0x100] sm:$0x3] %v19375_v36  ;;  %6518 = vst [vmem:[#allocation3 + $0x108] sm:$0xff] %v19375_v36 }
 0x407   :  { %6519 = vst [vmem:[#allocation3 + $0x110] sm:$0xff] %v19375_v36  ;;  %6520 = vst [vmem:[#allocation3 + $0x118] sm:$0x3] %v19375_v36 }
 0x408   :  { %16466 = vmatmul.mubr.f32.gmra.mrb[50].mxu0 %v13721_v50  ;;  %6521 = vst [vmem:[#allocation3 + $0x120] sm:$0xff] %v19375_v36  ;;  %6522 = vst [vmem:[#allocation3 + $0x128] sm:$0xff] %v19375_v36  ;;  %v13804_v50 = vld [vmem:[%s25740_s0 + $0x2ea] sm:$0xff] }
 0x409   :  { %16468 = vmatprep.mubr.f32.mxu0 %v13722_v51  ;;  %6523 = vst [vmem:[#allocation3 + $0x130] sm:$0x3] %v19375_v36  ;;  %6524 = vst [vmem:[#allocation3 + $0x138] sm:$0xff] %v19375_v36  ;;  %v13805_v51 = vld [vmem:[%s25740_s0 + $0x2f2] sm:$0xff] }
 0x40a   :  { %6525 = vst [vmem:[#allocation3 + $0x140] sm:$0xff] %v19375_v36  ;;  %6526 = vst [vmem:[#allocation3 + $0x148] sm:$0x3] %v19375_v36 }
 0x40b   :  { %6527 = vst [vmem:[#allocation3 + $0x150] sm:$0xff] %v19375_v36  ;;  %6528 = vst [vmem:[#allocation3 + $0x158] sm:$0xff] %v19375_v36 }
 0x40c   :  { %16469 = vmatmul.mubr.f32.gmra.mrb[52].mxu0 %v13723_v40  ;;  %6529 = vst [vmem:[#allocation3 + $0x160] sm:$0x3] %v19375_v36  ;;  %6530 = vst [vmem:[#allocation3 + $0x168] sm:$0xff] %v19375_v36  ;;  %v13806_v40 = vld [vmem:[%s25740_s0 + $0x302] sm:$0xff] }
 0x40d   :  { %16471 = vmatprep.mubr.f32.mxu0 %v13724_v57  ;;  %6531 = vst [vmem:[#allocation3 + $0x170] sm:$0xff] %v19375_v36  ;;  %6532 = vst [vmem:[#allocation3 + $0x178] sm:$0x3] %v19375_v36  ;;  %v13807_v57 = vld [vmem:[%s25740_s0 + $0x30a] sm:$0xff] }
 0x40e   :  { %6533 = vst [vmem:[#allocation3 + $0x180] sm:$0xff] %v19375_v36  ;;  %6534 = vst [vmem:[#allocation3 + $0x188] sm:$0xff] %v19375_v36 }
 0x40f   :  { %6535 = vst [vmem:[#allocation3 + $0x190] sm:$0x3] %v19375_v36  ;;  %6536 = vst [vmem:[#allocation3 + $0x198] sm:$0xff] %v19375_v36 }
 0x410   :  { %16472 = vmatmul.mubr.f32.gmra.mrb[54].mxu0 %v13725_v55  ;;  %6537 = vst [vmem:[#allocation3 + $0x1a0] sm:$0xff] %v19375_v36  ;;  %6538 = vst [vmem:[#allocation3 + $0x1a8] sm:$0x3] %v19375_v36  ;;  %v13808_v55 = vld [vmem:[%s25740_s0 + $0x31a] sm:$0xff] }
 0x411   :  { %16474 = vmatprep.mubr.f32.mxu0 %v13726_v56  ;;  %6539 = vst [vmem:[#allocation3 + $0x1b0] sm:$0xff] %v19375_v36  ;;  %6540 = vst [vmem:[#allocation3 + $0x1b8] sm:$0xff] %v19375_v36  ;;  %v13809_v56 = vld [vmem:[%s25740_s0 + $0x322] sm:$0xff] }
 0x412   :  { %6541 = vst [vmem:[#allocation3 + $0x1c0] sm:$0x3] %v19375_v36  ;;  %6542 = vst [vmem:[#allocation3 + $0x1c8] sm:$0xff] %v19375_v36 }
 0x413   :  { %6543 = vst [vmem:[#allocation3 + $0x1d0] sm:$0xff] %v19375_v36  ;;  %6544 = vst [vmem:[#allocation3 + $0x1d8] sm:$0x3] %v19375_v36 }
 0x414   :  { %16475 = vmatmul.mubr.f32.gmra.mrb[56].mxu0 %v13727_v0  ;;  %6545 = vst [vmem:[#allocation3 + $0x1e0] sm:$0xff] %v19375_v36  ;;  %6546 = vst [vmem:[#allocation3 + $0x1e8] sm:$0xff] %v19375_v36  ;;  %v19371_v0 = vld [vmem:[%s25740_s0 + $0x332] sm:$0xff] }
 0x415   :  { %16477 = vmatprep.mubr.f32.mxu0 %v13728_v60  ;;  %6547 = vst [vmem:[#allocation3 + $0x1f0] sm:$0x3] %v19375_v36  ;;  %6548 = vst [vmem:[#allocation3 + $0x1f8] sm:$0xff] %v19375_v36  ;;  %v13812_v60 = vld [vmem:[%s25740_s0 + $0x34a] sm:$0xff] }
 0x416   :  { %6549 = vst [vmem:[#allocation3 + $0x200] sm:$0xff] %v19375_v36  ;;  %6550 = vst [vmem:[#allocation3 + $0x208] sm:$0x3] %v19375_v36 }
 0x417   :  { %6551 = vst [vmem:[#allocation3 + $0x210] sm:$0xff] %v19375_v36  ;;  %6552 = vst [vmem:[#allocation3 + $0x218] sm:$0xff] %v19375_v36 }
 0x418   :  { %16478 = vmatmul.mubr.f32.gmra.mrb[58].mxu0 %v13729_v2  ;;  %6553 = vst [vmem:[#allocation3 + $0x220] sm:$0x3] %v19375_v36  ;;  %6554 = vst [vmem:[#allocation3 + $0x228] sm:$0xff] %v19375_v36  ;;  %v19372_v2 = vld [vmem:[%s25740_s0 + $0x33a] sm:$0xff] }
 0x419   :  { %16480 = vmatprep.mubr.f32.mxu0 %v20986_v48  ;;  %v13751_v48 = vld [vmem:[%s25740_s0 + $0x3a] sm:$0xff]  ;;  %6555 = vst [vmem:[#allocation3 + $0x230] sm:$0xff] %v19375_v36  ;;  %6556 = vst [vmem:[#allocation3 + $0x238] sm:$0x3] %v19375_v36 }
 0x41a   :  { %6557 = vst [vmem:[#allocation3 + $0x240] sm:$0xff] %v19375_v36  ;;  %6558 = vst [vmem:[#allocation3 + $0x248] sm:$0xff] %v19375_v36 }
 0x41b   :  { %6559 = vst [vmem:[#allocation3 + $0x250] sm:$0x3] %v19375_v36  ;;  %6560 = vst [vmem:[#allocation3 + $0x258] sm:$0xff] %v19375_v36 }
 0x41c   :  { %16481 = vmatmul.mubr.f32.gmra.mrb[60].mxu0 %v20993_v52  ;;  %v13753_v52 = vld [vmem:[%s25740_s0 + $0x52] sm:$0xff]  ;;  %6561 = vst [vmem:[#allocation3 + $0x260] sm:$0xff] %v19375_v36  ;;  %6562 = vst [vmem:[#allocation3 + $0x268] sm:$0x3] %v19375_v36 }
 0x41d   :  { %16483 = vmatprep.mubr.f32.mxu0 %v13732_v4  ;;  %6563 = vst [vmem:[#allocation3 + $0x270] sm:$0xff] %v19375_v36  ;;  %6564 = vst [vmem:[#allocation3 + $0x278] sm:$0xff] %v19375_v36  ;;  %v13813_v4 = vld [vmem:[%s25740_s0 + $0x352] sm:$0xff] }
 0x41e   :  { %6565 = vst [vmem:[#allocation3 + $0x280] sm:$0x3] %v19375_v36  ;;  %6566 = vst [vmem:[#allocation3 + $0x288] sm:$0xff] %v19375_v36 }
 0x41f   :  { %6567 = vst [vmem:[#allocation3 + $0x290] sm:$0xff] %v19375_v36  ;;  %6568 = vst [vmem:[#allocation3 + $0x298] sm:$0x3] %v19375_v36 }
 0x420   :  { %16484 = vmatmul.mubr.f32.gmra.mrb[62].mxu0 %v13733_v6  ;;  %6569 = vst [vmem:[#allocation3 + $0x2a0] sm:$0xff] %v19375_v36  ;;  %6570 = vst [vmem:[#allocation3 + $0x2a8] sm:$0xff] %v19375_v36 }
 0x421   :  { %16518 = vmatprep.mubr.f32.mxu0 %v13750_v9  ;;  %6571 = vst [vmem:[#allocation3 + $0x2b0] sm:$0x3] %v19375_v36  ;;  %6572 = vst [vmem:[#allocation3 + $0x2b8] sm:$0xff] %v19375_v36 }
 0x422   :  { %6573 = vst [vmem:[#allocation3 + $0x2c0] sm:$0xff] %v19375_v36  ;;  %6574 = vst [vmem:[#allocation3 + $0x2c8] sm:$0x3] %v19375_v36 }
 0x423   :  { %6575 = vst [vmem:[#allocation3 + $0x2d0] sm:$0xff] %v19375_v36  ;;  %6576 = vst [vmem:[#allocation3 + $0x2d8] sm:$0xff] %v19375_v36 }
 0x424   :  { %16519 = vmatmul.mubr.f32.vlgmr.msra.gmra.mrb[0].mxu0 %v13751_v48  ;;  %6577 = vst [vmem:[#allocation3 + $0x2e0] sm:$0x3] %v19375_v36  ;;  %6578 = vst [vmem:[#allocation3 + $0x2e8] sm:$0xff] %v19375_v36 }
 0x425   :  { %16521 = vmatprep.mubr.f32.mxu0 %v13752_v11  ;;  %6579 = vst [vmem:[#allocation3 + $0x2f0] sm:$0xff] %v19375_v36  ;;  %6580 = vst [vmem:[#allocation3 + $0x2f8] sm:$0x3] %v19375_v36 }
 0x426   :  { %6581 = vst [vmem:[#allocation3 + $0x300] sm:$0xff] %v19375_v36  ;;  %6582 = vst [vmem:[#allocation3 + $0x308] sm:$0xff] %v19375_v36 }
 0x427   :  { %6583 = vst [vmem:[#allocation3 + $0x310] sm:$0x3] %v19375_v36  ;;  %6584 = vst [vmem:[#allocation3 + $0x318] sm:$0xff] %v19375_v36 }
 0x428   :  { %16522 = vmatmul.mubr.f32.gmra.mrb[2].mxu0 %v13753_v52  ;;  %6585 = vst [vmem:[#allocation3 + $0x320] sm:$0xff] %v19375_v36  ;;  %6586 = vst [vmem:[#allocation3 + $0x328] sm:$0x3] %v19375_v36 }
 0x429   :  { %16524 = vmatprep.mubr.f32.mxu0 %v13754_v12  ;;  %6587 = vst [vmem:[#allocation3 + $0x330] sm:$0xff] %v19375_v36  ;;  %6588 = vst [vmem:[#allocation3 + $0x338] sm:$0xff] %v19375_v36 }
 0x42a   :  { %6589 = vst [vmem:[#allocation3 + $0x340] sm:$0x3] %v19375_v36  ;;  %6590 = vst [vmem:[#allocation3 + $0x348] sm:$0xff] %v19375_v36 }
 0x42b   :  { %6591 = vst [vmem:[#allocation3 + $0x350] sm:$0xff] %v19375_v36  ;;  %6592 = vst [vmem:[#allocation3 + $0x358] sm:$0x3] %v19375_v36 }
 0x42c   :  { %16525 = vmatmul.mubr.f32.gmra.mrb[4].mxu0 %v13755_v13 }
 0x42d   :  { %16527 = vmatprep.mubr.f32.mxu0 %v13756_v14 }
 0x430   :  { %16528 = vmatmul.mubr.f32.gmra.mrb[6].mxu0 %v13757_v15 }
 0x431   :  { %16530 = vmatprep.mubr.f32.mxu0 %v13758_v16 }
 0x434   :  { %16531 = vmatmul.mubr.f32.gmra.mrb[8].mxu0 %v13759_v17 }
 0x435   :  { %16533 = vmatprep.mubr.f32.mxu0 %v13760_v61 }
 0x438   :  { %16534 = vmatmul.mubr.f32.gmra.mrb[10].mxu0 %v13761_v3 }
 0x439   :  { %16536 = vmatprep.mubr.f32.mxu0 %v13762_v1 }
 0x43c   :  { %16537 = vmatmul.mubr.f32.gmra.mrb[12].mxu0 %v13763_v18 }
 0x43d   :  { %16539 = vmatprep.mubr.f32.mxu0 %v13764_v54 }
 0x440   :  { %16540 = vmatmul.mubr.f32.gmra.mrb[14].mxu0 %v13765_v21 }
 0x441   :  { %16542 = vmatprep.mubr.f32.mxu0 %v13766_v22 }
 0x444   :  { %16543 = vmatmul.mubr.f32.gmra.mrb[16].mxu0 %v13767_v23 }
 0x445   :  { %16545 = vmatprep.mubr.f32.mxu0 %v13768_v24 }
 0x448   :  { %16546 = vmatmul.mubr.f32.gmra.mrb[18].mxu0 %v13769_v25 }
 0x449   :  { %16548 = vmatprep.mubr.f32.mxu0 %v13770_v26 }
 0x44c   :  { %16549 = vmatmul.mubr.f32.gmra.mrb[20].mxu0 %v13771_v27 }
 0x44d   :  { %16551 = vmatprep.mubr.f32.mxu0 %v13772_v28 }
 0x450   :  { %16552 = vmatmul.mubr.f32.gmra.mrb[22].mxu0 %v13773_v29 }
 0x451   :  { %16554 = vmatprep.mubr.f32.mxu0 %v13774_v63 }
 0x454   :  { %16555 = vmatmul.mubr.f32.gmra.mrb[24].mxu0 %v13775_v30 }
 0x455   :  { %16557 = vmatprep.mubr.f32.mxu0 %v13776_v32 }
 0x458   :  { %16558 = vmatmul.mubr.f32.gmra.mrb[26].mxu0 %v13777_v33 }
 0x459   :  { %16560 = vmatprep.mubr.f32.mxu0 %v21079_v43  ;;  %v13783_v43 = vld [vmem:[%s25740_s0 + $0x1ea] sm:$0xff] }
 0x45c   :  { %16561 = vmatmul.mubr.f32.gmra.mrb[28].mxu0 %v21086_v47  ;;  %v13785_v47 = vld [vmem:[%s25740_s0 + $0x202] sm:$0xff] }
 0x45d   :  { %16563 = vmatprep.mubr.f32.mxu0 %v13780_v34 }
 0x460   :  { %16564 = vmatmul.mubr.f32.gmra.mrb[30].mxu0 %v13781_v37 }
 0x461   :  { %16566 = vmatprep.mubr.f32.mxu0 %v13782_v38 }
 0x464   :  { %16567 = vmatmul.mubr.f32.gmra.mrb[32].mxu0 %v13783_v43 }
 0x465   :  { %16569 = vmatprep.mubr.f32.mxu0 %v13784_v39 }
 0x468   :  { %16570 = vmatmul.mubr.f32.gmra.mrb[34].mxu0 %v13785_v47 }
 0x469   :  { %16572 = vmatprep.mubr.f32.mxu0 %v13786_v42 }
 0x46c   :  { %16573 = vmatmul.mubr.f32.gmra.mrb[36].mxu0 %v13787_v5 }
 0x46d   :  { %16575 = vmatprep.mubr.f32.mxu0 %v13788_v44 }
 0x470   :  { %16576 = vmatmul.mubr.f32.gmra.mrb[38].mxu0 %v13789_v7 }
 0x471   :  { %16578 = vmatprep.mubr.f32.mxu0 %v13790_v49 }
 0x474   :  { %16579 = vmatmul.mubr.f32.gmra.mrb[40].mxu0 %v13791_v53 }
 0x475   :  { %16581 = vmatprep.mubr.f32.mxu0 %v13792_v59 }
 0x478   :  { %16582 = vmatmul.mubr.f32.gmra.mrb[42].mxu0 %v13793_v31 }
 0x479   :  { %16584 = vmatprep.mubr.f32.mxu0 %v13794_v20 }
 0x47c   :  { %16585 = vmatmul.mubr.f32.gmra.mrb[44].mxu0 %v21722_v35 }
 0x47d   :  { %16587 = vmatprep.mubr.f32.mxu0 %v13796_v8 }
 0x480   :  { %16588 = vmatmul.mubr.f32.gmra.mrb[46].mxu0 %v13797_v10 }
 0x481   :  { %16590 = vmatprep.mubr.f32.mxu0 %v13798_v19 }
 0x484   :  { %16591 = vmatmul.mubr.f32.gmra.mrb[48].mxu0 %v13799_v41 }
 0x485   :  { %16593 = vmatprep.mubr.f32.mxu0 %v13800_v62 }
 0x488   :  { %16594 = vmatmul.mubr.f32.gmra.mrb[50].mxu0 %v13801_v45 }
 0x489   :  { %16596 = vmatprep.mubr.f32.mxu0 %v13802_v46 }
 0x48c   :  { %16597 = vmatmul.mubr.f32.gmra.mrb[52].mxu0 %v13803_v58 }
 0x48d   :  { %16599 = vmatprep.mubr.f32.mxu0 %v13804_v50 }
 0x490   :  { %16600 = vmatmul.mubr.f32.gmra.mrb[54].mxu0 %v13805_v51 }
 0x491   :  { %16602 = vmatprep.mubr.f32.mxu0 %v13806_v40 }
 0x494   :  { %16603 = vmatmul.mubr.f32.gmra.mrb[56].mxu0 %v13807_v57 }
 0x495   :  { %16605 = vmatprep.mubr.f32.mxu0 %v13808_v55 }
 0x498   :  { %16606 = vmatmul.mubr.f32.gmra.mrb[58].mxu0 %v13809_v56 }
 0x499   :  { %16608 = vmatprep.mubr.f32.mxu0 %v19371_v0 }
 0x49c   :  { %16609 = vmatmul.mubr.f32.gmra.mrb[60].mxu0 %v19372_v2 }
 0x49d   :  { %16611 = vmatprep.mubr.f32.mxu0 %v13812_v60 }
 0x4a0   :  { %16612 = vmatmul.mubr.f32.gmra.mrb[62].mxu0 %v13813_v4 }
 0x4f7   :  { %v21888_v6 = vpop.f32.mrb[0].mxu0 }
 0x4f8   :  { %v6143_v9 = vmul.f32 %v21888_v6, %v21888_v6  ;;  %v21892_v48 = vpop.f32.mrb[1].mxu0 }
 0x4f9   :  { %v6073_v11 = vadd.f32 %v21888_v6, %v21892_v48  ;;  %v6142_v52 = vmul.f32 %v21892_v48, %v21892_v48 }
 0x4fb   :  { %v6206_v12 = vadd.f32 %v6143_v9, %v6142_v52  ;;  %v21898_v13 = vpop.f32.mrb[2].mxu0 }
 0x4fc   :  { %v21900_v14 = vpop.f32.mrb[3].mxu0  ;;  %v6145_v17 = vmul.f32 %v21898_v13, %v21898_v13 }
 0x4fd   :  { %v6074_v15 = vadd.f32 %v6073_v11, %v21900_v14  ;;  %v6144_v16 = vmul.f32 %v21900_v14, %v21900_v14 }
 0x4ff   :  { %v6075_v61 = vadd.f32 %v21898_v13, %v6074_v15  ;;  %v6207_v3 = vadd.f32 %v6206_v12, %v6144_v16  ;;  %v21908_v1 = vpop.f32.mrb[4].mxu0 }
 0x500   :  { %v21910_v18 = vpop.f32.mrb[5].mxu0  ;;  %v6147_v23 = vmul.f32 %v21908_v1, %v21908_v1 }
 0x501   :  { %v6208_v54 = vadd.f32 %v6207_v3, %v6145_v17  ;;  %v6076_v21 = vadd.f32 %v6075_v61, %v21910_v18  ;;  %v6146_v22 = vmul.f32 %v21910_v18, %v21910_v18 }
 0x503   :  { %v6209_v24 = vadd.f32 %v6208_v54, %v6146_v22  ;;  %v21917_v25 = vpop.f32.mrb[6].mxu0  ;;  %v6077_v26 = vadd.f32 %v21908_v1, %v6076_v21 }
 0x504   :  { %v21920_v27 = vpop.f32.mrb[7].mxu0  ;;  %v6149_v30 = vmul.f32 %v21917_v25, %v21917_v25 }
 0x505   :  { %v6078_v28 = vadd.f32 %v6077_v26, %v21920_v27  ;;  %v6148_v29 = vmul.f32 %v21920_v27, %v21920_v27  ;;  %v6210_v63 = vadd.f32 %v6209_v24, %v6147_v23 }
 0x507   :  { %v6211_v32 = vadd.f32 %v6210_v63, %v6148_v29  ;;  %v21927_v33 = vpop.f32.mrb[8].mxu0  ;;  %v6079_v34 = vadd.f32 %v21917_v25, %v6078_v28 }
 0x508   :  { %v21930_v37 = vpop.f32.mrb[9].mxu0  ;;  %v6151_v47 = vmul.f32 %v21927_v33, %v21927_v33 }
 0x509   :  { %v6080_v38 = vadd.f32 %v6079_v34, %v21930_v37  ;;  %v6150_v43 = vmul.f32 %v21930_v37, %v21930_v37  ;;  %v6212_v39 = vadd.f32 %v6211_v32, %v6149_v30 }
 0x50b   :  { %v6213_v42 = vadd.f32 %v6212_v39, %v6150_v43  ;;  %v21937_v5 = vpop.f32.mrb[10].mxu0  ;;  %v6081_v44 = vadd.f32 %v21927_v33, %v6080_v38 }
 0x50c   :  { %v21940_v7 = vpop.f32.mrb[11].mxu0  ;;  %v6153_v31 = vmul.f32 %v21937_v5, %v21937_v5 }
 0x50d   :  { %v6082_v49 = vadd.f32 %v6081_v44, %v21940_v7  ;;  %v6152_v53 = vmul.f32 %v21940_v7, %v21940_v7  ;;  %v6214_v59 = vadd.f32 %v6213_v42, %v6151_v47 }
 0x50f   :  { %v6215_v20 = vadd.f32 %v6214_v59, %v6152_v53  ;;  %v21947_v35 = vpop.f32.mrb[12].mxu0  ;;  %v6083_v8 = vadd.f32 %v21937_v5, %v6082_v49 }
 0x510   :  { %v21950_v10 = vpop.f32.mrb[13].mxu0  ;;  %v6155_v45 = vmul.f32 %v21947_v35, %v21947_v35 }
 0x511   :  { %v6084_v19 = vadd.f32 %v6083_v8, %v21950_v10  ;;  %v6154_v41 = vmul.f32 %v21950_v10, %v21950_v10  ;;  %v6216_v62 = vadd.f32 %v6215_v20, %v6153_v31 }
 0x513   :  { %v6217_v46 = vadd.f32 %v6216_v62, %v6154_v41  ;;  %v21957_v58 = vpop.f32.mrb[14].mxu0  ;;  %v6085_v50 = vadd.f32 %v21947_v35, %v6084_v19 }
 0x514   :  { %v21960_v51 = vpop.f32.mrb[15].mxu0  ;;  %v6157_v56 = vmul.f32 %v21957_v58, %v21957_v58 }
 0x515   :  { %v6086_v40 = vadd.f32 %v6085_v50, %v21960_v51  ;;  %v6156_v57 = vmul.f32 %v21960_v51, %v21960_v51  ;;  %v6218_v55 = vadd.f32 %v6217_v46, %v6155_v45 }
 0x517   :  { %v6219_v0 = vadd.f32 %v6218_v55, %v6156_v57  ;;  %v21967_v60 = vpop.f32.mrb[16].mxu0  ;;  %v6087_v2 = vadd.f32 %v21957_v58, %v6086_v40 }
 0x518   :  { %v21970_v4 = vpop.f32.mrb[17].mxu0  ;;  %v6159_v12 = vmul.f32 %v21967_v60, %v21967_v60 }
 0x519   :  { %v6088_v9 = vadd.f32 %v6087_v2, %v21970_v4  ;;  %v6158_v11 = vmul.f32 %v21970_v4, %v21970_v4  ;;  %v6220_v52 = vadd.f32 %v6219_v0, %v6157_v56 }
 0x51b   :  { %v6221_v15 = vadd.f32 %v6220_v52, %v6158_v11  ;;  %v21977_v16 = vpop.f32.mrb[18].mxu0  ;;  %v6089_v17 = vadd.f32 %v21967_v60, %v6088_v9 }
 0x51c   :  { %v21980_v61 = vpop.f32.mrb[19].mxu0  ;;  %v6161_v22 = vmul.f32 %v21977_v16, %v21977_v16 }
 0x51d   :  { %v6090_v3 = vadd.f32 %v6089_v17, %v21980_v61  ;;  %v6160_v54 = vmul.f32 %v21980_v61, %v21980_v61  ;;  %v6222_v21 = vadd.f32 %v6221_v15, %v6159_v12 }
 0x51f   :  { %v6223_v23 = vadd.f32 %v6222_v21, %v6160_v54  ;;  %v21987_v24 = vpop.f32.mrb[20].mxu0  ;;  %v6091_v26 = vadd.f32 %v21977_v16, %v6090_v3  ;;  %v6850_v3 = vld [vmem:[%s25741_s2] sm:$0xff]  ;;  %v6851_v54 = vld [vmem:[%s25741_s2 + $0x8] sm:$0xff] }
 0x520   :  { %v21990_v28 = vpop.f32.mrb[21].mxu0  ;;  %v6163_v32 = vmul.f32 %v21987_v24, %v21987_v24 }
 0x521   :  { %v6092_v29 = vadd.f32 %v6091_v26, %v21990_v28  ;;  %v6162_v63 = vmul.f32 %v21990_v28, %v21990_v28  ;;  %v6224_v30 = vadd.f32 %v6223_v23, %v6161_v22 }
 0x523   :  { %v6225_v34 = vadd.f32 %v6224_v30, %v6162_v63  ;;  %v21997_v38 = vpop.f32.mrb[22].mxu0  ;;  %v6093_v43 = vadd.f32 %v21987_v24, %v6092_v29  ;;  %v18054_v29 = vpack.c.bf16 %v6851_v54, %v6850_v3  ;;  %v6856_v3 = vld [vmem:[%s25741_s2 + $0x30] sm:$0xff]  ;;  %v6857_v54 = vld [vmem:[%s25741_s2 + $0x38] sm:$0xff] }
 0x524   :  { %v22000_v39 = vpop.f32.mrb[23].mxu0  ;;  %v6165_v49 = vmul.f32 %v21997_v38, %v21997_v38 }
 0x525   :  { %v6094_v47 = vadd.f32 %v6093_v43, %v22000_v39  ;;  %v6164_v42 = vmul.f32 %v22000_v39, %v22000_v39  ;;  %v6226_v44 = vadd.f32 %v6225_v34, %v6163_v32  ;;  %18055 = vmatprep.subr.bf16.mxu1 %v18054_v29  ;;  %v6852_v43 = vld [vmem:[%s25741_s2 + $0x10] sm:$0xff] }
 0x526   :  { %18057 = vmatpush3.bf16.msra.mxu1 %v18054_v29 }
 0x527   :  { %v6227_v53 = vadd.f32 %v6226_v44, %v6164_v42  ;;  %v22007_v59 = vpop.f32.mrb[24].mxu0  ;;  %v6095_v31 = vadd.f32 %v21997_v38, %v6094_v47  ;;  %v6853_v47 = vld [vmem:[%s25741_s2 + $0x18] sm:$0xff] }
 0x528   :  { %v22010_v20 = vpop.f32.mrb[25].mxu0  ;;  %v6167_v62 = vmul.f32 %v22007_v59, %v22007_v59 }
 0x529   :  { %v6096_v8 = vadd.f32 %v6095_v31, %v22010_v20  ;;  %v6166_v19 = vmul.f32 %v22010_v20, %v22010_v20  ;;  %v6228_v41 = vadd.f32 %v6227_v53, %v6165_v49  ;;  %v18058_v31 = vpack.c.bf16 %v6853_v47, %v6852_v43 }
 0x52b   :  { %v6229_v45 = vadd.f32 %v6228_v41, %v6166_v19  ;;  %v22017_v46 = vpop.f32.mrb[26].mxu0  ;;  %v6097_v50 = vadd.f32 %v22007_v59, %v6096_v8  ;;  %18059 = vmatprep.subr.bf16.mxu1 %v18058_v31 }
 0x52c   :  { %v22020_v40 = vpop.f32.mrb[27].mxu0  ;;  %v6169_v0 = vmul.f32 %v22017_v46, %v22017_v46  ;;  %18061 = vmatpush3.bf16.msra.mxu1 %v18058_v31 }
 0x52d   :  { %v6098_v57 = vadd.f32 %v6097_v50, %v22020_v40  ;;  %v6168_v55 = vmul.f32 %v22020_v40, %v22020_v40  ;;  %v6230_v56 = vadd.f32 %v6229_v45, %v6167_v62  ;;  %v6854_v45 = vld [vmem:[%s25741_s2 + $0x20] sm:$0xff]  ;;  %v6855_v50 = vld [vmem:[%s25741_s2 + $0x28] sm:$0xff] }
 0x52f   :  { %v6231_v2 = vadd.f32 %v6230_v56, %v6168_v55  ;;  %v22027_v9 = vpop.f32.mrb[28].mxu0  ;;  %v6099_v11 = vadd.f32 %v22017_v46, %v6098_v57 }
 0x530   :  { %v22030_v52 = vpop.f32.mrb[29].mxu0  ;;  %v6171_v21 = vmul.f32 %v22027_v9, %v22027_v9 }
 0x531   :  { %v6100_v12 = vadd.f32 %v6099_v11, %v22030_v52  ;;  %v6170_v15 = vmul.f32 %v22030_v52, %v22030_v52  ;;  %v6232_v17 = vadd.f32 %v6231_v2, %v6169_v0  ;;  %v18062_v2 = vpack.c.bf16 %v6855_v50, %v6854_v45 }
 0x533   :  { %v6233_v22 = vadd.f32 %v6232_v17, %v6170_v15  ;;  %v22043_v23 = vpop.f32.mrb[30].mxu0  ;;  %v6101_v26 = vadd.f32 %v22027_v9, %v6100_v12  ;;  %18063 = vmatprep.subr.bf16.mxu1 %v18062_v2 }
 0x534   :  { %v22046_v63 = vpop.f32.mrb[31].mxu0  ;;  %v6173_v42 = vmul.f32 %v22043_v23, %v22043_v23  ;;  %18065 = vmatpush3.bf16.msra.mxu1 %v18062_v2  ;;  %v6861_v2 = vld [vmem:[%s25741_s2 + $0x58] sm:$0xff] }
 0x535   :  { %v6102_v30 = vadd.f32 %v6101_v26, %v22046_v63  ;;  %v6172_v32 = vmul.f32 %v22046_v63, %v22046_v63  ;;  %v6234_v34 = vadd.f32 %v6233_v22, %v6171_v21 }
 0x537   :  { %v6235_v44 = vadd.f32 %v6234_v34, %v6172_v32  ;;  %v22059_v49 = vpop.f32.mrb[32].mxu0  ;;  %v6103_v53 = vadd.f32 %v22043_v23, %v6102_v30  ;;  %v18066_v30 = vpack.c.bf16 %v6857_v54, %v6856_v3 }
 0x538   :  { %v22062_v8 = vpop.f32.mrb[33].mxu0  ;;  %v6175_v57 = vmul.f32 %v22059_v49, %v22059_v49 }
 0x539   :  { %v6104_v19 = vadd.f32 %v6103_v53, %v22062_v8  ;;  %v6174_v41 = vmul.f32 %v22062_v8, %v22062_v8  ;;  %v6236_v62 = vadd.f32 %v6235_v44, %v6173_v42  ;;  %18067 = vmatprep.subr.bf16.mxu1 %v18066_v30  ;;  %v6858_v42 = vld [vmem:[%s25741_s2 + $0x40] sm:$0xff]  ;;  %v6859_v44 = vld [vmem:[%s25741_s2 + $0x48] sm:$0xff] }
 0x53a   :  { %18069 = vmatpush3.bf16.msra.mxu1 %v18066_v30 }
 0x53b   :  { %v6237_v55 = vadd.f32 %v6236_v62, %v6174_v41  ;;  %v22075_v56 = vpop.f32.mrb[34].mxu0  ;;  %v6105_v0 = vadd.f32 %v22059_v49, %v6104_v19  ;;  %v18070_v62 = vpack.c.bf16 %v6859_v44, %v6858_v42 }
 0x53c   :  { %v22078_v11 = vpop.f32.mrb[35].mxu0  ;;  %v6177_v21 = vmul.f32 %v22075_v56, %v22075_v56 }
 0x53d   :  { %v6106_v12 = vadd.f32 %v6105_v0, %v22078_v11  ;;  %v6176_v15 = vmul.f32 %v22078_v11, %v22078_v11  ;;  %v6238_v17 = vadd.f32 %v6237_v55, %v6175_v57  ;;  %18071 = vmatprep.subr.bf16.mxu1 %v18070_v62  ;;  %v6860_v0 = vld [vmem:[%s25741_s2 + $0x50] sm:$0xff] }
 0x53e   :  { %18073 = vmatpush3.bf16.msra.mxu1 %v18070_v62  ;;  %v18074_v54 = vpack.c.bf16 %v6861_v2, %v6860_v0  ;;  %v6865_v0 = vld [vmem:[%s25741_s2 + $0x78] sm:$0xff] }
 0x53f   :  { %v6239_v22 = vadd.f32 %v6238_v17, %v6176_v15  ;;  %v22091_v26 = vpop.f32.mrb[36].mxu0  ;;  %v6107_v29 = vadd.f32 %v22075_v56, %v6106_v12 }
 0x540   :  { %v22094_v32 = vpop.f32.mrb[37].mxu0  ;;  %v6179_v53 = vmul.f32 %v22091_v26, %v22091_v26  ;;  %18075 = vmatprep.subr.bf16.mxu1 %v18074_v54 }
 0x541   :  { %v6108_v34 = vadd.f32 %v6107_v29, %v22094_v32  ;;  %v6178_v43 = vmul.f32 %v22094_v32, %v22094_v32  ;;  %v6240_v47 = vadd.f32 %v6239_v22, %v6177_v21 }
 0x542   :  { %18077 = vmatpush3.bf16.msra.mxu1 %v18074_v54 }
 0x543   :  { %v6241_v31 = vadd.f32 %v6240_v47, %v6178_v43  ;;  %v22107_v19 = vpop.f32.mrb[38].mxu0  ;;  %v6109_v41 = vadd.f32 %v22091_v26, %v6108_v34  ;;  %v6862_v34 = vld [vmem:[%s25741_s2 + $0x60] sm:$0xff]  ;;  %v6863_v43 = vld [vmem:[%s25741_s2 + $0x68] sm:$0xff] }
 0x544   :  { %v22110_v45 = vpop.f32.mrb[39].mxu0  ;;  %v6181_v12 = vmul.f32 %v22107_v19, %v22107_v19 }
 0x545   :  { %v6110_v50 = vadd.f32 %v6109_v41, %v22110_v45  ;;  %v6180_v57 = vmul.f32 %v22110_v45, %v22110_v45  ;;  %v6242_v55 = vadd.f32 %v6241_v31, %v6179_v53  ;;  %v18078_v31 = vpack.c.bf16 %v6863_v43, %v6862_v34 }
 0x547   :  { %v6243_v15 = vadd.f32 %v6242_v55, %v6180_v57  ;;  %v22123_v17 = vpop.f32.mrb[40].mxu0  ;;  %v6111_v3 = vadd.f32 %v22107_v19, %v6110_v50  ;;  %18079 = vmatprep.subr.bf16.mxu1 %v18078_v31  ;;  %v6864_v55 = vld [vmem:[%s25741_s2 + $0x70] sm:$0xff] }
 0x548   :  { %26317 = vst [vmem:[#allocation4_spill] sm:$0xff] %v22123_v17  ;;  %v22126_v21 = vpop.f32.mrb[41].mxu0  ;;  %v6183_v47 = vmul.f32 %v22123_v17, %v22123_v17  ;;  %18081 = vmatpush3.bf16.msra.mxu1 %v18078_v31  ;;  %v18082_v54 = vpack.c.bf16 %v6865_v0, %v6864_v55 }
 0x549   :  { %v6112_v22 = vadd.f32 %v6111_v3, %v22126_v21  ;;  %v6182_v29 = vmul.f32 %v22126_v21, %v22126_v21  ;;  %v6244_v30 = vadd.f32 %v6243_v15, %v6181_v12 }
 0x54a   :  { %18083 = vmatprep.subr.bf16.mxu1 %v18082_v54 }
 0x54b   :  { %v6245_v42 = vadd.f32 %v6244_v30, %v6182_v29  ;;  %v22139_v44 = vpop.f32.mrb[42].mxu0  ;;  %v6113_v53 = vadd.f32 %v22123_v17, %v6112_v22  ;;  %v13830_v29 = vld [vmem:[%s25741_s2 + $0x80] sm:$0xff]  ;;  %v13831_v30 = vld [vmem:[%s25741_s2 + $0x88] sm:$0xff] }
 0x54c   :  { %26318 = vst [vmem:[#allocation5_spill] sm:$0xff] %v22139_v44  ;;  %v22142_v41 = vpop.f32.mrb[43].mxu0  ;;  %v6185_v2 = vmul.f32 %v22139_v44, %v22139_v44  ;;  %18085 = vmatpush3.bf16.msra.mxu1 %v18082_v54 }
 0x54d   :  { %26319 = vst [vmem:[#allocation6_spill] sm:$0xff] %v22142_v41  ;;  %v6114_v62 = vadd.f32 %v6113_v53, %v22142_v41  ;;  %v6184_v50 = vmul.f32 %v22142_v41, %v22142_v41  ;;  %v6246_v57 = vadd.f32 %v6245_v42, %v6183_v47  ;;  %v18086_v42 = vpack.c.bf16 %v13831_v30, %v13830_v29 }
 0x54f   :  { %v6247_v12 = vadd.f32 %v6246_v57, %v6184_v50  ;;  %v22155_v15 = vpop.f32.mrb[44].mxu0  ;;  %v6115_v3 = vadd.f32 %v22139_v44, %v6114_v62  ;;  %18087 = vmatprep.subr.bf16.mxu1 %v18086_v42  ;;  %16647 = vmatmul.mubr.f32.vlgmr.msra.gmra.mrb[0].mxu1 %v19375_v36 }
 0x550   :  { %26320 = vst [vmem:[#allocation7_spill] sm:$0xff] %v22155_v15  ;;  %v22158_v22 = vpop.f32.mrb[45].mxu0  ;;  %v6187_v53 = vmul.f32 %v22155_v15, %v22155_v15  ;;  %18089 = vmatpush3.bf16.msra.mxu1 %v18086_v42 }
 0x551   :  { %26321 = vst [vmem:[#allocation8_spill] sm:$0xff] %v22158_v22  ;;  %v6116_v34 = vadd.f32 %v6115_v3, %v22158_v22  ;;  %v6186_v43 = vmul.f32 %v22158_v22, %v22158_v22  ;;  %v6248_v47 = vadd.f32 %v6247_v12, %v6185_v2  ;;  %v13832_v12 = vld [vmem:[%s25741_s2 + $0x90] sm:$0xff]  ;;  %v13833_v3 = vld [vmem:[%s25741_s2 + $0x98] sm:$0xff] }
 0x552   :  { %v18090_v54 = vpack.c.bf16 %v13833_v3, %v13832_v12 }
 0x553   :  { %v6249_v31 = vadd.f32 %v6248_v47, %v6186_v43  ;;  %v22171_v62 = vpop.f32.mrb[46].mxu0  ;;  %v6117_v50 = vadd.f32 %v22155_v15, %v6116_v34 }
 0x554   :  { %26322 = vst [vmem:[#allocation9_spill] sm:$0xff] %v22171_v62  ;;  %v22174_v57 = vpop.f32.mrb[47].mxu0  ;;  %v6189_v29 = vmul.f32 %v22171_v62, %v22171_v62  ;;  %18091 = vmatprep.subr.bf16.mxu1 %v18090_v54 }
 0x555   :  { %26323 = vst [vmem:[#allocation10_spill] sm:$0xff] %v22174_v57  ;;  %v6118_v55 = vadd.f32 %v6117_v50, %v22174_v57  ;;  %v6188_v0 = vmul.f32 %v22174_v57, %v22174_v57  ;;  %v6250_v2 = vadd.f32 %v6249_v31, %v6187_v53  ;;  %18093 = vmatpush3.bf16.msra.mxu1 %v18090_v54 }
 0x557   :  { %v6251_v30 = vadd.f32 %v6250_v2, %v6188_v0  ;;  %v22188_v34 = vpop.f32.mrb[48].mxu0  ;;  %v6119_v43 = vadd.f32 %v22171_v62, %v6118_v55 }
 0x558   :  { %26324 = vst [vmem:[#allocation11_spill] sm:$0xff] %v22188_v34  ;;  %v22191_v47 = vpop.f32.mrb[49].mxu0  ;;  %v6191_v42 = vmul.f32 %v22188_v34, %v22188_v34 }
 0x559   :  { %26325 = vst [vmem:[#allocation12_spill] sm:$0xff] %v22191_v47  ;;  %v6120_v36 = vadd.f32 %v6119_v43, %v22191_v47  ;;  %v6190_v53 = vmul.f32 %v22191_v47, %v22191_v47  ;;  %v6252_v31 = vadd.f32 %v6251_v30, %v6189_v29 }
 0x55b   :  { %v6253_v50 = vadd.f32 %v6252_v31, %v6190_v53  ;;  %v22198_v12 = vpop.f32.mrb[50].mxu0  ;;  %v6121_v0 = vadd.f32 %v22188_v34, %v6120_v36 }
 0x55c   :  { %26326 = vst [vmem:[#allocation13_spill] sm:$0xff] %v22198_v12  ;;  %v22201_v2 = vpop.f32.mrb[51].mxu0  ;;  %v6193_v29 = vmul.f32 %v22198_v12, %v22198_v12 }
 0x55d   :  { %26327 = vst [vmem:[#allocation14_spill] sm:$0xff] %v22201_v2  ;;  %v6122_v55 = vadd.f32 %v6121_v0, %v22201_v2  ;;  %v6192_v3 = vmul.f32 %v22201_v2, %v22201_v2  ;;  %v6254_v43 = vadd.f32 %v6253_v50, %v6191_v42 }
 0x55f   :  { %v6255_v54 = vadd.f32 %v6254_v43, %v6192_v3  ;;  %v22208_v30 = vpop.f32.mrb[52].mxu0  ;;  %v6123_v53 = vadd.f32 %v22198_v12, %v6122_v55 }
 0x560   :  { %26328 = vst [vmem:[#allocation15_spill] sm:$0xff] %v22208_v30  ;;  %v22211_v31 = vpop.f32.mrb[53].mxu0  ;;  %v6195_v2 = vmul.f32 %v22208_v30, %v22208_v30 }
 0x561   :  { %26329 = vst [vmem:[#allocation16_spill] sm:$0xff] %v22211_v31  ;;  %v6124_v36 = vadd.f32 %v6123_v53, %v22211_v31  ;;  %v6194_v34 = vmul.f32 %v22211_v31, %v22211_v31  ;;  %v6256_v0 = vadd.f32 %v6255_v54, %v6193_v29  ;;  %v13834_v29 = vld [vmem:[%s25741_s2 + $0xa0] sm:$0xff] }
 0x563   :  { %v6257_v42 = vadd.f32 %v6256_v0, %v6194_v34  ;;  %v22218_v50 = vpop.f32.mrb[54].mxu0  ;;  %v6125_v3 = vadd.f32 %v22208_v30, %v6124_v36  ;;  %v13835_v34 = vld [vmem:[%s25741_s2 + $0xa8] sm:$0xff] }
 0x564   :  { %26330 = vst [vmem:[#allocation17_spill] sm:$0xff] %v22218_v50  ;;  %v22221_v43 = vpop.f32.mrb[55].mxu0  ;;  %v18094_v54 = vpack.c.bf16 %v13835_v34, %v13834_v29  ;;  %v6197_v36 = vmul.f32 %v22218_v50, %v22218_v50 }
 0x565   :  { %26331 = vst [vmem:[#allocation18_spill] sm:$0xff] %v22221_v43  ;;  %v6126_v55 = vadd.f32 %v6125_v3, %v22221_v43  ;;  %v6196_v12 = vmul.f32 %v22221_v43, %v22221_v43  ;;  %v6258_v53 = vadd.f32 %v6257_v42, %v6195_v2 }
 0x566   :  { %18095 = vmatprep.subr.bf16.mxu1 %v18094_v54 }
 0x567   :  { %v6259_v0 = vadd.f32 %v6258_v53, %v6196_v12  ;;  %v22234_v30 = vpop.f32.mrb[56].mxu0  ;;  %v6127_v3 = vadd.f32 %v22218_v50, %v6126_v55  ;;  %18097 = vmatpush3.bf16.msra.mxu1 %v18094_v54 }
 0x568   :  { %26332 = vst [vmem:[#allocation19_spill] sm:$0xff] %v22234_v30  ;;  %v22237_v31 = vpop.f32.mrb[57].mxu0  ;;  %v6199_v29 = vmul.f32 %v22234_v30, %v22234_v30 }
 0x569   :  { %26333 = vst [vmem:[#allocation20_spill] sm:$0xff] %v22237_v31  ;;  %v6128_v2 = vadd.f32 %v6127_v3, %v22237_v31  ;;  %v6198_v42 = vmul.f32 %v22237_v31, %v22237_v31  ;;  %v6260_v43 = vadd.f32 %v6259_v0, %v6197_v36 }
 0x56b   :  { %v6261_v34 = vadd.f32 %v6260_v43, %v6198_v42  ;;  %v22244_v47 = vpop.f32.mrb[58].mxu0  ;;  %v6129_v12 = vadd.f32 %v22234_v30, %v6128_v2 }
 0x56c   :  { %26334 = vst [vmem:[#allocation21_spill] sm:$0xff] %v22244_v47  ;;  %v22247_v53 = vpop.f32.mrb[59].mxu0  ;;  %v6201_v36 = vmul.f32 %v22244_v47, %v22244_v47 }
 0x56d   :  { %26335 = vst [vmem:[#allocation22_spill] sm:$0xff] %v22247_v53  ;;  %v6130_v55 = vadd.f32 %v6129_v12, %v22247_v53  ;;  %v6200_v3 = vmul.f32 %v22247_v53, %v22247_v53  ;;  %v6262_v50 = vadd.f32 %v6261_v34, %v6199_v29 }
 0x56f   :  { %v6263_v54 = vadd.f32 %v6262_v50, %v6200_v3  ;;  %v22254_v0 = vpop.f32.mrb[60].mxu0  ;;  %v6131_v43 = vadd.f32 %v22244_v47, %v6130_v55 }
 0x570   :  { %26336 = vst [vmem:[#allocation23_spill] sm:$0xff] %v22254_v0  ;;  %v22257_v42 = vpop.f32.mrb[61].mxu0  ;;  %v6203_v53 = vmul.f32 %v22254_v0, %v22254_v0 }
 0x571   :  { %26337 = vst [vmem:[#allocation24_spill] sm:$0xff] %v22257_v42  ;;  %v6132_v2 = vadd.f32 %v6131_v43, %v22257_v42  ;;  %v6202_v30 = vmul.f32 %v22257_v42, %v22257_v42  ;;  %v6264_v12 = vadd.f32 %v6263_v54, %v6201_v36  ;;  %v13836_v43 = vld [vmem:[%s25741_s2 + $0xb0] sm:$0xff]  ;;  %v13837_v36 = vld [vmem:[%s25741_s2 + $0xb8] sm:$0xff] }
 0x572   :  { %v18098_v54 = vpack.c.bf16 %v13837_v36, %v13836_v43 }
 0x573   :  { %v6265_v29 = vadd.f32 %v6264_v12, %v6202_v30  ;;  %v22264_v34 = vpop.f32.mrb[62].mxu0  ;;  %v6133_v50 = vadd.f32 %v22254_v0, %v6132_v2 }
 0x574   :  { %v5870_v3 = vpop.f32.mrb[63].mxu0  ;;  %v6205_v30 = vmul.f32 %v22264_v34, %v22264_v34  ;;  %18099 = vmatprep.subr.bf16.mxu1 %v18098_v54 }
 0x575   :  { %v6134_v31 = vadd.f32 %v6133_v50, %v5870_v3  ;;  %v6204_v62 = vmul.f32 %v5870_v3, %v5870_v3  ;;  %v6266_v55 = vadd.f32 %v6265_v29, %v6203_v53  ;;  %18101 = vmatpush3.bf16.msra.mxu1 %v18098_v54 }
 0x577   :  { %v6135_v12 = vadd.f32 %v22264_v34, %v6134_v31  ;;  %v6267_v42 = vadd.f32 %v6266_v55, %v6204_v62  ;;  %v13838_v62 = vld [vmem:[%s25741_s2 + $0xc0] sm:$0xff]  ;;  %v13839_v31 = vld [vmem:[%s25741_s2 + $0xc8] sm:$0xff] }
 0x579   :  { %v6136_v2 = vrot.slane %v6135_v12, 4  ;;  %v6268_v50 = vadd.f32 %v6267_v42, %v6205_v30  ;;  %v18102_v42 = vpack.c.bf16 %v13839_v31, %v13838_v62 }
 0x57b   :  { %v6137_v53 = vadd.f32 %v6136_v2, %v6135_v12  ;;  %v6269_v29 = vrot.slane %v6268_v50, 4  ;;  %18103 = vmatprep.subr.bf16.mxu1 %v18102_v42  ;;  %v6071_v12 = vld [vmem:[%s25742_s4] sm:$0x1] }
 0x57c   :  { %18105 = vmatpush3.bf16.msra.mxu1 %v18102_v42 }
 0x57d   :  { %v6138_v0 = vrot.slane %v6137_v53, 2  ;;  %v6270_v47 = vadd.f32 %v6269_v29, %v6268_v50  ;;  %v6072_v29 = vld [vmem:[%s25742_s4 + $0x1] sm:$0x1] }
 0x57f   :  { %v6139_v57 = vadd.f32 %v6138_v0, %v6137_v53  ;;  %v6271_v15 = vrot.slane %v6270_v47, 2 }
 0x581   :  { %v6140_v22 = vrot.slane %v6139_v57, 1  ;;  %v6272_v44 = vadd.f32 %v6271_v15, %v6270_v47 }
 0x583   :  { %v6141_v41 = vadd.f32 %v6140_v22, %v6139_v57  ;;  %v6273_v43 = vrot.slane %v6272_v44, 1  ;;  %v6285_v22 = vlaneseq  ;;  %v13841_v57 = vld [vmem:[%s25741_s2 + $0xd8] sm:$0xff] }
 0x585   :  { %v6274_v36 = vadd.f32 %v6273_v43, %v6272_v44  ;;  %v6275_v17 = vmul.f32 0.001953125, %v6141_v41  ;;  %v6286_v44 = vshrl.u32 %v6285_v22, 7  ;;  %v13840_v41 = vld [vmem:[%s25741_s2 + $0xd0] sm:$0xff]  ;;  %v26339_v22 = vld [vmem:[#allocation4_spill] sm:$0xff] }
 0x586   :  { %v18106_v47 = vpack.c.bf16 %v13841_v57, %v13840_v41  ;;  %v26341_v41 = vld [vmem:[#allocation5_spill] sm:$0xff]  ;;  %v26342_v57 = vld [vmem:[#allocation8_spill] sm:$0xff] }
 0x587   :  { %v6276_v55 = vmul.f32 0.001953125, %v6274_v36  ;;  %v6277_v54 = vmul.f32 %v6275_v17, %v6275_v17  ;;  %v22291_v2 = vsub.s32 0, %v6286_v44  ;;  %v26340_v44 = vld [vmem:[#allocation6_spill] sm:$0xff] }
 0x588   :  { %18107 = vmatprep.subr.bf16.mxu1 %v18106_v47 }
 0x589   :  { %v6278_v0 = vsub.f32 %v6276_v55, %v6277_v54  ;;  %26338 = vst [vmem:[#allocation25_spill] sm:$0xff] %v22291_v2  ;;  %18109 = vmatpush3.bf16.msra.mxu1 %v18106_v47  ;;  %v26343_v47 = vld [vmem:[#allocation7_spill] sm:$0xff] }
 0x58b   :  { %v6279_v30 = vmax.f32 %v6278_v0, 0.0 }
 0x58d   :  { %v6280_v15 = vadd.f32 1e-05, %v6279_v30 }
 0x58f   :  { %19367 = vrsqrt.f32 %v6280_v15 }
 0x599   :  { %v19368_v50 = vpop.eup %19367 }
 0x59a   :  { %v6282_v53 = vmul.f32 %v19368_v50, %v6071_v12  ;;  %v26344_v12 = vld [vmem:[#allocation10_spill] sm:$0xff] }
 0x59c   :  { %v6283_v43 = vmul.f32 %v6282_v53, %v6275_v17  ;;  %v22297_v36 = vrot.slane %v6282_v53, %v22291_v2  ;;  %v26345_v53 = vld [vmem:[#allocation9_spill] sm:$0xff] }
 0x59e   :  { %v6284_v62 = vsub.f32 %v6072_v29, %v6283_v43  ;;  %v6351_v31 = vmul.f32 %v22297_v36, %v5870_v3  ;;  %v22302_v42 = vmul.f32 %v22297_v36, %v21892_v48  ;;  %v22306_v55 = vmul.f32 %v21888_v6, %v22297_v36  ;;  %v26346_v43 = vld [vmem:[#allocation12_spill] sm:$0xff] }
 0x59f   :  { %v22310_v54 = vmul.f32 %v22297_v36, %v21900_v14  ;;  %v22314_v17 = vmul.f32 %v21898_v13, %v22297_v36  ;;  %v22318_v0 = vmul.f32 %v22297_v36, %v21910_v18  ;;  %v22322_v48 = vmul.f32 %v21908_v1, %v22297_v36 }
 0x5a0   :  { %v22325_v3 = vrot.slane %v6284_v62, %v22291_v2  ;;  %v22329_v6 = vmul.f32 %v22297_v36, %v21920_v27  ;;  %v22333_v14 = vmul.f32 %v21917_v25, %v22297_v36  ;;  %v22337_v13 = vmul.f32 %v22297_v36, %v21930_v37  ;;  %v26358_v2 = vld [vmem:[#allocation17_spill] sm:$0xff] }
 0x5a1   :  { %v22341_v18 = vmul.f32 %v21927_v33, %v22297_v36  ;;  %v22345_v1 = vmul.f32 %v22297_v36, %v21940_v7  ;;  %v22349_v27 = vmul.f32 %v21937_v5, %v22297_v36  ;;  %v22353_v25 = vmul.f32 %v22297_v36, %v21950_v10 }
 0x5a2   :  { %v6419_v30 = vadd.f32 %v22325_v3, %v6351_v31  ;;  %v22358_v37 = vmul.f32 %v21947_v35, %v22297_v36  ;;  %v22362_v33 = vmul.f32 %v22297_v36, %v21960_v51  ;;  %v22366_v7 = vmul.f32 %v21957_v58, %v22297_v36  ;;  %v26347_v31 = vld [vmem:[#allocation11_spill] sm:$0xff] }
 0x5a3   :  { %v22370_v5 = vmul.f32 %v22297_v36, %v21970_v4  ;;  %v22374_v10 = vmul.f32 %v21967_v60, %v22297_v36  ;;  %v22378_v35 = vmul.f32 %v22297_v36, %v21980_v61  ;;  %v22382_v51 = vmul.f32 %v21977_v16, %v22297_v36 }
 0x5a4   :  { %v6483_v15 = vmax.f32 %v6419_v30, 0.0  ;;  %v22386_v58 = vmul.f32 %v22297_v36, %v21990_v28  ;;  %v22390_v4 = vmul.f32 %v21987_v24, %v22297_v36  ;;  %v22394_v60 = vmul.f32 %v22297_v36, %v22000_v39 }
 0x5a5   :  { %v22398_v61 = vmul.f32 %v21997_v38, %v22297_v36  ;;  %v22402_v16 = vmul.f32 %v22297_v36, %v22010_v20  ;;  %v22406_v28 = vmul.f32 %v22007_v59, %v22297_v36  ;;  %v22410_v24 = vmul.f32 %v22297_v36, %v22020_v40 }
 0x5a6   :  { %6656 = vst [vmem:[#allocation3 + $0x331] sm:$0xff] %v6483_v15  ;;  %v22414_v39 = vmul.f32 %v22017_v46, %v22297_v36  ;;  %v22418_v38 = vmul.f32 %v22297_v36, %v22030_v52  ;;  %v22422_v20 = vmul.f32 %v22027_v9, %v22297_v36  ;;  %v22426_v59 = vmul.f32 %v22297_v36, %v22046_v63  ;;  %v26348_v15 = vld [vmem:[#allocation14_spill] sm:$0xff] }
 0x5a7   :  { %v22430_v40 = vmul.f32 %v22043_v23, %v22297_v36  ;;  %v22434_v46 = vmul.f32 %v22297_v36, %v22062_v8  ;;  %v22438_v52 = vmul.f32 %v22059_v49, %v22297_v36  ;;  %v22442_v9 = vmul.f32 %v22297_v36, %v22078_v11 }
 0x5a8   :  { %v22446_v63 = vmul.f32 %v22075_v56, %v22297_v36  ;;  %v22450_v23 = vmul.f32 %v22297_v36, %v22094_v32  ;;  %v22454_v8 = vmul.f32 %v22091_v26, %v22297_v36  ;;  %v22458_v49 = vmul.f32 %v22297_v36, %v22110_v45 }
 0x5a9   :  { %v22462_v11 = vmul.f32 %v22107_v19, %v22297_v36  ;;  %v22466_v56 = vmul.f32 %v22297_v36, %v22126_v21  ;;  %v22470_v32 = vmul.f32 %v26339_v22, %v22297_v36  ;;  %v22474_v26 = vmul.f32 %v22297_v36, %v26340_v44  ;;  %v26350_v44 = vld [vmem:[#allocation13_spill] sm:$0xff] }
 0x5aa   :  { %v22478_v45 = vmul.f32 %v26341_v41, %v22297_v36  ;;  %v22482_v19 = vmul.f32 %v22297_v36, %v26342_v57  ;;  %v22486_v21 = vmul.f32 %v26343_v47, %v22297_v36  ;;  %v22490_v50 = vmul.f32 %v22297_v36, %v26344_v12  ;;  %v26352_v57 = vld [vmem:[#allocation16_spill] sm:$0xff]  ;;  %v26354_v12 = vld [vmem:[#allocation15_spill] sm:$0xff] }
 0x5ab   :  { %v22494_v29 = vmul.f32 %v26345_v53, %v22297_v36  ;;  %v22498_v62 = vmul.f32 %v22297_v36, %v26346_v43  ;;  %v22502_v30 = vmul.f32 %v26347_v31, %v22297_v36  ;;  %v22506_v22 = vmul.f32 %v22297_v36, %v26348_v15  ;;  %v26356_v43 = vld [vmem:[#allocation18_spill] sm:$0xff] }
 0x5ac   :  { %v22510_v41 = vmul.f32 %v26350_v44, %v22297_v36  ;;  %v22514_v47 = vmul.f32 %v22297_v36, %v26352_v57  ;;  %v22518_v53 = vmul.f32 %v26354_v12, %v22297_v36  ;;  %v22522_v31 = vmul.f32 %v22297_v36, %v26356_v43 }
 0x5ad   :  { %26349 = vst [vmem:[#allocation26_spill] sm:$0xff] %v22506_v22  ;;  %v22526_v15 = vmul.f32 %v26358_v2, %v22297_v36  ;;  %v26360_v22 = vld [vmem:[#allocation20_spill] sm:$0xff] }
 0x5ae   :  { %26351 = vst [vmem:[#allocation27_spill] sm:$0xff] %v22510_v41  ;;  %26353 = vst [vmem:[#allocation28_spill] sm:$0xff] %v22514_v47  ;;  %v22530_v44 = vmul.f32 %v22297_v36, %v26360_v22  ;;  %v26361_v41 = vld [vmem:[#allocation19_spill] sm:$0xff]  ;;  %v26362_v47 = vld [vmem:[#allocation22_spill] sm:$0xff] }
 0x5af   :  { %26355 = vst [vmem:[#allocation29_spill] sm:$0xff] %v22518_v53  ;;  %26357 = vst [vmem:[#allocation30_spill] sm:$0xff] %v22522_v31  ;;  %v22534_v57 = vmul.f32 %v26361_v41, %v22297_v36  ;;  %v22538_v12 = vmul.f32 %v22297_v36, %v26362_v47  ;;  %v26363_v53 = vld [vmem:[#allocation21_spill] sm:$0xff]  ;;  %v26364_v31 = vld [vmem:[#allocation24_spill] sm:$0xff]  ;;  %v22554_v41 = vmul.f32 %v22264_v34, %v22297_v36 }
 0x5b0   :  { %26359 = vst [vmem:[#allocation31_spill] sm:$0xff] %v22526_v15  ;;  %v22542_v43 = vmul.f32 %v26363_v53, %v22297_v36  ;;  %v22546_v2 = vmul.f32 %v22297_v36, %v26364_v31  ;;  %v26365_v15 = vld [vmem:[#allocation23_spill] sm:$0xff]  ;;  %v22558_v47 = vadd.f32 %v22325_v3, %v22302_v42  ;;  %v22562_v53 = vadd.f32 %v22325_v3, %v22306_v55 }
 0x5b1   :  { %v22550_v22 = vmul.f32 %v26365_v15, %v22297_v36  ;;  %v22566_v31 = vadd.f32 %v22325_v3, %v22310_v54  ;;  %v22570_v15 = vadd.f32 %v22325_v3, %v22314_v17  ;;  %v22574_v34 = vadd.f32 %v22325_v3, %v22318_v0 }
 0x5b2   :  { %v22578_v36 = vadd.f32 %v22325_v3, %v22322_v48  ;;  %v22582_v42 = vadd.f32 %v22325_v3, %v22329_v6  ;;  %v22586_v55 = vadd.f32 %v22325_v3, %v22333_v14  ;;  %v22590_v54 = vadd.f32 %v22325_v3, %v22337_v13 }
 0x5b3   :  { %v22594_v17 = vadd.f32 %v22325_v3, %v22341_v18  ;;  %v22598_v0 = vadd.f32 %v22325_v3, %v22345_v1  ;;  %v22602_v48 = vadd.f32 %v22325_v3, %v22349_v27  ;;  %v22606_v6 = vadd.f32 %v22325_v3, %v22353_v25 }
 0x5b4   :  { %v22610_v14 = vadd.f32 %v22325_v3, %v22358_v37  ;;  %v22614_v13 = vadd.f32 %v22325_v3, %v22362_v33  ;;  %v22618_v18 = vadd.f32 %v22325_v3, %v22366_v7  ;;  %v22622_v1 = vadd.f32 %v22325_v3, %v22370_v5 }
 0x5b5   :  { %v22626_v27 = vadd.f32 %v22325_v3, %v22374_v10  ;;  %v22630_v25 = vadd.f32 %v22325_v3, %v22378_v35  ;;  %v22634_v37 = vadd.f32 %v22325_v3, %v22382_v51  ;;  %v22638_v33 = vadd.f32 %v22325_v3, %v22386_v58 }
 0x5b6   :  { %v22642_v7 = vadd.f32 %v22325_v3, %v22390_v4  ;;  %v22646_v5 = vadd.f32 %v22325_v3, %v22394_v60  ;;  %v22650_v10 = vadd.f32 %v22325_v3, %v22398_v61  ;;  %v22654_v35 = vadd.f32 %v22325_v3, %v22402_v16 }
 0x5b7   :  { %v22658_v51 = vadd.f32 %v22325_v3, %v22406_v28  ;;  %v22662_v58 = vadd.f32 %v22325_v3, %v22410_v24  ;;  %v22666_v4 = vadd.f32 %v22325_v3, %v22414_v39  ;;  %v22670_v60 = vadd.f32 %v22325_v3, %v22418_v38 }
 0x5b8   :  { %v22674_v61 = vadd.f32 %v22325_v3, %v22422_v20  ;;  %v22678_v16 = vadd.f32 %v22325_v3, %v22426_v59  ;;  %v22682_v28 = vadd.f32 %v22325_v3, %v22430_v40  ;;  %v22686_v24 = vadd.f32 %v22325_v3, %v22434_v46 }
 0x5b9   :  { %v22690_v39 = vadd.f32 %v22325_v3, %v22438_v52  ;;  %v22694_v38 = vadd.f32 %v22325_v3, %v22442_v9  ;;  %v22698_v20 = vadd.f32 %v22325_v3, %v22446_v63  ;;  %v22702_v59 = vadd.f32 %v22325_v3, %v22450_v23 }
 0x5ba   :  { %v22706_v40 = vadd.f32 %v22325_v3, %v22454_v8  ;;  %v22710_v46 = vadd.f32 %v22325_v3, %v22458_v49  ;;  %v22714_v52 = vadd.f32 %v22325_v3, %v22462_v11  ;;  %v22718_v9 = vadd.f32 %v22325_v3, %v22466_v56 }
 0x5bb   :  { %v22722_v63 = vadd.f32 %v22325_v3, %v22470_v32  ;;  %v22726_v23 = vadd.f32 %v22325_v3, %v22474_v26  ;;  %v22730_v8 = vadd.f32 %v22325_v3, %v22478_v45  ;;  %v22734_v49 = vadd.f32 %v22325_v3, %v22482_v19  ;;  %v26376_v19 = vld [vmem:[#allocation26_spill] sm:$0xff] }
 0x5bc   :  { %26366 = vst [vmem:[#allocation32_spill] sm:$0xff] %v22714_v52  ;;  %v22738_v11 = vadd.f32 %v22325_v3, %v22486_v21  ;;  %v22742_v56 = vadd.f32 %v22325_v3, %v22490_v50  ;;  %v22746_v32 = vadd.f32 %v22325_v3, %v22494_v29  ;;  %v22750_v26 = vadd.f32 %v22325_v3, %v22498_v62 }
 0x5bd   :  { %26367 = vst [vmem:[#allocation33_spill] sm:$0xff] %v22722_v63  ;;  %26368 = vst [vmem:[#allocation34_spill] sm:$0xff] %v22726_v23  ;;  %v22754_v45 = vadd.f32 %v22325_v3, %v22502_v30  ;;  %v22758_v21 = vadd.f32 %v22325_v3, %v26376_v19 }
 0x5be   :  { %26369 = vst [vmem:[#allocation35_spill] sm:$0xff] %v22730_v8  ;;  %26370 = vst [vmem:[#allocation36_spill] sm:$0xff] %v22734_v49 }
 0x5bf   :  { %26371 = vst [vmem:[#allocation37_spill] sm:$0xff] %v22738_v11  ;;  %26372 = vst [vmem:[#allocation38_spill] sm:$0xff] %v22742_v56  ;;  %v26377_v11 = vld [vmem:[#allocation27_spill] sm:$0xff]  ;;  %v26378_v56 = vld [vmem:[#allocation28_spill] sm:$0xff] }
 0x5c0   :  { %26373 = vst [vmem:[#allocation39_spill] sm:$0xff] %v22746_v32  ;;  %26374 = vst [vmem:[#allocation40_spill] sm:$0xff] %v22750_v26  ;;  %v22762_v50 = vadd.f32 %v22325_v3, %v26377_v11  ;;  %v22766_v29 = vadd.f32 %v22325_v3, %v26378_v56  ;;  %v26379_v32 = vld [vmem:[#allocation29_spill] sm:$0xff]  ;;  %v26380_v26 = vld [vmem:[#allocation30_spill] sm:$0xff]  ;;  %v22782_v11 = vadd.f32 %v22325_v3, %v22530_v44 }
 0x5c1   :  { %26375 = vst [vmem:[#allocation41_spill] sm:$0xff] %v22754_v45  ;;  %v22770_v62 = vadd.f32 %v22325_v3, %v26379_v32  ;;  %v22774_v30 = vadd.f32 %v22325_v3, %v26380_v26  ;;  %v26381_v45 = vld [vmem:[#allocation31_spill] sm:$0xff]  ;;  %v22786_v56 = vadd.f32 %v22325_v3, %v22534_v57  ;;  %v22790_v32 = vadd.f32 %v22325_v3, %v22538_v12 }
 0x5c2   :  { %v22778_v19 = vadd.f32 %v22325_v3, %v26381_v45  ;;  %v22794_v26 = vadd.f32 %v22325_v3, %v22542_v43  ;;  %v22798_v45 = vadd.f32 %v22325_v3, %v22546_v2  ;;  %v22802_v44 = vadd.f32 %v22325_v3, %v22550_v22 }
 0x5c3   :  { %26382 = vst [vmem:[#allocation42_spill] sm:$0xff] %v22786_v56  ;;  %26383 = vst [vmem:[#allocation43_spill] sm:$0xff] %v22790_v32  ;;  %v22806_v57 = vadd.f32 %v22325_v3, %v22554_v41  ;;  %v25900_v56 = vmax.f32 %v22558_v47, 0.0  ;;  %v25901_v12 = vmax.f32 %v22562_v53, 0.0  ;;  %v25903_v2 = vmax.f32 %v22578_v36, 0.0 }
 0x5c4   :  { %26384 = vst [vmem:[#allocation44_spill] sm:$0xff] %v22794_v26  ;;  %26385 = vst [vmem:[#allocation45_spill] sm:$0xff] %v22798_v45  ;;  %v25902_v26 = vmax.f32 %v22574_v34, 0.0  ;;  %v25905_v3 = vmax.f32 %v22594_v17, 0.0  ;;  %v26387_v45 = vmax.f32 %v22566_v31, 0.0  ;;  %v26388_v22 = vmax.f32 %v22570_v15, 0.0 }
 0x5c5   :  { %26386 = vst [vmem:[#allocation46_spill] sm:$0xff] %v22802_v44  ;;  %v25904_v44 = vmax.f32 %v22590_v54, 0.0  ;;  %6594 = vst [vmem:[#allocation3 + $0x19] sm:$0xff] %v25900_v56  ;;  %v25906_v56 = vmax.f32 %v22610_v14, 0.0  ;;  %v25907_v41 = vmax.f32 %v22614_v13, 0.0  ;;  %v6452_v32 = vmax.f32 %v22682_v28, 0.0 }
 0x5c6   :  { %6595 = vst [vmem:[#allocation3 + $0x21] sm:$0xff] %v25901_v12  ;;  %6596 = vst [vmem:[#allocation3 + $0x31] sm:$0xff] %v26387_v45  ;;  %v26389_v12 = vmax.f32 %v22582_v42, 0.0  ;;  %v26390_v45 = vmax.f32 %v22586_v55, 0.0  ;;  %v25912_v43 = vmax.f32 %v22686_v24, 0.0 }
 0x5c7   :  { %6597 = vst [vmem:[#allocation3 + $0x39] sm:$0xff] %v26388_v22  ;;  %6598 = vst [vmem:[#allocation3 + $0x49] sm:$0xff] %v25902_v26  ;;  %v25908_v22 = vmax.f32 %v22626_v27, 0.0  ;;  %v25910_v26 = vmax.f32 %v22646_v5, 0.0  ;;  %v26413_v28 = vld [vmem:[#allocation39_spill] sm:$0xff] }
 0x5c8   :  { %6599 = vst [vmem:[#allocation3 + $0x51] sm:$0xff] %v25903_v2  ;;  %6600 = vst [vmem:[#allocation3 + $0x61] sm:$0xff] %v26389_v12  ;;  %v26391_v2 = vmax.f32 %v22598_v0, 0.0  ;;  %v26392_v12 = vmax.f32 %v22602_v48, 0.0 }
 0x5c9   :  { %6601 = vst [vmem:[#allocation3 + $0x69] sm:$0xff] %v26390_v45  ;;  %6602 = vst [vmem:[#allocation3 + $0x79] sm:$0xff] %v25904_v44  ;;  %v26393_v45 = vmax.f32 %v22606_v6, 0.0  ;;  %v25909_v44 = vmax.f32 %v22642_v7, 0.0 }
 0x5ca   :  { %6603 = vst [vmem:[#allocation3 + $0x81] sm:$0xff] %v25905_v3  ;;  %6604 = vst [vmem:[#allocation3 + $0x91] sm:$0xff] %v26391_v2  ;;  %v26394_v2 = vmax.f32 %v22618_v18, 0.0  ;;  %v6451_v3 = vmax.f32 %v22678_v16, 0.0  ;;  %v13842_v16 = vld [vmem:[%s25741_s2 + $0xe0] sm:$0xff] }
 0x5cb   :  { %6605 = vst [vmem:[#allocation3 + $0x99] sm:$0xff] %v26392_v12  ;;  %6606 = vst [vmem:[#allocation3 + $0xa9] sm:$0xff] %v26393_v45  ;;  %v26395_v12 = vmax.f32 %v22622_v1, 0.0  ;;  %v25911_v45 = vmax.f32 %v22658_v51, 0.0 }
 0x5cc   :  { %6607 = vst [vmem:[#allocation3 + $0xb1] sm:$0xff] %v25906_v56  ;;  %6608 = vst [vmem:[#allocation3 + $0xc1] sm:$0xff] %v25907_v41  ;;  %v26396_v56 = vmax.f32 %v22630_v25, 0.0  ;;  %v26397_v41 = vmax.f32 %v22634_v37, 0.0 }
 0x5cd   :  { %6609 = vst [vmem:[#allocation3 + $0xc9] sm:$0xff] %v26394_v2  ;;  %6610 = vst [vmem:[#allocation3 + $0xd9] sm:$0xff] %v26395_v12  ;;  %v26398_v2 = vmax.f32 %v22638_v33, 0.0  ;;  %v25913_v12 = vmax.f32 %v22674_v61, 0.0 }
 0x5ce   :  { %6611 = vst [vmem:[#allocation3 + $0xe1] sm:$0xff] %v25908_v22  ;;  %6612 = vst [vmem:[#allocation3 + $0xf1] sm:$0xff] %v26396_v56  ;;  %v26399_v56 = vmax.f32 %v22650_v10, 0.0  ;;  %v26406_v22 = vmax.f32 %v22690_v39, 0.0 }
 0x5cf   :  { %6613 = vst [vmem:[#allocation3 + $0xf9] sm:$0xff] %v26397_v41  ;;  %6614 = vst [vmem:[#allocation3 + $0x109] sm:$0xff] %v26398_v2  ;;  %v26400_v41 = vmax.f32 %v22654_v35, 0.0  ;;  %v26419_v2 = vld [vmem:[#allocation41_spill] sm:$0xff] }
 0x5d0   :  { %6615 = vst [vmem:[#allocation3 + $0x111] sm:$0xff] %v25909_v44  ;;  %6616 = vst [vmem:[#allocation3 + $0x121] sm:$0xff] %v25910_v26  ;;  %v26401_v44 = vmax.f32 %v22662_v58, 0.0  ;;  %v26402_v26 = vmax.f32 %v22666_v4, 0.0 }
 0x5d1   :  { %6617 = vst [vmem:[#allocation3 + $0x129] sm:$0xff] %v26399_v56  ;;  %6618 = vst [vmem:[#allocation3 + $0x139] sm:$0xff] %v26400_v41  ;;  %v26403_v56 = vmax.f32 %v22670_v60, 0.0  ;;  %v22903_v41 = vld [vmem:[#allocation3 + $0x18] sm:$0xff] }
 0x5d2   :  { %6619 = vst [vmem:[#allocation3 + $0x141] sm:$0xff] %v25911_v45  ;;  %6620 = vst [vmem:[#allocation3 + $0x151] sm:$0xff] %v26401_v44  ;;  %16649 = vmatprep.mubr.f32.mxu1 %v22903_v41  ;;  %v26412_v44 = vld [vmem:[#allocation38_spill] sm:$0xff]  ;;  %v13843_v45 = vld [vmem:[%s25741_s2 + $0xe8] sm:$0xff] }
 0x5d3   :  { %6621 = vst [vmem:[#allocation3 + $0x159] sm:$0xff] %v26402_v26  ;;  %6622 = vst [vmem:[#allocation3 + $0x169] sm:$0xff] %v26403_v56  ;;  %v22914_v26 = vld [vmem:[#allocation3 + $0x20] sm:$0xff]  ;;  %v26411_v56 = vld [vmem:[#allocation37_spill] sm:$0xff] }
 0x5d4   :  { %26404 = vst [vmem:[#allocation47_spill] sm:$0xff] %v22903_v41  ;;  %6623 = vst [vmem:[#allocation3 + $0x171] sm:$0xff] %v25913_v12  ;;  %16650 = vmatmul.mubr.f32.gmra.mrb[2].mxu1 %v22914_v26  ;;  %v22929_v12 = vld [vmem:[#allocation3 + $0x30] sm:$0xff]  ;;  %v22995_v41 = vld [vmem:[#allocation3 + $0x48] sm:$0xff] }
 0x5d5   :  { %6624 = vst [vmem:[#allocation3 + $0x181] sm:$0xff] %v6451_v3  ;;  %6625 = vst [vmem:[#allocation3 + $0x189] sm:$0xff] %v6452_v32  ;;  %v26407_v32 = vmax.f32 %v22694_v38, 0.0  ;;  %v26408_v3 = vmax.f32 %v22698_v20, 0.0  ;;  %16652 = vmatprep.mubr.f32.mxu1 %v22929_v12 }
 0x5d6   :  { %6626 = vst [vmem:[#allocation3 + $0x1c9] sm:$0xff] %v25912_v43  ;;  %26405 = vst [vmem:[#allocation48_spill] sm:$0xff] %v22914_v26  ;;  %v26409_v43 = vmax.f32 %v22702_v59, 0.0  ;;  %v26418_v26 = vmax.f32 %v22718_v9, 0.0 }
 0x5d7   :  { %6627 = vst [vmem:[#allocation3 + $0x1d1] sm:$0xff] %v26406_v22  ;;  %6628 = vst [vmem:[#allocation3 + $0x1e1] sm:$0xff] %v26407_v32  ;;  %v26414_v22 = vld [vmem:[#allocation40_spill] sm:$0xff]  ;;  %v26415_v32 = vmax.f32 %v22706_v40, 0.0 }
 0x5d8   :  { %6629 = vst [vmem:[#allocation3 + $0x1e9] sm:$0xff] %v26408_v3  ;;  %6630 = vst [vmem:[#allocation3 + $0x1f9] sm:$0xff] %v26409_v43  ;;  %v26416_v3 = vmax.f32 %v22710_v46, 0.0  ;;  %v26417_v43 = vmax.f32 %v22714_v52, 0.0  ;;  %v26420_v52 = vmax.f32 %v22722_v63, 0.0 }
 0x5d9   :  { %26410 = vst [vmem:[#allocation49_spill] sm:$0xff] %v22929_v12  ;;  %6631 = vst [vmem:[#allocation3 + $0x201] sm:$0xff] %v26415_v32  ;;  %v26423_v12 = vmax.f32 %v22734_v49, 0.0  ;;  %v26426_v49 = vmax.f32 %v26413_v28, 0.0  ;;  %v26430_v32 = vld [vmem:[#allocation43_spill] sm:$0xff]  ;;  %v26433_v28 = vmax.f32 %v26419_v2, 0.0 }
 0x5da   :  { %6632 = vst [vmem:[#allocation3 + $0x211] sm:$0xff] %v26416_v3  ;;  %6633 = vst [vmem:[#allocation3 + $0x219] sm:$0xff] %v26417_v43  ;;  %v26421_v43 = vmax.f32 %v22726_v23, 0.0  ;;  %v13844_v3 = vld [vmem:[%s25741_s2 + $0xf0] sm:$0xff]  ;;  %v22977_v23 = vld [vmem:[#allocation3 + $0x38] sm:$0xff]  ;;  %v26438_v2 = vmax.f32 %v22770_v62, 0.0 }
 0x5db   :  { %6634 = vst [vmem:[#allocation3 + $0x229] sm:$0xff] %v26418_v26  ;;  %6635 = vst [vmem:[#allocation3 + $0x231] sm:$0xff] %v26420_v52  ;;  %v26422_v26 = vmax.f32 %v22730_v8, 0.0  ;;  %v26427_v8 = vmax.f32 %v26414_v22, 0.0  ;;  %v26429_v52 = vld [vmem:[#allocation42_spill] sm:$0xff]  ;;  %v26436_v22 = vmax.f32 %v22766_v29, 0.0  ;;  %16653 = vmatmul.mubr.f32.gmra.mrb[4].mxu1 %v22977_v23 }
 0x5dc   :  { %6636 = vst [vmem:[#allocation3 + $0x241] sm:$0xff] %v26421_v43  ;;  %6638 = vst [vmem:[#allocation3 + $0x259] sm:$0xff] %v26423_v12  ;;  %v26425_v12 = vmax.f32 %v26412_v44, 0.0  ;;  %v13845_v43 = vld [vmem:[%s25741_s2 + $0xf8] sm:$0xff]  ;;  %v26432_v44 = vld [vmem:[#allocation45_spill] sm:$0xff]  ;;  %16655 = vmatprep.mubr.f32.mxu1 %v22995_v41 }
 0x5dd   :  { %6637 = vst [vmem:[#allocation3 + $0x249] sm:$0xff] %v26422_v26  ;;  %v26424_v26 = vmax.f32 %v26411_v56, 0.0  ;;  %6641 = vst [vmem:[#allocation3 + $0x279] sm:$0xff] %v26426_v49  ;;  %v26434_v49 = vmax.f32 %v22758_v21, 0.0  ;;  %v26437_v56 = vld [vmem:[#allocation46_spill] sm:$0xff]  ;;  %v18114_v63 = vpack.c.bf16 %v13845_v43, %v13844_v3  ;;  %v23032_v43 = vld [vmem:[#allocation3 + $0x68] sm:$0xff] }
 0x5de   :  { %6640 = vst [vmem:[#allocation3 + $0x271] sm:$0xff] %v26425_v12  ;;  %6642 = vst [vmem:[#allocation3 + $0x289] sm:$0xff] %v26427_v8  ;;  %v26435_v8 = vmax.f32 %v22762_v50, 0.0  ;;  %v6484_v12 = vmax.f32 %v22806_v57, 0.0  ;;  %v26443_v57 = vmax.f32 %v26430_v32, 0.0 }
 0x5df   :  { %6639 = vst [vmem:[#allocation3 + $0x261] sm:$0xff] %v26424_v26  ;;  %26428 = vst [vmem:[#allocation50_spill] sm:$0xff] %v22977_v23  ;;  %v26431_v26 = vld [vmem:[#allocation44_spill] sm:$0xff]  ;;  %v26442_v23 = vmax.f32 %v26429_v52, 0.0 }
 0x5e0   :  { %6643 = vst [vmem:[#allocation3 + $0x291] sm:$0xff] %v26433_v28  ;;  %6644 = vst [vmem:[#allocation3 + $0x2a1] sm:$0xff] %v26434_v49  ;;  %v26439_v28 = vmax.f32 %v22774_v30, 0.0  ;;  %v26440_v49 = vmax.f32 %v22778_v19, 0.0 }
 0x5e1   :  { %6645 = vst [vmem:[#allocation3 + $0x2a9] sm:$0xff] %v26435_v8  ;;  %6646 = vst [vmem:[#allocation3 + $0x2b9] sm:$0xff] %v26436_v22  ;;  %v26441_v8 = vmax.f32 %v22782_v11, 0.0  ;;  %v18110_v22 = vpack.c.bf16 %v13843_v45, %v13842_v16  ;;  %v13847_v45 = vld [vmem:[%s25741_s2 + $0x108] sm:$0xff]  ;;  %v23027_v16 = vld [vmem:[#allocation3 + $0x60] sm:$0xff] }
 0x5e2   :  { %6647 = vst [vmem:[#allocation3 + $0x2c1] sm:$0xff] %v26438_v2  ;;  %6648 = vst [vmem:[#allocation3 + $0x2d1] sm:$0xff] %v26439_v28  ;;  %v26444_v2 = vmax.f32 %v26431_v26, 0.0  ;;  %v26445_v28 = vmax.f32 %v26432_v44, 0.0 }
 0x5e3   :  { %6649 = vst [vmem:[#allocation3 + $0x2d9] sm:$0xff] %v26440_v49  ;;  %6650 = vst [vmem:[#allocation3 + $0x2e9] sm:$0xff] %v26441_v8  ;;  %v26446_v49 = vmax.f32 %v26437_v56, 0.0  ;;  %v23018_v8 = vld [vmem:[#allocation3 + $0x50] sm:$0xff]  ;;  %18111 = vmatprep.subr.bf16.mxu1 %v18110_v22 }
 0x5e4   :  { %6651 = vst [vmem:[#allocation3 + $0x2f1] sm:$0xff] %v26442_v23  ;;  %6652 = vst [vmem:[#allocation3 + $0x301] sm:$0xff] %v26443_v57  ;;  %v13846_v23 = vld [vmem:[%s25741_s2 + $0x100] sm:$0xff]  ;;  %16656 = vmatmul.mubr.f32.gmra.mrb[6].mxu1 %v23018_v8 }
 0x5e5   :  { %6653 = vst [vmem:[#allocation3 + $0x309] sm:$0xff] %v26444_v2  ;;  %6654 = vst [vmem:[#allocation3 + $0x319] sm:$0xff] %v26445_v28  ;;  %16658 = vmatprep.mubr.f32.mxu1 %v23027_v16  ;;  %18113 = vmatpush3.bf16.msra.mxu1 %v18110_v22  ;;  %v23030_v3 = vpack.c.bf16 %v13847_v45, %v13846_v23  ;;  %v23039_v57 = vld [vmem:[#allocation3 + $0x80] sm:$0xff]  ;;  %v23042_v2 = vld [vmem:[#allocation3 + $0x90] sm:$0xff] }
 0x5e6   :  { %6655 = vst [vmem:[#allocation3 + $0x321] sm:$0xff] %v26446_v49  ;;  %6657 = vst [vmem:[#allocation3 + $0x339] sm:$0xff] %v6484_v12  ;;  %18115 = vmatprep.subr.bf16.mxu1 %v18114_v63  ;;  %v23035_v12 = vld [vmem:[#allocation3 + $0x78] sm:$0xff]  ;;  %v23048_v28 = vld [vmem:[#allocation3 + $0xa8] sm:$0xff] }
 0x5e7   :  { %26447 = vst [vmem:[#allocation51_spill] sm:$0xff] %v23032_v43  ;;  %26448 = vst [vmem:[#allocation52_spill] sm:$0xff] %v23035_v12  ;;  %v23045_v22 = vld [vmem:[#allocation3 + $0x98] sm:$0xff]  ;;  %v23051_v49 = vld [vmem:[#allocation3 + $0xb0] sm:$0xff] }
 0x5e8   :  { %16659 = vmatmul.mubr.f32.gmra.mrb[8].mxu1 %v23032_v43  ;;  %26449 = vst [vmem:[#allocation53_spill] sm:$0xff] %v23039_v57  ;;  %26450 = vst [vmem:[#allocation54_spill] sm:$0xff] %v23042_v2  ;;  %v23057_v23 = vld [vmem:[#allocation3 + $0xc8] sm:$0xff]  ;;  %v23060_v45 = vld [vmem:[#allocation3 + $0xd8] sm:$0xff] }
 0x5e9   :  { %16661 = vmatprep.mubr.f32.mxu1 %v23035_v12  ;;  %18117 = vmatpush3.bf16.msra.mxu1 %v18114_v63  ;;  %26451 = vst [vmem:[#allocation55_spill] sm:$0xff] %v23045_v22  ;;  %26452 = vst [vmem:[#allocation56_spill] sm:$0xff] %v23048_v28  ;;  %v23054_v63 = vld [vmem:[#allocation3 + $0xc0] sm:$0xff]  ;;  %v26499_v12 = vmax.f32 %v22558_v47, 0.0 }
 0x5ea   :  { %18119 = vmatprep.subr.bf16.mxu1 %v23030_v3  ;;  %26453 = vst [vmem:[#allocation57_spill] sm:$0xff] %v23051_v49  ;;  %26454 = vst [vmem:[#allocation58_spill] sm:$0xff] %v23054_v63 }
 0x5eb   :  { %26455 = vst [vmem:[#allocation59_spill] sm:$0xff] %v23057_v23  ;;  %26456 = vst [vmem:[#allocation60_spill] sm:$0xff] %v23060_v45 }
 0x5ec   :  { %16662 = vmatmul.mubr.f32.gmra.mrb[10].mxu1 %v23039_v57  ;;  %v13851_v57 = vld [vmem:[%s25741_s2 + $0x128] sm:$0xff] }
 0x5ed   :  { %16664 = vmatprep.mubr.f32.mxu1 %v23042_v2  ;;  %v23189_v2 = vld [vmem:[#allocation3 + $0x320] sm:$0xff] }
 0x5f0   :  { %16665 = vmatmul.mubr.f32.gmra.mrb[12].mxu1 %v23045_v22  ;;  %v23063_v22 = vld [vmem:[#allocation3 + $0xe0] sm:$0xff] }
 0x5f1   :  { %16667 = vmatprep.mubr.f32.mxu1 %v23048_v28  ;;  %26457 = vst [vmem:[#allocation61_spill] sm:$0xff] %v23063_v22  ;;  %v23066_v28 = vld [vmem:[#allocation3 + $0xf0] sm:$0xff] }
 0x5f2   :  { %26458 = vst [vmem:[#allocation62_spill] sm:$0xff] %v23066_v28 }
 0x5f4   :  { %16668 = vmatmul.mubr.f32.gmra.mrb[14].mxu1 %v23051_v49  ;;  %v23069_v49 = vld [vmem:[#allocation3 + $0xf8] sm:$0xff] }
 0x5f5   :  { %16670 = vmatprep.mubr.f32.mxu1 %v23054_v63  ;;  %26459 = vst [vmem:[#allocation63_spill] sm:$0xff] %v23069_v49  ;;  %v23072_v63 = vld [vmem:[#allocation3 + $0x108] sm:$0xff] }
 0x5f6   :  { %26460 = vst [vmem:[#allocation64_spill] sm:$0xff] %v23072_v63 }
 0x5f8   :  { %16671 = vmatmul.mubr.f32.gmra.mrb[16].mxu1 %v23057_v23  ;;  %v23075_v23 = vld [vmem:[#allocation3 + $0x110] sm:$0xff] }
 0x5f9   :  { %16673 = vmatprep.mubr.f32.mxu1 %v23060_v45  ;;  %26461 = vst [vmem:[#allocation65_spill] sm:$0xff] %v23075_v23  ;;  %v23078_v45 = vld [vmem:[#allocation3 + $0x120] sm:$0xff] }
 0x5fa   :  { %26462 = vst [vmem:[#allocation66_spill] sm:$0xff] %v23078_v45 }
 0x5fc   :  { %16674 = vmatmul.mubr.f32.gmra.mrb[18].mxu1 %v23063_v22  ;;  %v23081_v22 = vld [vmem:[#allocation3 + $0x128] sm:$0xff] }
 0x5fd   :  { %16676 = vmatprep.mubr.f32.mxu1 %v23066_v28  ;;  %26463 = vst [vmem:[#allocation67_spill] sm:$0xff] %v23081_v22  ;;  %v23084_v28 = vld [vmem:[#allocation3 + $0x138] sm:$0xff] }
 0x5fe   :  { %26464 = vst [vmem:[#allocation68_spill] sm:$0xff] %v23084_v28 }
 0x600   :  { %16677 = vmatmul.mubr.f32.gmra.mrb[20].mxu1 %v23069_v49  ;;  %v23087_v49 = vld [vmem:[#allocation3 + $0x140] sm:$0xff] }
 0x601   :  { %16679 = vmatprep.mubr.f32.mxu1 %v23072_v63  ;;  %26465 = vst [vmem:[#allocation69_spill] sm:$0xff] %v23087_v49  ;;  %v23090_v63 = vld [vmem:[#allocation3 + $0x150] sm:$0xff] }
 0x602   :  { %26466 = vst [vmem:[#allocation70_spill] sm:$0xff] %v23090_v63 }
 0x604   :  { %16680 = vmatmul.mubr.f32.gmra.mrb[22].mxu1 %v23075_v23  ;;  %v23093_v23 = vld [vmem:[#allocation3 + $0x158] sm:$0xff] }
 0x605   :  { %16682 = vmatprep.mubr.f32.mxu1 %v23078_v45  ;;  %26467 = vst [vmem:[#allocation71_spill] sm:$0xff] %v23093_v23  ;;  %v23096_v45 = vld [vmem:[#allocation3 + $0x168] sm:$0xff] }
 0x606   :  { %26468 = vst [vmem:[#allocation72_spill] sm:$0xff] %v23096_v45 }
 0x608   :  { %16683 = vmatmul.mubr.f32.gmra.mrb[24].mxu1 %v23081_v22  ;;  %v23099_v22 = vld [vmem:[#allocation3 + $0x170] sm:$0xff] }
 0x609   :  { %16685 = vmatprep.mubr.f32.mxu1 %v23084_v28  ;;  %26469 = vst [vmem:[#allocation73_spill] sm:$0xff] %v23099_v22  ;;  %v19373_v28 = vld [vmem:[#allocation3] sm:$0xff] }
 0x60c   :  { %16686 = vmatmul.mubr.f32.gmra.mrb[26].mxu1 %v23087_v49  ;;  %v23102_v49 = vld [vmem:[#allocation3 + $0x1c8] sm:$0xff] }
 0x60d   :  { %16688 = vmatprep.mubr.f32.mxu1 %v23090_v63  ;;  %26470 = vst [vmem:[#allocation74_spill] sm:$0xff] %v23102_v49  ;;  %v23105_v63 = vld [vmem:[#allocation3 + $0x1d0] sm:$0xff] }
 0x60e   :  { %26471 = vst [vmem:[#allocation75_spill] sm:$0xff] %v23105_v63 }
 0x610   :  { %16689 = vmatmul.mubr.f32.gmra.mrb[28].mxu1 %v23093_v23  ;;  %v23108_v23 = vld [vmem:[#allocation3 + $0x1e0] sm:$0xff] }
 0x611   :  { %16691 = vmatprep.mubr.f32.mxu1 %v23096_v45  ;;  %26472 = vst [vmem:[#allocation76_spill] sm:$0xff] %v23108_v23  ;;  %v23111_v45 = vld [vmem:[#allocation3 + $0x1e8] sm:$0xff] }
 0x612   :  { %26473 = vst [vmem:[#allocation77_spill] sm:$0xff] %v23111_v45 }
 0x614   :  { %16692 = vmatmul.mubr.f32.gmra.mrb[30].mxu1 %v23099_v22  ;;  %v23114_v22 = vld [vmem:[#allocation3 + $0x1f8] sm:$0xff] }
 0x615   :  { %16694 = vmatprep.mubr.f32.mxu1 %v19373_v28  ;;  %26474 = vst [vmem:[#allocation78_spill] sm:$0xff] %v23114_v22 }
 0x618   :  { %16695 = vmatmul.mubr.f32.gmra.mrb[32].mxu1 %v19373_v28  ;;  %v23117_v28 = vld [vmem:[#allocation3 + $0x200] sm:$0xff] }
 0x619   :  { %16697 = vmatprep.mubr.f32.mxu1 %v23102_v49  ;;  %26475 = vst [vmem:[#allocation79_spill] sm:$0xff] %v23117_v28  ;;  %v23120_v49 = vld [vmem:[#allocation3 + $0x210] sm:$0xff] }
 0x61a   :  { %26476 = vst [vmem:[#allocation80_spill] sm:$0xff] %v23120_v49 }
 0x61c   :  { %16698 = vmatmul.mubr.f32.gmra.mrb[34].mxu1 %v23105_v63  ;;  %v23123_v63 = vld [vmem:[#allocation3 + $0x218] sm:$0xff] }
 0x61d   :  { %16700 = vmatprep.mubr.f32.mxu1 %v23108_v23  ;;  %26477 = vst [vmem:[#allocation81_spill] sm:$0xff] %v23123_v63  ;;  %v23126_v23 = vld [vmem:[#allocation3 + $0x228] sm:$0xff] }
 0x61e   :  { %26478 = vst [vmem:[#allocation82_spill] sm:$0xff] %v23126_v23 }
 0x620   :  { %16701 = vmatmul.mubr.f32.gmra.mrb[36].mxu1 %v23111_v45  ;;  %v23129_v45 = vld [vmem:[#allocation3 + $0x230] sm:$0xff] }
 0x621   :  { %16703 = vmatprep.mubr.f32.mxu1 %v23114_v22  ;;  %26479 = vst [vmem:[#allocation83_spill] sm:$0xff] %v23129_v45  ;;  %v23132_v22 = vld [vmem:[#allocation3 + $0x240] sm:$0xff] }
 0x622   :  { %26480 = vst [vmem:[#allocation84_spill] sm:$0xff] %v23132_v22 }
 0x624   :  { %16704 = vmatmul.mubr.f32.gmra.mrb[38].mxu1 %v23117_v28  ;;  %v23135_v28 = vld [vmem:[#allocation3 + $0x248] sm:$0xff] }
 0x625   :  { %16706 = vmatprep.mubr.f32.mxu1 %v23120_v49  ;;  %26481 = vst [vmem:[#allocation85_spill] sm:$0xff] %v23135_v28  ;;  %v23138_v49 = vld [vmem:[#allocation3 + $0x258] sm:$0xff] }
 0x626   :  { %26482 = vst [vmem:[#allocation86_spill] sm:$0xff] %v23138_v49 }
 0x628   :  { %16707 = vmatmul.mubr.f32.gmra.mrb[40].mxu1 %v23123_v63  ;;  %v23141_v63 = vld [vmem:[#allocation3 + $0x260] sm:$0xff] }
 0x629   :  { %16709 = vmatprep.mubr.f32.mxu1 %v23126_v23  ;;  %26483 = vst [vmem:[#allocation87_spill] sm:$0xff] %v23141_v63  ;;  %v23144_v23 = vld [vmem:[#allocation3 + $0x270] sm:$0xff] }
 0x62a   :  { %26484 = vst [vmem:[#allocation88_spill] sm:$0xff] %v23144_v23 }
 0x62c   :  { %16710 = vmatmul.mubr.f32.gmra.mrb[42].mxu1 %v23129_v45  ;;  %v23147_v45 = vld [vmem:[#allocation3 + $0x278] sm:$0xff] }
 0x62d   :  { %16712 = vmatprep.mubr.f32.mxu1 %v23132_v22  ;;  %26485 = vst [vmem:[#allocation89_spill] sm:$0xff] %v23147_v45  ;;  %v23150_v22 = vld [vmem:[#allocation3 + $0x288] sm:$0xff] }
 0x62e   :  { %26486 = vst [vmem:[#allocation90_spill] sm:$0xff] %v23150_v22 }
 0x630   :  { %16713 = vmatmul.mubr.f32.gmra.mrb[44].mxu1 %v23135_v28  ;;  %v23153_v28 = vld [vmem:[#allocation3 + $0x290] sm:$0xff] }
 0x631   :  { %16715 = vmatprep.mubr.f32.mxu1 %v23138_v49  ;;  %26487 = vst [vmem:[#allocation91_spill] sm:$0xff] %v23153_v28  ;;  %v23156_v49 = vld [vmem:[#allocation3 + $0x2a0] sm:$0xff] }
 0x632   :  { %26488 = vst [vmem:[#allocation92_spill] sm:$0xff] %v23156_v49 }
 0x634   :  { %16716 = vmatmul.mubr.f32.gmra.mrb[46].mxu1 %v23141_v63  ;;  %v23159_v63 = vld [vmem:[#allocation3 + $0x2a8] sm:$0xff] }
 0x635   :  { %16718 = vmatprep.mubr.f32.mxu1 %v23144_v23  ;;  %26489 = vst [vmem:[#allocation93_spill] sm:$0xff] %v23159_v63  ;;  %v23162_v23 = vld [vmem:[#allocation3 + $0x2b8] sm:$0xff] }
 0x636   :  { %26490 = vst [vmem:[#allocation94_spill] sm:$0xff] %v23162_v23 }
 0x638   :  { %16719 = vmatmul.mubr.f32.gmra.mrb[48].mxu1 %v23147_v45  ;;  %v23165_v45 = vld [vmem:[#allocation3 + $0x2c0] sm:$0xff] }
 0x639   :  { %16721 = vmatprep.mubr.f32.mxu1 %v23150_v22  ;;  %26491 = vst [vmem:[#allocation95_spill] sm:$0xff] %v23165_v45  ;;  %v23168_v22 = vld [vmem:[#allocation3 + $0x2d0] sm:$0xff] }
 0x63a   :  { %26492 = vst [vmem:[#allocation96_spill] sm:$0xff] %v23168_v22 }
 0x63c   :  { %16722 = vmatmul.mubr.f32.gmra.mrb[50].mxu1 %v23153_v28  ;;  %v23171_v28 = vld [vmem:[#allocation3 + $0x2d8] sm:$0xff] }
 0x63d   :  { %16724 = vmatprep.mubr.f32.mxu1 %v23156_v49  ;;  %26493 = vst [vmem:[#allocation97_spill] sm:$0xff] %v23171_v28  ;;  %v23174_v49 = vld [vmem:[#allocation3 + $0x2e8] sm:$0xff] }
 0x63e   :  { %26494 = vst [vmem:[#allocation98_spill] sm:$0xff] %v23174_v49 }
 0x640   :  { %16725 = vmatmul.mubr.f32.gmra.mrb[52].mxu1 %v23159_v63  ;;  %v23177_v63 = vld [vmem:[#allocation3 + $0x2f0] sm:$0xff] }
 0x641   :  { %16727 = vmatprep.mubr.f32.mxu1 %v23162_v23  ;;  %26495 = vst [vmem:[#allocation99_spill] sm:$0xff] %v23177_v63  ;;  %v23180_v23 = vld [vmem:[#allocation3 + $0x300] sm:$0xff] }
 0x642   :  { %26496 = vst [vmem:[#allocation100_spill] sm:$0xff] %v23180_v23 }
 0x644   :  { %16728 = vmatmul.mubr.f32.gmra.mrb[54].mxu1 %v23165_v45  ;;  %v23183_v45 = vld [vmem:[#allocation3 + $0x308] sm:$0xff] }
 0x645   :  { %16730 = vmatprep.mubr.f32.mxu1 %v23168_v22  ;;  %26497 = vst [vmem:[#allocation101_spill] sm:$0xff] %v23183_v45  ;;  %v23186_v22 = vld [vmem:[#allocation3 + $0x318] sm:$0xff] }
 0x646   :  { %26498 = vst [vmem:[#allocation102_spill] sm:$0xff] %v23186_v22 }
 0x648   :  { %16731 = vmatmul.mubr.f32.gmra.mrb[56].mxu1 %v23171_v28  ;;  %v7379_v28 = vld [vmem:[#allocation3 + $0x1] sm:$0xff] }
 0x649   :  { %16733 = vmatprep.mubr.f32.mxu1 %v23174_v49  ;;  %v13848_v49 = vld [vmem:[%s25741_s2 + $0x110] sm:$0xff] }
 0x64c   :  { %16734 = vmatmul.mubr.f32.gmra.mrb[58].mxu1 %v23177_v63  ;;  %v13849_v63 = vld [vmem:[%s25741_s2 + $0x118] sm:$0xff] }
 0x64d   :  { %16736 = vmatprep.mubr.f32.mxu1 %v23180_v23  ;;  %v7380_v23 = vld [vmem:[#allocation3 + $0x9] sm:$0xff] }
 0x650   :  { %16737 = vmatmul.mubr.f32.gmra.mrb[60].mxu1 %v23183_v45  ;;  %v18122_v45 = vpack.c.bf16 %v13849_v63, %v13848_v49  ;;  %v13852_v49 = vld [vmem:[%s25741_s2 + $0x130] sm:$0xff]  ;;  %v13853_v63 = vld [vmem:[%s25741_s2 + $0x138] sm:$0xff] }
 0x651   :  { %16739 = vmatprep.mubr.f32.mxu1 %v23186_v22  ;;  %v13850_v22 = vld [vmem:[%s25741_s2 + $0x120] sm:$0xff]  ;;  %v18130_v47 = vpack.c.bf16 %v13853_v63, %v13852_v49  ;;  %v26504_v49 = vmax.f32 %v22578_v36, 0.0  ;;  %v13859_v63 = vld [vmem:[%s25741_s2 + $0x168] sm:$0xff]  ;;  %v26507_v36 = vmax.f32 %v22590_v54, 0.0 }
 0x652   :  { %v18126_v43 = vpack.c.bf16 %v13851_v57, %v13850_v22  ;;  %v26502_v57 = vmax.f32 %v22570_v15, 0.0  ;;  %v13856_v22 = vld [vmem:[%s25741_s2 + $0x150] sm:$0xff]  ;;  %v26505_v15 = vmax.f32 %v22582_v42, 0.0 }
 0x654   :  { %16740 = vmatmul.mubr.f32.gmra.mrb[62].mxu1 %v23189_v2 }
 0x655   :  { %16774 = vmatprep.mubr.f32.mxu1 %v7379_v28  ;;  %v26500_v28 = vmax.f32 %v22562_v53, 0.0  ;;  %v26503_v53 = vmax.f32 %v22574_v34, 0.0 }
 0x658   :  { %16775 = vmatmul.mubr.f32.vlgmr.msra.gmra.mrb[0].mxu1 %v7380_v23  ;;  %v26501_v23 = vmax.f32 %v22566_v31, 0.0 }
 0x659   :  { %16777 = vmatprep.mubr.f32.mxu1 %v26499_v12  ;;  %18121 = vmatpush3.bf16.msra.mxu1 %v23030_v3  ;;  %v13854_v3 = vld [vmem:[%s25741_s2 + $0x140] sm:$0xff]  ;;  %v13855_v12 = vld [vmem:[%s25741_s2 + $0x148] sm:$0xff] }
 0x65a   :  { %18123 = vmatprep.subr.bf16.mxu1 %v18122_v45  ;;  %v18134_v31 = vpack.c.bf16 %v13855_v12, %v13854_v3  ;;  %v26508_v3 = vmax.f32 %v22594_v17, 0.0  ;;  %v13862_v12 = vld [vmem:[%s25741_s2 + $0x180] sm:$0xff]  ;;  %v26511_v17 = vmax.f32 %v22606_v6, 0.0  ;;  %v26516_v6 = vmax.f32 %v22626_v27, 0.0 }
 0x65b   :  { %v26523_v27 = vmax.f32 %v22654_v35, 0.0  ;;  %v26529_v35 = vmax.f32 %v22686_v24, 0.0  ;;  %v26536_v24 = vld [vmem:[#allocation32_spill] sm:$0xff] }
 0x65c   :  { %16778 = vmatmul.mubr.f32.gmra.mrb[2].mxu1 %v26500_v28  ;;  %v26506_v28 = vmax.f32 %v22586_v55, 0.0  ;;  %v26509_v55 = vmax.f32 %v22598_v0, 0.0 }
 0x65d   :  { %16780 = vmatprep.mubr.f32.mxu1 %v26501_v23  ;;  %18125 = vmatpush3.bf16.msra.mxu1 %v18122_v45  ;;  %v13857_v45 = vld [vmem:[%s25741_s2 + $0x158] sm:$0xff]  ;;  %v13860_v23 = vld [vmem:[%s25741_s2 + $0x170] sm:$0xff] }
 0x65e   :  { %18127 = vmatprep.subr.bf16.mxu1 %v18126_v43  ;;  %v18138_v34 = vpack.c.bf16 %v13857_v45, %v13856_v22  ;;  %v26513_v22 = vmax.f32 %v22614_v13, 0.0  ;;  %v26514_v45 = vmax.f32 %v22618_v18, 0.0  ;;  %v26519_v13 = vmax.f32 %v22638_v33, 0.0 }
 0x65f   :  { %v26521_v18 = vmax.f32 %v22646_v5, 0.0  ;;  %v26526_v33 = vmax.f32 %v22666_v4, 0.0  ;;  %v7411_v5 = vld [vmem:[#allocation3 + $0x1b1] sm:$0xff]  ;;  %v26532_v4 = vmax.f32 %v22698_v20, 0.0 }
 0x660   :  { %16781 = vmatmul.mubr.f32.gmra.mrb[4].mxu1 %v26502_v57  ;;  %v13863_v57 = vld [vmem:[%s25741_s2 + $0x188] sm:$0xff]  ;;  %v26541_v20 = vld [vmem:[#allocation34_spill] sm:$0xff] }
 0x661   :  { %16783 = vmatprep.mubr.f32.mxu1 %v26503_v53  ;;  %18129 = vmatpush3.bf16.msra.mxu1 %v18126_v43  ;;  %v13858_v43 = vld [vmem:[%s25741_s2 + $0x160] sm:$0xff]  ;;  %v26510_v53 = vmax.f32 %v22602_v48, 0.0  ;;  %v23267_v0 = vpack.c.bf16 %v13863_v57, %v13862_v12  ;;  %v26515_v48 = vmax.f32 %v22622_v1, 0.0  ;;  %v26522_v1 = vmax.f32 %v22650_v10, 0.0 }
 0x662   :  { %18131 = vmatprep.subr.bf16.mxu1 %v18130_v47  ;;  %v18142_v42 = vpack.c.bf16 %v13859_v63, %v13858_v43  ;;  %v7412_v10 = vld [vmem:[#allocation3 + $0x1b9] sm:$0xff]  ;;  %v26535_v43 = vmax.f32 %v22710_v46, 0.0  ;;  %v26537_v63 = vmax.f32 %v26536_v24, 0.0  ;;  %v26547_v46 = vld [vmem:[#allocation37_spill] sm:$0xff] }
 0x663   :  { %v26553_v12 = vld [vmem:[#allocation40_spill] sm:$0xff] }
 0x664   :  { %16784 = vmatmul.mubr.f32.gmra.mrb[6].mxu1 %v26504_v49  ;;  %v26517_v49 = vmax.f32 %v22630_v25, 0.0  ;;  %v26524_v25 = vmax.f32 %v22658_v51, 0.0  ;;  %v26530_v51 = vmax.f32 %v22690_v39, 0.0  ;;  %v26538_v39 = vmax.f32 %v22718_v9, 0.0  ;;  %v26551_v9 = vld [vmem:[#allocation39_spill] sm:$0xff] }
 0x665   :  { %16786 = vmatprep.mubr.f32.mxu1 %v26505_v15  ;;  %18133 = vmatpush3.bf16.msra.mxu1 %v18130_v47  ;;  %v13861_v47 = vld [vmem:[%s25741_s2 + $0x178] sm:$0xff]  ;;  %v26520_v15 = vmax.f32 %v22642_v7, 0.0  ;;  %v26527_v7 = vmax.f32 %v22670_v60, 0.0  ;;  %v26533_v60 = vmax.f32 %v22702_v59, 0.0  ;;  %v26554_v57 = vmax.f32 %v26553_v12, 0.0 }
 0x666   :  { %18135 = vmatprep.subr.bf16.mxu1 %v18134_v31  ;;  %v18146_v54 = vpack.c.bf16 %v13861_v47, %v13860_v23  ;;  %v26543_v59 = vld [vmem:[#allocation35_spill] sm:$0xff]  ;;  %v26548_v47 = vmax.f32 %v26547_v46, 0.0 }
 0x667   :  { %v23425_v24 = vld [vmem:[#allocation3 + $0x7a] sm:$0xff]  ;;  %v23470_v12 = vld [vmem:[#allocation3 + $0xf2] sm:$0xff] }
 0x668   :  { %16787 = vmatmul.mubr.f32.gmra.mrb[8].mxu1 %v26506_v28 }
 0x669   :  { %16789 = vmatprep.mubr.f32.mxu1 %v26507_v36  ;;  %18137 = vmatpush3.bf16.msra.mxu1 %v18134_v31  ;;  %v26512_v31 = vmax.f32 %v22610_v14, 0.0  ;;  %v26518_v14 = vmax.f32 %v22634_v37, 0.0  ;;  %v26525_v37 = vmax.f32 %v22662_v58, 0.0  ;;  %v26531_v58 = vmax.f32 %v22694_v38, 0.0  ;;  %v26539_v38 = vld [vmem:[#allocation33_spill] sm:$0xff] }
 0x66a   :  { %18139 = vmatprep.subr.bf16.mxu1 %v18138_v34  ;;  %v26540_v28 = vmax.f32 %v26539_v38, 0.0  ;;  %v26542_v36 = vmax.f32 %v26541_v20, 0.0  ;;  %v13876_v38 = vld [vmem:[%s25741_s2 + $0x1f0] sm:$0xff] }
 0x66b   :  { %v23437_v20 = vld [vmem:[#allocation3 + $0x92] sm:$0xff] }
 0x66c   :  { %16790 = vmatmul.mubr.f32.gmra.mrb[10].mxu1 %v26508_v3  ;;  %v26549_v3 = vld [vmem:[#allocation38_spill] sm:$0xff] }
 0x66d   :  { %16792 = vmatprep.mubr.f32.mxu1 %v26509_v55  ;;  %18141 = vmatpush3.bf16.msra.mxu1 %v18138_v34  ;;  %v26528_v34 = vmax.f32 %v22674_v61, 0.0  ;;  %v26534_v61 = vmax.f32 %v22706_v40, 0.0  ;;  %v26545_v40 = vld [vmem:[#allocation36_spill] sm:$0xff]  ;;  %v26550_v55 = vmax.f32 %v26549_v3, 0.0 }
 0x66e   :  { %18143 = vmatprep.subr.bf16.mxu1 %v18142_v42  ;;  %v26546_v23 = vmax.f32 %v26545_v40, 0.0  ;;  %v13879_v40 = vld [vmem:[%s25741_s2 + $0x208] sm:$0xff] }
 0x66f   :  { %v23457_v3 = vld [vmem:[#allocation3 + $0xc2] sm:$0xff] }
 0x670   :  { %16793 = vmatmul.mubr.f32.gmra.mrb[12].mxu1 %v26510_v53  ;;  %v26555_v53 = vld [vmem:[#allocation41_spill] sm:$0xff] }
 0x671   :  { %16795 = vmatprep.mubr.f32.mxu1 %v26511_v17  ;;  %18145 = vmatpush3.bf16.msra.mxu1 %v18142_v42  ;;  %v26544_v42 = vmax.f32 %v26543_v59, 0.0  ;;  %v26556_v17 = vmax.f32 %v26555_v53, 0.0  ;;  %v23440_v59 = vld [vmem:[#allocation3 + $0x9a] sm:$0xff]  ;;  %v23476_v53 = vld [vmem:[#allocation3 + $0x10a] sm:$0xff] }
 0x672   :  { %18147 = vmatprep.subr.bf16.mxu1 %v18146_v54 }
 0x674   :  { %16796 = vmatmul.mubr.f32.gmra.mrb[14].mxu1 %v26512_v31  ;;  %v26557_v31 = vmax.f32 %v22758_v21, 0.0  ;;  %v26564_v21 = vmax.f32 %v26429_v52, 0.0  ;;  %v26568_v52 = vmax.f32 %v26437_v56, 0.0 }
 0x675   :  { %16798 = vmatprep.mubr.f32.mxu1 %v26513_v22  ;;  %18149 = vmatpush3.bf16.msra.mxu1 %v18146_v54  ;;  %v26552_v54 = vmax.f32 %v26551_v9, 0.0  ;;  %v26558_v22 = vmax.f32 %v22762_v50, 0.0  ;;  %v26565_v50 = vmax.f32 %v26430_v32, 0.0  ;;  %v8038_v32 = vld [vmem:[#allocation3 + $0xa] sm:$0xff]  ;;  %v23464_v9 = vld [vmem:[#allocation3 + $0xda] sm:$0xff] }
 0x676   :  { %18151 = vmatprep.subr.bf16.mxu1 %v23267_v0 }
 0x678   :  { %16799 = vmatmul.mubr.f32.gmra.mrb[16].mxu1 %v26514_v45  ;;  %v26559_v45 = vmax.f32 %v22766_v29, 0.0  ;;  %v26566_v29 = vmax.f32 %v26431_v26, 0.0  ;;  %v13867_v26 = vld [vmem:[%s25741_s2 + $0x1a8] sm:$0xff] }
 0x679   :  { %16801 = vmatprep.mubr.f32.mxu1 %v26515_v48  ;;  %v26560_v48 = vmax.f32 %v22770_v62, 0.0  ;;  %v26567_v62 = vmax.f32 %v26432_v44, 0.0  ;;  %v13866_v44 = vld [vmem:[%s25741_s2 + $0x1a0] sm:$0xff] }
 0x67a   :  { %v18158_v56 = vpack.c.bf16 %v13867_v26, %v13866_v44  ;;  %v23527_v44 = vld [vmem:[#allocation3 + $0x21a] sm:$0xff]  ;;  %v23530_v26 = vld [vmem:[#allocation3 + $0x22a] sm:$0xff] }
 0x67c   :  { %16802 = vmatmul.mubr.f32.gmra.mrb[18].mxu1 %v26516_v6  ;;  %v26561_v6 = vmax.f32 %v22774_v30, 0.0  ;;  %v8037_v30 = vld [vmem:[#allocation3 + $0x2] sm:$0xff] }
 0x67d   :  { %16804 = vmatprep.mubr.f32.mxu1 %v26517_v49  ;;  %v26562_v49 = vmax.f32 %v22778_v19, 0.0  ;;  %v13864_v19 = vld [vmem:[%s25741_s2 + $0x190] sm:$0xff] }
 0x680   :  { %16805 = vmatmul.mubr.f32.gmra.mrb[20].mxu1 %v26518_v14  ;;  %v26563_v14 = vmax.f32 %v22782_v11, 0.0  ;;  %v13865_v11 = vld [vmem:[%s25741_s2 + $0x198] sm:$0xff] }
 0x681   :  { %16807 = vmatprep.mubr.f32.mxu1 %v26519_v13  ;;  %v18154_v13 = vpack.c.bf16 %v13865_v11, %v13864_v19  ;;  %v23512_v19 = vld [vmem:[#allocation3 + $0x1e2] sm:$0xff]  ;;  %v23515_v11 = vld [vmem:[#allocation3 + $0x1ea] sm:$0xff] }
 0x684   :  { %16808 = vmatmul.mubr.f32.gmra.mrb[22].mxu1 %v26520_v15  ;;  %v23376_v15 = vld [vmem:[#allocation3 + $0x1a] sm:$0xff] }
 0x685   :  { %16810 = vmatprep.mubr.f32.mxu1 %v26521_v18  ;;  %v23380_v18 = vld [vmem:[#allocation3 + $0x22] sm:$0xff] }
 0x688   :  { %16811 = vmatmul.mubr.f32.gmra.mrb[24].mxu1 %v26522_v1  ;;  %v13868_v1 = vld [vmem:[%s25741_s2 + $0x1b0] sm:$0xff] }
 0x689   :  { %16813 = vmatprep.mubr.f32.mxu1 %v26523_v27  ;;  %v13869_v27 = vld [vmem:[%s25741_s2 + $0x1b8] sm:$0xff] }
 0x68c   :  { %16814 = vmatmul.mubr.f32.gmra.mrb[26].mxu1 %v26524_v25  ;;  %v23389_v25 = vld [vmem:[#allocation3 + $0x32] sm:$0xff] }
 0x68d   :  { %16816 = vmatprep.mubr.f32.mxu1 %v26525_v37  ;;  %v23392_v37 = vld [vmem:[#allocation3 + $0x3a] sm:$0xff] }
 0x690   :  { %16817 = vmatmul.mubr.f32.gmra.mrb[28].mxu1 %v26526_v33  ;;  %v13870_v33 = vld [vmem:[%s25741_s2 + $0x1c0] sm:$0xff] }
 0x691   :  { %16819 = vmatprep.mubr.f32.mxu1 %v26527_v7  ;;  %v13871_v7 = vld [vmem:[%s25741_s2 + $0x1c8] sm:$0xff] }
 0x694   :  { %16820 = vmatmul.mubr.f32.gmra.mrb[30].mxu1 %v26528_v34  ;;  %v18166_v34 = vpack.c.bf16 %v13871_v7, %v13870_v33  ;;  %v23545_v33 = vld [vmem:[#allocation3 + $0x262] sm:$0xff]  ;;  %v23548_v7 = vld [vmem:[#allocation3 + $0x272] sm:$0xff] }
 0x695   :  { %16822 = vmatprep.mubr.f32.mxu1 %v7411_v5  ;;  %v23401_v5 = vld [vmem:[#allocation3 + $0x4a] sm:$0xff] }
 0x698   :  { %16823 = vmatmul.mubr.f32.gmra.mrb[32].mxu1 %v7412_v10  ;;  %v23404_v10 = vld [vmem:[#allocation3 + $0x52] sm:$0xff] }
 0x699   :  { %16825 = vmatprep.mubr.f32.mxu1 %v26529_v35  ;;  %v13872_v35 = vld [vmem:[%s25741_s2 + $0x1d0] sm:$0xff] }
 0x69c   :  { %16826 = vmatmul.mubr.f32.gmra.mrb[34].mxu1 %v26530_v51  ;;  %v13873_v51 = vld [vmem:[%s25741_s2 + $0x1d8] sm:$0xff] }
 0x69d   :  { %16828 = vmatprep.mubr.f32.mxu1 %v26531_v58  ;;  %v23413_v58 = vld [vmem:[#allocation3 + $0x62] sm:$0xff] }
 0x6a0   :  { %16829 = vmatmul.mubr.f32.gmra.mrb[36].mxu1 %v26532_v4  ;;  %v18170_v4 = vpack.c.bf16 %v13873_v51, %v13872_v35  ;;  %v23554_v35 = vld [vmem:[#allocation3 + $0x28a] sm:$0xff]  ;;  %v23557_v51 = vld [vmem:[#allocation3 + $0x292] sm:$0xff] }
 0x6a1   :  { %16831 = vmatprep.mubr.f32.mxu1 %v26533_v60  ;;  %v23416_v60 = vld [vmem:[#allocation3 + $0x6a] sm:$0xff] }
 0x6a4   :  { %16832 = vmatmul.mubr.f32.gmra.mrb[38].mxu1 %v26534_v61  ;;  %v13874_v61 = vld [vmem:[%s25741_s2 + $0x1e0] sm:$0xff] }
 0x6a5   :  { %16834 = vmatprep.mubr.f32.mxu1 %v26535_v43  ;;  %v13875_v43 = vld [vmem:[%s25741_s2 + $0x1e8] sm:$0xff] }
 0x6a8   :  { %16835 = vmatmul.mubr.f32.gmra.mrb[40].mxu1 %v26537_v63  ;;  %v18174_v63 = vpack.c.bf16 %v13875_v43, %v13874_v61  ;;  %v23563_v61 = vld [vmem:[#allocation3 + $0x2aa] sm:$0xff]  ;;  %v23566_v43 = vld [vmem:[#allocation3 + $0x2ba] sm:$0xff] }
 0x6a9   :  { %16837 = vmatprep.mubr.f32.mxu1 %v26538_v39  ;;  %v23428_v39 = vld [vmem:[#allocation3 + $0x82] sm:$0xff]  ;;  %26569 = vst [vmem:[#allocation103_spill] sm:$0xff] %v23563_v61  ;;  %26570 = vst [vmem:[#allocation104_spill] sm:$0xff] %v23566_v43 }
 0x6ac   :  { %16838 = vmatmul.mubr.f32.gmra.mrb[42].mxu1 %v26540_v28  ;;  %v13877_v28 = vld [vmem:[%s25741_s2 + $0x1f8] sm:$0xff] }
 0x6ad   :  { %16840 = vmatprep.mubr.f32.mxu1 %v26542_v36  ;;  %v18178_v36 = vpack.c.bf16 %v13877_v28, %v13876_v38  ;;  %v23572_v38 = vld [vmem:[#allocation3 + $0x2d2] sm:$0xff]  ;;  %v23575_v28 = vld [vmem:[#allocation3 + $0x2da] sm:$0xff] }
 0x6ae   :  { %26572 = vst [vmem:[#allocation106_spill] sm:$0xff] %v23572_v38  ;;  %26573 = vst [vmem:[#allocation107_spill] sm:$0xff] %v23575_v28 }
 0x6b0   :  { %16841 = vmatmul.mubr.f32.gmra.mrb[44].mxu1 %v26544_v42  ;;  %v13878_v42 = vld [vmem:[%s25741_s2 + $0x200] sm:$0xff] }
 0x6b1   :  { %16843 = vmatprep.mubr.f32.mxu1 %v26546_v23  ;;  %v23449_v23 = vld [vmem:[#allocation3 + $0xaa] sm:$0xff]  ;;  %v23452_v46 = vpack.c.bf16 %v13879_v40, %v13878_v42  ;;  %v23581_v42 = vld [vmem:[#allocation3 + $0x2f2] sm:$0xff]  ;;  %v23584_v40 = vld [vmem:[#allocation3 + $0x302] sm:$0xff] }
 0x6b2   :  { %26575 = vst [vmem:[#allocation109_spill] sm:$0xff] %v23581_v42  ;;  %26576 = vst [vmem:[#allocation110_spill] sm:$0xff] %v23584_v40 }
 0x6b4   :  { %16844 = vmatmul.mubr.f32.gmra.mrb[46].mxu1 %v26548_v47  ;;  %v23454_v47 = vld [vmem:[#allocation3 + $0xb2] sm:$0xff] }
 0x6b5   :  { %16846 = vmatprep.mubr.f32.mxu1 %v26550_v55  ;;  %v23461_v55 = vld [vmem:[#allocation3 + $0xca] sm:$0xff] }
 0x6b8   :  { %16847 = vmatmul.mubr.f32.gmra.mrb[48].mxu1 %v26552_v54  ;;  %v23467_v54 = vld [vmem:[#allocation3 + $0xe2] sm:$0xff] }
 0x6b9   :  { %16849 = vmatprep.mubr.f32.mxu1 %v26554_v57  ;;  %v23473_v57 = vld [vmem:[#allocation3 + $0xfa] sm:$0xff] }
 0x6bc   :  { %16850 = vmatmul.mubr.f32.gmra.mrb[50].mxu1 %v26556_v17  ;;  %v23479_v17 = vld [vmem:[#allocation3 + $0x112] sm:$0xff] }
 0x6bd   :  { %16852 = vmatprep.mubr.f32.mxu1 %v26557_v31  ;;  %v23482_v31 = vld [vmem:[#allocation3 + $0x122] sm:$0xff] }
 0x6c0   :  { %16853 = vmatmul.mubr.f32.gmra.mrb[52].mxu1 %v26558_v22  ;;  %v23485_v22 = vld [vmem:[#allocation3 + $0x12a] sm:$0xff] }
 0x6c1   :  { %16855 = vmatprep.mubr.f32.mxu1 %v26559_v45  ;;  %v23488_v45 = vld [vmem:[#allocation3 + $0x13a] sm:$0xff] }
 0x6c4   :  { %16856 = vmatmul.mubr.f32.gmra.mrb[54].mxu1 %v26560_v48  ;;  %v23491_v48 = vld [vmem:[#allocation3 + $0x142] sm:$0xff] }
 0x6c5   :  { %16858 = vmatprep.mubr.f32.mxu1 %v26561_v6  ;;  %v23494_v6 = vld [vmem:[#allocation3 + $0x152] sm:$0xff] }
 0x6c8   :  { %16859 = vmatmul.mubr.f32.gmra.mrb[56].mxu1 %v26562_v49  ;;  %v23497_v49 = vld [vmem:[#allocation3 + $0x15a] sm:$0xff] }
 0x6c9   :  { %16861 = vmatprep.mubr.f32.mxu1 %v26563_v14  ;;  %v23500_v14 = vld [vmem:[#allocation3 + $0x16a] sm:$0xff] }
 0x6cc   :  { %16862 = vmatmul.mubr.f32.gmra.mrb[58].mxu1 %v26564_v21  ;;  %v8069_v21 = vld [vmem:[#allocation3 + $0x1b2] sm:$0xff] }
 0x6cd   :  { %16864 = vmatprep.mubr.f32.mxu1 %v26565_v50  ;;  %v23503_v50 = vld [vmem:[#allocation3 + $0x172] sm:$0xff] }
 0x6d0   :  { %16865 = vmatmul.mubr.f32.gmra.mrb[60].mxu1 %v26566_v29  ;;  %v8070_v29 = vld [vmem:[#allocation3 + $0x1ba] sm:$0xff] }
 0x6d1   :  { %16867 = vmatprep.mubr.f32.mxu1 %v26567_v62  ;;  %v23506_v62 = vld [vmem:[#allocation3 + $0x1ca] sm:$0xff] }
 0x6d4   :  { %16868 = vmatmul.mubr.f32.gmra.mrb[62].mxu1 %v26568_v52  ;;  %v23518_v52 = vld [vmem:[#allocation3 + $0x1fa] sm:$0xff] }
 0x6d5   :  { %16902 = vmatprep.mubr.f32.mxu1 %v8037_v30  ;;  %v23509_v30 = vld [vmem:[#allocation3 + $0x1d2] sm:$0xff] }
 0x6d8   :  { %16903 = vmatmul.mubr.f32.vlgmr.msra.gmra.mrb[0].mxu1 %v8038_v32  ;;  %v23521_v32 = vld [vmem:[#allocation3 + $0x202] sm:$0xff] }
 0x6d9   :  { %16905 = vmatprep.mubr.f32.mxu1 %v23376_v15  ;;  %18153 = vmatpush3.bf16.msra.mxu1 %v23267_v0  ;;  %v18162_v0 = vpack.c.bf16 %v13869_v27, %v13868_v1  ;;  %v23536_v1 = vld [vmem:[#allocation3 + $0x242] sm:$0xff]  ;;  %v23539_v27 = vld [vmem:[#allocation3 + $0x24a] sm:$0xff] }
 0x6da   :  { %18155 = vmatprep.subr.bf16.mxu1 %v18154_v13 }
 0x6dc   :  { %16906 = vmatmul.mubr.f32.gmra.mrb[2].mxu1 %v23380_v18 }
 0x6dd   :  { %16908 = vmatprep.mubr.f32.mxu1 %v23389_v25  ;;  %18157 = vmatpush3.bf16.msra.mxu1 %v18154_v13  ;;  %v23524_v13 = vld [vmem:[#allocation3 + $0x212] sm:$0xff] }
 0x6de   :  { %18159 = vmatprep.subr.bf16.mxu1 %v18158_v56 }
 0x6e0   :  { %16909 = vmatmul.mubr.f32.gmra.mrb[4].mxu1 %v23392_v37 }
 0x6e1   :  { %16911 = vmatprep.mubr.f32.mxu1 %v23401_v5  ;;  %18161 = vmatpush3.bf16.msra.mxu1 %v18158_v56  ;;  %v23533_v56 = vld [vmem:[#allocation3 + $0x232] sm:$0xff] }
 0x6e2   :  { %18163 = vmatprep.subr.bf16.mxu1 %v18162_v0 }
 0x6e4   :  { %16912 = vmatmul.mubr.f32.gmra.mrb[6].mxu1 %v23404_v10 }
 0x6e5   :  { %16914 = vmatprep.mubr.f32.mxu1 %v23413_v58  ;;  %18165 = vmatpush3.bf16.msra.mxu1 %v18162_v0  ;;  %v23542_v0 = vld [vmem:[#allocation3 + $0x25a] sm:$0xff] }
 0x6e6   :  { %18167 = vmatprep.subr.bf16.mxu1 %v18166_v34 }
 0x6e8   :  { %16915 = vmatmul.mubr.f32.gmra.mrb[8].mxu1 %v23416_v60 }
 0x6e9   :  { %16917 = vmatprep.mubr.f32.mxu1 %v23425_v24  ;;  %18169 = vmatpush3.bf16.msra.mxu1 %v18166_v34  ;;  %v23551_v34 = vld [vmem:[#allocation3 + $0x27a] sm:$0xff] }
 0x6ea   :  { %18171 = vmatprep.subr.bf16.mxu1 %v18170_v4 }
 0x6ec   :  { %16918 = vmatmul.mubr.f32.gmra.mrb[10].mxu1 %v23428_v39 }
 0x6ed   :  { %16920 = vmatprep.mubr.f32.mxu1 %v23437_v20  ;;  %18173 = vmatpush3.bf16.msra.mxu1 %v18170_v4  ;;  %v23560_v4 = vld [vmem:[#allocation3 + $0x2a2] sm:$0xff] }
 0x6ee   :  { %18175 = vmatprep.subr.bf16.mxu1 %v18174_v63 }
 0x6f0   :  { %16921 = vmatmul.mubr.f32.gmra.mrb[12].mxu1 %v23440_v59 }
 0x6f1   :  { %16923 = vmatprep.mubr.f32.mxu1 %v23449_v23  ;;  %18177 = vmatpush3.bf16.msra.mxu1 %v18174_v63  ;;  %v23569_v63 = vld [vmem:[#allocation3 + $0x2c2] sm:$0xff] }
 0x6f2   :  { %18179 = vmatprep.subr.bf16.mxu1 %v18178_v36  ;;  %26571 = vst [vmem:[#allocation105_spill] sm:$0xff] %v23569_v63 }
 0x6f4   :  { %16924 = vmatmul.mubr.f32.gmra.mrb[14].mxu1 %v23454_v47 }
 0x6f5   :  { %16926 = vmatprep.mubr.f32.mxu1 %v23457_v3  ;;  %18181 = vmatpush3.bf16.msra.mxu1 %v18178_v36  ;;  %v23578_v36 = vld [vmem:[#allocation3 + $0x2ea] sm:$0xff] }
 0x6f6   :  { %18183 = vmatprep.subr.bf16.mxu1 %v23452_v46  ;;  %26574 = vst [vmem:[#allocation108_spill] sm:$0xff] %v23578_v36 }
 0x6f8   :  { %16927 = vmatmul.mubr.f32.gmra.mrb[16].mxu1 %v23461_v55 }
 0x6f9   :  { %16929 = vmatprep.mubr.f32.mxu1 %v23464_v9 }
 0x6fc   :  { %16930 = vmatmul.mubr.f32.gmra.mrb[18].mxu1 %v23467_v54 }
 0x6fd   :  { %16932 = vmatprep.mubr.f32.mxu1 %v23470_v12 }
 0x700   :  { %16933 = vmatmul.mubr.f32.gmra.mrb[20].mxu1 %v23473_v57 }
 0x701   :  { %16935 = vmatprep.mubr.f32.mxu1 %v23476_v53 }
 0x704   :  { %16936 = vmatmul.mubr.f32.gmra.mrb[22].mxu1 %v23479_v17 }
 0x705   :  { %16938 = vmatprep.mubr.f32.mxu1 %v23482_v31 }
 0x708   :  { %16939 = vmatmul.mubr.f32.gmra.mrb[24].mxu1 %v23485_v22 }
 0x709   :  { %16941 = vmatprep.mubr.f32.mxu1 %v23488_v45 }
 0x70c   :  { %16942 = vmatmul.mubr.f32.gmra.mrb[26].mxu1 %v23491_v48 }
 0x70d   :  { %16944 = vmatprep.mubr.f32.mxu1 %v23494_v6 }
 0x710   :  { %16945 = vmatmul.mubr.f32.gmra.mrb[28].mxu1 %v23497_v49 }
 0x711   :  { %16947 = vmatprep.mubr.f32.mxu1 %v23500_v14 }
 0x714   :  { %16948 = vmatmul.mubr.f32.gmra.mrb[30].mxu1 %v23503_v50 }
 0x715   :  { %16950 = vmatprep.mubr.f32.mxu1 %v8069_v21  ;;  %v23587_v21 = vld [vmem:[#allocation3 + $0x30a] sm:$0xff] }
 0x716   :  { %26577 = vst [vmem:[#allocation111_spill] sm:$0xff] %v23587_v21 }
 0x718   :  { %16951 = vmatmul.mubr.f32.gmra.mrb[32].mxu1 %v8070_v29  ;;  %v23590_v29 = vld [vmem:[#allocation3 + $0x31a] sm:$0xff] }
 0x719   :  { %16953 = vmatprep.mubr.f32.mxu1 %v23506_v62  ;;  %26578 = vst [vmem:[#allocation112_spill] sm:$0xff] %v23590_v29 }
 0x71c   :  { %16954 = vmatmul.mubr.f32.gmra.mrb[34].mxu1 %v23509_v30 }
 0x71d   :  { %16956 = vmatprep.mubr.f32.mxu1 %v23512_v19 }
 0x720   :  { %16957 = vmatmul.mubr.f32.gmra.mrb[36].mxu1 %v23515_v11 }
 0x721   :  { %16959 = vmatprep.mubr.f32.mxu1 %v23518_v52 }
 0x724   :  { %16960 = vmatmul.mubr.f32.gmra.mrb[38].mxu1 %v23521_v32 }
 0x725   :  { %16962 = vmatprep.mubr.f32.mxu1 %v23524_v13 }
 0x728   :  { %16963 = vmatmul.mubr.f32.gmra.mrb[40].mxu1 %v23527_v44 }
 0x729   :  { %16965 = vmatprep.mubr.f32.mxu1 %v23530_v26 }
 0x72c   :  { %16966 = vmatmul.mubr.f32.gmra.mrb[42].mxu1 %v23533_v56 }
 0x72d   :  { %16968 = vmatprep.mubr.f32.mxu1 %v23536_v1 }
 0x730   :  { %16969 = vmatmul.mubr.f32.gmra.mrb[44].mxu1 %v23539_v27 }
 0x731   :  { %16971 = vmatprep.mubr.f32.mxu1 %v23542_v0 }
 0x734   :  { %16972 = vmatmul.mubr.f32.gmra.mrb[46].mxu1 %v23545_v33 }
 0x735   :  { %16974 = vmatprep.mubr.f32.mxu1 %v23548_v7 }
 0x738   :  { %16975 = vmatmul.mubr.f32.gmra.mrb[48].mxu1 %v23551_v34 }
 0x739   :  { %16977 = vmatprep.mubr.f32.mxu1 %v23554_v35 }
 0x73c   :  { %16978 = vmatmul.mubr.f32.gmra.mrb[50].mxu1 %v23557_v51 }
 0x73d   :  { %16980 = vmatprep.mubr.f32.mxu1 %v23560_v4 }
 0x740   :  { %16981 = vmatmul.mubr.f32.gmra.mrb[52].mxu1 %v23563_v61 }
 0x741   :  { %16983 = vmatprep.mubr.f32.mxu1 %v23566_v43  ;;  %v26581_v43 = vld [vmem:[#allocation49_spill] sm:$0xff] }
 0x744   :  { %16984 = vmatmul.mubr.f32.gmra.mrb[54].mxu1 %v23569_v63  ;;  %v26580_v63 = vld [vmem:[#allocation48_spill] sm:$0xff] }
 0x745   :  { %16986 = vmatprep.mubr.f32.mxu1 %v23572_v38 }
 0x748   :  { %16987 = vmatmul.mubr.f32.gmra.mrb[56].mxu1 %v23575_v28  ;;  %v23593_v28 = vld [vmem:[#allocation3 + $0x322] sm:$0xff] }
 0x749   :  { %16989 = vmatprep.mubr.f32.mxu1 %v23578_v36  ;;  %v13880_v36 = vld [vmem:[%s25741_s2 + $0x210] sm:$0xff] }
 0x74c   :  { %16990 = vmatmul.mubr.f32.gmra.mrb[58].mxu1 %v23581_v42  ;;  %v13881_v42 = vld [vmem:[%s25741_s2 + $0x218] sm:$0xff] }
 0x74d   :  { %16992 = vmatprep.mubr.f32.mxu1 %v23584_v40  ;;  %v26579_v40 = vld [vmem:[#allocation47_spill] sm:$0xff]  ;;  %v18186_v38 = vpack.c.bf16 %v13881_v42, %v13880_v36  ;;  %v13884_v36 = vld [vmem:[%s25741_s2 + $0x230] sm:$0xff] }
 0x74e   :  { %v13885_v42 = vld [vmem:[%s25741_s2 + $0x238] sm:$0xff] }
 0x750   :  { %16993 = vmatmul.mubr.f32.gmra.mrb[60].mxu1 %v23587_v21  ;;  %v13882_v21 = vld [vmem:[%s25741_s2 + $0x220] sm:$0xff] }
 0x751   :  { %16995 = vmatprep.mubr.f32.mxu1 %v23590_v29  ;;  %v13883_v29 = vld [vmem:[%s25741_s2 + $0x228] sm:$0xff] }
 0x752   :  { %v18190_v61 = vpack.c.bf16 %v13883_v29, %v13882_v21  ;;  %v26583_v29 = vld [vmem:[#allocation51_spill] sm:$0xff] }
 0x754   :  { %16996 = vmatmul.mubr.f32.gmra.mrb[62].mxu1 %v23593_v28 }
 0x755   :  { %17030 = vmatprep.mubr.f32.mxu1 %v26579_v40  ;;  %v26582_v40 = vld [vmem:[#allocation50_spill] sm:$0xff] }
 0x758   :  { %17031 = vmatmul.mubr.f32.vlgmr.msra.gmra.mrb[0].mxu1 %v26580_v63  ;;  %v18194_v63 = vpack.c.bf16 %v13885_v42, %v13884_v36  ;;  %v26584_v36 = vld [vmem:[#allocation52_spill] sm:$0xff]  ;;  %v26585_v42 = vld [vmem:[#allocation53_spill] sm:$0xff] }
 0x759   :  { %17033 = vmatprep.mubr.f32.mxu1 %v26581_v43  ;;  %18185 = vmatpush3.bf16.msra.mxu1 %v23452_v46  ;;  %v13886_v46 = vld [vmem:[%s25741_s2 + $0x240] sm:$0xff]  ;;  %v13887_v43 = vld [vmem:[%s25741_s2 + $0x248] sm:$0xff] }
 0x75a   :  { %18187 = vmatprep.subr.bf16.mxu1 %v18186_v38  ;;  %v18198_v21 = vpack.c.bf16 %v13887_v43, %v13886_v46  ;;  %v13893_v43 = vld [vmem:[%s25741_s2 + $0x278] sm:$0xff] }
 0x75c   :  { %17034 = vmatmul.mubr.f32.gmra.mrb[2].mxu1 %v26582_v40  ;;  %v26586_v40 = vld [vmem:[#allocation54_spill] sm:$0xff] }
 0x75d   :  { %17036 = vmatprep.mubr.f32.mxu1 %v22995_v41  ;;  %18189 = vmatpush3.bf16.msra.mxu1 %v18186_v38  ;;  %v13888_v41 = vld [vmem:[%s25741_s2 + $0x250] sm:$0xff]  ;;  %v13889_v38 = vld [vmem:[%s25741_s2 + $0x258] sm:$0xff] }
 0x75e   :  { %18191 = vmatprep.subr.bf16.mxu1 %v18190_v61 }
 0x760   :  { %17037 = vmatmul.mubr.f32.gmra.mrb[4].mxu1 %v23018_v8  ;;  %v18202_v8 = vpack.c.bf16 %v13889_v38, %v13888_v41  ;;  %v26587_v41 = vld [vmem:[#allocation55_spill] sm:$0xff]  ;;  %v26588_v38 = vld [vmem:[#allocation56_spill] sm:$0xff] }
 0x761   :  { %17039 = vmatprep.mubr.f32.mxu1 %v23027_v16  ;;  %18193 = vmatpush3.bf16.msra.mxu1 %v18190_v61  ;;  %v13890_v16 = vld [vmem:[%s25741_s2 + $0x260] sm:$0xff]  ;;  %v13891_v61 = vld [vmem:[%s25741_s2 + $0x268] sm:$0xff] }
 0x762   :  { %18195 = vmatprep.subr.bf16.mxu1 %v18194_v63  ;;  %v18206_v46 = vpack.c.bf16 %v13891_v61, %v13890_v16  ;;  %v26589_v16 = vld [vmem:[#allocation57_spill] sm:$0xff]  ;;  %v26590_v61 = vld [vmem:[#allocation58_spill] sm:$0xff] }
 0x764   :  { %17040 = vmatmul.mubr.f32.gmra.mrb[6].mxu1 %v26583_v29 }
 0x765   :  { %17042 = vmatprep.mubr.f32.mxu1 %v26584_v36  ;;  %18197 = vmatpush3.bf16.msra.mxu1 %v18194_v63  ;;  %v13892_v63 = vld [vmem:[%s25741_s2 + $0x270] sm:$0xff]  ;;  %v13895_v36 = vld [vmem:[%s25741_s2 + $0x288] sm:$0xff] }
 0x766   :  { %18199 = vmatprep.subr.bf16.mxu1 %v18198_v21  ;;  %v18210_v29 = vpack.c.bf16 %v13893_v43, %v13892_v63  ;;  %v26593_v63 = vld [vmem:[#allocation61_spill] sm:$0xff]  ;;  %v26594_v43 = vld [vmem:[#allocation62_spill] sm:$0xff] }
 0x768   :  { %17043 = vmatmul.mubr.f32.gmra.mrb[8].mxu1 %v26585_v42 }
 0x769   :  { %17045 = vmatprep.mubr.f32.mxu1 %v26586_v40  ;;  %18201 = vmatpush3.bf16.msra.mxu1 %v18198_v21  ;;  %v13894_v21 = vld [vmem:[%s25741_s2 + $0x280] sm:$0xff]  ;;  %v26591_v40 = vld [vmem:[#allocation59_spill] sm:$0xff] }
 0x76a   :  { %18203 = vmatprep.subr.bf16.mxu1 %v18202_v8  ;;  %v23660_v42 = vpack.c.bf16 %v13895_v36, %v13894_v21  ;;  %v26599_v21 = vld [vmem:[#allocation67_spill] sm:$0xff]  ;;  %v26600_v36 = vld [vmem:[#allocation68_spill] sm:$0xff] }
 0x76c   :  { %17046 = vmatmul.mubr.f32.gmra.mrb[10].mxu1 %v26587_v41  ;;  %v26595_v41 = vld [vmem:[#allocation63_spill] sm:$0xff] }
 0x76d   :  { %17048 = vmatprep.mubr.f32.mxu1 %v26588_v38  ;;  %18205 = vmatpush3.bf16.msra.mxu1 %v18202_v8  ;;  %v26592_v8 = vld [vmem:[#allocation60_spill] sm:$0xff] }
 0x76e   :  { %18207 = vmatprep.subr.bf16.mxu1 %v18206_v46  ;;  %v26596_v38 = vld [vmem:[#allocation64_spill] sm:$0xff] }
 0x770   :  { %17049 = vmatmul.mubr.f32.gmra.mrb[12].mxu1 %v26589_v16  ;;  %v26597_v16 = vld [vmem:[#allocation65_spill] sm:$0xff] }
 0x771   :  { %17051 = vmatprep.mubr.f32.mxu1 %v26590_v61  ;;  %18209 = vmatpush3.bf16.msra.mxu1 %v18206_v46  ;;  %v26598_v46 = vld [vmem:[#allocation66_spill] sm:$0xff]  ;;  %v26601_v61 = vld [vmem:[#allocation69_spill] sm:$0xff] }
 0x772   :  { %18211 = vmatprep.subr.bf16.mxu1 %v18210_v29 }
 0x774   :  { %17052 = vmatmul.mubr.f32.gmra.mrb[14].mxu1 %v26591_v40  ;;  %v26603_v40 = vld [vmem:[#allocation71_spill] sm:$0xff] }
 0x775   :  { %17054 = vmatprep.mubr.f32.mxu1 %v26592_v8  ;;  %18213 = vmatpush3.bf16.msra.mxu1 %v18210_v29  ;;  %v26602_v29 = vld [vmem:[#allocation70_spill] sm:$0xff]  ;;  %v26604_v8 = vld [vmem:[#allocation72_spill] sm:$0xff] }
 0x776   :  { %18215 = vmatprep.subr.bf16.mxu1 %v23660_v42 }
 0x778   :  { %17055 = vmatmul.mubr.f32.gmra.mrb[16].mxu1 %v26593_v63  ;;  %v26605_v63 = vld [vmem:[#allocation73_spill] sm:$0xff] }
 0x779   :  { %17057 = vmatprep.mubr.f32.mxu1 %v26594_v43  ;;  %v23678_v43 = vld [vmem:[#allocation3 + $0x180] sm:$0xff] }
 0x77c   :  { %17058 = vmatmul.mubr.f32.gmra.mrb[18].mxu1 %v26595_v41  ;;  %v23681_v41 = vld [vmem:[#allocation3 + $0x188] sm:$0xff] }
 0x77d   :  { %17060 = vmatprep.mubr.f32.mxu1 %v26596_v38  ;;  %26606 = vst [vmem:[#allocation113_spill] sm:$0xff] %v23681_v41  ;;  %v26607_v38 = vld [vmem:[#allocation74_spill] sm:$0xff] }
 0x780   :  { %17061 = vmatmul.mubr.f32.gmra.mrb[20].mxu1 %v26597_v16  ;;  %v26608_v16 = vld [vmem:[#allocation75_spill] sm:$0xff] }
 0x781   :  { %17063 = vmatprep.mubr.f32.mxu1 %v26598_v46  ;;  %v26609_v46 = vld [vmem:[#allocation76_spill] sm:$0xff] }
 0x784   :  { %17064 = vmatmul.mubr.f32.gmra.mrb[22].mxu1 %v26599_v21  ;;  %v26610_v21 = vld [vmem:[#allocation77_spill] sm:$0xff] }
 0x785   :  { %17066 = vmatprep.mubr.f32.mxu1 %v26600_v36  ;;  %v26611_v36 = vld [vmem:[#allocation78_spill] sm:$0xff] }
 0x788   :  { %17067 = vmatmul.mubr.f32.gmra.mrb[24].mxu1 %v26601_v61  ;;  %v26612_v61 = vld [vmem:[#allocation79_spill] sm:$0xff] }
 0x789   :  { %17069 = vmatprep.mubr.f32.mxu1 %v26602_v29  ;;  %v26613_v29 = vld [vmem:[#allocation80_spill] sm:$0xff] }
 0x78c   :  { %17070 = vmatmul.mubr.f32.gmra.mrb[26].mxu1 %v26603_v40  ;;  %v26614_v40 = vld [vmem:[#allocation81_spill] sm:$0xff] }
 0x78d   :  { %17072 = vmatprep.mubr.f32.mxu1 %v26604_v8  ;;  %v26615_v8 = vld [vmem:[#allocation82_spill] sm:$0xff] }
 0x790   :  { %17073 = vmatmul.mubr.f32.gmra.mrb[28].mxu1 %v26605_v63  ;;  %v26616_v63 = vld [vmem:[#allocation83_spill] sm:$0xff] }
 0x791   :  { %17075 = vmatprep.mubr.f32.mxu1 %v23678_v43 }
 0x794   :  { %17076 = vmatmul.mubr.f32.gmra.mrb[30].mxu1 %v23681_v41  ;;  %v26617_v41 = vld [vmem:[#allocation84_spill] sm:$0xff] }
 0x795   :  { %17078 = vmatprep.mubr.f32.mxu1 %v26607_v38  ;;  %v26618_v38 = vld [vmem:[#allocation85_spill] sm:$0xff] }
 0x798   :  { %17079 = vmatmul.mubr.f32.gmra.mrb[32].mxu1 %v26608_v16  ;;  %v26619_v16 = vld [vmem:[#allocation86_spill] sm:$0xff] }
 0x799   :  { %17081 = vmatprep.mubr.f32.mxu1 %v26609_v46  ;;  %v26620_v46 = vld [vmem:[#allocation87_spill] sm:$0xff] }
 0x79c   :  { %17082 = vmatmul.mubr.f32.gmra.mrb[34].mxu1 %v26610_v21  ;;  %v26621_v21 = vld [vmem:[#allocation88_spill] sm:$0xff] }
 0x79d   :  { %17084 = vmatprep.mubr.f32.mxu1 %v26611_v36  ;;  %v26622_v36 = vld [vmem:[#allocation89_spill] sm:$0xff] }
 0x7a0   :  { %17085 = vmatmul.mubr.f32.gmra.mrb[36].mxu1 %v26612_v61  ;;  %v26623_v61 = vld [vmem:[#allocation90_spill] sm:$0xff] }
 0x7a1   :  { %17087 = vmatprep.mubr.f32.mxu1 %v26613_v29  ;;  %v26624_v29 = vld [vmem:[#allocation91_spill] sm:$0xff] }
 0x7a4   :  { %17088 = vmatmul.mubr.f32.gmra.mrb[38].mxu1 %v26614_v40  ;;  %v26625_v40 = vld [vmem:[#allocation92_spill] sm:$0xff] }
 0x7a5   :  { %17090 = vmatprep.mubr.f32.mxu1 %v26615_v8  ;;  %v26626_v8 = vld [vmem:[#allocation93_spill] sm:$0xff] }
 0x7a8   :  { %17091 = vmatmul.mubr.f32.gmra.mrb[40].mxu1 %v26616_v63  ;;  %v26627_v63 = vld [vmem:[#allocation94_spill] sm:$0xff] }
 0x7a9   :  { %17093 = vmatprep.mubr.f32.mxu1 %v26617_v41  ;;  %v26628_v41 = vld [vmem:[#allocation95_spill] sm:$0xff] }
 0x7ac   :  { %17094 = vmatmul.mubr.f32.gmra.mrb[42].mxu1 %v26618_v38  ;;  %v26629_v38 = vld [vmem:[#allocation96_spill] sm:$0xff] }
 0x7ad   :  { %17096 = vmatprep.mubr.f32.mxu1 %v26619_v16  ;;  %v26630_v16 = vld [vmem:[#allocation97_spill] sm:$0xff] }
 0x7b0   :  { %17097 = vmatmul.mubr.f32.gmra.mrb[44].mxu1 %v26620_v46  ;;  %v26631_v46 = vld [vmem:[#allocation98_spill] sm:$0xff] }
 0x7b1   :  { %17099 = vmatprep.mubr.f32.mxu1 %v26621_v21  ;;  %v26632_v21 = vld [vmem:[#allocation99_spill] sm:$0xff] }
 0x7b4   :  { %17100 = vmatmul.mubr.f32.gmra.mrb[46].mxu1 %v26622_v36  ;;  %v26633_v36 = vld [vmem:[#allocation100_spill] sm:$0xff] }
 0x7b5   :  { %17102 = vmatprep.mubr.f32.mxu1 %v26623_v61  ;;  %v26634_v61 = vld [vmem:[#allocation101_spill] sm:$0xff] }
 0x7b8   :  { %17103 = vmatmul.mubr.f32.gmra.mrb[48].mxu1 %v26624_v29  ;;  %v26635_v29 = vld [vmem:[#allocation102_spill] sm:$0xff] }
 0x7b9   :  { %17105 = vmatprep.mubr.f32.mxu1 %v26625_v40  ;;  %v23714_v40 = vld [vmem:[#allocation3 + $0x330] sm:$0xff] }
 0x7bc   :  { %17106 = vmatmul.mubr.f32.gmra.mrb[50].mxu1 %v26626_v8  ;;  %v23717_v8 = vld [vmem:[#allocation3 + $0x338] sm:$0xff] }
 0x7bd   :  { %17108 = vmatprep.mubr.f32.mxu1 %v26627_v63  ;;  %v13896_v63 = vld [vmem:[%s25741_s2 + $0x290] sm:$0xff] }
 0x7c0   :  { %17109 = vmatmul.mubr.f32.gmra.mrb[52].mxu1 %v26628_v41  ;;  %v13897_v41 = vld [vmem:[%s25741_s2 + $0x298] sm:$0xff] }
 0x7c1   :  { %17111 = vmatprep.mubr.f32.mxu1 %v26629_v38  ;;  %v9353_v38 = vld [vmem:[#allocation3 + $0x19] sm:$0xff] }
 0x7c4   :  { %17112 = vmatmul.mubr.f32.gmra.mrb[54].mxu1 %v26630_v16  ;;  %v18218_v16 = vpack.c.bf16 %v13897_v41, %v13896_v63  ;;  %v13900_v63 = vld [vmem:[%s25741_s2 + $0x2b0] sm:$0xff]  ;;  %v13901_v41 = vld [vmem:[%s25741_s2 + $0x2b8] sm:$0xff] }
 0x7c5   :  { %17114 = vmatprep.mubr.f32.mxu1 %v26631_v46  ;;  %v13898_v46 = vld [vmem:[%s25741_s2 + $0x2a0] sm:$0xff] }
 0x7c8   :  { %17115 = vmatmul.mubr.f32.gmra.mrb[56].mxu1 %v26632_v21  ;;  %v13899_v21 = vld [vmem:[%s25741_s2 + $0x2a8] sm:$0xff] }
 0x7c9   :  { %17117 = vmatprep.mubr.f32.mxu1 %v26633_v36  ;;  %v23732_v36 = vld [vmem:[#allocation3 + $0x31] sm:$0xff] }
 0x7cc   :  { %17118 = vmatmul.mubr.f32.gmra.mrb[58].mxu1 %v26634_v61  ;;  %v18222_v61 = vpack.c.bf16 %v13899_v21, %v13898_v46  ;;  %v13902_v46 = vld [vmem:[%s25741_s2 + $0x2c0] sm:$0xff]  ;;  %v13903_v21 = vld [vmem:[%s25741_s2 + $0x2c8] sm:$0xff] }
 0x7cd   :  { %17120 = vmatprep.mubr.f32.mxu1 %v26635_v29  ;;  %v23736_v29 = vld [vmem:[#allocation3 + $0x39] sm:$0xff] }
 0x7ce   :  { %26636 = vst [vmem:[#allocation114_spill] sm:$0xff] %v23736_v29 }
 0x7d0   :  { %17121 = vmatmul.mubr.f32.gmra.mrb[60].mxu1 %v23189_v2  ;;  %v9354_v2 = vld [vmem:[#allocation3 + $0x21] sm:$0xff] }
 0x7d1   :  { %17123 = vmatprep.mubr.f32.mxu1 %v23714_v40 }
 0x7d4   :  { %17124 = vmatmul.mubr.f32.gmra.mrb[62].mxu1 %v23717_v8 }
 0x7d5   :  { %17158 = vmatprep.mubr.f32.mxu1 %v9353_v38  ;;  %v23745_v38 = vld [vmem:[#allocation3 + $0x49] sm:$0xff] }
 0x7d6   :  { %26637 = vst [vmem:[#allocation115_spill] sm:$0xff] %v23745_v38 }
 0x7d8   :  { %17159 = vmatmul.mubr.f32.vlgmr.msra.gmra.mrb[0].mxu1 %v9354_v2  ;;  %v23748_v2 = vld [vmem:[#allocation3 + $0x51] sm:$0xff] }
 0x7d9   :  { %17161 = vmatprep.mubr.f32.mxu1 %v23732_v36  ;;  %18217 = vmatpush3.bf16.msra.mxu1 %v23660_v42  ;;  %v18226_v42 = vpack.c.bf16 %v13901_v41, %v13900_v63  ;;  %26638 = vst [vmem:[#allocation116_spill] sm:$0xff] %v23748_v2  ;;  %v23760_v63 = vld [vmem:[#allocation3 + $0x69] sm:$0xff] }
 0x7da   :  { %18219 = vmatprep.subr.bf16.mxu1 %v18218_v16  ;;  %26640 = vst [vmem:[#allocation118_spill] sm:$0xff] %v23760_v63  ;;  %v13904_v41 = vld [vmem:[%s25741_s2 + $0x2d0] sm:$0xff] }
 0x7dc   :  { %17162 = vmatmul.mubr.f32.gmra.mrb[2].mxu1 %v23736_v29  ;;  %v23757_v29 = vld [vmem:[#allocation3 + $0x61] sm:$0xff] }
 0x7dd   :  { %17164 = vmatprep.mubr.f32.mxu1 %v23745_v38  ;;  %18221 = vmatpush3.bf16.msra.mxu1 %v18218_v16  ;;  %26639 = vst [vmem:[#allocation117_spill] sm:$0xff] %v23757_v29  ;;  %v18230_v16 = vpack.c.bf16 %v13903_v21, %v13902_v46  ;;  %v13905_v38 = vld [vmem:[%s25741_s2 + $0x2d8] sm:$0xff]  ;;  %v23772_v46 = vld [vmem:[#allocation3 + $0x81] sm:$0xff] }
 0x7de   :  { %18223 = vmatprep.subr.bf16.mxu1 %v18222_v61  ;;  %26642 = vst [vmem:[#allocation120_spill] sm:$0xff] %v23772_v46  ;;  %v13906_v21 = vld [vmem:[%s25741_s2 + $0x2e0] sm:$0xff] }
 0x7e0   :  { %17165 = vmatmul.mubr.f32.gmra.mrb[4].mxu1 %v23748_v2  ;;  %v23769_v2 = vld [vmem:[#allocation3 + $0x79] sm:$0xff] }
 0x7e1   :  { %17167 = vmatprep.mubr.f32.mxu1 %v23757_v29  ;;  %18225 = vmatpush3.bf16.msra.mxu1 %v18222_v61  ;;  %26641 = vst [vmem:[#allocation119_spill] sm:$0xff] %v23769_v2  ;;  %v18234_v61 = vpack.c.bf16 %v13905_v38, %v13904_v41  ;;  %v13907_v29 = vld [vmem:[%s25741_s2 + $0x2e8] sm:$0xff]  ;;  %v23784_v38 = vld [vmem:[#allocation3 + $0x99] sm:$0xff]  ;;  %v13908_v41 = vld [vmem:[%s25741_s2 + $0x2f0] sm:$0xff] }
 0x7e2   :  { %18227 = vmatprep.subr.bf16.mxu1 %v18226_v42  ;;  %26644 = vst [vmem:[#allocation122_spill] sm:$0xff] %v23784_v38 }
 0x7e4   :  { %17168 = vmatmul.mubr.f32.gmra.mrb[6].mxu1 %v23760_v63  ;;  %v23781_v63 = vld [vmem:[#allocation3 + $0x91] sm:$0xff] }
 0x7e5   :  { %17170 = vmatprep.mubr.f32.mxu1 %v23769_v2  ;;  %18229 = vmatpush3.bf16.msra.mxu1 %v18226_v42  ;;  %26643 = vst [vmem:[#allocation121_spill] sm:$0xff] %v23781_v63  ;;  %v18238_v42 = vpack.c.bf16 %v13907_v29, %v13906_v21  ;;  %v13909_v2 = vld [vmem:[%s25741_s2 + $0x2f8] sm:$0xff]  ;;  %v13910_v21 = vld [vmem:[%s25741_s2 + $0x300] sm:$0xff] }
 0x7e6   :  { %18231 = vmatprep.subr.bf16.mxu1 %v18230_v16  ;;  %v23796_v29 = vld [vmem:[#allocation3 + $0xb1] sm:$0xff] }
 0x7e7   :  { %26645 = vst [vmem:[#allocation123_spill] sm:$0xff] %v23796_v29 }
 0x7e8   :  { %17171 = vmatmul.mubr.f32.gmra.mrb[8].mxu1 %v23772_v46  ;;  %v23793_v46 = vld [vmem:[#allocation3 + $0xa9] sm:$0xff] }
 0x7e9   :  { %17173 = vmatprep.mubr.f32.mxu1 %v23781_v63  ;;  %18233 = vmatpush3.bf16.msra.mxu1 %v18230_v16  ;;  %v18242_v16 = vpack.c.bf16 %v13909_v2, %v13908_v41  ;;  %v13911_v63 = vld [vmem:[%s25741_s2 + $0x308] sm:$0xff]  ;;  %v23813_v41 = vld [vmem:[#allocation3 + $0xd9] sm:$0xff] }
 0x7ea   :  { %18235 = vmatprep.subr.bf16.mxu1 %v18234_v61  ;;  %v23810_v2 = vld [vmem:[#allocation3 + $0xc9] sm:$0xff]  ;;  %26647 = vst [vmem:[#allocation125_spill] sm:$0xff] %v23813_v41 }
 0x7ec   :  { %17174 = vmatmul.mubr.f32.gmra.mrb[10].mxu1 %v23784_v38  ;;  %v23805_v38 = vld [vmem:[#allocation3 + $0xc1] sm:$0xff] }
 0x7ed   :  { %17176 = vmatprep.mubr.f32.mxu1 %v23793_v46  ;;  %18237 = vmatpush3.bf16.msra.mxu1 %v18234_v61  ;;  %26646 = vst [vmem:[#allocation124_spill] sm:$0xff] %v23805_v38  ;;  %v23808_v61 = vpack.c.bf16 %v13911_v63, %v13910_v21  ;;  %v23823_v63 = vld [vmem:[#allocation3 + $0xf9] sm:$0xff]  ;;  %v23829_v21 = vld [vmem:[#allocation3 + $0x111] sm:$0xff] }
 0x7ee   :  { %18239 = vmatprep.subr.bf16.mxu1 %v18238_v42  ;;  %26650 = vst [vmem:[#allocation6_spill] sm:$0xff] %v23823_v63  ;;  %26652 = vst [vmem:[#allocation8_spill] sm:$0xff] %v23829_v21 }
 0x7f0   :  { %17177 = vmatmul.mubr.f32.gmra.mrb[12].mxu1 %v23796_v29  ;;  %v23817_v29 = vld [vmem:[#allocation3 + $0xe1] sm:$0xff] }
 0x7f1   :  { %17179 = vmatprep.mubr.f32.mxu1 %v23805_v38  ;;  %18241 = vmatpush3.bf16.msra.mxu1 %v18238_v42  ;;  %26648 = vst [vmem:[#allocation126_spill] sm:$0xff] %v23817_v29  ;;  %v23820_v38 = vld [vmem:[#allocation3 + $0xf1] sm:$0xff]  ;;  %v23826_v42 = vld [vmem:[#allocation3 + $0x109] sm:$0xff] }
 0x7f2   :  { %18243 = vmatprep.subr.bf16.mxu1 %v18242_v16  ;;  %26649 = vst [vmem:[#allocation4_spill] sm:$0xff] %v23820_v38  ;;  %26651 = vst [vmem:[#allocation5_spill] sm:$0xff] %v23826_v42 }
 0x7f4   :  { %17180 = vmatmul.mubr.f32.gmra.mrb[14].mxu1 %v23810_v2 }
 0x7f5   :  { %17182 = vmatprep.mubr.f32.mxu1 %v23813_v41  ;;  %18245 = vmatpush3.bf16.msra.mxu1 %v18242_v16  ;;  %v23832_v16 = vld [vmem:[#allocation3 + $0x121] sm:$0xff]  ;;  %v9386_v41 = vld [vmem:[#allocation3 + $0x1d1] sm:$0xff] }
 0x7f6   :  { %18247 = vmatprep.subr.bf16.mxu1 %v23808_v61  ;;  %26653 = vst [vmem:[#allocation7_spill] sm:$0xff] %v23832_v16 }
 0x7f8   :  { %17183 = vmatmul.mubr.f32.gmra.mrb[16].mxu1 %v23817_v29  ;;  %v23835_v29 = vld [vmem:[#allocation3 + $0x129] sm:$0xff] }
 0x7f9   :  { %17185 = vmatprep.mubr.f32.mxu1 %v23820_v38  ;;  %26654 = vst [vmem:[#allocation10_spill] sm:$0xff] %v23835_v29  ;;  %v23838_v38 = vld [vmem:[#allocation3 + $0x139] sm:$0xff] }
 0x7fa   :  { %26655 = vst [vmem:[#allocation9_spill] sm:$0xff] %v23838_v38 }
 0x7fc   :  { %17186 = vmatmul.mubr.f32.gmra.mrb[18].mxu1 %v23823_v63  ;;  %v23841_v63 = vld [vmem:[#allocation3 + $0x141] sm:$0xff] }
 0x7fd   :  { %17188 = vmatprep.mubr.f32.mxu1 %v23826_v42  ;;  %26656 = vst [vmem:[#allocation12_spill] sm:$0xff] %v23841_v63  ;;  %v23844_v42 = vld [vmem:[#allocation3 + $0x151] sm:$0xff] }
 0x7fe   :  { %26657 = vst [vmem:[#allocation11_spill] sm:$0xff] %v23844_v42 }
 0x800   :  { %17189 = vmatmul.mubr.f32.gmra.mrb[20].mxu1 %v23829_v21  ;;  %v23847_v21 = vld [vmem:[#allocation3 + $0x159] sm:$0xff] }
 0x801   :  { %17191 = vmatprep.mubr.f32.mxu1 %v23832_v16  ;;  %26658 = vst [vmem:[#allocation14_spill] sm:$0xff] %v23847_v21  ;;  %v23850_v16 = vld [vmem:[#allocation3 + $0x169] sm:$0xff] }
 0x802   :  { %26659 = vst [vmem:[#allocation13_spill] sm:$0xff] %v23850_v16 }
 0x804   :  { %17192 = vmatmul.mubr.f32.gmra.mrb[22].mxu1 %v23835_v29  ;;  %v23853_v29 = vld [vmem:[#allocation3 + $0x171] sm:$0xff] }
 0x805   :  { %17194 = vmatprep.mubr.f32.mxu1 %v23838_v38  ;;  %26660 = vst [vmem:[#allocation16_spill] sm:$0xff] %v23853_v29  ;;  %v23856_v38 = vld [vmem:[#allocation3 + $0x181] sm:$0xff] }
 0x806   :  { %26661 = vst [vmem:[#allocation15_spill] sm:$0xff] %v23856_v38 }
 0x808   :  { %17195 = vmatmul.mubr.f32.gmra.mrb[24].mxu1 %v23841_v63  ;;  %v23859_v63 = vld [vmem:[#allocation3 + $0x189] sm:$0xff] }
 0x809   :  { %17197 = vmatprep.mubr.f32.mxu1 %v23844_v42  ;;  %26662 = vst [vmem:[#allocation18_spill] sm:$0xff] %v23859_v63  ;;  %v9385_v42 = vld [vmem:[#allocation3 + $0x1c9] sm:$0xff] }
 0x80c   :  { %17198 = vmatmul.mubr.f32.gmra.mrb[26].mxu1 %v23847_v21  ;;  %v23862_v21 = vld [vmem:[#allocation3 + $0x1e1] sm:$0xff] }
 0x80d   :  { %17200 = vmatprep.mubr.f32.mxu1 %v23850_v16  ;;  %26663 = vst [vmem:[#allocation17_spill] sm:$0xff] %v23862_v21  ;;  %v23865_v16 = vld [vmem:[#allocation3 + $0x1e9] sm:$0xff] }
 0x80e   :  { %26664 = vst [vmem:[#allocation20_spill] sm:$0xff] %v23865_v16 }
 0x810   :  { %17201 = vmatmul.mubr.f32.gmra.mrb[28].mxu1 %v23853_v29  ;;  %v23868_v29 = vld [vmem:[#allocation3 + $0x1f9] sm:$0xff] }
 0x811   :  { %17203 = vmatprep.mubr.f32.mxu1 %v23856_v38  ;;  %26665 = vst [vmem:[#allocation19_spill] sm:$0xff] %v23868_v29  ;;  %v23871_v38 = vld [vmem:[#allocation3 + $0x201] sm:$0xff] }
 0x812   :  { %26666 = vst [vmem:[#allocation22_spill] sm:$0xff] %v23871_v38 }
 0x814   :  { %17204 = vmatmul.mubr.f32.gmra.mrb[30].mxu1 %v23859_v63  ;;  %v23874_v63 = vld [vmem:[#allocation3 + $0x211] sm:$0xff] }
 0x815   :  { %17206 = vmatprep.mubr.f32.mxu1 %v9385_v42  ;;  %26667 = vst [vmem:[#allocation21_spill] sm:$0xff] %v23874_v63  ;;  %v23880_v42 = vld [vmem:[#allocation3 + $0x229] sm:$0xff] }
 0x816   :  { %26669 = vst [vmem:[#allocation23_spill] sm:$0xff] %v23880_v42 }
 0x818   :  { %17207 = vmatmul.mubr.f32.gmra.mrb[32].mxu1 %v9386_v41  ;;  %v23877_v41 = vld [vmem:[#allocation3 + $0x219] sm:$0xff] }
 0x819   :  { %17209 = vmatprep.mubr.f32.mxu1 %v23862_v21  ;;  %26668 = vst [vmem:[#allocation24_spill] sm:$0xff] %v23877_v41 }
 0x81c   :  { %17210 = vmatmul.mubr.f32.gmra.mrb[34].mxu1 %v23865_v16  ;;  %v23883_v16 = vld [vmem:[#allocation3 + $0x231] sm:$0xff] }
 0x81d   :  { %17212 = vmatprep.mubr.f32.mxu1 %v23868_v29  ;;  %26670 = vst [vmem:[#allocation26_spill] sm:$0xff] %v23883_v16  ;;  %v23886_v29 = vld [vmem:[#allocation3 + $0x241] sm:$0xff] }
 0x81e   :  { %26671 = vst [vmem:[#allocation27_spill] sm:$0xff] %v23886_v29 }
 0x820   :  { %17213 = vmatmul.mubr.f32.gmra.mrb[36].mxu1 %v23871_v38  ;;  %v23889_v38 = vld [vmem:[#allocation3 + $0x249] sm:$0xff] }
 0x821   :  { %17215 = vmatprep.mubr.f32.mxu1 %v23874_v63  ;;  %26672 = vst [vmem:[#allocation28_spill] sm:$0xff] %v23889_v38  ;;  %v23892_v63 = vld [vmem:[#allocation3 + $0x259] sm:$0xff] }
 0x822   :  { %26673 = vst [vmem:[#allocation29_spill] sm:$0xff] %v23892_v63 }
 0x824   :  { %17216 = vmatmul.mubr.f32.gmra.mrb[38].mxu1 %v23877_v41  ;;  %v23895_v41 = vld [vmem:[#allocation3 + $0x261] sm:$0xff] }
 0x825   :  { %17218 = vmatprep.mubr.f32.mxu1 %v23880_v42  ;;  %26674 = vst [vmem:[#allocation30_spill] sm:$0xff] %v23895_v41  ;;  %v23898_v42 = vld [vmem:[#allocation3 + $0x271] sm:$0xff] }
 0x826   :  { %26675 = vst [vmem:[#allocation31_spill] sm:$0xff] %v23898_v42 }
 0x828   :  { %17219 = vmatmul.mubr.f32.gmra.mrb[40].mxu1 %v23883_v16  ;;  %v23901_v16 = vld [vmem:[#allocation3 + $0x279] sm:$0xff] }
 0x829   :  { %17221 = vmatprep.mubr.f32.mxu1 %v23886_v29  ;;  %26676 = vst [vmem:[#allocation42_spill] sm:$0xff] %v23901_v16  ;;  %v23904_v29 = vld [vmem:[#allocation3 + $0x289] sm:$0xff] }
 0x82a   :  { %26677 = vst [vmem:[#allocation43_spill] sm:$0xff] %v23904_v29 }
 0x82c   :  { %17222 = vmatmul.mubr.f32.gmra.mrb[42].mxu1 %v23889_v38  ;;  %v23907_v38 = vld [vmem:[#allocation3 + $0x291] sm:$0xff] }
 0x82d   :  { %17224 = vmatprep.mubr.f32.mxu1 %v23892_v63  ;;  %26678 = vst [vmem:[#allocation44_spill] sm:$0xff] %v23907_v38  ;;  %v23910_v63 = vld [vmem:[#allocation3 + $0x2a1] sm:$0xff] }
 0x82e   :  { %26679 = vst [vmem:[#allocation45_spill] sm:$0xff] %v23910_v63 }
 0x830   :  { %17225 = vmatmul.mubr.f32.gmra.mrb[44].mxu1 %v23895_v41  ;;  %v23913_v41 = vld [vmem:[#allocation3 + $0x2a9] sm:$0xff] }
 0x831   :  { %17227 = vmatprep.mubr.f32.mxu1 %v23898_v42  ;;  %26680 = vst [vmem:[#allocation46_spill] sm:$0xff] %v23913_v41  ;;  %v23916_v42 = vld [vmem:[#allocation3 + $0x2b9] sm:$0xff] }
 0x832   :  { %26681 = vst [vmem:[#allocation32_spill] sm:$0xff] %v23916_v42 }
 0x834   :  { %17228 = vmatmul.mubr.f32.gmra.mrb[46].mxu1 %v23901_v16  ;;  %v23919_v16 = vld [vmem:[#allocation3 + $0x2c1] sm:$0xff] }
 0x835   :  { %17230 = vmatprep.mubr.f32.mxu1 %v23904_v29  ;;  %26682 = vst [vmem:[#allocation33_spill] sm:$0xff] %v23919_v16  ;;  %v23922_v29 = vld [vmem:[#allocation3 + $0x2d1] sm:$0xff] }
 0x836   :  { %26683 = vst [vmem:[#allocation34_spill] sm:$0xff] %v23922_v29 }
 0x838   :  { %17231 = vmatmul.mubr.f32.gmra.mrb[48].mxu1 %v23907_v38  ;;  %v23925_v38 = vld [vmem:[#allocation3 + $0x2d9] sm:$0xff] }
 0x839   :  { %17233 = vmatprep.mubr.f32.mxu1 %v23910_v63  ;;  %26684 = vst [vmem:[#allocation35_spill] sm:$0xff] %v23925_v38  ;;  %v23928_v63 = vld [vmem:[#allocation3 + $0x2e9] sm:$0xff] }
 0x83a   :  { %26685 = vst [vmem:[#allocation36_spill] sm:$0xff] %v23928_v63 }
 0x83c   :  { %17234 = vmatmul.mubr.f32.gmra.mrb[50].mxu1 %v23913_v41  ;;  %v23931_v41 = vld [vmem:[#allocation3 + $0x2f1] sm:$0xff] }
 0x83d   :  { %17236 = vmatprep.mubr.f32.mxu1 %v23916_v42  ;;  %26686 = vst [vmem:[#allocation37_spill] sm:$0xff] %v23931_v41  ;;  %v23934_v42 = vld [vmem:[#allocation3 + $0x301] sm:$0xff] }
 0x83e   :  { %26687 = vst [vmem:[#allocation38_spill] sm:$0xff] %v23934_v42 }
 0x840   :  { %17237 = vmatmul.mubr.f32.gmra.mrb[52].mxu1 %v23919_v16  ;;  %v23937_v16 = vld [vmem:[#allocation3 + $0x309] sm:$0xff] }
 0x841   :  { %17239 = vmatprep.mubr.f32.mxu1 %v23922_v29  ;;  %26688 = vst [vmem:[#allocation39_spill] sm:$0xff] %v23937_v16  ;;  %v23940_v29 = vld [vmem:[#allocation3 + $0x319] sm:$0xff] }
 0x842   :  { %26689 = vst [vmem:[#allocation40_spill] sm:$0xff] %v23940_v29 }
 0x844   :  { %17240 = vmatmul.mubr.f32.gmra.mrb[54].mxu1 %v23925_v38  ;;  %v23943_v38 = vld [vmem:[#allocation3 + $0x321] sm:$0xff] }
 0x845   :  { %17242 = vmatprep.mubr.f32.mxu1 %v23928_v63  ;;  %26690 = vst [vmem:[#allocation41_spill] sm:$0xff] %v23943_v38  ;;  %v23946_v63 = vld [vmem:[#allocation3 + $0x331] sm:$0xff] }
 0x846   :  { %26691 = vst [vmem:[#allocation47_spill] sm:$0xff] %v23946_v63 }
 0x848   :  { %17243 = vmatmul.mubr.f32.gmra.mrb[56].mxu1 %v23931_v41  ;;  %v23949_v41 = vld [vmem:[#allocation3 + $0x339] sm:$0xff] }
 0x849   :  { %17245 = vmatprep.mubr.f32.mxu1 %v23934_v42  ;;  %v13912_v42 = vld [vmem:[%s25741_s2 + $0x310] sm:$0xff] }
 0x84c   :  { %17246 = vmatmul.mubr.f32.gmra.mrb[58].mxu1 %v23937_v16  ;;  %v13913_v16 = vld [vmem:[%s25741_s2 + $0x318] sm:$0xff] }
 0x84d   :  { %17248 = vmatprep.mubr.f32.mxu1 %v23940_v29  ;;  %v18250_v29 = vpack.c.bf16 %v13913_v16, %v13912_v42  ;;  %v13917_v16 = vld [vmem:[%s25741_s2 + $0x338] sm:$0xff] }
 0x84e   :  { %v10679_v42 = vld [vmem:[#allocation3 + $0x98] sm:$0xff] }
 0x850   :  { %17249 = vmatmul.mubr.f32.gmra.mrb[60].mxu1 %v23943_v38  ;;  %v13914_v38 = vld [vmem:[%s25741_s2 + $0x320] sm:$0xff] }
 0x851   :  { %17251 = vmatprep.mubr.f32.mxu1 %v23946_v63  ;;  %v13915_v63 = vld [vmem:[%s25741_s2 + $0x328] sm:$0xff] }
 0x852   :  { %v18254_v21 = vpack.c.bf16 %v13915_v63, %v13914_v38  ;;  %v13919_v38 = vld [vmem:[%s25741_s2 + $0x348] sm:$0xff]  ;;  %v13925_v63 = vld [vmem:[%s25741_s2 + $0x378] sm:$0xff] }
 0x854   :  { %17252 = vmatmul.mubr.f32.gmra.mrb[62].mxu1 %v23949_v41 }
 0x855   :  { %17286 = vmatprep.mubr.f32.mxu1 %v23376_v15  ;;  %v13916_v15 = vld [vmem:[%s25741_s2 + $0x330] sm:$0xff] }
 0x858   :  { %17287 = vmatmul.mubr.f32.vlgmr.msra.gmra.mrb[0].mxu1 %v23380_v18  ;;  %v18258_v18 = vpack.c.bf16 %v13917_v16, %v13916_v15  ;;  %v13938_v15 = vld [vmem:[%s25741_s2 + $0x3e0] sm:$0xff]  ;;  %v13939_v16 = vld [vmem:[%s25741_s2 + $0x3e8] sm:$0xff] }
 0x859   :  { %17289 = vmatprep.mubr.f32.mxu1 %v23389_v25  ;;  %18249 = vmatpush3.bf16.msra.mxu1 %v23808_v61  ;;  %v13918_v25 = vld [vmem:[%s25741_s2 + $0x340] sm:$0xff]  ;;  %v13923_v61 = vld [vmem:[%s25741_s2 + $0x368] sm:$0xff] }
 0x85a   :  { %18251 = vmatprep.subr.bf16.mxu1 %v18250_v29 }
 0x85c   :  { %17290 = vmatmul.mubr.f32.gmra.mrb[2].mxu1 %v23392_v37  ;;  %v18262_v37 = vpack.c.bf16 %v13919_v38, %v13918_v25  ;;  %v18302_v25 = vpack.c.bf16 %v13939_v16, %v13938_v15  ;;  %v10681_v38 = vld [vmem:[#allocation3 + $0xb0] sm:$0xff]  ;;  %v10727_v15 = vld [vmem:[#allocation3 + $0x308] sm:$0xff]  ;;  %v10728_v16 = vld [vmem:[#allocation3 + $0x318] sm:$0xff] }
 0x85d   :  { %17292 = vmatprep.mubr.f32.mxu1 %v23401_v5  ;;  %18253 = vmatpush3.bf16.msra.mxu1 %v18250_v29  ;;  %v13920_v5 = vld [vmem:[%s25741_s2 + $0x350] sm:$0xff]  ;;  %v13921_v29 = vld [vmem:[%s25741_s2 + $0x358] sm:$0xff] }
 0x85e   :  { %18255 = vmatprep.subr.bf16.mxu1 %v18254_v21 }
 0x860   :  { %17293 = vmatmul.mubr.f32.gmra.mrb[4].mxu1 %v23404_v10  ;;  %v18266_v10 = vpack.c.bf16 %v13921_v29, %v13920_v5  ;;  %v13941_v5 = vld [vmem:[%s25741_s2 + $0x3f8] sm:$0xff]  ;;  %v10682_v29 = vld [vmem:[#allocation3 + $0xc0] sm:$0xff] }
 0x861   :  { %17295 = vmatprep.mubr.f32.mxu1 %v23413_v58  ;;  %18257 = vmatpush3.bf16.msra.mxu1 %v18254_v21  ;;  %v13922_v58 = vld [vmem:[%s25741_s2 + $0x360] sm:$0xff]  ;;  %v13927_v21 = vld [vmem:[%s25741_s2 + $0x388] sm:$0xff] }
 0x862   :  { %18259 = vmatprep.subr.bf16.mxu1 %v18258_v18 }
 0x864   :  { %17296 = vmatmul.mubr.f32.gmra.mrb[6].mxu1 %v23416_v60  ;;  %v18270_v60 = vpack.c.bf16 %v13923_v61, %v13922_v58  ;;  %v10683_v58 = vld [vmem:[#allocation3 + $0xc8] sm:$0xff]  ;;  %v13942_v61 = vld [vmem:[%s25741_s2 + $0x400] sm:$0xff] }
 0x865   :  { %17298 = vmatprep.mubr.f32.mxu1 %v23425_v24  ;;  %18261 = vmatpush3.bf16.msra.mxu1 %v18258_v18  ;;  %v13924_v24 = vld [vmem:[%s25741_s2 + $0x370] sm:$0xff]  ;;  %v10680_v18 = vld [vmem:[#allocation3 + $0xa8] sm:$0xff] }
 0x866   :  { %18263 = vmatprep.subr.bf16.mxu1 %v18262_v37 }
 0x868   :  { %17299 = vmatmul.mubr.f32.gmra.mrb[8].mxu1 %v23428_v39  ;;  %v18274_v39 = vpack.c.bf16 %v13925_v63, %v13924_v24  ;;  %v10684_v24 = vld [vmem:[#allocation3 + $0xd8] sm:$0xff] }
 0x869   :  { %17301 = vmatprep.mubr.f32.mxu1 %v23437_v20  ;;  %18265 = vmatpush3.bf16.msra.mxu1 %v18262_v37  ;;  %v13926_v20 = vld [vmem:[%s25741_s2 + $0x380] sm:$0xff]  ;;  %v13940_v37 = vld [vmem:[%s25741_s2 + $0x3f0] sm:$0xff] }
 0x86a   :  { %18267 = vmatprep.subr.bf16.mxu1 %v18266_v10 }
 0x86c   :  { %17302 = vmatmul.mubr.f32.gmra.mrb[10].mxu1 %v23440_v59  ;;  %v24016_v59 = vpack.c.bf16 %v13927_v21, %v13926_v20  ;;  %v10686_v20 = vld [vmem:[#allocation3 + $0xf0] sm:$0xff]  ;;  %v10687_v21 = vld [vmem:[#allocation3 + $0xf8] sm:$0xff] }
 0x86d   :  { %17304 = vmatprep.mubr.f32.mxu1 %v23449_v23  ;;  %18269 = vmatpush3.bf16.msra.mxu1 %v18266_v10  ;;  %v24034_v23 = vld [vmem:[#allocation3 + $0x182] sm:$0xff]  ;;  %v18306_v10 = vpack.c.bf16 %v13941_v5, %v13940_v37  ;;  %v26703_v5 = vld [vmem:[#allocation114_spill] sm:$0xff] }
 0x86e   :  { %18271 = vmatprep.subr.bf16.mxu1 %v18270_v60 }
 0x870   :  { %17305 = vmatmul.mubr.f32.gmra.mrb[12].mxu1 %v23454_v47  ;;  %v24037_v47 = vld [vmem:[#allocation3 + $0x18a] sm:$0xff] }
 0x871   :  { %17307 = vmatprep.mubr.f32.mxu1 %v23457_v3  ;;  %18273 = vmatpush3.bf16.msra.mxu1 %v18270_v60  ;;  %v26692_v3 = vld [vmem:[#allocation103_spill] sm:$0xff]  ;;  %v13943_v60 = vld [vmem:[%s25741_s2 + $0x408] sm:$0xff] }
 0x872   :  { %18275 = vmatprep.subr.bf16.mxu1 %v18274_v39  ;;  %v24125_v63 = vpack.c.bf16 %v13943_v60, %v13942_v61  ;;  %v26705_v61 = vld [vmem:[#allocation116_spill] sm:$0xff]  ;;  %v26706_v60 = vld [vmem:[#allocation117_spill] sm:$0xff] }
 0x874   :  { %17308 = vmatmul.mubr.f32.gmra.mrb[14].mxu1 %v23461_v55  ;;  %v26693_v55 = vld [vmem:[#allocation104_spill] sm:$0xff] }
 0x875   :  { %17310 = vmatprep.mubr.f32.mxu1 %v23464_v9  ;;  %18277 = vmatpush3.bf16.msra.mxu1 %v18274_v39  ;;  %v26694_v9 = vld [vmem:[#allocation105_spill] sm:$0xff]  ;;  %v10685_v39 = vld [vmem:[#allocation3 + $0xe0] sm:$0xff] }
 0x876   :  { %18279 = vmatprep.subr.bf16.mxu1 %v24016_v59 }
 0x878   :  { %17311 = vmatmul.mubr.f32.gmra.mrb[16].mxu1 %v23467_v54  ;;  %v26695_v54 = vld [vmem:[#allocation106_spill] sm:$0xff] }
 0x879   :  { %17313 = vmatprep.mubr.f32.mxu1 %v23470_v12  ;;  %v26696_v12 = vld [vmem:[#allocation107_spill] sm:$0xff] }
 0x87c   :  { %17314 = vmatmul.mubr.f32.gmra.mrb[18].mxu1 %v23473_v57  ;;  %v26697_v57 = vld [vmem:[#allocation108_spill] sm:$0xff] }
 0x87d   :  { %17316 = vmatprep.mubr.f32.mxu1 %v23476_v53  ;;  %v26698_v53 = vld [vmem:[#allocation109_spill] sm:$0xff] }
 0x880   :  { %17317 = vmatmul.mubr.f32.gmra.mrb[20].mxu1 %v23479_v17  ;;  %v26699_v17 = vld [vmem:[#allocation110_spill] sm:$0xff] }
 0x881   :  { %17319 = vmatprep.mubr.f32.mxu1 %v23482_v31  ;;  %v26700_v31 = vld [vmem:[#allocation111_spill] sm:$0xff] }
 0x884   :  { %17320 = vmatmul.mubr.f32.gmra.mrb[22].mxu1 %v23485_v22  ;;  %v26701_v22 = vld [vmem:[#allocation112_spill] sm:$0xff] }
 0x885   :  { %17322 = vmatprep.mubr.f32.mxu1 %v23488_v45  ;;  %v24070_v45 = vld [vmem:[#allocation3 + $0x332] sm:$0xff] }
 0x888   :  { %17323 = vmatmul.mubr.f32.gmra.mrb[24].mxu1 %v23491_v48  ;;  %v24073_v48 = vld [vmem:[#allocation3 + $0x33a] sm:$0xff] }
 0x889   :  { %17325 = vmatprep.mubr.f32.mxu1 %v23494_v6  ;;  %v13928_v6 = vld [vmem:[%s25741_s2 + $0x390] sm:$0xff] }
 0x88c   :  { %17326 = vmatmul.mubr.f32.gmra.mrb[26].mxu1 %v23497_v49  ;;  %v13929_v49 = vld [vmem:[%s25741_s2 + $0x398] sm:$0xff] }
 0x88d   :  { %17328 = vmatprep.mubr.f32.mxu1 %v23500_v14  ;;  %v10670_v14 = vld [vmem:[#allocation3 + $0x30] sm:$0xff] }
 0x890   :  { %17329 = vmatmul.mubr.f32.gmra.mrb[28].mxu1 %v23503_v50  ;;  %v18282_v50 = vpack.c.bf16 %v13929_v49, %v13928_v6  ;;  %v24130_v6 = vld [vmem:[#allocation3] sm:$0xff] }
 0x891   :  { %17331 = vmatprep.mubr.f32.mxu1 %v24034_v23  ;;  %v10702_v49 = vld [vmem:[#allocation3 + $0x1e0] sm:$0xff] }
 0x894   :  { %17332 = vmatmul.mubr.f32.gmra.mrb[30].mxu1 %v24037_v47 }
 0x895   :  { %17334 = vmatprep.mubr.f32.mxu1 %v23506_v62  ;;  %v10671_v62 = vld [vmem:[#allocation3 + $0x38] sm:$0xff] }
 0x898   :  { %17335 = vmatmul.mubr.f32.gmra.mrb[32].mxu1 %v23509_v30  ;;  %v13930_v30 = vld [vmem:[%s25741_s2 + $0x3a0] sm:$0xff] }
 0x899   :  { %17337 = vmatprep.mubr.f32.mxu1 %v23512_v19  ;;  %v13931_v19 = vld [vmem:[%s25741_s2 + $0x3a8] sm:$0xff] }
 0x89c   :  { %17338 = vmatmul.mubr.f32.gmra.mrb[34].mxu1 %v23515_v11  ;;  %v10672_v11 = vld [vmem:[#allocation3 + $0x48] sm:$0xff] }
 0x89d   :  { %17340 = vmatprep.mubr.f32.mxu1 %v23518_v52  ;;  %v18286_v52 = vpack.c.bf16 %v13931_v19, %v13930_v30  ;;  %v10706_v30 = vld [vmem:[#allocation3 + $0x210] sm:$0xff]  ;;  %v10707_v19 = vld [vmem:[#allocation3 + $0x218] sm:$0xff] }
 0x8a0   :  { %17341 = vmatmul.mubr.f32.gmra.mrb[36].mxu1 %v23521_v32  ;;  %v10673_v32 = vld [vmem:[#allocation3 + $0x50] sm:$0xff] }
 0x8a1   :  { %17343 = vmatprep.mubr.f32.mxu1 %v23524_v13  ;;  %v13932_v13 = vld [vmem:[%s25741_s2 + $0x3b0] sm:$0xff] }
 0x8a4   :  { %17344 = vmatmul.mubr.f32.gmra.mrb[38].mxu1 %v23527_v44  ;;  %v13933_v44 = vld [vmem:[%s25741_s2 + $0x3b8] sm:$0xff] }
 0x8a5   :  { %17346 = vmatprep.mubr.f32.mxu1 %v23530_v26  ;;  %v10674_v26 = vld [vmem:[#allocation3 + $0x60] sm:$0xff] }
 0x8a8   :  { %17347 = vmatmul.mubr.f32.gmra.mrb[40].mxu1 %v23533_v56  ;;  %v18290_v56 = vpack.c.bf16 %v13933_v44, %v13932_v13  ;;  %v10712_v13 = vld [vmem:[#allocation3 + $0x258] sm:$0xff]  ;;  %v10713_v44 = vld [vmem:[#allocation3 + $0x260] sm:$0xff] }
 0x8a9   :  { %17349 = vmatprep.mubr.f32.mxu1 %v23536_v1  ;;  %v10675_v1 = vld [vmem:[#allocation3 + $0x68] sm:$0xff] }
 0x8ac   :  { %17350 = vmatmul.mubr.f32.gmra.mrb[42].mxu1 %v23539_v27  ;;  %v13934_v27 = vld [vmem:[%s25741_s2 + $0x3c0] sm:$0xff] }
 0x8ad   :  { %17352 = vmatprep.mubr.f32.mxu1 %v23542_v0  ;;  %v13935_v0 = vld [vmem:[%s25741_s2 + $0x3c8] sm:$0xff] }
 0x8b0   :  { %17353 = vmatmul.mubr.f32.gmra.mrb[44].mxu1 %v23545_v33  ;;  %v10676_v33 = vld [vmem:[#allocation3 + $0x78] sm:$0xff] }
 0x8b1   :  { %17355 = vmatprep.mubr.f32.mxu1 %v23548_v7  ;;  %v18294_v7 = vpack.c.bf16 %v13935_v0, %v13934_v27  ;;  %v10717_v27 = vld [vmem:[#allocation3 + $0x290] sm:$0xff]  ;;  %v10718_v0 = vld [vmem:[#allocation3 + $0x2a0] sm:$0xff] }
 0x8b4   :  { %17356 = vmatmul.mubr.f32.gmra.mrb[46].mxu1 %v23551_v34  ;;  %v10677_v34 = vld [vmem:[#allocation3 + $0x80] sm:$0xff] }
 0x8b5   :  { %17358 = vmatprep.mubr.f32.mxu1 %v23554_v35  ;;  %v13936_v35 = vld [vmem:[%s25741_s2 + $0x3d0] sm:$0xff] }
 0x8b8   :  { %17359 = vmatmul.mubr.f32.gmra.mrb[48].mxu1 %v23557_v51  ;;  %v13937_v51 = vld [vmem:[%s25741_s2 + $0x3d8] sm:$0xff] }
 0x8b9   :  { %17361 = vmatprep.mubr.f32.mxu1 %v23560_v4  ;;  %v10678_v4 = vld [vmem:[#allocation3 + $0x90] sm:$0xff] }
 0x8bc   :  { %17362 = vmatmul.mubr.f32.gmra.mrb[50].mxu1 %v26692_v3  ;;  %v10689_v3 = vld [vmem:[#allocation3 + $0x110] sm:$0xff] }
 0x8bd   :  { %17364 = vmatprep.mubr.f32.mxu1 %v26693_v55  ;;  %v10690_v55 = vld [vmem:[#allocation3 + $0x120] sm:$0xff] }
 0x8c0   :  { %17365 = vmatmul.mubr.f32.gmra.mrb[52].mxu1 %v26694_v9  ;;  %v10691_v9 = vld [vmem:[#allocation3 + $0x128] sm:$0xff] }
 0x8c1   :  { %17367 = vmatprep.mubr.f32.mxu1 %v26695_v54  ;;  %v10692_v54 = vld [vmem:[#allocation3 + $0x138] sm:$0xff] }
 0x8c4   :  { %17368 = vmatmul.mubr.f32.gmra.mrb[54].mxu1 %v26696_v12  ;;  %v10693_v12 = vld [vmem:[#allocation3 + $0x140] sm:$0xff] }
 0x8c5   :  { %17370 = vmatprep.mubr.f32.mxu1 %v26697_v57  ;;  %v10694_v57 = vld [vmem:[#allocation3 + $0x150] sm:$0xff] }
 0x8c8   :  { %17371 = vmatmul.mubr.f32.gmra.mrb[56].mxu1 %v26698_v53  ;;  %v10695_v53 = vld [vmem:[#allocation3 + $0x158] sm:$0xff] }
 0x8c9   :  { %17373 = vmatprep.mubr.f32.mxu1 %v26699_v17  ;;  %v10696_v17 = vld [vmem:[#allocation3 + $0x168] sm:$0xff] }
 0x8cc   :  { %17374 = vmatmul.mubr.f32.gmra.mrb[58].mxu1 %v26700_v31  ;;  %v10697_v31 = vld [vmem:[#allocation3 + $0x170] sm:$0xff] }
 0x8cd   :  { %17376 = vmatprep.mubr.f32.mxu1 %v26701_v22  ;;  %v26702_v22 = vld [vmem:[#allocation113_spill] sm:$0xff] }
 0x8d0   :  { %17377 = vmatmul.mubr.f32.gmra.mrb[60].mxu1 %v23593_v28  ;;  %v18298_v28 = vpack.c.bf16 %v13937_v51, %v13936_v35  ;;  %v10722_v35 = vld [vmem:[#allocation3 + $0x2d0] sm:$0xff]  ;;  %v10723_v51 = vld [vmem:[#allocation3 + $0x2d8] sm:$0xff] }
 0x8d1   :  { %17379 = vmatprep.mubr.f32.mxu1 %v24070_v45 }
 0x8d4   :  { %17380 = vmatmul.mubr.f32.gmra.mrb[62].mxu1 %v24073_v48 }
 0x8d5   :  { %17414 = vmatprep.mubr.f32.mxu1 %v10670_v14  ;;  %v10703_v14 = vld [vmem:[#allocation3 + $0x1e8] sm:$0xff] }
 0x8d8   :  { %17415 = vmatmul.mubr.f32.vlgmr.msra.gmra.mrb[0].mxu1 %v10671_v62  ;;  %v10705_v62 = vld [vmem:[#allocation3 + $0x200] sm:$0xff] }
 0x8d9   :  { %17417 = vmatprep.mubr.f32.mxu1 %v10672_v11  ;;  %18281 = vmatpush3.bf16.msra.mxu1 %v24016_v59  ;;  %v10688_v59 = vld [vmem:[#allocation3 + $0x108] sm:$0xff]  ;;  %v10709_v11 = vld [vmem:[#allocation3 + $0x230] sm:$0xff] }
 0x8da   :  { %18283 = vmatprep.subr.bf16.mxu1 %v18282_v50 }
 0x8dc   :  { %17418 = vmatmul.mubr.f32.gmra.mrb[2].mxu1 %v10673_v32  ;;  %v10711_v32 = vld [vmem:[#allocation3 + $0x248] sm:$0xff] }
 0x8dd   :  { %17420 = vmatprep.mubr.f32.mxu1 %v10674_v26  ;;  %18285 = vmatpush3.bf16.msra.mxu1 %v18282_v50  ;;  %v10704_v50 = vld [vmem:[#allocation3 + $0x1f8] sm:$0xff]  ;;  %v10714_v26 = vld [vmem:[#allocation3 + $0x270] sm:$0xff] }
 0x8de   :  { %18287 = vmatprep.subr.bf16.mxu1 %v18286_v52 }
 0x8e0   :  { %17421 = vmatmul.mubr.f32.gmra.mrb[4].mxu1 %v10675_v1  ;;  %v10716_v1 = vld [vmem:[#allocation3 + $0x288] sm:$0xff] }
 0x8e1   :  { %17423 = vmatprep.mubr.f32.mxu1 %v10676_v33  ;;  %18289 = vmatpush3.bf16.msra.mxu1 %v18286_v52  ;;  %v10710_v52 = vld [vmem:[#allocation3 + $0x240] sm:$0xff]  ;;  %v10719_v33 = vld [vmem:[#allocation3 + $0x2a8] sm:$0xff] }
 0x8e2   :  { %18291 = vmatprep.subr.bf16.mxu1 %v18290_v56 }
 0x8e4   :  { %17424 = vmatmul.mubr.f32.gmra.mrb[6].mxu1 %v10677_v34  ;;  %v10721_v34 = vld [vmem:[#allocation3 + $0x2c0] sm:$0xff] }
 0x8e5   :  { %17426 = vmatprep.mubr.f32.mxu1 %v10678_v4  ;;  %18293 = vmatpush3.bf16.msra.mxu1 %v18290_v56  ;;  %v10715_v56 = vld [vmem:[#allocation3 + $0x278] sm:$0xff]  ;;  %v10724_v4 = vld [vmem:[#allocation3 + $0x2e8] sm:$0xff] }
 0x8e6   :  { %18295 = vmatprep.subr.bf16.mxu1 %v18294_v7 }
 0x8e8   :  { %17427 = vmatmul.mubr.f32.gmra.mrb[8].mxu1 %v10679_v42  ;;  %v10726_v42 = vld [vmem:[#allocation3 + $0x300] sm:$0xff] }
 0x8e9   :  { %17429 = vmatprep.mubr.f32.mxu1 %v10680_v18  ;;  %18297 = vmatpush3.bf16.msra.mxu1 %v18294_v7  ;;  %v10720_v7 = vld [vmem:[#allocation3 + $0x2b8] sm:$0xff]  ;;  %v10729_v18 = vld [vmem:[#allocation3 + $0x320] sm:$0xff] }
 0x8ea   :  { %18299 = vmatprep.subr.bf16.mxu1 %v18298_v28 }
 0x8ec   :  { %17430 = vmatmul.mubr.f32.gmra.mrb[10].mxu1 %v10681_v38  ;;  %v13945_v38 = vld [vmem:[%s25741_s2 + $0x418] sm:$0xff] }
 0x8ed   :  { %17432 = vmatprep.mubr.f32.mxu1 %v10682_v29  ;;  %18301 = vmatpush3.bf16.msra.mxu1 %v18298_v28  ;;  %v10725_v28 = vld [vmem:[#allocation3 + $0x2f0] sm:$0xff]  ;;  %v26704_v29 = vld [vmem:[#allocation115_spill] sm:$0xff] }
 0x8ee   :  { %18303 = vmatprep.subr.bf16.mxu1 %v18302_v25 }
 0x8f0   :  { %17433 = vmatmul.mubr.f32.gmra.mrb[12].mxu1 %v10683_v58  ;;  %v13949_v58 = vld [vmem:[%s25741_s2 + $0x438] sm:$0xff] }
 0x8f1   :  { %17435 = vmatprep.mubr.f32.mxu1 %v10684_v24  ;;  %18305 = vmatpush3.bf16.msra.mxu1 %v18302_v25  ;;  %v13944_v25 = vld [vmem:[%s25741_s2 + $0x410] sm:$0xff] }
 0x8f2   :  { %18307 = vmatprep.subr.bf16.mxu1 %v18306_v10  ;;  %v18314_v37 = vpack.c.bf16 %v13945_v38, %v13944_v25  ;;  %v26739_v25 = vld [vmem:[#allocation28_spill] sm:$0xff]  ;;  %v26740_v38 = vld [vmem:[#allocation29_spill] sm:$0xff] }
 0x8f4   :  { %17436 = vmatmul.mubr.f32.gmra.mrb[14].mxu1 %v10685_v39  ;;  %v13951_v39 = vld [vmem:[%s25741_s2 + $0x448] sm:$0xff] }
 0x8f5   :  { %17438 = vmatprep.mubr.f32.mxu1 %v10686_v20  ;;  %18309 = vmatpush3.bf16.msra.mxu1 %v18306_v10  ;;  %v26707_v20 = vld [vmem:[#allocation118_spill] sm:$0xff] }
 0x8f6   :  { %18311 = vmatprep.subr.bf16.mxu1 %v24125_v63 }
 0x8f8   :  { %17439 = vmatmul.mubr.f32.gmra.mrb[16].mxu1 %v10687_v21  ;;  %v26708_v21 = vld [vmem:[#allocation119_spill] sm:$0xff] }
 0x8f9   :  { %17441 = vmatprep.mubr.f32.mxu1 %v10688_v59 }
 0x8fc   :  { %17442 = vmatmul.mubr.f32.gmra.mrb[18].mxu1 %v10689_v3  ;;  %v13952_v3 = vld [vmem:[%s25741_s2 + $0x450] sm:$0xff] }
 0x8fd   :  { %17444 = vmatprep.mubr.f32.mxu1 %v10690_v55  ;;  %v13953_v55 = vld [vmem:[%s25741_s2 + $0x458] sm:$0xff] }
 0x900   :  { %17445 = vmatmul.mubr.f32.gmra.mrb[20].mxu1 %v10691_v9  ;;  %v26709_v9 = vld [vmem:[#allocation120_spill] sm:$0xff] }
 0x901   :  { %17447 = vmatprep.mubr.f32.mxu1 %v10692_v54  ;;  %v26710_v54 = vld [vmem:[#allocation121_spill] sm:$0xff] }
 0x904   :  { %17448 = vmatmul.mubr.f32.gmra.mrb[22].mxu1 %v10693_v12  ;;  %v18330_v12 = vpack.c.bf16 %v13953_v55, %v13952_v3  ;;  %v26757_v3 = vld [vmem:[#allocation41_spill] sm:$0xff]  ;;  %v26758_v55 = vld [vmem:[#allocation47_spill] sm:$0xff] }
 0x905   :  { %17450 = vmatprep.mubr.f32.mxu1 %v10694_v57  ;;  %v13954_v57 = vld [vmem:[%s25741_s2 + $0x460] sm:$0xff] }
 0x908   :  { %17451 = vmatmul.mubr.f32.gmra.mrb[24].mxu1 %v10695_v53  ;;  %v13955_v53 = vld [vmem:[%s25741_s2 + $0x468] sm:$0xff] }
 0x909   :  { %17453 = vmatprep.mubr.f32.mxu1 %v10696_v17  ;;  %v26711_v17 = vld [vmem:[#allocation122_spill] sm:$0xff] }
 0x90c   :  { %17454 = vmatmul.mubr.f32.gmra.mrb[26].mxu1 %v10697_v31  ;;  %v18334_v31 = vpack.c.bf16 %v13955_v53, %v13954_v57  ;;  %v11987_v57 = vld [vmem:[#allocation3 + $0x3a] sm:$0xff]  ;;  %v11988_v53 = vld [vmem:[#allocation3 + $0x4a] sm:$0xff] }
 0x90d   :  { %17456 = vmatprep.mubr.f32.mxu1 %v23678_v43  ;;  %v10708_v43 = vld [vmem:[#allocation3 + $0x228] sm:$0xff] }
 0x910   :  { %17457 = vmatmul.mubr.f32.gmra.mrb[28].mxu1 %v26702_v22  ;;  %v13956_v22 = vld [vmem:[%s25741_s2 + $0x470] sm:$0xff] }
 0x911   :  { %17459 = vmatprep.mubr.f32.mxu1 %v24130_v6 }
 0x914   :  { %17460 = vmatmul.mubr.f32.gmra.mrb[30].mxu1 %v24130_v6 }
 0x915   :  { %17462 = vmatprep.mubr.f32.mxu1 %v10702_v49  ;;  %v26712_v49 = vld [vmem:[#allocation123_spill] sm:$0xff] }
 0x918   :  { %17463 = vmatmul.mubr.f32.gmra.mrb[32].mxu1 %v10703_v14  ;;  %v26713_v14 = vld [vmem:[#allocation124_spill] sm:$0xff] }
 0x919   :  { %17465 = vmatprep.mubr.f32.mxu1 %v10704_v50 }
 0x91c   :  { %17466 = vmatmul.mubr.f32.gmra.mrb[34].mxu1 %v10705_v62  ;;  %v26715_v62 = vld [vmem:[#allocation126_spill] sm:$0xff] }
 0x91d   :  { %17468 = vmatprep.mubr.f32.mxu1 %v10706_v30  ;;  %v26716_v30 = vld [vmem:[#allocation4_spill] sm:$0xff] }
 0x920   :  { %17469 = vmatmul.mubr.f32.gmra.mrb[36].mxu1 %v10707_v19  ;;  %v26717_v19 = vld [vmem:[#allocation6_spill] sm:$0xff] }
 0x921   :  { %17471 = vmatprep.mubr.f32.mxu1 %v10708_v43  ;;  %v26718_v43 = vld [vmem:[#allocation5_spill] sm:$0xff] }
 0x924   :  { %17472 = vmatmul.mubr.f32.gmra.mrb[38].mxu1 %v10709_v11  ;;  %v26719_v11 = vld [vmem:[#allocation8_spill] sm:$0xff] }
 0x925   :  { %17474 = vmatprep.mubr.f32.mxu1 %v10710_v52  ;;  %v26720_v52 = vld [vmem:[#allocation7_spill] sm:$0xff] }
 0x928   :  { %17475 = vmatmul.mubr.f32.gmra.mrb[40].mxu1 %v10711_v32  ;;  %v26721_v32 = vld [vmem:[#allocation10_spill] sm:$0xff] }
 0x929   :  { %17477 = vmatprep.mubr.f32.mxu1 %v10712_v13  ;;  %v26723_v13 = vld [vmem:[#allocation12_spill] sm:$0xff] }
 0x92c   :  { %17478 = vmatmul.mubr.f32.gmra.mrb[42].mxu1 %v10713_v44  ;;  %v26724_v44 = vld [vmem:[#allocation11_spill] sm:$0xff] }
 0x92d   :  { %17480 = vmatprep.mubr.f32.mxu1 %v10714_v26  ;;  %v26725_v26 = vld [vmem:[#allocation14_spill] sm:$0xff] }
 0x930   :  { %17481 = vmatmul.mubr.f32.gmra.mrb[44].mxu1 %v10715_v56  ;;  %v26726_v56 = vld [vmem:[#allocation13_spill] sm:$0xff] }
 0x931   :  { %17483 = vmatprep.mubr.f32.mxu1 %v10716_v1  ;;  %v26727_v1 = vld [vmem:[#allocation16_spill] sm:$0xff] }
 0x934   :  { %17484 = vmatmul.mubr.f32.gmra.mrb[46].mxu1 %v10717_v27  ;;  %v26728_v27 = vld [vmem:[#allocation15_spill] sm:$0xff] }
 0x935   :  { %17486 = vmatprep.mubr.f32.mxu1 %v10718_v0  ;;  %v11358_v0 = vld [vmem:[#allocation3 + $0x199] sm:$0xff] }
 0x938   :  { %17487 = vmatmul.mubr.f32.gmra.mrb[48].mxu1 %v10719_v33  ;;  %v26729_v33 = vld [vmem:[#allocation18_spill] sm:$0xff] }
 0x939   :  { %17489 = vmatprep.mubr.f32.mxu1 %v10720_v7  ;;  %v11359_v7 = vld [vmem:[#allocation3 + $0x1a1] sm:$0xff] }
 0x93c   :  { %17490 = vmatmul.mubr.f32.gmra.mrb[50].mxu1 %v10721_v34  ;;  %v26730_v34 = vld [vmem:[#allocation17_spill] sm:$0xff] }
 0x93d   :  { %17492 = vmatprep.mubr.f32.mxu1 %v10722_v35  ;;  %v26731_v35 = vld [vmem:[#allocation20_spill] sm:$0xff] }
 0x940   :  { %17493 = vmatmul.mubr.f32.gmra.mrb[52].mxu1 %v10723_v51  ;;  %v26732_v51 = vld [vmem:[#allocation19_spill] sm:$0xff] }
 0x941   :  { %17495 = vmatprep.mubr.f32.mxu1 %v10724_v4  ;;  %v26733_v4 = vld [vmem:[#allocation22_spill] sm:$0xff] }
 0x944   :  { %17496 = vmatmul.mubr.f32.gmra.mrb[54].mxu1 %v10725_v28  ;;  %v26734_v28 = vld [vmem:[#allocation21_spill] sm:$0xff] }
 0x945   :  { %17498 = vmatprep.mubr.f32.mxu1 %v10726_v42  ;;  %v26735_v42 = vld [vmem:[#allocation24_spill] sm:$0xff] }
 0x948   :  { %17499 = vmatmul.mubr.f32.gmra.mrb[56].mxu1 %v10727_v15  ;;  %v26736_v15 = vld [vmem:[#allocation23_spill] sm:$0xff] }
 0x949   :  { %17501 = vmatprep.mubr.f32.mxu1 %v10728_v16  ;;  %v26737_v16 = vld [vmem:[#allocation26_spill] sm:$0xff] }
 0x94c   :  { %17502 = vmatmul.mubr.f32.gmra.mrb[58].mxu1 %v10729_v18  ;;  %v26738_v18 = vld [vmem:[#allocation27_spill] sm:$0xff] }
 0x94d   :  { %17504 = vmatprep.mubr.f32.mxu1 %v23714_v40  ;;  %v13946_v40 = vld [vmem:[%s25741_s2 + $0x420] sm:$0xff] }
 0x950   :  { %17505 = vmatmul.mubr.f32.gmra.mrb[60].mxu1 %v23717_v8  ;;  %v13947_v8 = vld [vmem:[%s25741_s2 + $0x428] sm:$0xff] }
 0x951   :  { %17507 = vmatprep.mubr.f32.mxu1 %v24130_v6  ;;  %v18318_v10 = vpack.c.bf16 %v13947_v8, %v13946_v40  ;;  %v26742_v40 = vld [vmem:[#allocation31_spill] sm:$0xff]  ;;  %v26743_v8 = vld [vmem:[#allocation42_spill] sm:$0xff] }
 0x954   :  { %17508 = vmatmul.mubr.f32.gmra.mrb[62].mxu1 %v24130_v6  ;;  %v13957_v6 = vld [vmem:[%s25741_s2 + $0x478] sm:$0xff] }
 0x955   :  { %17542 = vmatprep.mubr.f32.mxu1 %v23732_v36  ;;  %v13948_v36 = vld [vmem:[%s25741_s2 + $0x430] sm:$0xff]  ;;  %v18338_v50 = vpack.c.bf16 %v13957_v6, %v13956_v22  ;;  %v11992_v6 = vld [vmem:[#allocation3 + $0x7a] sm:$0xff] }
 0x956   :  { %v18322_v24 = vpack.c.bf16 %v13949_v58, %v13948_v36  ;;  %v26747_v36 = vld [vmem:[#allocation46_spill] sm:$0xff]  ;;  %v26748_v58 = vld [vmem:[#allocation32_spill] sm:$0xff] }
 0x957   :  { %v11991_v22 = vld [vmem:[#allocation3 + $0x6a] sm:$0xff] }
 0x958   :  { %17543 = vmatmul.mubr.f32.vlgmr.msra.gmra.mrb[0].mxu1 %v26703_v5  ;;  %v26744_v5 = vld [vmem:[#allocation43_spill] sm:$0xff] }
 0x959   :  { %17545 = vmatprep.mubr.f32.mxu1 %v26704_v29  ;;  %18313 = vmatpush3.bf16.msra.mxu1 %v24125_v63  ;;  %v13950_v63 = vld [vmem:[%s25741_s2 + $0x440] sm:$0xff] }
 0x95a   :  { %18315 = vmatprep.subr.bf16.mxu1 %v18314_v37  ;;  %v18326_v59 = vpack.c.bf16 %v13951_v39, %v13950_v63  ;;  %v26745_v29 = vld [vmem:[#allocation44_spill] sm:$0xff]  ;;  %v26753_v39 = vld [vmem:[#allocation37_spill] sm:$0xff] }
 0x95b   :  { %v26752_v63 = vld [vmem:[#allocation36_spill] sm:$0xff] }
 0x95c   :  { %17546 = vmatmul.mubr.f32.gmra.mrb[2].mxu1 %v26705_v61  ;;  %v26749_v61 = vld [vmem:[#allocation33_spill] sm:$0xff] }
 0x95d   :  { %17548 = vmatprep.mubr.f32.mxu1 %v26706_v60  ;;  %18317 = vmatpush3.bf16.msra.mxu1 %v18314_v37  ;;  %v26741_v37 = vld [vmem:[#allocation30_spill] sm:$0xff] }
 0x95e   :  { %18319 = vmatprep.subr.bf16.mxu1 %v18318_v10  ;;  %v26750_v60 = vld [vmem:[#allocation34_spill] sm:$0xff] }
 0x960   :  { %17549 = vmatmul.mubr.f32.gmra.mrb[4].mxu1 %v26707_v20  ;;  %v26754_v20 = vld [vmem:[#allocation38_spill] sm:$0xff] }
 0x961   :  { %17551 = vmatprep.mubr.f32.mxu1 %v26708_v21  ;;  %18321 = vmatpush3.bf16.msra.mxu1 %v18318_v10  ;;  %v26746_v10 = vld [vmem:[#allocation45_spill] sm:$0xff]  ;;  %v26755_v21 = vld [vmem:[#allocation39_spill] sm:$0xff] }
 0x962   :  { %18323 = vmatprep.subr.bf16.mxu1 %v18322_v24 }
 0x964   :  { %17552 = vmatmul.mubr.f32.gmra.mrb[6].mxu1 %v26709_v9  ;;  %v11390_v9 = vld [vmem:[#allocation3 + $0x349] sm:$0xff] }
 0x965   :  { %17554 = vmatprep.mubr.f32.mxu1 %v26710_v54  ;;  %18325 = vmatpush3.bf16.msra.mxu1 %v18322_v24  ;;  %v26751_v24 = vld [vmem:[#allocation35_spill] sm:$0xff] }
 0x966   :  { %18327 = vmatprep.subr.bf16.mxu1 %v18326_v59  ;;  %v11391_v54 = vld [vmem:[#allocation3 + $0x351] sm:$0xff] }
 0x968   :  { %17555 = vmatmul.mubr.f32.gmra.mrb[8].mxu1 %v26711_v17  ;;  %v11989_v17 = vld [vmem:[#allocation3 + $0x52] sm:$0xff] }
 0x969   :  { %17557 = vmatprep.mubr.f32.mxu1 %v23793_v46  ;;  %18329 = vmatpush3.bf16.msra.mxu1 %v18326_v59  ;;  %v26714_v46 = vld [vmem:[#allocation125_spill] sm:$0xff]  ;;  %v26756_v59 = vld [vmem:[#allocation40_spill] sm:$0xff] }
 0x96a   :  { %18331 = vmatprep.subr.bf16.mxu1 %v18330_v12 }
 0x96c   :  { %17558 = vmatmul.mubr.f32.gmra.mrb[10].mxu1 %v26712_v49  ;;  %v11993_v49 = vld [vmem:[#allocation3 + $0x82] sm:$0xff] }
 0x96d   :  { %17560 = vmatprep.mubr.f32.mxu1 %v26713_v14  ;;  %18333 = vmatpush3.bf16.msra.mxu1 %v18330_v12  ;;  %v11986_v12 = vld [vmem:[#allocation3 + $0x32] sm:$0xff]  ;;  %v11995_v14 = vld [vmem:[#allocation3 + $0x9a] sm:$0xff] }
 0x96e   :  { %18335 = vmatprep.subr.bf16.mxu1 %v18334_v31 }
 0x970   :  { %17561 = vmatmul.mubr.f32.gmra.mrb[12].mxu1 %v23810_v2  ;;  %v26722_v2 = vld [vmem:[#allocation9_spill] sm:$0xff] }
 0x971   :  { %17563 = vmatprep.mubr.f32.mxu1 %v26714_v46  ;;  %18337 = vmatpush3.bf16.msra.mxu1 %v18334_v31  ;;  %v11990_v31 = vld [vmem:[#allocation3 + $0x62] sm:$0xff]  ;;  %v11997_v46 = vld [vmem:[#allocation3 + $0xb2] sm:$0xff] }
 0x972   :  { %18339 = vmatprep.subr.bf16.mxu1 %v18338_v50 }
 0x974   :  { %17564 = vmatmul.mubr.f32.gmra.mrb[14].mxu1 %v26715_v62  ;;  %v11998_v62 = vld [vmem:[#allocation3 + $0xc2] sm:$0xff] }
 0x975   :  { %17566 = vmatprep.mubr.f32.mxu1 %v26716_v30  ;;  %18341 = vmatpush3.bf16.msra.mxu1 %v18338_v50  ;;  %v11996_v50 = vld [vmem:[#allocation3 + $0xaa] sm:$0xff] }
 0x976   :  { %v11999_v30 = vld [vmem:[#allocation3 + $0xca] sm:$0xff] }
 0x978   :  { %17567 = vmatmul.mubr.f32.gmra.mrb[16].mxu1 %v26717_v19  ;;  %v12000_v19 = vld [vmem:[#allocation3 + $0xda] sm:$0xff] }
 0x979   :  { %17569 = vmatprep.mubr.f32.mxu1 %v26718_v43  ;;  %v12001_v43 = vld [vmem:[#allocation3 + $0xe2] sm:$0xff] }
 0x97c   :  { %17570 = vmatmul.mubr.f32.gmra.mrb[18].mxu1 %v26719_v11  ;;  %v12002_v11 = vld [vmem:[#allocation3 + $0xf2] sm:$0xff] }
 0x97d   :  { %17572 = vmatprep.mubr.f32.mxu1 %v26720_v52  ;;  %v12003_v52 = vld [vmem:[#allocation3 + $0xfa] sm:$0xff] }
 0x980   :  { %17573 = vmatmul.mubr.f32.gmra.mrb[20].mxu1 %v26721_v32  ;;  %v12004_v32 = vld [vmem:[#allocation3 + $0x10a] sm:$0xff] }
 0x981   :  { %17575 = vmatprep.mubr.f32.mxu1 %v26722_v2  ;;  %v12005_v2 = vld [vmem:[#allocation3 + $0x112] sm:$0xff] }
 0x984   :  { %17576 = vmatmul.mubr.f32.gmra.mrb[22].mxu1 %v26723_v13  ;;  %v12006_v13 = vld [vmem:[#allocation3 + $0x122] sm:$0xff] }
 0x985   :  { %17578 = vmatprep.mubr.f32.mxu1 %v26724_v44  ;;  %v12007_v44 = vld [vmem:[#allocation3 + $0x12a] sm:$0xff] }
 0x988   :  { %17579 = vmatmul.mubr.f32.gmra.mrb[24].mxu1 %v26725_v26  ;;  %v12008_v26 = vld [vmem:[#allocation3 + $0x13a] sm:$0xff] }
 0x989   :  { %17581 = vmatprep.mubr.f32.mxu1 %v26726_v56  ;;  %v12009_v56 = vld [vmem:[#allocation3 + $0x142] sm:$0xff] }
 0x98c   :  { %17582 = vmatmul.mubr.f32.gmra.mrb[26].mxu1 %v26727_v1  ;;  %v12010_v1 = vld [vmem:[#allocation3 + $0x152] sm:$0xff] }
 0x98d   :  { %17584 = vmatprep.mubr.f32.mxu1 %v26728_v27  ;;  %v12011_v27 = vld [vmem:[#allocation3 + $0x15a] sm:$0xff] }
 0x990   :  { %17585 = vmatmul.mubr.f32.gmra.mrb[28].mxu1 %v26729_v33  ;;  %v12013_v33 = vld [vmem:[#allocation3 + $0x172] sm:$0xff] }
 0x991   :  { %17587 = vmatprep.mubr.f32.mxu1 %v11358_v0  ;;  %v12012_v0 = vld [vmem:[#allocation3 + $0x16a] sm:$0xff] }
 0x994   :  { %17588 = vmatmul.mubr.f32.gmra.mrb[30].mxu1 %v11359_v7  ;;  %v12016_v7 = vld [vmem:[#allocation3 + $0x19a] sm:$0xff] }
 0x995   :  { %17590 = vmatprep.mubr.f32.mxu1 %v26730_v34  ;;  %v12017_v34 = vld [vmem:[#allocation3 + $0x1a2] sm:$0xff] }
 0x998   :  { %17591 = vmatmul.mubr.f32.gmra.mrb[32].mxu1 %v26731_v35  ;;  %v12018_v35 = vld [vmem:[#allocation3 + $0x1e2] sm:$0xff] }
 0x999   :  { %17593 = vmatprep.mubr.f32.mxu1 %v26732_v51  ;;  %v12019_v51 = vld [vmem:[#allocation3 + $0x1ea] sm:$0xff] }
 0x99c   :  { %17594 = vmatmul.mubr.f32.gmra.mrb[34].mxu1 %v26733_v4  ;;  %v12020_v4 = vld [vmem:[#allocation3 + $0x1fa] sm:$0xff] }
 0x99d   :  { %17596 = vmatprep.mubr.f32.mxu1 %v26734_v28  ;;  %v12021_v28 = vld [vmem:[#allocation3 + $0x202] sm:$0xff] }
 0x9a0   :  { %17597 = vmatmul.mubr.f32.gmra.mrb[36].mxu1 %v26735_v42  ;;  %v12022_v42 = vld [vmem:[#allocation3 + $0x212] sm:$0xff] }
 0x9a1   :  { %17599 = vmatprep.mubr.f32.mxu1 %v26736_v15  ;;  %v12023_v15 = vld [vmem:[#allocation3 + $0x21a] sm:$0xff] }
 0x9a4   :  { %17600 = vmatmul.mubr.f32.gmra.mrb[38].mxu1 %v26737_v16  ;;  %v12024_v16 = vld [vmem:[#allocation3 + $0x22a] sm:$0xff] }
 0x9a5   :  { %17602 = vmatprep.mubr.f32.mxu1 %v26738_v18  ;;  %v12027_v18 = vld [vmem:[#allocation3 + $0x24a] sm:$0xff] }
 0x9a8   :  { %17603 = vmatmul.mubr.f32.gmra.mrb[40].mxu1 %v26739_v25  ;;  %v12028_v25 = vld [vmem:[#allocation3 + $0x25a] sm:$0xff] }
 0x9a9   :  { %17605 = vmatprep.mubr.f32.mxu1 %v26740_v38  ;;  %v12029_v38 = vld [vmem:[#allocation3 + $0x262] sm:$0xff] }
 0x9ac   :  { %17606 = vmatmul.mubr.f32.gmra.mrb[42].mxu1 %v26741_v37  ;;  %v12030_v37 = vld [vmem:[#allocation3 + $0x272] sm:$0xff] }
 0x9ad   :  { %17608 = vmatprep.mubr.f32.mxu1 %v26742_v40  ;;  %v12031_v40 = vld [vmem:[#allocation3 + $0x27a] sm:$0xff] }
 0x9b0   :  { %17609 = vmatmul.mubr.f32.gmra.mrb[44].mxu1 %v26743_v8  ;;  %v12032_v8 = vld [vmem:[#allocation3 + $0x28a] sm:$0xff] }
 0x9b1   :  { %17611 = vmatprep.mubr.f32.mxu1 %v26744_v5  ;;  %v12033_v5 = vld [vmem:[#allocation3 + $0x292] sm:$0xff] }
 0x9b4   :  { %17612 = vmatmul.mubr.f32.gmra.mrb[46].mxu1 %v26745_v29  ;;  %v12034_v29 = vld [vmem:[#allocation3 + $0x2a2] sm:$0xff] }
 0x9b5   :  { %17614 = vmatprep.mubr.f32.mxu1 %v26746_v10  ;;  %v12035_v10 = vld [vmem:[#allocation3 + $0x2aa] sm:$0xff] }
 0x9b8   :  { %17615 = vmatmul.mubr.f32.gmra.mrb[48].mxu1 %v26747_v36  ;;  %v12036_v36 = vld [vmem:[#allocation3 + $0x2ba] sm:$0xff] }
 0x9b9   :  { %17617 = vmatprep.mubr.f32.mxu1 %v26748_v58  ;;  %v12037_v58 = vld [vmem:[#allocation3 + $0x2c2] sm:$0xff] }
 0x9bc   :  { %17618 = vmatmul.mubr.f32.gmra.mrb[50].mxu1 %v26749_v61  ;;  %v12038_v61 = vld [vmem:[#allocation3 + $0x2d2] sm:$0xff] }
 0x9bd   :  { %17620 = vmatprep.mubr.f32.mxu1 %v26750_v60  ;;  %v12039_v60 = vld [vmem:[#allocation3 + $0x2da] sm:$0xff] }
 0x9c0   :  { %17621 = vmatmul.mubr.f32.gmra.mrb[52].mxu1 %v26751_v24  ;;  %v12040_v24 = vld [vmem:[#allocation3 + $0x2ea] sm:$0xff] }
 0x9c1   :  { %17623 = vmatprep.mubr.f32.mxu1 %v26752_v63  ;;  %v12041_v63 = vld [vmem:[#allocation3 + $0x2f2] sm:$0xff] }
 0x9c4   :  { %17624 = vmatmul.mubr.f32.gmra.mrb[54].mxu1 %v26753_v39  ;;  %v12042_v39 = vld [vmem:[#allocation3 + $0x302] sm:$0xff] }
 0x9c5   :  { %17626 = vmatprep.mubr.f32.mxu1 %v26754_v20  ;;  %v12043_v20 = vld [vmem:[#allocation3 + $0x30a] sm:$0xff] }
 0x9c8   :  { %17627 = vmatmul.mubr.f32.gmra.mrb[56].mxu1 %v26755_v21  ;;  %v12044_v21 = vld [vmem:[#allocation3 + $0x31a] sm:$0xff] }
 0x9c9   :  { %17629 = vmatprep.mubr.f32.mxu1 %v26756_v59  ;;  %v12045_v59 = vld [vmem:[#allocation3 + $0x322] sm:$0xff] }
 0x9cc   :  { %17630 = vmatmul.mubr.f32.gmra.mrb[58].mxu1 %v26757_v3  ;;  %v12048_v3 = vld [vmem:[#allocation3 + $0x34a] sm:$0xff] }
 0x9cd   :  { %17632 = vmatprep.mubr.f32.mxu1 %v26758_v55  ;;  %v12049_v55 = vld [vmem:[#allocation3 + $0x352] sm:$0xff] }
 0x9d0   :  { %17633 = vmatmul.mubr.f32.gmra.mrb[60].mxu1 %v23949_v41  ;;  %v11994_v41 = vld [vmem:[#allocation3 + $0x92] sm:$0xff] }
 0x9d1   :  { %17635 = vmatprep.mubr.f32.mxu1 %v11390_v9 }
 0x9d4   :  { %17636 = vmatmul.mubr.f32.gmra.mrb[62].mxu1 %v11391_v54 }
 0x9d5   :  { %17670 = vmatprep.mubr.f32.mxu1 %v11986_v12 }
 0x9d8   :  { %17671 = vmatmul.mubr.f32.vlgmr.msra.gmra.mrb[0].mxu1 %v11987_v57 }
 0x9d9   :  { %17673 = vmatprep.mubr.f32.mxu1 %v11988_v53 }
 0x9dc   :  { %17674 = vmatmul.mubr.f32.gmra.mrb[2].mxu1 %v11989_v17 }
 0x9dd   :  { %17676 = vmatprep.mubr.f32.mxu1 %v11990_v31 }
 0x9e0   :  { %17677 = vmatmul.mubr.f32.gmra.mrb[4].mxu1 %v11991_v22 }
 0x9e1   :  { %17679 = vmatprep.mubr.f32.mxu1 %v11992_v6 }
 0x9e4   :  { %17680 = vmatmul.mubr.f32.gmra.mrb[6].mxu1 %v11993_v49 }
 0x9e5   :  { %17682 = vmatprep.mubr.f32.mxu1 %v11994_v41 }
 0x9e8   :  { %17683 = vmatmul.mubr.f32.gmra.mrb[8].mxu1 %v11995_v14 }
 0x9e9   :  { %17685 = vmatprep.mubr.f32.mxu1 %v11996_v50 }
 0x9ec   :  { %17686 = vmatmul.mubr.f32.gmra.mrb[10].mxu1 %v11997_v46 }
 0x9ed   :  { %17688 = vmatprep.mubr.f32.mxu1 %v11998_v62 }
 0x9f0   :  { %17689 = vmatmul.mubr.f32.gmra.mrb[12].mxu1 %v11999_v30 }
 0x9f1   :  { %17691 = vmatprep.mubr.f32.mxu1 %v12000_v19 }
 0x9f4   :  { %17692 = vmatmul.mubr.f32.gmra.mrb[14].mxu1 %v12001_v43 }
 0x9f5   :  { %17694 = vmatprep.mubr.f32.mxu1 %v12002_v11 }
 0x9f8   :  { %17695 = vmatmul.mubr.f32.gmra.mrb[16].mxu1 %v12003_v52 }
 0x9f9   :  { %17697 = vmatprep.mubr.f32.mxu1 %v12004_v32 }
 0x9fc   :  { %17698 = vmatmul.mubr.f32.gmra.mrb[18].mxu1 %v12005_v2 }
 0x9fd   :  { %17700 = vmatprep.mubr.f32.mxu1 %v12006_v13 }
 0xa00   :  { %17701 = vmatmul.mubr.f32.gmra.mrb[20].mxu1 %v12007_v44 }
 0xa01   :  { %17703 = vmatprep.mubr.f32.mxu1 %v12008_v26 }
 0xa04   :  { %17704 = vmatmul.mubr.f32.gmra.mrb[22].mxu1 %v12009_v56 }
 0xa05   :  { %17706 = vmatprep.mubr.f32.mxu1 %v12010_v1 }
 0xa08   :  { %17707 = vmatmul.mubr.f32.gmra.mrb[24].mxu1 %v12011_v27 }
 0xa09   :  { %17709 = vmatprep.mubr.f32.mxu1 %v12012_v0 }
 0xa0c   :  { %17710 = vmatmul.mubr.f32.gmra.mrb[26].mxu1 %v12013_v33 }
 0xa0d   :  { %17712 = vmatprep.mubr.f32.mxu1 %v24034_v23  ;;  %v12025_v23 = vld [vmem:[#allocation3 + $0x232] sm:$0xff] }
 0xa10   :  { %17713 = vmatmul.mubr.f32.gmra.mrb[28].mxu1 %v24037_v47  ;;  %v12026_v47 = vld [vmem:[#allocation3 + $0x242] sm:$0xff] }
 0xa11   :  { %17715 = vmatprep.mubr.f32.mxu1 %v12016_v7 }
 0xa14   :  { %17716 = vmatmul.mubr.f32.gmra.mrb[30].mxu1 %v12017_v34 }
 0xa15   :  { %17718 = vmatprep.mubr.f32.mxu1 %v12018_v35 }
 0xa18   :  { %17719 = vmatmul.mubr.f32.gmra.mrb[32].mxu1 %v12019_v51 }
 0xa19   :  { %17721 = vmatprep.mubr.f32.mxu1 %v12020_v4 }
 0xa1c   :  { %17722 = vmatmul.mubr.f32.gmra.mrb[34].mxu1 %v12021_v28 }
 0xa1d   :  { %17724 = vmatprep.mubr.f32.mxu1 %v12022_v42 }
 0xa20   :  { %17725 = vmatmul.mubr.f32.gmra.mrb[36].mxu1 %v12023_v15 }
 0xa21   :  { %17727 = vmatprep.mubr.f32.mxu1 %v12024_v16 }
 0xa24   :  { %17728 = vmatmul.mubr.f32.gmra.mrb[38].mxu1 %v12025_v23 }
 0xa25   :  { %17730 = vmatprep.mubr.f32.mxu1 %v12026_v47 }
 0xa28   :  { %17731 = vmatmul.mubr.f32.gmra.mrb[40].mxu1 %v12027_v18 }
 0xa29   :  { %17733 = vmatprep.mubr.f32.mxu1 %v12028_v25 }
 0xa2c   :  { %17734 = vmatmul.mubr.f32.gmra.mrb[42].mxu1 %v12029_v38 }
 0xa2d   :  { %17736 = vmatprep.mubr.f32.mxu1 %v12030_v37 }
 0xa30   :  { %17737 = vmatmul.mubr.f32.gmra.mrb[44].mxu1 %v12031_v40 }
 0xa31   :  { %17739 = vmatprep.mubr.f32.mxu1 %v12032_v8 }
 0xa34   :  { %17740 = vmatmul.mubr.f32.gmra.mrb[46].mxu1 %v12033_v5 }
 0xa35   :  { %17742 = vmatprep.mubr.f32.mxu1 %v12034_v29 }
 0xa38   :  { %17743 = vmatmul.mubr.f32.gmra.mrb[48].mxu1 %v12035_v10 }
 0xa39   :  { %17745 = vmatprep.mubr.f32.mxu1 %v12036_v36 }
 0xa3c   :  { %17746 = vmatmul.mubr.f32.gmra.mrb[50].mxu1 %v12037_v58 }
 0xa3d   :  { %17748 = vmatprep.mubr.f32.mxu1 %v12038_v61 }
 0xa40   :  { %17749 = vmatmul.mubr.f32.gmra.mrb[52].mxu1 %v12039_v60 }
 0xa41   :  { %17751 = vmatprep.mubr.f32.mxu1 %v12040_v24 }
 0xa44   :  { %17752 = vmatmul.mubr.f32.gmra.mrb[54].mxu1 %v12041_v63 }
 0xa45   :  { %17754 = vmatprep.mubr.f32.mxu1 %v12042_v39 }
 0xa48   :  { %17755 = vmatmul.mubr.f32.gmra.mrb[56].mxu1 %v12043_v20 }
 0xa49   :  { %17757 = vmatprep.mubr.f32.mxu1 %v12044_v21 }
 0xa4c   :  { %17758 = vmatmul.mubr.f32.gmra.mrb[58].mxu1 %v12045_v59 }
 0xa4d   :  { %17760 = vmatprep.mubr.f32.mxu1 %v24070_v45 }
 0xa50   :  { %17761 = vmatmul.mubr.f32.gmra.mrb[60].mxu1 %v24073_v48 }
 0xa51   :  { %17763 = vmatprep.mubr.f32.mxu1 %v12048_v3 }
 0xa54   :  { %17764 = vmatmul.mubr.f32.gmra.mrb[62].mxu1 %v12049_v55 }
 0xaab   :  { %v24245_v9 = vpop.f32.mrb[0].mxu1 }
 0xaac   :  { %v12780_v54 = vmul.f32 %v24245_v9, %v24245_v9  ;;  %v24249_v12 = vpop.f32.mrb[1].mxu1 }
 0xaad   :  { %v12710_v57 = vadd.f32 %v24245_v9, %v24249_v12  ;;  %v12779_v53 = vmul.f32 %v24249_v12, %v24249_v12 }
 0xaaf   :  { %v12843_v45 = vadd.f32 %v12780_v54, %v12779_v53  ;;  %v24255_v17 = vpop.f32.mrb[2].mxu1 }
 0xab0   :  { %v24257_v48 = vpop.f32.mrb[3].mxu1  ;;  %v12782_v6 = vmul.f32 %v24255_v17, %v24255_v17 }
 0xab1   :  { %v12711_v31 = vadd.f32 %v12710_v57, %v24257_v48  ;;  %v12781_v22 = vmul.f32 %v24257_v48, %v24257_v48 }
 0xab3   :  { %v12712_v49 = vadd.f32 %v24255_v17, %v12711_v31  ;;  %v12844_v41 = vadd.f32 %v12843_v45, %v12781_v22  ;;  %v24265_v14 = vpop.f32.mrb[4].mxu1 }
 0xab4   :  { %v24267_v50 = vpop.f32.mrb[5].mxu1  ;;  %v12784_v19 = vmul.f32 %v24265_v14, %v24265_v14 }
 0xab5   :  { %v12845_v46 = vadd.f32 %v12844_v41, %v12782_v6  ;;  %v12713_v62 = vadd.f32 %v12712_v49, %v24267_v50  ;;  %v12783_v30 = vmul.f32 %v24267_v50, %v24267_v50 }
 0xab7   :  { %v12846_v43 = vadd.f32 %v12845_v46, %v12783_v30  ;;  %v24274_v11 = vpop.f32.mrb[6].mxu1  ;;  %v12714_v52 = vadd.f32 %v24265_v14, %v12713_v62 }
 0xab8   :  { %v24277_v32 = vpop.f32.mrb[7].mxu1  ;;  %v12786_v26 = vmul.f32 %v24274_v11, %v24274_v11 }
 0xab9   :  { %v12715_v2 = vadd.f32 %v12714_v52, %v24277_v32  ;;  %v12785_v13 = vmul.f32 %v24277_v32, %v24277_v32  ;;  %v12847_v44 = vadd.f32 %v12846_v43, %v12784_v19 }
 0xabb   :  { %v12848_v56 = vadd.f32 %v12847_v44, %v12785_v13  ;;  %v24284_v1 = vpop.f32.mrb[8].mxu1  ;;  %v12716_v27 = vadd.f32 %v24274_v11, %v12715_v2 }
 0xabc   :  { %v24287_v0 = vpop.f32.mrb[9].mxu1  ;;  %v12788_v35 = vmul.f32 %v24284_v1, %v24284_v1 }
 0xabd   :  { %v12717_v33 = vadd.f32 %v12716_v27, %v24287_v0  ;;  %v12787_v7 = vmul.f32 %v24287_v0, %v24287_v0  ;;  %v12849_v34 = vadd.f32 %v12848_v56, %v12786_v26 }
 0xabf   :  { %v12850_v51 = vadd.f32 %v12849_v34, %v12787_v7  ;;  %v24294_v4 = vpop.f32.mrb[10].mxu1  ;;  %v12718_v28 = vadd.f32 %v24284_v1, %v12717_v33 }
 0xac0   :  { %v24297_v42 = vpop.f32.mrb[11].mxu1  ;;  %v12790_v47 = vmul.f32 %v24294_v4, %v24294_v4 }
 0xac1   :  { %v12719_v15 = vadd.f32 %v12718_v28, %v24297_v42  ;;  %v12789_v16 = vmul.f32 %v24297_v42, %v24297_v42  ;;  %v12851_v23 = vadd.f32 %v12850_v51, %v12788_v35 }
 0xac3   :  { %v12852_v18 = vadd.f32 %v12851_v23, %v12789_v16  ;;  %v24304_v25 = vpop.f32.mrb[12].mxu1  ;;  %v12720_v38 = vadd.f32 %v24294_v4, %v12719_v15 }
 0xac4   :  { %v24307_v37 = vpop.f32.mrb[13].mxu1  ;;  %v12792_v29 = vmul.f32 %v24304_v25, %v24304_v25 }
 0xac5   :  { %v12721_v40 = vadd.f32 %v12720_v38, %v24307_v37  ;;  %v12791_v8 = vmul.f32 %v24307_v37, %v24307_v37  ;;  %v12853_v5 = vadd.f32 %v12852_v18, %v12790_v47 }
 0xac7   :  { %v12854_v10 = vadd.f32 %v12853_v5, %v12791_v8  ;;  %v24314_v36 = vpop.f32.mrb[14].mxu1  ;;  %v12722_v58 = vadd.f32 %v24304_v25, %v12721_v40 }
 0xac8   :  { %v24317_v61 = vpop.f32.mrb[15].mxu1  ;;  %v12794_v39 = vmul.f32 %v24314_v36, %v24314_v36 }
 0xac9   :  { %v12723_v60 = vadd.f32 %v12722_v58, %v24317_v61  ;;  %v12793_v24 = vmul.f32 %v24317_v61, %v24317_v61  ;;  %v12855_v63 = vadd.f32 %v12854_v10, %v12792_v29 }
 0xacb   :  { %v12856_v20 = vadd.f32 %v12855_v63, %v12793_v24  ;;  %v24324_v21 = vpop.f32.mrb[16].mxu1  ;;  %v12724_v59 = vadd.f32 %v24314_v36, %v12723_v60 }
 0xacc   :  { %v24327_v3 = vpop.f32.mrb[17].mxu1  ;;  %v12796_v53 = vmul.f32 %v24324_v21, %v24324_v21 }
 0xacd   :  { %v12725_v55 = vadd.f32 %v12724_v59, %v24327_v3  ;;  %v12795_v54 = vmul.f32 %v24327_v3, %v24327_v3  ;;  %v12857_v57 = vadd.f32 %v12856_v20, %v12794_v39 }
 0xacf   :  { %v12858_v45 = vadd.f32 %v12857_v57, %v12795_v54  ;;  %v24334_v31 = vpop.f32.mrb[18].mxu1  ;;  %v12726_v22 = vadd.f32 %v24324_v21, %v12725_v55 }
 0xad0   :  { %v24337_v6 = vpop.f32.mrb[19].mxu1  ;;  %v12798_v62 = vmul.f32 %v24334_v31, %v24334_v31 }
 0xad1   :  { %v12727_v49 = vadd.f32 %v12726_v22, %v24337_v6  ;;  %v12797_v41 = vmul.f32 %v24337_v6, %v24337_v6  ;;  %v12859_v46 = vadd.f32 %v12858_v45, %v12796_v53 }
 0xad3   :  { %v12860_v30 = vadd.f32 %v12859_v46, %v12797_v41  ;;  %v24344_v19 = vpop.f32.mrb[20].mxu1  ;;  %v12728_v43 = vadd.f32 %v24334_v31, %v12727_v49 }
 0xad4   :  { %v24347_v52 = vpop.f32.mrb[21].mxu1  ;;  %v12800_v26 = vmul.f32 %v24344_v19, %v24344_v19 }
 0xad5   :  { %v12729_v2 = vadd.f32 %v12728_v43, %v24347_v52  ;;  %v12799_v13 = vmul.f32 %v24347_v52, %v24347_v52  ;;  %v12861_v44 = vadd.f32 %v12860_v30, %v12798_v62 }
 0xad7   :  { %v12862_v56 = vadd.f32 %v12861_v44, %v12799_v13  ;;  %v24354_v27 = vpop.f32.mrb[22].mxu1  ;;  %v12730_v33 = vadd.f32 %v24344_v19, %v12729_v2 }
 0xad8   :  { %v24357_v7 = vpop.f32.mrb[23].mxu1  ;;  %v12802_v28 = vmul.f32 %v24354_v27, %v24354_v27 }
 0xad9   :  { %v12731_v34 = vadd.f32 %v12730_v33, %v24357_v7  ;;  %v12801_v35 = vmul.f32 %v24357_v7, %v24357_v7  ;;  %v12863_v51 = vadd.f32 %v12862_v56, %v12800_v26 }
 0xadb   :  { %v12864_v15 = vadd.f32 %v12863_v51, %v12801_v35  ;;  %v24364_v16 = vpop.f32.mrb[24].mxu1  ;;  %v12732_v23 = vadd.f32 %v24354_v27, %v12731_v34 }
 0xadc   :  { %v24367_v47 = vpop.f32.mrb[25].mxu1  ;;  %v12804_v8 = vmul.f32 %v24364_v16, %v24364_v16 }
 0xadd   :  { %v12733_v18 = vadd.f32 %v12732_v23, %v24367_v47  ;;  %v12803_v38 = vmul.f32 %v24367_v47, %v24367_v47  ;;  %v12865_v40 = vadd.f32 %v12864_v15, %v12802_v28 }
 0xadf   :  { %v12866_v5 = vadd.f32 %v12865_v40, %v12803_v38  ;;  %v24374_v29 = vpop.f32.mrb[26].mxu1  ;;  %v12734_v10 = vadd.f32 %v24364_v16, %v12733_v18 }
 0xae0   :  { %v24377_v58 = vpop.f32.mrb[27].mxu1  ;;  %v12806_v39 = vmul.f32 %v24374_v29, %v24374_v29 }
 0xae1   :  { %v12735_v60 = vadd.f32 %v12734_v10, %v24377_v58  ;;  %v12805_v24 = vmul.f32 %v24377_v58, %v24377_v58  ;;  %v12867_v63 = vadd.f32 %v12866_v5, %v12804_v8 }
 0xae3   :  { %v12868_v20 = vadd.f32 %v12867_v63, %v12805_v24  ;;  %v24384_v59 = vpop.f32.mrb[28].mxu1  ;;  %v12736_v55 = vadd.f32 %v24374_v29, %v12735_v60 }
 0xae4   :  { %v24387_v54 = vpop.f32.mrb[29].mxu1  ;;  %v12808_v22 = vmul.f32 %v24384_v59, %v24384_v59 }
 0xae5   :  { %v12737_v57 = vadd.f32 %v12736_v55, %v24387_v54  ;;  %v12807_v53 = vmul.f32 %v24387_v54, %v24387_v54  ;;  %v12869_v45 = vadd.f32 %v12868_v20, %v12806_v39 }
 0xae7   :  { %v12870_v49 = vadd.f32 %v12869_v45, %v12807_v53  ;;  %v24394_v41 = vpop.f32.mrb[30].mxu1  ;;  %v12738_v46 = vadd.f32 %v24384_v59, %v12737_v57 }
 0xae8   :  { %v24397_v62 = vpop.f32.mrb[31].mxu1  ;;  %v12810_v13 = vmul.f32 %v24394_v41, %v24394_v41 }
 0xae9   :  { %v12739_v30 = vadd.f32 %v12738_v46, %v24397_v62  ;;  %v12809_v43 = vmul.f32 %v24397_v62, %v24397_v62  ;;  %v12871_v2 = vadd.f32 %v12870_v49, %v12808_v22 }
 0xaeb   :  { %v12872_v44 = vadd.f32 %v12871_v2, %v12809_v43  ;;  %v24404_v26 = vpop.f32.mrb[32].mxu1  ;;  %v12740_v56 = vadd.f32 %v24394_v41, %v12739_v30 }
 0xaec   :  { %v24407_v33 = vpop.f32.mrb[33].mxu1  ;;  %v12812_v28 = vmul.f32 %v24404_v26, %v24404_v26 }
 0xaed   :  { %v12741_v34 = vadd.f32 %v12740_v56, %v24407_v33  ;;  %v12811_v35 = vmul.f32 %v24407_v33, %v24407_v33  ;;  %v12873_v51 = vadd.f32 %v12872_v44, %v12810_v13 }
 0xaef   :  { %v12874_v15 = vadd.f32 %v12873_v51, %v12811_v35  ;;  %v24414_v23 = vpop.f32.mrb[34].mxu1  ;;  %v12742_v18 = vadd.f32 %v24404_v26, %v12741_v34 }
 0xaf0   :  { %v24417_v38 = vpop.f32.mrb[35].mxu1  ;;  %v12814_v10 = vmul.f32 %v24414_v23, %v24414_v23 }
 0xaf1   :  { %v12743_v40 = vadd.f32 %v12742_v18, %v24417_v38  ;;  %v12813_v8 = vmul.f32 %v24417_v38, %v24417_v38  ;;  %v12875_v5 = vadd.f32 %v12874_v15, %v12812_v28 }
 0xaf3   :  { %v12876_v60 = vadd.f32 %v12875_v5, %v12813_v8  ;;  %v24424_v24 = vpop.f32.mrb[36].mxu1  ;;  %v12744_v63 = vadd.f32 %v24414_v23, %v12743_v40 }
 0xaf4   :  { %v24427_v39 = vpop.f32.mrb[37].mxu1  ;;  %v12816_v53 = vmul.f32 %v24424_v24, %v24424_v24 }
 0xaf5   :  { %v12745_v20 = vadd.f32 %v12744_v63, %v24427_v39  ;;  %v12815_v55 = vmul.f32 %v24427_v39, %v24427_v39  ;;  %v12877_v57 = vadd.f32 %v12876_v60, %v12814_v10 }
 0xaf7   :  { %v12878_v45 = vadd.f32 %v12877_v57, %v12815_v55  ;;  %v24434_v22 = vpop.f32.mrb[38].mxu1  ;;  %v12746_v49 = vadd.f32 %v24424_v24, %v12745_v20 }
 0xaf8   :  { %26759 = vst [vmem:[#allocation48_spill] sm:$0xff] %v24434_v22  ;;  %v24437_v46 = vpop.f32.mrb[39].mxu1  ;;  %v12818_v13 = vmul.f32 %v24434_v22, %v24434_v22 }
 0xaf9   :  { %v12747_v30 = vadd.f32 %v12746_v49, %v24437_v46  ;;  %v12817_v43 = vmul.f32 %v24437_v46, %v24437_v46  ;;  %v12879_v2 = vadd.f32 %v12878_v45, %v12816_v53 }
 0xafb   :  { %v12880_v44 = vadd.f32 %v12879_v2, %v12817_v43  ;;  %v24444_v56 = vpop.f32.mrb[40].mxu1  ;;  %v12748_v34 = vadd.f32 %v24434_v22, %v12747_v30 }
 0xafc   :  { %26760 = vst [vmem:[#allocation49_spill] sm:$0xff] %v24444_v56  ;;  %v24447_v35 = vpop.f32.mrb[41].mxu1  ;;  %v12820_v18 = vmul.f32 %v24444_v56, %v24444_v56 }
 0xafd   :  { %26761 = vst [vmem:[#allocation50_spill] sm:$0xff] %v24447_v35  ;;  %v12749_v51 = vadd.f32 %v12748_v34, %v24447_v35  ;;  %v12819_v28 = vmul.f32 %v24447_v35, %v24447_v35  ;;  %v12881_v15 = vadd.f32 %v12880_v44, %v12818_v13 }
 0xaff   :  { %v12882_v40 = vadd.f32 %v12881_v15, %v12819_v28  ;;  %v24454_v8 = vpop.f32.mrb[42].mxu1  ;;  %v12750_v5 = vadd.f32 %v24444_v56, %v12749_v51 }
 0xb00   :  { %26762 = vst [vmem:[#allocation51_spill] sm:$0xff] %v24454_v8  ;;  %v24457_v10 = vpop.f32.mrb[43].mxu1  ;;  %v12822_v55 = vmul.f32 %v24454_v8, %v24454_v8 }
 0xb01   :  { %26763 = vst [vmem:[#allocation52_spill] sm:$0xff] %v24457_v10  ;;  %v12751_v60 = vadd.f32 %v12750_v5, %v24457_v10  ;;  %v12821_v63 = vmul.f32 %v24457_v10, %v24457_v10  ;;  %v12883_v20 = vadd.f32 %v12882_v40, %v12820_v18 }
 0xb03   :  { %v12884_v57 = vadd.f32 %v12883_v20, %v12821_v63  ;;  %v24464_v53 = vpop.f32.mrb[44].mxu1  ;;  %v12752_v45 = vadd.f32 %v24454_v8, %v12751_v60 }
 0xb04   :  { %26764 = vst [vmem:[#allocation53_spill] sm:$0xff] %v24464_v53  ;;  %v24467_v49 = vpop.f32.mrb[45].mxu1  ;;  %v12824_v13 = vmul.f32 %v24464_v53, %v24464_v53 }
 0xb05   :  { %26765 = vst [vmem:[#allocation54_spill] sm:$0xff] %v24467_v49  ;;  %v12753_v30 = vadd.f32 %v12752_v45, %v24467_v49  ;;  %v12823_v43 = vmul.f32 %v24467_v49, %v24467_v49  ;;  %v12885_v2 = vadd.f32 %v12884_v57, %v12822_v55 }
 0xb07   :  { %v12886_v44 = vadd.f32 %v12885_v2, %v12823_v43  ;;  %v24474_v34 = vpop.f32.mrb[46].mxu1  ;;  %v12754_v51 = vadd.f32 %v24464_v53, %v12753_v30 }
 0xb08   :  { %26766 = vst [vmem:[#allocation55_spill] sm:$0xff] %v24474_v34  ;;  %v24477_v28 = vpop.f32.mrb[47].mxu1  ;;  %v12826_v5 = vmul.f32 %v24474_v34, %v24474_v34 }
 0xb09   :  { %26767 = vst [vmem:[#allocation56_spill] sm:$0xff] %v24477_v28  ;;  %v12755_v15 = vadd.f32 %v12754_v51, %v24477_v28  ;;  %v12825_v18 = vmul.f32 %v24477_v28, %v24477_v28  ;;  %v12887_v40 = vadd.f32 %v12886_v44, %v12824_v13 }
 0xb0b   :  { %v12888_v60 = vadd.f32 %v12887_v40, %v12825_v18  ;;  %v24484_v63 = vpop.f32.mrb[48].mxu1  ;;  %v12756_v20 = vadd.f32 %v24474_v34, %v12755_v15 }
 0xb0c   :  { %26768 = vst [vmem:[#allocation57_spill] sm:$0xff] %v24484_v63  ;;  %v24487_v55 = vpop.f32.mrb[49].mxu1  ;;  %v12828_v43 = vmul.f32 %v24484_v63, %v24484_v63 }
 0xb0d   :  { %26769 = vst [vmem:[#allocation58_spill] sm:$0xff] %v24487_v55  ;;  %v12757_v57 = vadd.f32 %v12756_v20, %v24487_v55  ;;  %v12827_v45 = vmul.f32 %v24487_v55, %v24487_v55  ;;  %v12889_v30 = vadd.f32 %v12888_v60, %v12826_v5 }
 0xb0f   :  { %v12890_v2 = vadd.f32 %v12889_v30, %v12827_v45  ;;  %v24494_v13 = vpop.f32.mrb[50].mxu1  ;;  %v12758_v44 = vadd.f32 %v24484_v63, %v12757_v57 }
 0xb10   :  { %26770 = vst [vmem:[#allocation59_spill] sm:$0xff] %v24494_v13  ;;  %v24497_v51 = vpop.f32.mrb[51].mxu1  ;;  %v12830_v20 = vmul.f32 %v24494_v13, %v24494_v13 }
 0xb11   :  { %26771 = vst [vmem:[#allocation60_spill] sm:$0xff] %v24497_v51  ;;  %v12759_v15 = vadd.f32 %v12758_v44, %v24497_v51  ;;  %v12829_v18 = vmul.f32 %v24497_v51, %v24497_v51  ;;  %v12891_v40 = vadd.f32 %v12890_v2, %v12828_v43 }
 0xb13   :  { %v12892_v5 = vadd.f32 %v12891_v40, %v12829_v18  ;;  %v24504_v60 = vpop.f32.mrb[52].mxu1  ;;  %v12760_v45 = vadd.f32 %v24494_v13, %v12759_v15 }
 0xb14   :  { %26772 = vst [vmem:[#allocation61_spill] sm:$0xff] %v24504_v60  ;;  %v24507_v30 = vpop.f32.mrb[53].mxu1  ;;  %v12832_v51 = vmul.f32 %v24504_v60, %v24504_v60 }
 0xb15   :  { %26773 = vst [vmem:[#allocation62_spill] sm:$0xff] %v24507_v30  ;;  %v12761_v57 = vadd.f32 %v12760_v45, %v24507_v30  ;;  %v12831_v63 = vmul.f32 %v24507_v30, %v24507_v30  ;;  %v12893_v44 = vadd.f32 %v12892_v5, %v12830_v20 }
 0xb17   :  { %v12894_v43 = vadd.f32 %v12893_v44, %v12831_v63  ;;  %v24514_v2 = vpop.f32.mrb[54].mxu1  ;;  %v12762_v18 = vadd.f32 %v24504_v60, %v12761_v57 }
 0xb18   :  { %26774 = vst [vmem:[#allocation63_spill] sm:$0xff] %v24514_v2  ;;  %v24517_v40 = vpop.f32.mrb[55].mxu1  ;;  %v12834_v30 = vmul.f32 %v24514_v2, %v24514_v2 }
 0xb19   :  { %26775 = vst [vmem:[#allocation64_spill] sm:$0xff] %v24517_v40  ;;  %v12763_v15 = vadd.f32 %v12762_v18, %v24517_v40  ;;  %v12833_v13 = vmul.f32 %v24517_v40, %v24517_v40  ;;  %v12895_v45 = vadd.f32 %v12894_v43, %v12832_v51 }
 0xb1b   :  { %v12896_v20 = vadd.f32 %v12895_v45, %v12833_v13  ;;  %v24524_v5 = vpop.f32.mrb[56].mxu1  ;;  %v12764_v63 = vadd.f32 %v24514_v2, %v12763_v15 }
 0xb1c   :  { %26776 = vst [vmem:[#allocation65_spill] sm:$0xff] %v24524_v5  ;;  %v24527_v44 = vpop.f32.mrb[57].mxu1  ;;  %v12836_v40 = vmul.f32 %v24524_v5, %v24524_v5 }
 0xb1d   :  { %26777 = vst [vmem:[#allocation66_spill] sm:$0xff] %v24527_v44  ;;  %v12765_v57 = vadd.f32 %v12764_v63, %v24527_v44  ;;  %v12835_v60 = vmul.f32 %v24527_v44, %v24527_v44  ;;  %v12897_v18 = vadd.f32 %v12896_v20, %v12834_v30 }
 0xb1f   :  { %v12898_v51 = vadd.f32 %v12897_v18, %v12835_v60  ;;  %v24534_v43 = vpop.f32.mrb[58].mxu1  ;;  %v12766_v13 = vadd.f32 %v24524_v5, %v12765_v57 }
 0xb20   :  { %26778 = vst [vmem:[#allocation67_spill] sm:$0xff] %v24534_v43  ;;  %v24537_v45 = vpop.f32.mrb[59].mxu1  ;;  %v12838_v44 = vmul.f32 %v24534_v43, %v24534_v43 }
 0xb21   :  { %26779 = vst [vmem:[#allocation68_spill] sm:$0xff] %v24537_v45  ;;  %v12767_v15 = vadd.f32 %v12766_v13, %v24537_v45  ;;  %v12837_v2 = vmul.f32 %v24537_v45, %v24537_v45  ;;  %v12899_v63 = vadd.f32 %v12898_v51, %v12836_v40 }
 0xb23   :  { %v12900_v30 = vadd.f32 %v12899_v63, %v12837_v2  ;;  %v24544_v20 = vpop.f32.mrb[60].mxu1  ;;  %v12768_v60 = vadd.f32 %v24534_v43, %v12767_v15 }
 0xb24   :  { %26780 = vst [vmem:[#allocation69_spill] sm:$0xff] %v24544_v20  ;;  %v24547_v18 = vpop.f32.mrb[61].mxu1  ;;  %v12840_v45 = vmul.f32 %v24544_v20, %v24544_v20 }
 0xb25   :  { %26781 = vst [vmem:[#allocation70_spill] sm:$0xff] %v24547_v18  ;;  %v12769_v57 = vadd.f32 %v12768_v60, %v24547_v18  ;;  %v12839_v5 = vmul.f32 %v24547_v18, %v24547_v18  ;;  %v12901_v13 = vadd.f32 %v12900_v30, %v12838_v44 }
 0xb27   :  { %v12902_v40 = vadd.f32 %v12901_v13, %v12839_v5  ;;  %v24554_v51 = vpop.f32.mrb[62].mxu1  ;;  %v12770_v2 = vadd.f32 %v24544_v20, %v12769_v57 }
 0xb28   :  { %v24557_v63 = vpop.f32.mrb[63].mxu1  ;;  %v12842_v18 = vmul.f32 %v24554_v51, %v24554_v51 }
 0xb29   :  { %26782 = vst [vmem:[#allocation71_spill] sm:$0xff] %v24557_v63  ;;  %v12771_v15 = vadd.f32 %v12770_v2, %v24557_v63  ;;  %v12841_v43 = vmul.f32 %v24557_v63, %v24557_v63  ;;  %v12903_v60 = vadd.f32 %v12902_v40, %v12840_v45 }
 0xb2b   :  { %v12772_v44 = vadd.f32 %v24554_v51, %v12771_v15  ;;  %v12904_v30 = vadd.f32 %v12903_v60, %v12841_v43  ;;  %v26785_v60 = vld [vmem:[#allocation50_spill] sm:$0xff] }
 0xb2d   :  { %v12773_v55 = vrot.slane %v12772_v44, 4  ;;  %v12905_v5 = vadd.f32 %v12904_v30, %v12842_v18  ;;  %v26787_v30 = vld [vmem:[#allocation52_spill] sm:$0xff] }
 0xb2f   :  { %v12774_v13 = vadd.f32 %v12773_v55, %v12772_v44  ;;  %v12906_v34 = vrot.slane %v12905_v5, 4  ;;  %v12708_v55 = vld [vmem:[%s25742_s4 + $0x2] sm:$0x1]  ;;  %v26786_v44 = vld [vmem:[#allocation49_spill] sm:$0xff] }
 0xb31   :  { %v12775_v28 = vrot.slane %v12774_v13, 2  ;;  %v12907_v57 = vadd.f32 %v12906_v34, %v12905_v5  ;;  %v26788_v5 = vld [vmem:[#allocation51_spill] sm:$0xff] }
 0xb33   :  { %v12776_v20 = vadd.f32 %v12775_v28, %v12774_v13  ;;  %v12908_v53 = vrot.slane %v12907_v57, 2  ;;  %v26789_v13 = vld [vmem:[#allocation54_spill] sm:$0xff] }
 0xb35   :  { %v12777_v49 = vrot.slane %v12776_v20, 1  ;;  %v12909_v2 = vadd.f32 %v12908_v53, %v12907_v57  ;;  %v24571_v53 = vld [vmem:[%s25742_s4 + $0x3] sm:$0x1] }
 0xb37   :  { %v12778_v8 = vadd.f32 %v12777_v49, %v12776_v20  ;;  %v12910_v10 = vrot.slane %v12909_v2, 1 }
 0xb39   :  { %v12911_v63 = vadd.f32 %v12910_v10, %v12909_v2  ;;  %v12912_v45 = vmul.f32 0.001953125, %v12778_v8  ;;  %v26783_v8 = vld [vmem:[#allocation25_spill] sm:$0xff] }
 0xb3a   :  { %v26790_v2 = vld [vmem:[#allocation53_spill] sm:$0xff] }
 0xb3b   :  { %v12913_v40 = vmul.f32 0.001953125, %v12911_v63  ;;  %v12914_v56 = vmul.f32 %v12912_v45, %v12912_v45  ;;  %v26784_v63 = vld [vmem:[#allocation48_spill] sm:$0xff] }
 0xb3d   :  { %v12915_v35 = vsub.f32 %v12913_v40, %v12914_v56  ;;  %v26791_v40 = vld [vmem:[#allocation56_spill] sm:$0xff] }
 0xb3f   :  { %v12916_v22 = vmax.f32 %v12915_v35, 0.0 }
 0xb41   :  { %v12917_v15 = vadd.f32 1e-05, %v12916_v22  ;;  %v26803_v22 = vld [vmem:[#allocation61_spill] sm:$0xff] }
 0xb43   :  { %19369 = vrsqrt.f32 %v12917_v15 }
 0xb4d   :  { %v19370_v43 = vpop.eup %19369 }
 0xb4e   :  { %v12919_v34 = vmul.f32 %v19370_v43, %v12708_v55  ;;  %v26792_v55 = vld [vmem:[#allocation55_spill] sm:$0xff] }
 0xb50   :  { %v24573_v49 = vmul.f32 %v12919_v34, %v12912_v45  ;;  %v24576_v10 = vrot.slane %v12919_v34, %v26783_v8  ;;  %v26793_v34 = vld [vmem:[#allocation58_spill] sm:$0xff] }
 0xb52   :  { %v24582_v56 = vmul.f32 %v24576_v10, %v24249_v12  ;;  %v24586_v35 = vmul.f32 %v24245_v9, %v24576_v10  ;;  %v24590_v28 = vmul.f32 %v24576_v10, %v24257_v48  ;;  %v24594_v20 = vmul.f32 %v24255_v17, %v24576_v10 }
 0xb53   :  { %v24598_v18 = vmul.f32 %v24576_v10, %v24267_v50  ;;  %v24602_v12 = vmul.f32 %v24265_v14, %v24576_v10  ;;  %v24606_v9 = vmul.f32 %v24576_v10, %v24277_v32  ;;  %v24610_v48 = vmul.f32 %v24274_v11, %v24576_v10 }
 0xb54   :  { %v24614_v17 = vmul.f32 %v24576_v10, %v24287_v0  ;;  %v24618_v50 = vmul.f32 %v24284_v1, %v24576_v10  ;;  %v24622_v14 = vmul.f32 %v24576_v10, %v24297_v42  ;;  %v24626_v32 = vmul.f32 %v24294_v4, %v24576_v10 }
 0xb55   :  { %v24630_v11 = vmul.f32 %v24576_v10, %v24307_v37  ;;  %v24634_v0 = vmul.f32 %v24304_v25, %v24576_v10  ;;  %v24638_v1 = vmul.f32 %v24576_v10, %v24317_v61  ;;  %v24642_v42 = vmul.f32 %v24314_v36, %v24576_v10 }
 0xb56   :  { %v24646_v4 = vmul.f32 %v24576_v10, %v24327_v3  ;;  %v24650_v37 = vmul.f32 %v24324_v21, %v24576_v10  ;;  %v24654_v25 = vmul.f32 %v24576_v10, %v24337_v6  ;;  %v24658_v61 = vmul.f32 %v24334_v31, %v24576_v10 }
 0xb57   :  { %v24662_v36 = vmul.f32 %v24576_v10, %v24347_v52  ;;  %v24666_v3 = vmul.f32 %v24344_v19, %v24576_v10  ;;  %v24670_v21 = vmul.f32 %v24576_v10, %v24357_v7  ;;  %v24674_v6 = vmul.f32 %v24354_v27, %v24576_v10 }
 0xb58   :  { %v24678_v31 = vmul.f32 %v24576_v10, %v24367_v47  ;;  %v24682_v52 = vmul.f32 %v24364_v16, %v24576_v10  ;;  %v24686_v19 = vmul.f32 %v24576_v10, %v24377_v58  ;;  %v24690_v7 = vmul.f32 %v24374_v29, %v24576_v10 }
 0xb59   :  { %v24694_v27 = vmul.f32 %v24576_v10, %v24387_v54  ;;  %v24698_v47 = vmul.f32 %v24384_v59, %v24576_v10  ;;  %v24702_v16 = vmul.f32 %v24576_v10, %v24397_v62  ;;  %v24706_v58 = vmul.f32 %v24394_v41, %v24576_v10 }
 0xb5a   :  { %v24710_v29 = vmul.f32 %v24576_v10, %v24407_v33  ;;  %v24714_v54 = vmul.f32 %v24404_v26, %v24576_v10  ;;  %v24718_v59 = vmul.f32 %v24576_v10, %v24417_v38  ;;  %v24722_v62 = vmul.f32 %v24414_v23, %v24576_v10 }
 0xb5b   :  { %v24726_v41 = vmul.f32 %v24576_v10, %v24427_v39  ;;  %v24730_v33 = vmul.f32 %v24424_v24, %v24576_v10  ;;  %v24734_v26 = vmul.f32 %v24576_v10, %v24437_v46  ;;  %v24738_v38 = vmul.f32 %v26784_v63, %v24576_v10 }
 0xb5c   :  { %v24742_v23 = vmul.f32 %v24576_v10, %v26785_v60  ;;  %v24746_v39 = vmul.f32 %v26786_v44, %v24576_v10  ;;  %v24750_v24 = vmul.f32 %v24576_v10, %v26787_v30  ;;  %v24754_v46 = vmul.f32 %v26788_v5, %v24576_v10  ;;  %v26795_v60 = vld [vmem:[#allocation57_spill] sm:$0xff]  ;;  %v26797_v30 = vld [vmem:[#allocation60_spill] sm:$0xff] }
 0xb5d   :  { %v24758_v57 = vmul.f32 %v24576_v10, %v26789_v13  ;;  %v24762_v45 = vmul.f32 %v26790_v2, %v24576_v10  ;;  %v24766_v15 = vmul.f32 %v24576_v10, %v26791_v40  ;;  %v24770_v43 = vmul.f32 %v26792_v55, %v24576_v10  ;;  %v26799_v13 = vld [vmem:[#allocation59_spill] sm:$0xff]  ;;  %v26801_v40 = vld [vmem:[#allocation62_spill] sm:$0xff] }
 0xb5e   :  { %v24774_v63 = vmul.f32 %v24576_v10, %v26793_v34  ;;  %v24778_v44 = vmul.f32 %v26795_v60, %v24576_v10  ;;  %v24782_v5 = vmul.f32 %v24576_v10, %v26797_v30  ;;  %v24786_v2 = vmul.f32 %v26799_v13, %v24576_v10 }
 0xb5f   :  { %v24790_v55 = vmul.f32 %v24576_v10, %v26801_v40  ;;  %v24794_v34 = vmul.f32 %v26803_v22, %v24576_v10 }
 0xb60   :  { %26794 = vst [vmem:[#allocation72_spill] sm:$0xff] %v24774_v63  ;;  %26796 = vst [vmem:[#allocation73_spill] sm:$0xff] %v24778_v44  ;;  %v26805_v63 = vld [vmem:[#allocation64_spill] sm:$0xff]  ;;  %v26807_v44 = vld [vmem:[#allocation63_spill] sm:$0xff] }
 0xb61   :  { %26798 = vst [vmem:[#allocation74_spill] sm:$0xff] %v24782_v5  ;;  %26800 = vst [vmem:[#allocation75_spill] sm:$0xff] %v24786_v2  ;;  %v24798_v60 = vmul.f32 %v24576_v10, %v26805_v63  ;;  %v24802_v30 = vmul.f32 %v26807_v44, %v24576_v10  ;;  %v26809_v5 = vld [vmem:[#allocation66_spill] sm:$0xff]  ;;  %v26811_v2 = vld [vmem:[#allocation65_spill] sm:$0xff] }
 0xb62   :  { %26802 = vst [vmem:[#allocation76_spill] sm:$0xff] %v24790_v55  ;;  %26804 = vst [vmem:[#allocation77_spill] sm:$0xff] %v24794_v34  ;;  %v24806_v13 = vmul.f32 %v24576_v10, %v26809_v5  ;;  %v24810_v40 = vmul.f32 %v26811_v2, %v24576_v10  ;;  %v26812_v55 = vld [vmem:[#allocation68_spill] sm:$0xff]  ;;  %v26813_v34 = vld [vmem:[#allocation67_spill] sm:$0xff] }
 0xb63   :  { %26806 = vst [vmem:[#allocation78_spill] sm:$0xff] %v24798_v60  ;;  %26808 = vst [vmem:[#allocation79_spill] sm:$0xff] %v24802_v30  ;;  %v24814_v22 = vmul.f32 %v24576_v10, %v26812_v55  ;;  %v24818_v63 = vmul.f32 %v26813_v34, %v24576_v10  ;;  %v26815_v60 = vld [vmem:[#allocation70_spill] sm:$0xff]  ;;  %v26816_v30 = vld [vmem:[#allocation69_spill] sm:$0xff]  ;;  %v24834_v55 = vmul.f32 %v24554_v51, %v24576_v10 }
 0xb64   :  { %26810 = vst [vmem:[#allocation80_spill] sm:$0xff] %v24806_v13  ;;  %v24822_v44 = vmul.f32 %v24576_v10, %v26815_v60  ;;  %v24826_v5 = vmul.f32 %v26816_v30, %v24576_v10  ;;  %v26817_v13 = vld [vmem:[#allocation71_spill] sm:$0xff]  ;;  %v26818_v34 = vsub.f32 %v24571_v53, %v24573_v49 }
 0xb65   :  { %26814 = vst [vmem:[#allocation81_spill] sm:$0xff] %v24818_v63  ;;  %v24830_v2 = vmul.f32 %v24576_v10, %v26817_v13 }
 0xb66   :  { %v24840_v63 = vrot.slane %v26818_v34, %v26783_v8 }
 0xb68   :  { %v24844_v60 = vadd.f32 %v24840_v63, %v24582_v56  ;;  %v24848_v30 = vadd.f32 %v24840_v63, %v24586_v35  ;;  %v24852_v13 = vadd.f32 %v24840_v63, %v24590_v28  ;;  %v24856_v51 = vadd.f32 %v24840_v63, %v24594_v20  ;;  %v26837_v34 = vld [vmem:[#allocation74_spill] sm:$0xff] }
 0xb69   :  { %v24860_v53 = vadd.f32 %v24840_v63, %v24598_v18  ;;  %v24864_v49 = vadd.f32 %v24840_v63, %v24602_v12  ;;  %v24868_v8 = vadd.f32 %v24840_v63, %v24606_v9  ;;  %v24872_v10 = vadd.f32 %v24840_v63, %v24610_v48 }
 0xb6a   :  { %v24876_v56 = vadd.f32 %v24840_v63, %v24614_v17  ;;  %v24880_v35 = vadd.f32 %v24840_v63, %v24618_v50  ;;  %v24884_v28 = vadd.f32 %v24840_v63, %v24622_v14  ;;  %v24888_v20 = vadd.f32 %v24840_v63, %v24626_v32 }
 0xb6b   :  { %v24892_v18 = vadd.f32 %v24840_v63, %v24630_v11  ;;  %v24896_v12 = vadd.f32 %v24840_v63, %v24634_v0  ;;  %v24900_v9 = vadd.f32 %v24840_v63, %v24638_v1  ;;  %v24904_v48 = vadd.f32 %v24840_v63, %v24642_v42 }
 0xb6c   :  { %v24908_v17 = vadd.f32 %v24840_v63, %v24646_v4  ;;  %v24912_v50 = vadd.f32 %v24840_v63, %v24650_v37  ;;  %v24916_v14 = vadd.f32 %v24840_v63, %v24654_v25  ;;  %v24920_v32 = vadd.f32 %v24840_v63, %v24658_v61 }
 0xb6d   :  { %v24924_v11 = vadd.f32 %v24840_v63, %v24662_v36  ;;  %v24928_v0 = vadd.f32 %v24840_v63, %v24666_v3  ;;  %v24932_v1 = vadd.f32 %v24840_v63, %v24670_v21  ;;  %v24936_v42 = vadd.f32 %v24840_v63, %v24674_v6 }
 0xb6e   :  { %v24940_v4 = vadd.f32 %v24840_v63, %v24678_v31  ;;  %v24944_v37 = vadd.f32 %v24840_v63, %v24682_v52  ;;  %v24948_v25 = vadd.f32 %v24840_v63, %v24686_v19  ;;  %v24952_v61 = vadd.f32 %v24840_v63, %v24690_v7 }
 0xb6f   :  { %v24956_v36 = vadd.f32 %v24840_v63, %v24694_v27  ;;  %v24960_v3 = vadd.f32 %v24840_v63, %v24698_v47  ;;  %v24964_v21 = vadd.f32 %v24840_v63, %v24702_v16  ;;  %v24968_v6 = vadd.f32 %v24840_v63, %v24706_v58 }
 0xb70   :  { %v24972_v31 = vadd.f32 %v24840_v63, %v24710_v29  ;;  %v24976_v52 = vadd.f32 %v24840_v63, %v24714_v54  ;;  %v24980_v19 = vadd.f32 %v24840_v63, %v24718_v59  ;;  %v24984_v7 = vadd.f32 %v24840_v63, %v24722_v62 }
 0xb71   :  { %v24988_v27 = vadd.f32 %v24840_v63, %v24726_v41  ;;  %v24992_v47 = vadd.f32 %v24840_v63, %v24730_v33  ;;  %v24996_v16 = vadd.f32 %v24840_v63, %v24734_v26  ;;  %v25000_v58 = vadd.f32 %v24840_v63, %v24738_v38 }
 0xb72   :  { %26819 = vst [vmem:[#allocation82_spill] sm:$0xff] %v24980_v19  ;;  %26820 = vst [vmem:[#allocation83_spill] sm:$0xff] %v24984_v7  ;;  %v25004_v29 = vadd.f32 %v24840_v63, %v24742_v23  ;;  %v25008_v54 = vadd.f32 %v24840_v63, %v24746_v39  ;;  %v25012_v59 = vadd.f32 %v24840_v63, %v24750_v24  ;;  %v13958_v23 = vld [vmem:[%s25740_s0 + $0x19] sm:$0xff]  ;;  %v13959_v39 = vld [vmem:[%s25740_s0 + $0x21] sm:$0xff] }
 0xb73   :  { %26821 = vst [vmem:[#allocation84_spill] sm:$0xff] %v24988_v27  ;;  %26822 = vst [vmem:[#allocation85_spill] sm:$0xff] %v24992_v47  ;;  %v25016_v62 = vadd.f32 %v24840_v63, %v24754_v46  ;;  %v25020_v41 = vadd.f32 %v24840_v63, %v24758_v57  ;;  %v25024_v33 = vadd.f32 %v24840_v63, %v24762_v45  ;;  %v13960_v24 = vld [vmem:[%s25740_s0 + $0x31] sm:$0xff]  ;;  %v13961_v46 = vld [vmem:[%s25740_s0 + $0x39] sm:$0xff] }
 0xb74   :  { %26823 = vst [vmem:[#allocation86_spill] sm:$0xff] %v24996_v16  ;;  %26824 = vst [vmem:[#allocation87_spill] sm:$0xff] %v25000_v58  ;;  %v25028_v26 = vadd.f32 %v24840_v63, %v24766_v15  ;;  %v25032_v38 = vadd.f32 %v24840_v63, %v24770_v43  ;;  %v26833_v57 = vld [vmem:[#allocation72_spill] sm:$0xff]  ;;  %v26835_v15 = vld [vmem:[#allocation73_spill] sm:$0xff]  ;;  %v25177_v47 = vadd.f32 %v13960_v24, %v24852_v13 }
 0xb75   :  { %26825 = vst [vmem:[#allocation88_spill] sm:$0xff] %v25004_v29  ;;  %26826 = vst [vmem:[#allocation89_spill] sm:$0xff] %v25008_v54  ;;  %v25048_v45 = vadd.f32 %v24840_v63, %v26833_v57  ;;  %v25052_v43 = vadd.f32 %v24840_v63, %v26835_v15  ;;  %v13963_v57 = vld [vmem:[%s25740_s0 + $0x51] sm:$0xff]  ;;  %v13964_v15 = vld [vmem:[%s25740_s0 + $0x61] sm:$0xff]  ;;  %v25180_v27 = vadd.f32 %v13961_v46, %v24856_v51 }
 0xb76   :  { %26827 = vst [vmem:[#allocation90_spill] sm:$0xff] %v25012_v59  ;;  %26828 = vst [vmem:[#allocation91_spill] sm:$0xff] %v25016_v62  ;;  %v26847_v59 = vld [vmem:[#allocation79_spill] sm:$0xff]  ;;  %v13970_v16 = vld [vmem:[%s25740_s0 + $0xa9] sm:$0xff]  ;;  %v25198_v51 = vadd.f32 %v13963_v57, %v24864_v49 }
 0xb77   :  { %26829 = vst [vmem:[#allocation92_spill] sm:$0xff] %v25020_v41  ;;  %26830 = vst [vmem:[#allocation93_spill] sm:$0xff] %v25024_v33  ;;  %v13962_v41 = vld [vmem:[%s25740_s0 + $0x49] sm:$0xff]  ;;  %v25088_v54 = vadd.f32 %v24840_v63, %v26847_v59  ;;  %v13966_v29 = vld [vmem:[%s25740_s0 + $0x79] sm:$0xff] }
 0xb78   :  { %26831 = vst [vmem:[#allocation94_spill] sm:$0xff] %v25028_v26  ;;  %26832 = vst [vmem:[#allocation95_spill] sm:$0xff] %v25032_v38  ;;  %v25056_v38 = vadd.f32 %v24840_v63, %v26837_v34  ;;  %v26839_v26 = vld [vmem:[#allocation75_spill] sm:$0xff]  ;;  %v13965_v34 = vld [vmem:[%s25740_s0 + $0x69] sm:$0xff]  ;;  %v25195_v13 = vadd.f32 %v13962_v41, %v24860_v53 }
 0xb79   :  { %26834 = vst [vmem:[#allocation96_spill] sm:$0xff] %v25048_v45  ;;  %26836 = vst [vmem:[#allocation97_spill] sm:$0xff] %v25052_v43  ;;  %v25060_v33 = vadd.f32 %v24840_v63, %v26839_v26  ;;  %v26845_v45 = vld [vmem:[#allocation78_spill] sm:$0xff]  ;;  %v13982_v7 = vld [vmem:[%s25740_s0 + $0x139] sm:$0xff] }
 0xb7a   :  { %26838 = vst [vmem:[#allocation98_spill] sm:$0xff] %v25056_v38  ;;  %v26841_v38 = vld [vmem:[#allocation76_spill] sm:$0xff]  ;;  %v25084_v62 = vadd.f32 %v24840_v63, %v26845_v45  ;;  %26848 = vst [vmem:[#allocation103_spill] sm:$0xff] %v25088_v54  ;;  %v25108_v54 = vadd.f32 %v24840_v63, %v24810_v40  ;;  %v13986_v24 = vld [vmem:[%s25740_s0 + $0x169] sm:$0xff] }
 0xb7b   :  { %26840 = vst [vmem:[#allocation99_spill] sm:$0xff] %v25060_v33  ;;  %v25076_v26 = vadd.f32 %v24840_v63, %v26841_v38  ;;  %v26843_v33 = vld [vmem:[#allocation77_spill] sm:$0xff]  ;;  %v13969_v45 = vld [vmem:[%s25740_s0 + $0x99] sm:$0xff]  ;;  %v13987_v46 = vld [vmem:[%s25740_s0 + $0x171] sm:$0xff] }
 0xb7c   :  { %v25080_v43 = vadd.f32 %v24840_v63, %v26843_v33  ;;  %26846 = vst [vmem:[#allocation102_spill] sm:$0xff] %v25084_v62  ;;  %v13967_v38 = vld [vmem:[%s25740_s0 + $0x81] sm:$0xff]  ;;  %v13968_v33 = vld [vmem:[%s25740_s0 + $0x91] sm:$0xff]  ;;  %26851 = vst [vmem:[#allocation105_spill] sm:$0xff] %v25108_v54  ;;  %v25144_v54 = vadd.f32 %v24840_v63, %v24834_v55  ;;  %v25228_v57 = vadd.f32 %v13969_v45, %v24888_v20 }
 0xb7d   :  { %26842 = vst [vmem:[#allocation100_spill] sm:$0xff] %v25076_v26  ;;  %v26849_v62 = vld [vmem:[#allocation80_spill] sm:$0xff]  ;;  %v26853_v26 = vld [vmem:[#allocation81_spill] sm:$0xff]  ;;  %v13979_v55 = vld [vmem:[%s25740_s0 + $0x111] sm:$0xff]  ;;  %v25225_v41 = vadd.f32 %v13968_v33, %v24884_v28  ;;  %v25243_v28 = vadd.f32 %v13970_v16, %v24892_v18 }
 0xb7e   :  { %26844 = vst [vmem:[#allocation101_spill] sm:$0xff] %v25080_v43  ;;  %v25104_v59 = vadd.f32 %v24840_v63, %v26849_v62  ;;  %v25112_v43 = vadd.f32 %v24840_v63, %v24814_v22  ;;  %v25116_v58 = vadd.f32 %v24840_v63, %v26853_v26  ;;  %v13971_v62 = vld [vmem:[%s25740_s0 + $0xb1] sm:$0xff]  ;;  %v13972_v40 = vld [vmem:[%s25740_s0 + $0xc1] sm:$0xff]  ;;  %v13973_v22 = vld [vmem:[%s25740_s0 + $0xc9] sm:$0xff]  ;;  %v25132_v26 = vadd.f32 %v24840_v63, %v24822_v44 }
 0xb7f   :  { %26858 = vst [vmem:[#allocation111_spill] sm:$0xff] %v25144_v54  ;;  %v13975_v44 = vld [vmem:[%s25740_s0 + $0xe1] sm:$0xff]  ;;  %v13989_v49 = vld [vmem:[%s25740_s0 + $0x189] sm:$0xff]  ;;  %v25246_v20 = vadd.f32 %v13971_v62, %v24896_v12  ;;  %v13994_v33 = vld [vmem:[%s25740_s0 + $0x1f9] sm:$0xff] }
 0xb80   :  { %26850 = vst [vmem:[#allocation104_spill] sm:$0xff] %v25104_v59  ;;  %26852 = vst [vmem:[#allocation106_spill] sm:$0xff] %v25112_v43  ;;  %v25140_v43 = vadd.f32 %v24840_v63, %v24830_v2  ;;  %v13974_v59 = vld [vmem:[%s25740_s0 + $0xd9] sm:$0xff]  ;;  %v13980_v54 = vld [vmem:[%s25740_s0 + $0x121] sm:$0xff] }
 0xb81   :  { %26854 = vst [vmem:[#allocation107_spill] sm:$0xff] %v25116_v58  ;;  %26855 = vst [vmem:[#allocation108_spill] sm:$0xff] %v25132_v26  ;;  %v25136_v58 = vadd.f32 %v24840_v63, %v24826_v5  ;;  %v13976_v5 = vld [vmem:[%s25740_s0 + $0xf1] sm:$0xff]  ;;  %v13977_v2 = vld [vmem:[%s25740_s0 + $0xf9] sm:$0xff]  ;;  %v25174_v26 = vadd.f32 %v13959_v39, %v24848_v30  ;;  %v25204_v39 = vadd.f32 %v13965_v34, %v24872_v10 }
 0xb82   :  { %26857 = vst [vmem:[#allocation110_spill] sm:$0xff] %v25140_v43  ;;  %v13978_v63 = vld [vmem:[%s25740_s0 + $0x109] sm:$0xff]  ;;  %v13983_v19 = vld [vmem:[%s25740_s0 + $0x141] sm:$0xff]  ;;  %v13985_v30 = vld [vmem:[%s25740_s0 + $0x159] sm:$0xff]  ;;  %v25222_v10 = vadd.f32 %v13967_v38, %v24880_v35  ;;  %v25252_v38 = vadd.f32 %v13973_v22, %v24904_v48  ;;  %v25270_v48 = vadd.f32 %v13975_v44, %v24912_v50  ;;  %v25273_v16 = vadd.f32 %v13976_v5, %v24916_v14 }
 0xb83   :  { %26856 = vst [vmem:[#allocation109_spill] sm:$0xff] %v25136_v58  ;;  %v13981_v43 = vld [vmem:[%s25740_s0 + $0x129] sm:$0xff]  ;;  %v25171_v58 = vadd.f32 %v13958_v23, %v24844_v60  ;;  %v13984_v60 = vld [vmem:[%s25740_s0 + $0x151] sm:$0xff]  ;;  %v25201_v23 = vadd.f32 %v13964_v15, %v24868_v8  ;;  %v13988_v53 = vld [vmem:[%s25740_s0 + $0x181] sm:$0xff]  ;;  %v25219_v8 = vadd.f32 %v13966_v29, %v24876_v56  ;;  %v25249_v29 = vadd.f32 %v13972_v40, %v24900_v9 }
 0xb84   :  { %v13990_v15 = vld [vmem:[%s25740_s0 + $0x1c9] sm:$0xff]  ;;  %v13991_v34 = vld [vmem:[%s25740_s0 + $0x1d1] sm:$0xff]  ;;  %v13992_v56 = vld [vmem:[%s25740_s0 + $0x1e1] sm:$0xff]  ;;  %v25267_v9 = vadd.f32 %v13974_v59, %v24908_v17  ;;  %v25276_v62 = vadd.f32 %v13977_v2, %v24920_v32  ;;  %v25288_v50 = vadd.f32 %v13978_v63, %v24924_v11  ;;  %v25291_v14 = vadd.f32 %v13979_v55, %v24928_v0 }
 0xb85   :  { %v13993_v35 = vld [vmem:[%s25740_s0 + $0x1e9] sm:$0xff]  ;;  %v13995_v45 = vld [vmem:[%s25740_s0 + $0x201] sm:$0xff]  ;;  %v13996_v18 = vld [vmem:[%s25740_s0 + $0x211] sm:$0xff]  ;;  %v25294_v32 = vadd.f32 %v13980_v54, %v24932_v1  ;;  %v25297_v59 = vadd.f32 %v13981_v43, %v24936_v42  ;;  %v25309_v0 = vadd.f32 %v13982_v7, %v24940_v4  ;;  %v25312_v1 = vadd.f32 %v13983_v19, %v24944_v37 }
 0xb86   :  { %v13997_v12 = vld [vmem:[%s25740_s0 + $0x219] sm:$0xff]  ;;  %v13998_v40 = vld [vmem:[%s25740_s0 + $0x229] sm:$0xff]  ;;  %v13999_v22 = vld [vmem:[%s25740_s0 + $0x231] sm:$0xff]  ;;  %v25315_v42 = vadd.f32 %v13984_v60, %v24948_v25  ;;  %v25318_v54 = vadd.f32 %v13985_v30, %v24952_v61  ;;  %v25330_v37 = vadd.f32 %v13986_v24, %v24956_v36  ;;  %v25333_v25 = vadd.f32 %v13987_v46, %v24960_v3 }
 0xb87   :  { %v14000_v17 = vld [vmem:[%s25740_s0 + $0x241] sm:$0xff]  ;;  %v14001_v44 = vld [vmem:[%s25740_s0 + $0x249] sm:$0xff]  ;;  %v14002_v5 = vld [vmem:[%s25740_s0 + $0x259] sm:$0xff]  ;;  %v25336_v61 = vadd.f32 %v13988_v53, %v24964_v21  ;;  %v25339_v19 = vadd.f32 %v13989_v49, %v24968_v6  ;;  %v25351_v3 = vadd.f32 %v13990_v15, %v24972_v31  ;;  %v25354_v21 = vadd.f32 %v13991_v34, %v24976_v52 }
 0xb88   :  { %v14003_v11 = vld [vmem:[%s25740_s0 + $0x261] sm:$0xff]  ;;  %v14004_v43 = vld [vmem:[%s25740_s0 + $0x271] sm:$0xff]  ;;  %v14005_v2 = vld [vmem:[%s25740_s0 + $0x279] sm:$0xff] }
 0xb89   :  { %v14006_v4 = vld [vmem:[%s25740_s0 + $0x289] sm:$0xff]  ;;  %v14007_v7 = vld [vmem:[%s25740_s0 + $0x291] sm:$0xff]  ;;  %v14008_v63 = vld [vmem:[%s25740_s0 + $0x2a1] sm:$0xff] }
 0xb8a   :  { %v14009_v36 = vld [vmem:[%s25740_s0 + $0x2a9] sm:$0xff]  ;;  %v26861_v60 = vld [vmem:[#allocation83_spill] sm:$0xff]  ;;  %v14011_v46 = vld [vmem:[%s25740_s0 + $0x2c1] sm:$0xff] }
 0xb8b   :  { %v26859_v6 = vld [vmem:[#allocation82_spill] sm:$0xff]  ;;  %v25360_v30 = vadd.f32 %v13993_v35, %v26861_v60  ;;  %v14010_v24 = vld [vmem:[%s25740_s0 + $0x2b9] sm:$0xff]  ;;  %v26865_v49 = vld [vmem:[#allocation85_spill] sm:$0xff] }
 0xb8c   :  { %v25357_v55 = vadd.f32 %v13992_v56, %v26859_v6  ;;  %v14012_v31 = vld [vmem:[%s25740_s0 + $0x2d1] sm:$0xff]  ;;  %v26863_v52 = vld [vmem:[#allocation84_spill] sm:$0xff]  ;;  %v25375_v15 = vadd.f32 %v13995_v45, %v26865_v49 }
 0xb8d   :  { %26862 = vst [vmem:[#allocation113_spill] sm:$0xff] %v25360_v30  ;;  %v25372_v53 = vadd.f32 %v13994_v33, %v26863_v52  ;;  %v26867_v34 = vld [vmem:[#allocation86_spill] sm:$0xff]  ;;  %v26869_v35 = vld [vmem:[#allocation87_spill] sm:$0xff]  ;;  %v26871_v45 = vld [vmem:[#allocation88_spill] sm:$0xff] }
 0xb8e   :  { %26860 = vst [vmem:[#allocation112_spill] sm:$0xff] %v25357_v55  ;;  %26866 = vst [vmem:[#allocation115_spill] sm:$0xff] %v25375_v15  ;;  %v25378_v56 = vadd.f32 %v13996_v18, %v26867_v34  ;;  %v25381_v6 = vadd.f32 %v13997_v12, %v26869_v35  ;;  %v14013_v60 = vld [vmem:[%s25740_s0 + $0x2d9] sm:$0xff]  ;;  %v14014_v30 = vld [vmem:[%s25740_s0 + $0x2e9] sm:$0xff]  ;;  %v25393_v52 = vadd.f32 %v13998_v40, %v26871_v45 }
 0xb8f   :  { %26864 = vst [vmem:[#allocation114_spill] sm:$0xff] %v25372_v53  ;;  %v14015_v33 = vld [vmem:[%s25740_s0 + $0x2f1] sm:$0xff]  ;;  %v26873_v18 = vld [vmem:[#allocation89_spill] sm:$0xff]  ;;  %v14018_v40 = vld [vmem:[%s25740_s0 + $0x319] sm:$0xff] }
 0xb90   :  { %26868 = vst [vmem:[#allocation116_spill] sm:$0xff] %v25378_v56  ;;  %26870 = vst [vmem:[#allocation117_spill] sm:$0xff] %v25381_v6  ;;  %v25396_v49 = vadd.f32 %v13999_v22, %v26873_v18  ;;  %v26875_v12 = vld [vmem:[#allocation90_spill] sm:$0xff]  ;;  %v26877_v35 = vld [vmem:[#allocation91_spill] sm:$0xff] }
 0xb91   :  { %26872 = vst [vmem:[#allocation118_spill] sm:$0xff] %v25393_v52  ;;  %v25399_v34 = vadd.f32 %v14000_v17, %v26875_v12  ;;  %v25402_v6 = vadd.f32 %v14001_v44, %v26877_v35  ;;  %v14016_v56 = vld [vmem:[%s25740_s0 + $0x301] sm:$0xff]  ;;  %v14017_v15 = vld [vmem:[%s25740_s0 + $0x309] sm:$0xff]  ;;  %v26885_v35 = vld [vmem:[#allocation95_spill] sm:$0xff] }
 0xb92   :  { %26874 = vst [vmem:[#allocation119_spill] sm:$0xff] %v25396_v49  ;;  %v26879_v22 = vld [vmem:[#allocation92_spill] sm:$0xff]  ;;  %v26881_v17 = vld [vmem:[#allocation93_spill] sm:$0xff]  ;;  %v26883_v44 = vld [vmem:[#allocation94_spill] sm:$0xff] }
 0xb93   :  { %26876 = vst [vmem:[#allocation120_spill] sm:$0xff] %v25399_v34  ;;  %26878 = vst [vmem:[#allocation121_spill] sm:$0xff] %v25402_v6  ;;  %v25414_v45 = vadd.f32 %v14002_v5, %v26879_v22  ;;  %v25417_v18 = vadd.f32 %v14003_v11, %v26881_v17  ;;  %v25420_v12 = vadd.f32 %v14004_v43, %v26883_v44  ;;  %v14019_v34 = vld [vmem:[%s25740_s0 + $0x321] sm:$0xff]  ;;  %v14020_v49 = vld [vmem:[%s25740_s0 + $0x331] sm:$0xff] }
 0xb94   :  { %v25423_v6 = vadd.f32 %v14005_v2, %v26885_v35  ;;  %v14021_v5 = vld [vmem:[%s25740_s0 + $0x339] sm:$0xff]  ;;  %v26888_v43 = vld [vmem:[#allocation97_spill] sm:$0xff]  ;;  %v26889_v2 = vld [vmem:[#allocation98_spill] sm:$0xff] }
 0xb95   :  { %26880 = vst [vmem:[#allocation122_spill] sm:$0xff] %v25414_v45  ;;  %26882 = vst [vmem:[#allocation123_spill] sm:$0xff] %v25417_v18  ;;  %v26887_v11 = vld [vmem:[#allocation96_spill] sm:$0xff]  ;;  %v25438_v17 = vadd.f32 %v14007_v7, %v26888_v43  ;;  %v25441_v44 = vadd.f32 %v14008_v63, %v26889_v2  ;;  %v26890_v35 = vld [vmem:[#allocation99_spill] sm:$0xff] }
 0xb96   :  { %26884 = vst [vmem:[#allocation124_spill] sm:$0xff] %v25420_v12  ;;  %26886 = vst [vmem:[#allocation125_spill] sm:$0xff] %v25423_v6  ;;  %v25435_v22 = vadd.f32 %v14006_v4, %v26887_v11  ;;  %v25444_v6 = vadd.f32 %v14009_v36, %v26890_v35  ;;  %v26891_v12 = vld [vmem:[#allocation100_spill] sm:$0xff]  ;;  %v26892_v45 = vld [vmem:[#allocation101_spill] sm:$0xff] }
 0xb97   :  { %v25447_v18 = vadd.f32 %v14010_v24, %v26891_v12  ;;  %v25450_v52 = vadd.f32 %v14011_v46, %v26892_v45  ;;  %v26893_v53 = vld [vmem:[#allocation102_spill] sm:$0xff]  ;;  %v26894_v4 = vld [vmem:[#allocation103_spill] sm:$0xff]  ;;  %v26895_v7 = vld [vmem:[#allocation104_spill] sm:$0xff] }
 0xb98   :  { %v25453_v55 = vadd.f32 %v14012_v31, %v26893_v53  ;;  %v25456_v11 = vadd.f32 %v14013_v60, %v26894_v4  ;;  %v25459_v43 = vadd.f32 %v14014_v30, %v26895_v7  ;;  %v26896_v63 = vld [vmem:[#allocation105_spill] sm:$0xff]  ;;  %v26897_v36 = vld [vmem:[#allocation106_spill] sm:$0xff]  ;;  %v26898_v24 = vld [vmem:[#allocation107_spill] sm:$0xff] }
 0xb99   :  { %v25462_v2 = vadd.f32 %v14015_v33, %v26896_v63  ;;  %v25465_v35 = vadd.f32 %v14016_v56, %v26897_v36  ;;  %v25468_v12 = vadd.f32 %v14017_v15, %v26898_v24  ;;  %v26899_v46 = vld [vmem:[#allocation108_spill] sm:$0xff]  ;;  %v26900_v31 = vld [vmem:[#allocation109_spill] sm:$0xff]  ;;  %v26901_v60 = vld [vmem:[#allocation110_spill] sm:$0xff]  ;;  %v13186_v33 = vmax.f32 %v25171_v58, 0.0 }
 0xb9a   :  { %v25471_v45 = vadd.f32 %v14018_v40, %v26899_v46  ;;  %v25474_v53 = vadd.f32 %v14019_v34, %v26900_v31  ;;  %v25477_v4 = vadd.f32 %v14020_v49, %v26901_v60  ;;  %v26902_v30 = vld [vmem:[#allocation111_spill] sm:$0xff]  ;;  %v13187_v56 = vmax.f32 %v25174_v26, 0.0  ;;  %v26908_v46 = vld [vmem:[#allocation117_spill] sm:$0xff]  ;;  %v26909_v60 = vld [vmem:[#allocation118_spill] sm:$0xff] }
 0xb9b   :  { %v25480_v7 = vadd.f32 %v14021_v5, %v26902_v30  ;;  %v13188_v63 = vmax.f32 %v25177_v47, 0.0  ;;  %v13189_v15 = vmax.f32 %v25180_v27, 0.0  ;;  %v13190_v40 = vmax.f32 %v25195_v13, 0.0  ;;  %13250 = vst [vmem:[%s25743_s5] sm:$0xff] %v13186_v33  ;;  %v26910_v33 = vld [vmem:[#allocation119_spill] sm:$0xff] }
 0xb9c   :  { %v13191_v36 = vmax.f32 %v25198_v51, 0.0  ;;  %v13192_v34 = vmax.f32 %v25201_v23, 0.0  ;;  %v13193_v49 = vmax.f32 %v25204_v39, 0.0  ;;  %v13194_v24 = vmax.f32 %v25219_v8, 0.0  ;;  %13251 = vst [vmem:[%s25743_s5 + $0x8] sm:$0xff] %v13187_v56 }
 0xb9d   :  { %v13195_v5 = vmax.f32 %v25222_v10, 0.0  ;;  %v13196_v58 = vmax.f32 %v25225_v41, 0.0  ;;  %v13197_v26 = vmax.f32 %v25228_v57, 0.0  ;;  %13252 = vst [vmem:[%s25743_s5 + $0x10] sm:$0xff] %v13188_v63  ;;  %13253 = vst [vmem:[%s25743_s5 + $0x18] sm:$0xff] %v13189_v15  ;;  %v13198_v27 = vmax.f32 %v25243_v28, 0.0 }
 0xb9e   :  { %v13199_v47 = vmax.f32 %v25246_v20, 0.0  ;;  %v13200_v13 = vmax.f32 %v25249_v29, 0.0  ;;  %v13201_v51 = vmax.f32 %v25252_v38, 0.0  ;;  %13254 = vst [vmem:[%s25743_s5 + $0x20] sm:$0xff] %v13190_v40  ;;  %13255 = vst [vmem:[%s25743_s5 + $0x28] sm:$0xff] %v13191_v36  ;;  %v13202_v23 = vmax.f32 %v25267_v9, 0.0 }
 0xb9f   :  { %13256 = vst [vmem:[%s25743_s5 + $0x30] sm:$0xff] %v13192_v34  ;;  %13257 = vst [vmem:[%s25743_s5 + $0x38] sm:$0xff] %v13193_v49  ;;  %v13203_v39 = vmax.f32 %v25270_v48, 0.0  ;;  %v13204_v8 = vmax.f32 %v25273_v16, 0.0  ;;  %v13205_v10 = vmax.f32 %v25276_v62, 0.0  ;;  %v13206_v41 = vmax.f32 %v25288_v50, 0.0 }
 0xba0   :  { %13258 = vst [vmem:[%s25743_s5 + $0x40] sm:$0xff] %v13194_v24  ;;  %13259 = vst [vmem:[%s25743_s5 + $0x48] sm:$0xff] %v13195_v5  ;;  %v13207_v57 = vmax.f32 %v25291_v14, 0.0  ;;  %v13208_v28 = vmax.f32 %v25294_v32, 0.0  ;;  %v13209_v20 = vmax.f32 %v25297_v59, 0.0  ;;  %v13210_v29 = vmax.f32 %v25309_v0, 0.0 }
 0xba1   :  { %13260 = vst [vmem:[%s25743_s5 + $0x50] sm:$0xff] %v13196_v58  ;;  %13261 = vst [vmem:[%s25743_s5 + $0x58] sm:$0xff] %v13197_v26  ;;  %v13211_v38 = vmax.f32 %v25312_v1, 0.0  ;;  %v13212_v9 = vmax.f32 %v25315_v42, 0.0  ;;  %v13213_v48 = vmax.f32 %v25318_v54, 0.0  ;;  %v13214_v16 = vmax.f32 %v25330_v37, 0.0 }
 0xba2   :  { %13262 = vst [vmem:[%s25743_s5 + $0x60] sm:$0xff] %v13198_v27  ;;  %13263 = vst [vmem:[%s25743_s5 + $0x68] sm:$0xff] %v13199_v47  ;;  %v13215_v62 = vmax.f32 %v25333_v25, 0.0  ;;  %v13216_v50 = vmax.f32 %v25336_v61, 0.0  ;;  %v13217_v14 = vmax.f32 %v25339_v19, 0.0  ;;  %v13218_v32 = vmax.f32 %v25351_v3, 0.0 }
 0xba3   :  { %13264 = vst [vmem:[%s25743_s5 + $0x70] sm:$0xff] %v13200_v13  ;;  %13265 = vst [vmem:[%s25743_s5 + $0x78] sm:$0xff] %v13201_v51  ;;  %v13219_v59 = vmax.f32 %v25354_v21, 0.0  ;;  %v26903_v0 = vld [vmem:[#allocation112_spill] sm:$0xff]  ;;  %v26904_v42 = vld [vmem:[#allocation113_spill] sm:$0xff]  ;;  %v13225_v31 = vmax.f32 %v26908_v46, 0.0 }
 0xba4   :  { %13266 = vst [vmem:[%s25743_s5 + $0x80] sm:$0xff] %v13202_v23  ;;  %13267 = vst [vmem:[%s25743_s5 + $0x88] sm:$0xff] %v13203_v39  ;;  %v13220_v1 = vmax.f32 %v26903_v0, 0.0  ;;  %v13221_v54 = vmax.f32 %v26904_v42, 0.0  ;;  %v26905_v37 = vld [vmem:[#allocation114_spill] sm:$0xff]  ;;  %v26906_v61 = vld [vmem:[#allocation115_spill] sm:$0xff] }
 0xba5   :  { %13268 = vst [vmem:[%s25743_s5 + $0x90] sm:$0xff] %v13204_v8  ;;  %13269 = vst [vmem:[%s25743_s5 + $0x98] sm:$0xff] %v13205_v10  ;;  %v13222_v25 = vmax.f32 %v26905_v37, 0.0  ;;  %v13223_v19 = vmax.f32 %v26906_v61, 0.0  ;;  %v26907_v3 = vld [vmem:[#allocation116_spill] sm:$0xff]  ;;  %v13226_v30 = vmax.f32 %v26909_v60, 0.0 }
 0xba6   :  { %13270 = vst [vmem:[%s25743_s5 + $0xa0] sm:$0xff] %v13206_v41  ;;  %13271 = vst [vmem:[%s25743_s5 + $0xa8] sm:$0xff] %v13207_v57  ;;  %v13224_v21 = vmax.f32 %v26907_v3, 0.0  ;;  %v13227_v56 = vmax.f32 %v26910_v33, 0.0  ;;  %v26911_v63 = vld [vmem:[#allocation120_spill] sm:$0xff]  ;;  %v26912_v40 = vld [vmem:[#allocation121_spill] sm:$0xff] }
 0xba7   :  { %13272 = vst [vmem:[%s25743_s5 + $0xb0] sm:$0xff] %v13208_v28  ;;  %13273 = vst [vmem:[%s25743_s5 + $0xb8] sm:$0xff] %v13209_v20  ;;  %v13228_v15 = vmax.f32 %v26911_v63, 0.0  ;;  %v13229_v36 = vmax.f32 %v26912_v40, 0.0  ;;  %v26913_v34 = vld [vmem:[#allocation122_spill] sm:$0xff]  ;;  %v26914_v24 = vld [vmem:[#allocation123_spill] sm:$0xff] }
 0xba8   :  { %13274 = vst [vmem:[%s25743_s5 + $0xc0] sm:$0xff] %v13210_v29  ;;  %13275 = vst [vmem:[%s25743_s5 + $0xc8] sm:$0xff] %v13211_v38  ;;  %v13230_v49 = vmax.f32 %v26913_v34, 0.0  ;;  %v13231_v5 = vmax.f32 %v26914_v24, 0.0  ;;  %v26915_v58 = vld [vmem:[#allocation124_spill] sm:$0xff]  ;;  %v26916_v27 = vld [vmem:[#allocation125_spill] sm:$0xff] }
 0xba9   :  { %13276 = vst [vmem:[%s25743_s5 + $0xd0] sm:$0xff] %v13212_v9  ;;  %13277 = vst [vmem:[%s25743_s5 + $0xd8] sm:$0xff] %v13213_v48  ;;  %v13232_v26 = vmax.f32 %v26915_v58, 0.0  ;;  %v13233_v47 = vmax.f32 %v26916_v27, 0.0  ;;  %v13234_v13 = vmax.f32 %v25435_v22, 0.0  ;;  %v13235_v51 = vmax.f32 %v25438_v17, 0.0 }
 0xbaa   :  { %13278 = vst [vmem:[%s25743_s5 + $0xe0] sm:$0xff] %v13214_v16  ;;  %13279 = vst [vmem:[%s25743_s5 + $0xe8] sm:$0xff] %v13215_v62  ;;  %v13236_v23 = vmax.f32 %v25441_v44, 0.0  ;;  %v13237_v39 = vmax.f32 %v25444_v6, 0.0  ;;  %v13238_v22 = vmax.f32 %v25447_v18, 0.0  ;;  %v13239_v6 = vmax.f32 %v25450_v52, 0.0 }
 0xbab   :  { %13280 = vst [vmem:[%s25743_s5 + $0xf0] sm:$0xff] %v13216_v50  ;;  %13281 = vst [vmem:[%s25743_s5 + $0xf8] sm:$0xff] %v13217_v14  ;;  %v13240_v17 = vmax.f32 %v25453_v55, 0.0  ;;  %v13241_v44 = vmax.f32 %v25456_v11, 0.0  ;;  %v13242_v55 = vmax.f32 %v25459_v43, 0.0  ;;  %v13243_v52 = vmax.f32 %v25462_v2, 0.0 }
 0xbac   :  { %13282 = vst [vmem:[%s25743_s5 + $0x100] sm:$0xff] %v13218_v32  ;;  %13283 = vst [vmem:[%s25743_s5 + $0x108] sm:$0xff] %v13219_v59  ;;  %v13244_v18 = vmax.f32 %v25465_v35, 0.0  ;;  %v13245_v11 = vmax.f32 %v25468_v12, 0.0  ;;  %v13246_v43 = vmax.f32 %v25471_v45, 0.0  ;;  %v13247_v2 = vmax.f32 %v25474_v53, 0.0 }
 0xbad   :  { %13284 = vst [vmem:[%s25743_s5 + $0x110] sm:$0xff] %v13220_v1  ;;  %13285 = vst [vmem:[%s25743_s5 + $0x118] sm:$0xff] %v13221_v54  ;;  %v13248_v35 = vmax.f32 %v25477_v4, 0.0  ;;  %v13249_v12 = vmax.f32 %v25480_v7, 0.0 }
 0xbae   :  { %13286 = vst [vmem:[%s25743_s5 + $0x120] sm:$0xff] %v13222_v25  ;;  %13287 = vst [vmem:[%s25743_s5 + $0x128] sm:$0xff] %v13223_v19 }
 0xbaf   :  { %13288 = vst [vmem:[%s25743_s5 + $0x130] sm:$0xff] %v13224_v21  ;;  %13289 = vst [vmem:[%s25743_s5 + $0x138] sm:$0xff] %v13225_v31 }
 0xbb0   :  { %13290 = vst [vmem:[%s25743_s5 + $0x140] sm:$0xff] %v13226_v30  ;;  %13291 = vst [vmem:[%s25743_s5 + $0x148] sm:$0xff] %v13227_v56 }
 0xbb1   :  { %13292 = vst [vmem:[%s25743_s5 + $0x150] sm:$0xff] %v13228_v15  ;;  %13293 = vst [vmem:[%s25743_s5 + $0x158] sm:$0xff] %v13229_v36 }
 0xbb2   :  { %13294 = vst [vmem:[%s25743_s5 + $0x160] sm:$0xff] %v13230_v49  ;;  %13295 = vst [vmem:[%s25743_s5 + $0x168] sm:$0xff] %v13231_v5 }
 0xbb3   :  { %13296 = vst [vmem:[%s25743_s5 + $0x170] sm:$0xff] %v13232_v26  ;;  %13297 = vst [vmem:[%s25743_s5 + $0x178] sm:$0xff] %v13233_v47 }
 0xbb4   :  { %13298 = vst [vmem:[%s25743_s5 + $0x180] sm:$0xff] %v13234_v13  ;;  %13299 = vst [vmem:[%s25743_s5 + $0x188] sm:$0xff] %v13235_v51 }
 0xbb5   :  { %13300 = vst [vmem:[%s25743_s5 + $0x190] sm:$0xff] %v13236_v23  ;;  %13301 = vst [vmem:[%s25743_s5 + $0x198] sm:$0xff] %v13237_v39 }
 0xbb6   :  { %13302 = vst [vmem:[%s25743_s5 + $0x1a0] sm:$0xff] %v13238_v22  ;;  %13303 = vst [vmem:[%s25743_s5 + $0x1a8] sm:$0xff] %v13239_v6 }
 0xbb7   :  { %13304 = vst [vmem:[%s25743_s5 + $0x1b0] sm:$0xff] %v13240_v17  ;;  %13305 = vst [vmem:[%s25743_s5 + $0x1b8] sm:$0xff] %v13241_v44 }
 0xbb8   :  { %13306 = vst [vmem:[%s25743_s5 + $0x1c0] sm:$0xff] %v13242_v55  ;;  %13307 = vst [vmem:[%s25743_s5 + $0x1c8] sm:$0xff] %v13243_v52 }
 0xbb9   :  { %13308 = vst [vmem:[%s25743_s5 + $0x1d0] sm:$0xff] %v13244_v18  ;;  %13309 = vst [vmem:[%s25743_s5 + $0x1d8] sm:$0xff] %v13245_v11 }
 0xbba   :  { %13310 = vst [vmem:[%s25743_s5 + $0x1e0] sm:$0xff] %v13246_v43  ;;  %13311 = vst [vmem:[%s25743_s5 + $0x1e8] sm:$0xff] %v13247_v2 }
 0xbbb   :  { %13312 = vst [vmem:[%s25743_s5 + $0x1f0] sm:$0xff] %v13248_v35  ;;  %13313 = vst [vmem:[%s25743_s5 + $0x1f8] sm:$0xff] %v13249_v12 }

</bundles_post_ra>
